<compile_context>
chip_gen: v6e
topology: v6e:2x2x1
jax: 0.10.0
libtpu: 0.0.40
codegen_flags: <defaults>
</compile_context>

<pallas_src>
import functools
import math

import jax
import jax.numpy as jnp
from jax.experimental import pallas as pl
from jax.experimental.pallas import tpu as pltpu


# ----------------------------- Pallas kernel ------------------------------- #

def _encoder_layer_kernel(
    # inputs
    xkv_ref,                     # (1, S, H)  full sequence for this batch (bf16)
    mask_ref,                    # (1, 1, S)  additive attention bias (f32)
    wq_ref, bq_ref,              # (H, H) bf16, (1, H) f32
    wk_ref, bk_ref,
    wv_ref, bv_ref,
    wo_ref, bo_ref,
    g1_ref, be1_ref,             # LayerNorm 1 gamma/beta (1, H) f32
    w1_ref, bb1_ref,             # (H, F) bf16, (1, F) f32
    w2_ref, bb2_ref,             # (F, H) bf16, (1, H) f32
    g2_ref, be2_ref,             # LayerNorm 2 gamma/beta (1, H) f32
    # output
    o_ref,                       # (1, TQ, H)
    # scratch (persists across grid steps on a core)
    k_sc,                        # (NH, S,  hd) bf16  per-batch K cache
    v_sc,                        # (NH, S,  hd) bf16  per-batch V cache
    q_sc,                        # (NH, TQ, hd) bf16  per-tile Q (head-major)
    acc_sc,                      # (TQ, H) f32        attention-output accumulator
    *, num_heads: int, eps: float,
):
    qi = pl.program_id(1)
    _, S, H = xkv_ref.shape
    TQ = o_ref.shape[1]
    hd = H // num_heads
    scale = 1.0 / math.sqrt(hd)

    # ---- K/V projections: once per batch (qi == 0), cached in VMEM scratch ----
    @pl.when(qi == 0)
    def _():
        xkv = xkv_ref[0]                                           # (S, H) bf16
        k = jnp.dot(xkv, wk_ref[...],
                    preferred_element_type=jnp.float32) + bk_ref[...]
        v = jnp.dot(xkv, wv_ref[...],
                    preferred_element_type=jnp.float32) + bv_ref[...]
        kb = k.astype(jnp.bfloat16)
        vb = v.astype(jnp.bfloat16)
        for h in range(num_heads):        # static head-major scatter (lane-aligned)
            lo = h * hd
            k_sc[h] = kb[:, lo:lo + hd]
            v_sc[h] = vb[:, lo:lo + hd]

    # ---- Q projection: query tile sliced from the resident (1,S,H) block ----
    q_start = pl.multiple_of(qi * TQ, TQ)
    xq = xkv_ref[0, pl.ds(q_start, TQ), :]                         # (TQ, H) bf16
    q = jnp.dot(xq, wq_ref[...],
                preferred_element_type=jnp.float32) + bq_ref[...]
    q = (q * scale).astype(jnp.bfloat16)        # fold 1/sqrt(hd) once, cast once
    for h in range(num_heads):
        q_sc[h] = q[:, h * hd:(h + 1) * hd]

    mask = mask_ref[0]                                             # (1, S) f32

    # ---- per-head attention + fused per-head output projection ----
    acc_sc[...] = jnp.zeros_like(acc_sc)

    def head_body(h, carry):
        off = pl.multiple_of(h * hd, hd)
        qh = q_sc[h]                                               # (TQ, hd) bf16
        kh = k_sc[h]                                               # (S,  hd) bf16
        vh = v_sc[h]                                               # (S,  hd) bf16
        s = jax.lax.dot_general(                                   # (TQ, S) f32
            qh, kh, (((1,), (1,)), ((), ())),
            preferred_element_type=jnp.float32)
        s = s + mask
        m = jnp.max(s, axis=-1, keepdims=True)
        p = jnp.exp(s - m)
        denom = jnp.sum(p, axis=-1, keepdims=True)
        attn = (p * pl.reciprocal(denom, approx=True)).astype(jnp.bfloat16)
        ctx_h = jnp.dot(attn, vh,
                        preferred_element_type=jnp.float32)        # (TQ, hd) f32
        wo_h = wo_ref[pl.ds(off, hd), :]       # (hd, H) bf16, sublane-aligned slice
        acc_sc[...] = acc_sc[...] + jnp.dot(
            ctx_h.astype(jnp.bfloat16), wo_h,
            preferred_element_type=jnp.float32)
        return carry

    jax.lax.fori_loop(0, num_heads, head_body, 0, unroll=True)

    attn_out = acc_sc[...] + bo_ref[...]

    # ---- residual + LayerNorm 1 (f32 elementwise) ----
    h1 = xq.astype(jnp.float32) + attn_out
    mu1 = jnp.mean(h1, axis=-1, keepdims=True)
    var1 = jnp.mean(jnp.square(h1 - mu1), axis=-1, keepdims=True)
    h1 = (h1 - mu1) * jax.lax.rsqrt(var1 + eps) * g1_ref[...] + be1_ref[...]

    # ---- feed-forward (tanh-approx GELU), bf16 MXU / f32 acc ----
    f = jnp.dot(h1.astype(jnp.bfloat16), w1_ref[...],
                preferred_element_type=jnp.float32) + bb1_ref[...]
    f = jax.nn.gelu(f, approximate=True)
    f = jnp.dot(f.astype(jnp.bfloat16), w2_ref[...],
                preferred_element_type=jnp.float32) + bb2_ref[...]

    # ---- residual + LayerNorm 2 ----
    h2 = h1 + f
    mu2 = jnp.mean(h2, axis=-1, keepdims=True)
    var2 = jnp.mean(jnp.square(h2 - mu2), axis=-1, keepdims=True)
    h2 = (h2 - mu2) * jax.lax.rsqrt(var2 + eps) * g2_ref[...] + be2_ref[...]

    o_ref[0] = h2.astype(o_ref.dtype)


# ------------------------------ JAX wrapper -------------------------------- #

def encoder_layer(x, attn_bias, params, *, num_heads: int, eps: float = 1e-12,
                  tq: int = 128, vmem_limit_bytes: int = 48 * 1024 * 1024):
    """One fused BERT encoder layer.

    x:         (B, S, H) bf16 activations.
    attn_bias: (B, 1, S) f32 additive attention bias (0 keep, -1e9 pad).
    """
    B, S, H = x.shape
    assert H % num_heads == 0
    hd = H // num_heads
    assert hd % 8 == 0, hd
    TQ = min(tq, S)
    assert S % TQ == 0, (S, TQ)
    NQ = S // TQ

    # Full-sequence activation block (resident across query tiles) + mask.
    xkv_spec = pl.BlockSpec((1, S, H), lambda b, qi: (b, 0, 0))
    mask_spec = pl.BlockSpec((1, 1, S), lambda b, qi: (b, 0, 0))

    def const_spec(shape):
        zeros = (0,) * len(shape)
        # Block index never changes -> single-buffer (saves VMEM vs default 2).
        return pl.BlockSpec(shape, lambda b, qi, _z=zeros: _z,
                            pipeline_mode=pl.Buffered(1))

    weight_order = ['wq', 'bq', 'wk', 'bk', 'wv', 'bv', 'wo', 'bo',
                    'g1', 'be1', 'w1', 'bb1', 'w2', 'bb2', 'g2', 'be2']
    weight_args = [params[name] for name in weight_order]
    weight_specs = [const_spec(params[name].shape) for name in weight_order]

    kernel = functools.partial(_encoder_layer_kernel,
                               num_heads=num_heads, eps=eps)

    return pl.pallas_call(
        kernel,
        out_shape=jax.ShapeDtypeStruct((B, S, H), x.dtype),
        grid_spec=pltpu.PrefetchScalarGridSpec(
            num_scalar_prefetch=0,
            grid=(B, NQ),
            in_specs=[xkv_spec, mask_spec] + weight_specs,
            out_specs=pl.BlockSpec((1, TQ, H), lambda b, qi: (b, qi, 0)),
            scratch_shapes=[
                pltpu.VMEM((num_heads, S, hd), jnp.bfloat16),   # K cache
                pltpu.VMEM((num_heads, S, hd), jnp.bfloat16),   # V cache
                pltpu.VMEM((num_heads, TQ, hd), jnp.bfloat16),  # Q (head-major)
                pltpu.VMEM((TQ, H), jnp.float32),               # attn-out acc
            ],
        ),
        compiler_params=pltpu.CompilerParams(
            # b parallel (feeds both v7x TCs), qi MUST be arbitrary for the
            # per-batch K/V scratch cache to be valid.
            dimension_semantics=("parallel", "arbitrary"),
            vmem_limit_bytes=vmem_limit_bytes,
        ),
    )(x, attn_bias, *weight_args)


def init_layer_params(key, hidden, ffn):
    """Matrices bf16 (MXU inputs); biases / LN params f32, lane-major (1, D)."""
    ks = jax.random.split(key, 8)
    s = 0.02

    def w(k, shape):
        return (s * jax.random.normal(k, shape, jnp.float32)).astype(jnp.bfloat16)

    return {
        'wq': w(ks[0], (hidden, hidden)), 'bq': jnp.zeros((1, hidden), jnp.float32),
        'wk': w(ks[1], (hidden, hidden)), 'bk': jnp.zeros((1, hidden), jnp.float32),
        'wv': w(ks[2], (hidden, hidden)), 'bv': jnp.zeros((1, hidden), jnp.float32),
        'wo': w(ks[3], (hidden, hidden)), 'bo': jnp.zeros((1, hidden), jnp.float32),
        'g1': jnp.ones((1, hidden), jnp.float32),
        'be1': jnp.zeros((1, hidden), jnp.float32),
        'w1': w(ks[4], (hidden, ffn)), 'bb1': jnp.zeros((1, ffn), jnp.float32),
        'w2': w(ks[5], (ffn, hidden)), 'bb2': jnp.zeros((1, hidden), jnp.float32),
        'g2': jnp.ones((1, hidden), jnp.float32),
        'be2': jnp.zeros((1, hidden), jnp.float32),
    }


def base_model_forward(x, attention_mask, layer_params_list, permutation, *,
                       num_heads):
    """Mirrors BaseModels: run encoder.layer in (possibly permuted) order."""
    # Additive attention bias from the 0/1 mask (padded tokens -> -1e9).
    attn_bias = jnp.where(attention_mask > 0, 0.0, -1e9).astype(jnp.float32)
    # _add_permutate_layers: select layers by permutation (client/server rank).
    for i in permutation:
        assert i < len(layer_params_list), permutation
        x = encoder_layer(x, attn_bias, layer_params_list[i],
                          num_heads=num_heads)
    return x


# --------------------------------- main ------------------------------------ #

if __name__ == "__main__":
    # Small but TPU-aligned demo config: head_dim = 128, S/H multiples of 128.
    B, S, H, F, NH = 2, 256, 256, 512, 2
    NUM_LAYERS = 4
    # rank > 0 -> "client_model_layers" style permutation of the encoder stack.
    permutation = [2, 0, 3, 1]

    key = jax.random.PRNGKey(0)
    kx, *kls = jax.random.split(key, NUM_LAYERS + 1)

    x = jax.random.normal(kx, (B, S, H), jnp.float32).astype(jnp.bfloat16)
    attention_mask = jnp.ones((B, 1, S), jnp.float32)      # no padding in demo
    layer_params = [init_layer_params(k, H, F) for k in kls]

    out = base_model_forward(x, attention_mask, layer_params, permutation,
                             num_heads=NH)
    out = jax.block_until_ready(out)
    assert out.shape == (B, S, H) and bool(jnp.all(jnp.isfinite(
        out.astype(jnp.float32))))
    print("KERNEL_OK")
</pallas_src>

<mosaic_0001>
module attributes {stable_mosaic.version = 11 : i64} {
  func.func @_encoder_layer_kernel(%arg0: i32, %arg1: i32, %arg2: memref<1x256x256xbf16, #tpu.memory_space<vmem>>, %arg3: memref<1x1x256xf32, #tpu.memory_space<vmem>>, %arg4: memref<256x256xbf16, #tpu.memory_space<vmem>>, %arg5: memref<1x256xf32, #tpu.memory_space<vmem>>, %arg6: memref<256x256xbf16, #tpu.memory_space<vmem>>, %arg7: memref<1x256xf32, #tpu.memory_space<vmem>>, %arg8: memref<256x256xbf16, #tpu.memory_space<vmem>>, %arg9: memref<1x256xf32, #tpu.memory_space<vmem>>, %arg10: memref<256x256xbf16, #tpu.memory_space<vmem>>, %arg11: memref<1x256xf32, #tpu.memory_space<vmem>>, %arg12: memref<1x256xf32, #tpu.memory_space<vmem>>, %arg13: memref<1x256xf32, #tpu.memory_space<vmem>>, %arg14: memref<256x512xbf16, #tpu.memory_space<vmem>>, %arg15: memref<1x512xf32, #tpu.memory_space<vmem>>, %arg16: memref<512x256xbf16, #tpu.memory_space<vmem>>, %arg17: memref<1x256xf32, #tpu.memory_space<vmem>>, %arg18: memref<1x256xf32, #tpu.memory_space<vmem>>, %arg19: memref<1x256xf32, #tpu.memory_space<vmem>>, %arg20: memref<1x128x256xbf16, #tpu.memory_space<vmem>>, %arg21: memref<2x256x128xbf16, #tpu.memory_space<vmem>>, %arg22: memref<2x256x128xbf16, #tpu.memory_space<vmem>>, %arg23: memref<2x128x128xbf16, #tpu.memory_space<vmem>>, %arg24: memref<128x256xf32, #tpu.memory_space<vmem>>) attributes {dimension_semantics = [#tpu.dimension_semantics<parallel>, #tpu.dimension_semantics<arbitrary>], iteration_bounds = array<i64: 2, 2>, scalar_prefetch = 0 : i64, scratch_operands = 4 : i64, tpu.core_type = #tpu.core_type<tc>, window_params = [{transform_indices = @transform_0, window_bounds = array<i64: 1, 256, 256>}, {transform_indices = @transform_1, window_bounds = array<i64: 1, 1, 256>}, {pipeline_mode = #tpu.pipeline_mode<synchronous>, transform_indices = @transform_2, window_bounds = array<i64: 256, 256>}, {pipeline_mode = #tpu.pipeline_mode<synchronous>, transform_indices = @transform_3, window_bounds = array<i64: 1, 256>}, {pipeline_mode = #tpu.pipeline_mode<synchronous>, transform_indices = @transform_4, window_bounds = array<i64: 256, 256>}, {pipeline_mode = #tpu.pipeline_mode<synchronous>, transform_indices = @transform_5, window_bounds = array<i64: 1, 256>}, {pipeline_mode = #tpu.pipeline_mode<synchronous>, transform_indices = @transform_6, window_bounds = array<i64: 256, 256>}, {pipeline_mode = #tpu.pipeline_mode<synchronous>, transform_indices = @transform_7, window_bounds = array<i64: 1, 256>}, {pipeline_mode = #tpu.pipeline_mode<synchronous>, transform_indices = @transform_8, window_bounds = array<i64: 256, 256>}, {pipeline_mode = #tpu.pipeline_mode<synchronous>, transform_indices = @transform_9, window_bounds = array<i64: 1, 256>}, {pipeline_mode = #tpu.pipeline_mode<synchronous>, transform_indices = @transform_10, window_bounds = array<i64: 1, 256>}, {pipeline_mode = #tpu.pipeline_mode<synchronous>, transform_indices = @transform_11, window_bounds = array<i64: 1, 256>}, {pipeline_mode = #tpu.pipeline_mode<synchronous>, transform_indices = @transform_12, window_bounds = array<i64: 256, 512>}, {pipeline_mode = #tpu.pipeline_mode<synchronous>, transform_indices = @transform_13, window_bounds = array<i64: 1, 512>}, {pipeline_mode = #tpu.pipeline_mode<synchronous>, transform_indices = @transform_14, window_bounds = array<i64: 512, 256>}, {pipeline_mode = #tpu.pipeline_mode<synchronous>, transform_indices = @transform_15, window_bounds = array<i64: 1, 256>}, {pipeline_mode = #tpu.pipeline_mode<synchronous>, transform_indices = @transform_16, window_bounds = array<i64: 1, 256>}, {pipeline_mode = #tpu.pipeline_mode<synchronous>, transform_indices = @transform_17, window_bounds = array<i64: 1, 256>}, {transform_indices = @transform_18, window_bounds = array<i64: 1, 128, 256>}]} {
    %c0_i32 = arith.constant 0 : i32
    %0 = arith.cmpi eq, %arg1, %c0_i32 : i32
    %1 = arith.extui %0 : i1 to i32
    %c0_i32_0 = arith.constant 0 : i32
    %2 = arith.cmpi ne, %1, %c0_i32_0 : i32
    scf.if %2 {
      %c0_92 = arith.constant 0 : index
      %c0_93 = arith.constant 0 : index
      %c0_94 = arith.constant 0 : index
      %178 = vector.load %arg2[%c0_92, %c0_93, %c0_94] : memref<1x256x256xbf16, #tpu.memory_space<vmem>>, vector<1x256x256xbf16>
      %179 = vector.shape_cast %178 : vector<1x256x256xbf16> to vector<256x256xbf16>
      %c0_95 = arith.constant 0 : index
      %c0_96 = arith.constant 0 : index
      %180 = vector.load %arg6[%c0_95, %c0_96] : memref<256x256xbf16, #tpu.memory_space<vmem>>, vector<256x256xbf16>
      %cst_97 = arith.constant dense<0.000000e+00> : vector<256x256xf32>
      %181 = tpu.matmul %179, %180, %cst_97 {dimension_numbers = #tpu.dot_dimension_numbers<[1], [0], [0], [1], [0, 0, 1, 1], [], []>} : vector<256x256xbf16>, vector<256x256xbf16>, vector<256x256xf32> -> vector<256x256xf32>
      %c0_98 = arith.constant 0 : index
      %c0_99 = arith.constant 0 : index
      %182 = vector.load %arg7[%c0_98, %c0_99] : memref<1x256xf32, #tpu.memory_space<vmem>>, vector<1x256xf32>
      %183 = vector.broadcast %182 : vector<1x256xf32> to vector<256x256xf32>
      %184 = arith.addf %181, %183 : vector<256x256xf32>
      %c0_100 = arith.constant 0 : index
      %c0_101 = arith.constant 0 : index
      %185 = vector.load %arg8[%c0_100, %c0_101] : memref<256x256xbf16, #tpu.memory_space<vmem>>, vector<256x256xbf16>
      %cst_102 = arith.constant dense<0.000000e+00> : vector<256x256xf32>
      %186 = tpu.matmul %179, %185, %cst_102 {dimension_numbers = #tpu.dot_dimension_numbers<[1], [0], [0], [1], [0, 0, 1, 1], [], []>} : vector<256x256xbf16>, vector<256x256xbf16>, vector<256x256xf32> -> vector<256x256xf32>
      %c0_103 = arith.constant 0 : index
      %c0_104 = arith.constant 0 : index
      %187 = vector.load %arg9[%c0_103, %c0_104] : memref<1x256xf32, #tpu.memory_space<vmem>>, vector<1x256xf32>
      %188 = vector.broadcast %187 : vector<1x256xf32> to vector<256x256xf32>
      %189 = arith.addf %186, %188 : vector<256x256xf32>
      %190 = arith.truncf %184 : vector<256x256xf32> to vector<256x256xbf16>
      %191 = arith.truncf %189 : vector<256x256xf32> to vector<256x256xbf16>
      %192 = vector.extract_strided_slice %190 {offsets = [0, 0], sizes = [256, 128], strides = [1, 1]} : vector<256x256xbf16> to vector<256x128xbf16>
      %c0_105 = arith.constant 0 : index
      %c0_106 = arith.constant 0 : index
      %c0_107 = arith.constant 0 : index
      %193 = vector.load %arg21[%c0_105, %c0_106, %c0_107] : memref<2x256x128xbf16, #tpu.memory_space<vmem>>, vector<1x256x128xbf16>
      %194 = vector.shape_cast %193 : vector<1x256x128xbf16> to vector<256x128xbf16>
      %195 = vector.shape_cast %192 : vector<256x128xbf16> to vector<1x256x128xbf16>
      tpu.vector_store %arg21[%c0_105, %c0_106, %c0_107], %195 {strides = array<i32>} : memref<2x256x128xbf16, #tpu.memory_space<vmem>>, vector<1x256x128xbf16>,
      %196 = vector.extract_strided_slice %191 {offsets = [0, 0], sizes = [256, 128], strides = [1, 1]} : vector<256x256xbf16> to vector<256x128xbf16>
      %c0_108 = arith.constant 0 : index
      %c0_109 = arith.constant 0 : index
      %c0_110 = arith.constant 0 : index
      %197 = vector.load %arg22[%c0_108, %c0_109, %c0_110] : memref<2x256x128xbf16, #tpu.memory_space<vmem>>, vector<1x256x128xbf16>
      %198 = vector.shape_cast %197 : vector<1x256x128xbf16> to vector<256x128xbf16>
      %199 = vector.shape_cast %196 : vector<256x128xbf16> to vector<1x256x128xbf16>
      tpu.vector_store %arg22[%c0_108, %c0_109, %c0_110], %199 {strides = array<i32>} : memref<2x256x128xbf16, #tpu.memory_space<vmem>>, vector<1x256x128xbf16>,
      %200 = vector.extract_strided_slice %190 {offsets = [0, 128], sizes = [256, 128], strides = [1, 1]} : vector<256x256xbf16> to vector<256x128xbf16>
      %c1_111 = arith.constant 1 : index
      %c0_112 = arith.constant 0 : index
      %c0_113 = arith.constant 0 : index
      %201 = vector.load %arg21[%c1_111, %c0_112, %c0_113] : memref<2x256x128xbf16, #tpu.memory_space<vmem>>, vector<1x256x128xbf16>
      %202 = vector.shape_cast %201 : vector<1x256x128xbf16> to vector<256x128xbf16>
      %203 = vector.shape_cast %200 : vector<256x128xbf16> to vector<1x256x128xbf16>
      tpu.vector_store %arg21[%c1_111, %c0_112, %c0_113], %203 {strides = array<i32>} : memref<2x256x128xbf16, #tpu.memory_space<vmem>>, vector<1x256x128xbf16>,
      %204 = vector.extract_strided_slice %191 {offsets = [0, 128], sizes = [256, 128], strides = [1, 1]} : vector<256x256xbf16> to vector<256x128xbf16>
      %c1_114 = arith.constant 1 : index
      %c0_115 = arith.constant 0 : index
      %c0_116 = arith.constant 0 : index
      %205 = vector.load %arg22[%c1_114, %c0_115, %c0_116] : memref<2x256x128xbf16, #tpu.memory_space<vmem>>, vector<1x256x128xbf16>
      %206 = vector.shape_cast %205 : vector<1x256x128xbf16> to vector<256x128xbf16>
      %207 = vector.shape_cast %204 : vector<256x128xbf16> to vector<1x256x128xbf16>
      tpu.vector_store %arg22[%c1_114, %c0_115, %c0_116], %207 {strides = array<i32>} : memref<2x256x128xbf16, #tpu.memory_space<vmem>>, vector<1x256x128xbf16>,
    } else {
    }
    %c128_i32 = arith.constant 128 : i32
    %3 = arith.muli %arg1, %c128_i32 : i32
    %4 = tpu.assume_multiple %3, 128 : i32
    %c0 = arith.constant 0 : index
    %5 = arith.index_cast %4 : i32 to index
    %c0_1 = arith.constant 0 : index
    %6 = vector.load %arg2[%c0, %5, %c0_1] : memref<1x256x256xbf16, #tpu.memory_space<vmem>>, vector<1x128x256xbf16>
    %7 = vector.shape_cast %6 : vector<1x128x256xbf16> to vector<128x256xbf16>
    %c0_2 = arith.constant 0 : index
    %c0_3 = arith.constant 0 : index
    %8 = vector.load %arg4[%c0_2, %c0_3] : memref<256x256xbf16, #tpu.memory_space<vmem>>, vector<256x256xbf16>
    %cst = arith.constant dense<0.000000e+00> : vector<128x256xf32>
    %9 = tpu.matmul %7, %8, %cst {dimension_numbers = #tpu.dot_dimension_numbers<[1], [0], [0], [1], [0, 0, 1, 1], [], []>} : vector<128x256xbf16>, vector<256x256xbf16>, vector<128x256xf32> -> vector<128x256xf32>
    %c0_4 = arith.constant 0 : index
    %c0_5 = arith.constant 0 : index
    %10 = vector.load %arg5[%c0_4, %c0_5] : memref<1x256xf32, #tpu.memory_space<vmem>>, vector<1x256xf32>
    %11 = vector.broadcast %10 : vector<1x256xf32> to vector<128x256xf32>
    %12 = arith.addf %9, %11 : vector<128x256xf32>
    %cst_6 = arith.constant 0.0883883461 : f32
    %13 = vector.broadcast %cst_6 : f32 to vector<128x256xf32>
    %14 = arith.mulf %12, %13 : vector<128x256xf32>
    %15 = arith.truncf %14 : vector<128x256xf32> to vector<128x256xbf16>
    %16 = vector.extract_strided_slice %15 {offsets = [0, 0], sizes = [128, 128], strides = [1, 1]} : vector<128x256xbf16> to vector<128x128xbf16>
    %c0_7 = arith.constant 0 : index
    %c0_8 = arith.constant 0 : index
    %c0_9 = arith.constant 0 : index
    %17 = vector.load %arg23[%c0_7, %c0_8, %c0_9] : memref<2x128x128xbf16, #tpu.memory_space<vmem>>, vector<1x128x128xbf16>
    %18 = vector.shape_cast %17 : vector<1x128x128xbf16> to vector<128x128xbf16>
    %19 = vector.shape_cast %16 : vector<128x128xbf16> to vector<1x128x128xbf16>
    tpu.vector_store %arg23[%c0_7, %c0_8, %c0_9], %19 {strides = array<i32>} : memref<2x128x128xbf16, #tpu.memory_space<vmem>>, vector<1x128x128xbf16>,
    %20 = vector.extract_strided_slice %15 {offsets = [0, 128], sizes = [128, 128], strides = [1, 1]} : vector<128x256xbf16> to vector<128x128xbf16>
    %c1 = arith.constant 1 : index
    %c0_10 = arith.constant 0 : index
    %c0_11 = arith.constant 0 : index
    %21 = vector.load %arg23[%c1, %c0_10, %c0_11] : memref<2x128x128xbf16, #tpu.memory_space<vmem>>, vector<1x128x128xbf16>
    %22 = vector.shape_cast %21 : vector<1x128x128xbf16> to vector<128x128xbf16>
    %23 = vector.shape_cast %20 : vector<128x128xbf16> to vector<1x128x128xbf16>
    tpu.vector_store %arg23[%c1, %c0_10, %c0_11], %23 {strides = array<i32>} : memref<2x128x128xbf16, #tpu.memory_space<vmem>>, vector<1x128x128xbf16>,
    %c0_12 = arith.constant 0 : index
    %c0_13 = arith.constant 0 : index
    %c0_14 = arith.constant 0 : index
    %24 = vector.load %arg3[%c0_12, %c0_13, %c0_14] : memref<1x1x256xf32, #tpu.memory_space<vmem>>, vector<1x1x256xf32>
    %25 = vector.shape_cast %24 : vector<1x1x256xf32> to vector<1x256xf32>
    %cst_15 = arith.constant 0.000000e+00 : f32
    %26 = vector.broadcast %cst_15 : f32 to vector<128x256xf32>
    %c0_16 = arith.constant 0 : index
    %c0_17 = arith.constant 0 : index
    %27 = vector.load %arg24[%c0_16, %c0_17] : memref<128x256xf32, #tpu.memory_space<vmem>>, vector<128x256xf32>
    tpu.vector_store %arg24[%c0_16, %c0_17], %26 {strides = array<i32>} : memref<128x256xf32, #tpu.memory_space<vmem>>, vector<128x256xf32>,
    %c0_i32_18 = arith.constant 0 : i32
    %c128_i32_19 = arith.constant 128 : i32
    %28 = arith.muli %c0_i32_18, %c128_i32_19 : i32
    %29 = tpu.assume_multiple %28, 128 : i32
    %30 = arith.index_cast %c0_i32_18 : i32 to index
    %c0_20 = arith.constant 0 : index
    %c0_21 = arith.constant 0 : index
    %31 = vector.load %arg23[%30, %c0_20, %c0_21] : memref<2x128x128xbf16, #tpu.memory_space<vmem>>, vector<1x128x128xbf16>
    %32 = vector.shape_cast %31 : vector<1x128x128xbf16> to vector<128x128xbf16>
    %33 = arith.index_cast %c0_i32_18 : i32 to index
    %c0_22 = arith.constant 0 : index
    %c0_23 = arith.constant 0 : index
    %34 = vector.load %arg21[%33, %c0_22, %c0_23] : memref<2x256x128xbf16, #tpu.memory_space<vmem>>, vector<1x256x128xbf16>
    %35 = vector.shape_cast %34 : vector<1x256x128xbf16> to vector<256x128xbf16>
    %36 = arith.index_cast %c0_i32_18 : i32 to index
    %c0_24 = arith.constant 0 : index
    %c0_25 = arith.constant 0 : index
    %37 = vector.load %arg22[%36, %c0_24, %c0_25] : memref<2x256x128xbf16, #tpu.memory_space<vmem>>, vector<1x256x128xbf16>
    %38 = vector.shape_cast %37 : vector<1x256x128xbf16> to vector<256x128xbf16>
    %cst_26 = arith.constant dense<0.000000e+00> : vector<128x256xf32>
    %39 = tpu.matmul %32, %35, %cst_26 {dimension_numbers = #tpu.dot_dimension_numbers<[1], [1], [0], [0], [0, 0, 1, 0], [], []>} : vector<128x128xbf16>, vector<256x128xbf16>, vector<128x256xf32> -> vector<128x256xf32>
    %40 = vector.broadcast %25 : vector<1x256xf32> to vector<128x256xf32>
    %41 = arith.addf %39, %40 : vector<128x256xf32>
    %cst_27 = arith.constant dense<0xFF800000> : vector<128xf32>
    %42 = vector.multi_reduction <maximumf>, %41, %cst_27 [1] : vector<128x256xf32> to vector<128xf32>
    %43 = vector.shape_cast %42 : vector<128xf32> to vector<128x1xf32>
    %44 = vector.broadcast %43 : vector<128x1xf32> to vector<128x256xf32>
    %45 = arith.subf %41, %44 : vector<128x256xf32>
    %46 = math.exp %45 : vector<128x256xf32>
    %cst_28 = arith.constant dense<0.000000e+00> : vector<128xf32>
    %47 = vector.multi_reduction <add>, %46, %cst_28 [1] : vector<128x256xf32> to vector<128xf32>
    %48 = vector.shape_cast %47 : vector<128xf32> to vector<128x1xf32>
    %49 = tpu.reciprocal %48 {approx = true} : vector<128x1xf32> -> vector<128x1xf32>
    %50 = vector.broadcast %49 : vector<128x1xf32> to vector<128x256xf32>
    %51 = arith.mulf %46, %50 : vector<128x256xf32>
    %52 = arith.truncf %51 : vector<128x256xf32> to vector<128x256xbf16>
    %cst_29 = arith.constant dense<0.000000e+00> : vector<128x128xf32>
    %53 = tpu.matmul %52, %38, %cst_29 {dimension_numbers = #tpu.dot_dimension_numbers<[1], [0], [0], [1], [0, 0, 1, 1], [], []>} : vector<128x256xbf16>, vector<256x128xbf16>, vector<128x128xf32> -> vector<128x128xf32>
    %54 = arith.index_cast %29 : i32 to index
    %c0_30 = arith.constant 0 : index
    %55 = vector.load %arg10[%54, %c0_30] : memref<256x256xbf16, #tpu.memory_space<vmem>>, vector<128x256xbf16>
    %c0_31 = arith.constant 0 : index
    %c0_32 = arith.constant 0 : index
    %56 = vector.load %arg24[%c0_31, %c0_32] : memref<128x256xf32, #tpu.memory_space<vmem>>, vector<128x256xf32>
    %57 = arith.truncf %53 : vector<128x128xf32> to vector<128x128xbf16>
    %cst_33 = arith.constant dense<0.000000e+00> : vector<128x256xf32>
    %58 = tpu.matmul %57, %55, %cst_33 {dimension_numbers = #tpu.dot_dimension_numbers<[1], [0], [0], [1], [0, 0, 1, 1], [], []>} : vector<128x128xbf16>, vector<128x256xbf16>, vector<128x256xf32> -> vector<128x256xf32>
    %59 = arith.addf %56, %58 : vector<128x256xf32>
    %c0_34 = arith.constant 0 : index
    %c0_35 = arith.constant 0 : index
    %60 = vector.load %arg24[%c0_34, %c0_35] : memref<128x256xf32, #tpu.memory_space<vmem>>, vector<128x256xf32>
    tpu.vector_store %arg24[%c0_34, %c0_35], %59 {strides = array<i32>} : memref<128x256xf32, #tpu.memory_space<vmem>>, vector<128x256xf32>,
    %c1_i32 = arith.constant 1 : i32
    %c128_i32_36 = arith.constant 128 : i32
    %61 = arith.muli %c1_i32, %c128_i32_36 : i32
    %62 = tpu.assume_multiple %61, 128 : i32
    %63 = arith.index_cast %c1_i32 : i32 to index
    %c0_37 = arith.constant 0 : index
    %c0_38 = arith.constant 0 : index
    %64 = vector.load %arg23[%63, %c0_37, %c0_38] : memref<2x128x128xbf16, #tpu.memory_space<vmem>>, vector<1x128x128xbf16>
    %65 = vector.shape_cast %64 : vector<1x128x128xbf16> to vector<128x128xbf16>
    %66 = arith.index_cast %c1_i32 : i32 to index
    %c0_39 = arith.constant 0 : index
    %c0_40 = arith.constant 0 : index
    %67 = vector.load %arg21[%66, %c0_39, %c0_40] : memref<2x256x128xbf16, #tpu.memory_space<vmem>>, vector<1x256x128xbf16>
    %68 = vector.shape_cast %67 : vector<1x256x128xbf16> to vector<256x128xbf16>
    %69 = arith.index_cast %c1_i32 : i32 to index
    %c0_41 = arith.constant 0 : index
    %c0_42 = arith.constant 0 : index
    %70 = vector.load %arg22[%69, %c0_41, %c0_42] : memref<2x256x128xbf16, #tpu.memory_space<vmem>>, vector<1x256x128xbf16>
    %71 = vector.shape_cast %70 : vector<1x256x128xbf16> to vector<256x128xbf16>
    %cst_43 = arith.constant dense<0.000000e+00> : vector<128x256xf32>
    %72 = tpu.matmul %65, %68, %cst_43 {dimension_numbers = #tpu.dot_dimension_numbers<[1], [1], [0], [0], [0, 0, 1, 0], [], []>} : vector<128x128xbf16>, vector<256x128xbf16>, vector<128x256xf32> -> vector<128x256xf32>
    %73 = vector.broadcast %25 : vector<1x256xf32> to vector<128x256xf32>
    %74 = arith.addf %72, %73 : vector<128x256xf32>
    %cst_44 = arith.constant dense<0xFF800000> : vector<128xf32>
    %75 = vector.multi_reduction <maximumf>, %74, %cst_44 [1] : vector<128x256xf32> to vector<128xf32>
    %76 = vector.shape_cast %75 : vector<128xf32> to vector<128x1xf32>
    %77 = vector.broadcast %76 : vector<128x1xf32> to vector<128x256xf32>
    %78 = arith.subf %74, %77 : vector<128x256xf32>
    %79 = math.exp %78 : vector<128x256xf32>
    %cst_45 = arith.constant dense<0.000000e+00> : vector<128xf32>
    %80 = vector.multi_reduction <add>, %79, %cst_45 [1] : vector<128x256xf32> to vector<128xf32>
    %81 = vector.shape_cast %80 : vector<128xf32> to vector<128x1xf32>
    %82 = tpu.reciprocal %81 {approx = true} : vector<128x1xf32> -> vector<128x1xf32>
    %83 = vector.broadcast %82 : vector<128x1xf32> to vector<128x256xf32>
    %84 = arith.mulf %79, %83 : vector<128x256xf32>
    %85 = arith.truncf %84 : vector<128x256xf32> to vector<128x256xbf16>
    %cst_46 = arith.constant dense<0.000000e+00> : vector<128x128xf32>
    %86 = tpu.matmul %85, %71, %cst_46 {dimension_numbers = #tpu.dot_dimension_numbers<[1], [0], [0], [1], [0, 0, 1, 1], [], []>} : vector<128x256xbf16>, vector<256x128xbf16>, vector<128x128xf32> -> vector<128x128xf32>
    %87 = arith.index_cast %62 : i32 to index
    %c0_47 = arith.constant 0 : index
    %88 = vector.load %arg10[%87, %c0_47] : memref<256x256xbf16, #tpu.memory_space<vmem>>, vector<128x256xbf16>
    %c0_48 = arith.constant 0 : index
    %c0_49 = arith.constant 0 : index
    %89 = vector.load %arg24[%c0_48, %c0_49] : memref<128x256xf32, #tpu.memory_space<vmem>>, vector<128x256xf32>
    %90 = arith.truncf %86 : vector<128x128xf32> to vector<128x128xbf16>
    %cst_50 = arith.constant dense<0.000000e+00> : vector<128x256xf32>
    %91 = tpu.matmul %90, %88, %cst_50 {dimension_numbers = #tpu.dot_dimension_numbers<[1], [0], [0], [1], [0, 0, 1, 1], [], []>} : vector<128x128xbf16>, vector<128x256xbf16>, vector<128x256xf32> -> vector<128x256xf32>
    %92 = arith.addf %89, %91 : vector<128x256xf32>
    %c0_51 = arith.constant 0 : index
    %c0_52 = arith.constant 0 : index
    %93 = vector.load %arg24[%c0_51, %c0_52] : memref<128x256xf32, #tpu.memory_space<vmem>>, vector<128x256xf32>
    tpu.vector_store %arg24[%c0_51, %c0_52], %92 {strides = array<i32>} : memref<128x256xf32, #tpu.memory_space<vmem>>, vector<128x256xf32>,
    %c2_i32 = arith.constant 2 : i32
    %c0_53 = arith.constant 0 : index
    %c0_54 = arith.constant 0 : index
    %94 = vector.load %arg24[%c0_53, %c0_54] : memref<128x256xf32, #tpu.memory_space<vmem>>, vector<128x256xf32>
    %c0_55 = arith.constant 0 : index
    %c0_56 = arith.constant 0 : index
    %95 = vector.load %arg11[%c0_55, %c0_56] : memref<1x256xf32, #tpu.memory_space<vmem>>, vector<1x256xf32>
    %96 = vector.broadcast %95 : vector<1x256xf32> to vector<128x256xf32>
    %97 = arith.addf %94, %96 : vector<128x256xf32>
    %98 = arith.extf %7 : vector<128x256xbf16> to vector<128x256xf32>
    %99 = arith.addf %98, %97 : vector<128x256xf32>
    %cst_57 = arith.constant dense<0.000000e+00> : vector<128xf32>
    %100 = vector.multi_reduction <add>, %99, %cst_57 [1] : vector<128x256xf32> to vector<128xf32>
    %101 = vector.shape_cast %100 : vector<128xf32> to vector<128x1xf32>
    %cst_58 = arith.constant 2.560000e+02 : f32
    %102 = vector.broadcast %cst_58 : f32 to vector<128x1xf32>
    %103 = arith.divf %101, %102 : vector<128x1xf32>
    %104 = vector.broadcast %103 : vector<128x1xf32> to vector<128x256xf32>
    %105 = arith.subf %99, %104 : vector<128x256xf32>
    %106 = arith.mulf %105, %105 : vector<128x256xf32>
    %cst_59 = arith.constant dense<0.000000e+00> : vector<128xf32>
    %107 = vector.multi_reduction <add>, %106, %cst_59 [1] : vector<128x256xf32> to vector<128xf32>
    %108 = vector.shape_cast %107 : vector<128xf32> to vector<128x1xf32>
    %cst_60 = arith.constant 2.560000e+02 : f32
    %109 = vector.broadcast %cst_60 : f32 to vector<128x1xf32>
    %110 = arith.divf %108, %109 : vector<128x1xf32>
    %111 = vector.broadcast %103 : vector<128x1xf32> to vector<128x256xf32>
    %112 = arith.subf %99, %111 : vector<128x256xf32>
    %cst_61 = arith.constant 9.99999996E-13 : f32
    %113 = vector.broadcast %cst_61 : f32 to vector<128x1xf32>
    %114 = arith.addf %110, %113 : vector<128x1xf32>
    %115 = math.rsqrt %114 : vector<128x1xf32>
    %116 = vector.broadcast %115 : vector<128x1xf32> to vector<128x256xf32>
    %117 = arith.mulf %112, %116 : vector<128x256xf32>
    %c0_62 = arith.constant 0 : index
    %c0_63 = arith.constant 0 : index
    %118 = vector.load %arg12[%c0_62, %c0_63] : memref<1x256xf32, #tpu.memory_space<vmem>>, vector<1x256xf32>
    %119 = vector.broadcast %118 : vector<1x256xf32> to vector<128x256xf32>
    %120 = arith.mulf %117, %119 : vector<128x256xf32>
    %c0_64 = arith.constant 0 : index
    %c0_65 = arith.constant 0 : index
    %121 = vector.load %arg13[%c0_64, %c0_65] : memref<1x256xf32, #tpu.memory_space<vmem>>, vector<1x256xf32>
    %122 = vector.broadcast %121 : vector<1x256xf32> to vector<128x256xf32>
    %123 = arith.addf %120, %122 : vector<128x256xf32>
    %124 = arith.truncf %123 : vector<128x256xf32> to vector<128x256xbf16>
    %c0_66 = arith.constant 0 : index
    %c0_67 = arith.constant 0 : index
    %125 = vector.load %arg14[%c0_66, %c0_67] : memref<256x512xbf16, #tpu.memory_space<vmem>>, vector<256x512xbf16>
    %cst_68 = arith.constant dense<0.000000e+00> : vector<128x512xf32>
    %126 = tpu.matmul %124, %125, %cst_68 {dimension_numbers = #tpu.dot_dimension_numbers<[1], [0], [0], [1], [0, 0, 1, 1], [], []>} : vector<128x256xbf16>, vector<256x512xbf16>, vector<128x512xf32> -> vector<128x512xf32>
    %c0_69 = arith.constant 0 : index
    %c0_70 = arith.constant 0 : index
    %127 = vector.load %arg15[%c0_69, %c0_70] : memref<1x512xf32, #tpu.memory_space<vmem>>, vector<1x512xf32>
    %128 = vector.broadcast %127 : vector<1x512xf32> to vector<128x512xf32>
    %129 = arith.addf %126, %128 : vector<128x512xf32>
    %130 = arith.mulf %129, %129 : vector<128x512xf32>
    %131 = arith.mulf %129, %130 : vector<128x512xf32>
    %cst_71 = arith.constant 4.471500e-02 : f32
    %132 = vector.broadcast %cst_71 : f32 to vector<128x512xf32>
    %133 = arith.mulf %132, %131 : vector<128x512xf32>
    %134 = arith.addf %129, %133 : vector<128x512xf32>
    %cst_72 = arith.constant 0.797884583 : f32
    %135 = vector.broadcast %cst_72 : f32 to vector<128x512xf32>
    %136 = arith.mulf %135, %134 : vector<128x512xf32>
    %137 = math.tanh %136 : vector<128x512xf32>
    %cst_73 = arith.constant 1.000000e+00 : f32
    %138 = vector.broadcast %cst_73 : f32 to vector<128x512xf32>
    %139 = arith.addf %138, %137 : vector<128x512xf32>
    %cst_74 = arith.constant 5.000000e-01 : f32
    %140 = vector.broadcast %cst_74 : f32 to vector<128x512xf32>
    %141 = arith.mulf %140, %139 : vector<128x512xf32>
    %142 = arith.mulf %129, %141 : vector<128x512xf32>
    %143 = arith.truncf %142 : vector<128x512xf32> to vector<128x512xbf16>
    %c0_75 = arith.constant 0 : index
    %c0_76 = arith.constant 0 : index
    %144 = vector.load %arg16[%c0_75, %c0_76] : memref<512x256xbf16, #tpu.memory_space<vmem>>, vector<512x256xbf16>
    %cst_77 = arith.constant dense<0.000000e+00> : vector<128x256xf32>
    %145 = tpu.matmul %143, %144, %cst_77 {dimension_numbers = #tpu.dot_dimension_numbers<[1], [0], [0], [1], [0, 0, 1, 1], [], []>} : vector<128x512xbf16>, vector<512x256xbf16>, vector<128x256xf32> -> vector<128x256xf32>
    %c0_78 = arith.constant 0 : index
    %c0_79 = arith.constant 0 : index
    %146 = vector.load %arg17[%c0_78, %c0_79] : memref<1x256xf32, #tpu.memory_space<vmem>>, vector<1x256xf32>
    %147 = vector.broadcast %146 : vector<1x256xf32> to vector<128x256xf32>
    %148 = arith.addf %145, %147 : vector<128x256xf32>
    %149 = arith.addf %123, %148 : vector<128x256xf32>
    %cst_80 = arith.constant dense<0.000000e+00> : vector<128xf32>
    %150 = vector.multi_reduction <add>, %149, %cst_80 [1] : vector<128x256xf32> to vector<128xf32>
    %151 = vector.shape_cast %150 : vector<128xf32> to vector<128x1xf32>
    %cst_81 = arith.constant 2.560000e+02 : f32
    %152 = vector.broadcast %cst_81 : f32 to vector<128x1xf32>
    %153 = arith.divf %151, %152 : vector<128x1xf32>
    %154 = vector.broadcast %153 : vector<128x1xf32> to vector<128x256xf32>
    %155 = arith.subf %149, %154 : vector<128x256xf32>
    %156 = arith.mulf %155, %155 : vector<128x256xf32>
    %cst_82 = arith.constant dense<0.000000e+00> : vector<128xf32>
    %157 = vector.multi_reduction <add>, %156, %cst_82 [1] : vector<128x256xf32> to vector<128xf32>
    %158 = vector.shape_cast %157 : vector<128xf32> to vector<128x1xf32>
    %cst_83 = arith.constant 2.560000e+02 : f32
    %159 = vector.broadcast %cst_83 : f32 to vector<128x1xf32>
    %160 = arith.divf %158, %159 : vector<128x1xf32>
    %161 = vector.broadcast %153 : vector<128x1xf32> to vector<128x256xf32>
    %162 = arith.subf %149, %161 : vector<128x256xf32>
    %cst_84 = arith.constant 9.99999996E-13 : f32
    %163 = vector.broadcast %cst_84 : f32 to vector<128x1xf32>
    %164 = arith.addf %160, %163 : vector<128x1xf32>
    %165 = math.rsqrt %164 : vector<128x1xf32>
    %166 = vector.broadcast %165 : vector<128x1xf32> to vector<128x256xf32>
    %167 = arith.mulf %162, %166 : vector<128x256xf32>
    %c0_85 = arith.constant 0 : index
    %c0_86 = arith.constant 0 : index
    %168 = vector.load %arg18[%c0_85, %c0_86] : memref<1x256xf32, #tpu.memory_space<vmem>>, vector<1x256xf32>
    %169 = vector.broadcast %168 : vector<1x256xf32> to vector<128x256xf32>
    %170 = arith.mulf %167, %169 : vector<128x256xf32>
    %c0_87 = arith.constant 0 : index
    %c0_88 = arith.constant 0 : index
    %171 = vector.load %arg19[%c0_87, %c0_88] : memref<1x256xf32, #tpu.memory_space<vmem>>, vector<1x256xf32>
    %172 = vector.broadcast %171 : vector<1x256xf32> to vector<128x256xf32>
    %173 = arith.addf %170, %172 : vector<128x256xf32>
    %174 = arith.truncf %173 : vector<128x256xf32> to vector<128x256xbf16>
    %c0_89 = arith.constant 0 : index
    %c0_90 = arith.constant 0 : index
    %c0_91 = arith.constant 0 : index
    %175 = vector.load %arg20[%c0_89, %c0_90, %c0_91] : memref<1x128x256xbf16, #tpu.memory_space<vmem>>, vector<1x128x256xbf16>
    %176 = vector.shape_cast %175 : vector<1x128x256xbf16> to vector<128x256xbf16>
    %177 = vector.shape_cast %174 : vector<128x256xbf16> to vector<1x128x256xbf16>
    tpu.vector_store %arg20[%c0_89, %c0_90, %c0_91], %177 {strides = array<i32>} : memref<1x128x256xbf16, #tpu.memory_space<vmem>>, vector<1x128x256xbf16>,
    return
  }
  func.func @transform_0(%arg0: i32, %arg1: i32) -> (i32, i32, i32) {
    %c0_i32 = arith.constant 0 : i32
    %c0_i32_0 = arith.constant 0 : i32
    %c0_i32_1 = arith.constant 0 : i32
    return %arg0, %c0_i32, %c0_i32_0 : i32, i32, i32
  }
  func.func @transform_1(%arg0: i32, %arg1: i32) -> (i32, i32, i32) {
    %c0_i32 = arith.constant 0 : i32
    %c0_i32_0 = arith.constant 0 : i32
    %c0_i32_1 = arith.constant 0 : i32
    return %arg0, %c0_i32, %c0_i32_0 : i32, i32, i32
  }
  func.func @transform_2(%arg0: i32, %arg1: i32) -> (i32, i32) {
    %c0_i32 = arith.constant 0 : i32
    %c0_i32_0 = arith.constant 0 : i32
    %c0_i32_1 = arith.constant 0 : i32
    return %c0_i32, %c0_i32_0 : i32, i32
  }
  func.func @transform_3(%arg0: i32, %arg1: i32) -> (i32, i32) {
    %c0_i32 = arith.constant 0 : i32
    %c0_i32_0 = arith.constant 0 : i32
    %c0_i32_1 = arith.constant 0 : i32
    return %c0_i32, %c0_i32_0 : i32, i32
  }
  func.func @transform_4(%arg0: i32, %arg1: i32) -> (i32, i32) {
    %c0_i32 = arith.constant 0 : i32
    %c0_i32_0 = arith.constant 0 : i32
    %c0_i32_1 = arith.constant 0 : i32
    return %c0_i32, %c0_i32_0 : i32, i32
  }
  func.func @transform_5(%arg0: i32, %arg1: i32) -> (i32, i32) {
    %c0_i32 = arith.constant 0 : i32
    %c0_i32_0 = arith.constant 0 : i32
    %c0_i32_1 = arith.constant 0 : i32
    return %c0_i32, %c0_i32_0 : i32, i32
  }
  func.func @transform_6(%arg0: i32, %arg1: i32) -> (i32, i32) {
    %c0_i32 = arith.constant 0 : i32
    %c0_i32_0 = arith.constant 0 : i32
    %c0_i32_1 = arith.constant 0 : i32
    return %c0_i32, %c0_i32_0 : i32, i32
  }
  func.func @transform_7(%arg0: i32, %arg1: i32) -> (i32, i32) {
    %c0_i32 = arith.constant 0 : i32
    %c0_i32_0 = arith.constant 0 : i32
    %c0_i32_1 = arith.constant 0 : i32
    return %c0_i32, %c0_i32_0 : i32, i32
  }
  func.func @transform_8(%arg0: i32, %arg1: i32) -> (i32, i32) {
    %c0_i32 = arith.constant 0 : i32
    %c0_i32_0 = arith.constant 0 : i32
    %c0_i32_1 = arith.constant 0 : i32
    return %c0_i32, %c0_i32_0 : i32, i32
  }
  func.func @transform_9(%arg0: i32, %arg1: i32) -> (i32, i32) {
    %c0_i32 = arith.constant 0 : i32
    %c0_i32_0 = arith.constant 0 : i32
    %c0_i32_1 = arith.constant 0 : i32
    return %c0_i32, %c0_i32_0 : i32, i32
  }
  func.func @transform_10(%arg0: i32, %arg1: i32) -> (i32, i32) {
    %c0_i32 = arith.constant 0 : i32
    %c0_i32_0 = arith.constant 0 : i32
    %c0_i32_1 = arith.constant 0 : i32
    return %c0_i32, %c0_i32_0 : i32, i32
  }
  func.func @transform_11(%arg0: i32, %arg1: i32) -> (i32, i32) {
    %c0_i32 = arith.constant 0 : i32
    %c0_i32_0 = arith.constant 0 : i32
    %c0_i32_1 = arith.constant 0 : i32
    return %c0_i32, %c0_i32_0 : i32, i32
  }
  func.func @transform_12(%arg0: i32, %arg1: i32) -> (i32, i32) {
    %c0_i32 = arith.constant 0 : i32
    %c0_i32_0 = arith.constant 0 : i32
    %c0_i32_1 = arith.constant 0 : i32
    return %c0_i32, %c0_i32_0 : i32, i32
  }
  func.func @transform_13(%arg0: i32, %arg1: i32) -> (i32, i32) {
    %c0_i32 = arith.constant 0 : i32
    %c0_i32_0 = arith.constant 0 : i32
    %c0_i32_1 = arith.constant 0 : i32
    return %c0_i32, %c0_i32_0 : i32, i32
  }
  func.func @transform_14(%arg0: i32, %arg1: i32) -> (i32, i32) {
    %c0_i32 = arith.constant 0 : i32
    %c0_i32_0 = arith.constant 0 : i32
    %c0_i32_1 = arith.constant 0 : i32
    return %c0_i32, %c0_i32_0 : i32, i32
  }
  func.func @transform_15(%arg0: i32, %arg1: i32) -> (i32, i32) {
    %c0_i32 = arith.constant 0 : i32
    %c0_i32_0 = arith.constant 0 : i32
    %c0_i32_1 = arith.constant 0 : i32
    return %c0_i32, %c0_i32_0 : i32, i32
  }
  func.func @transform_16(%arg0: i32, %arg1: i32) -> (i32, i32) {
    %c0_i32 = arith.constant 0 : i32
    %c0_i32_0 = arith.constant 0 : i32
    %c0_i32_1 = arith.constant 0 : i32
    return %c0_i32, %c0_i32_0 : i32, i32
  }
  func.func @transform_17(%arg0: i32, %arg1: i32) -> (i32, i32) {
    %c0_i32 = arith.constant 0 : i32
    %c0_i32_0 = arith.constant 0 : i32
    %c0_i32_1 = arith.constant 0 : i32
    return %c0_i32, %c0_i32_0 : i32, i32
  }
  func.func @transform_18(%arg0: i32, %arg1: i32) -> (i32, i32, i32) {
    %c0_i32 = arith.constant 0 : i32
    %c0_i32_0 = arith.constant 0 : i32
    return %arg0, %arg1, %c0_i32 : i32, i32, i32
  }
}

</mosaic_0001>

<bundles_post_ra>
// kernel: tpu_custom_call.1
= control target key start
LH: loop header
LB: loop body
LE: loop exit
PB: predicated region body
PF: predicated region fallthrough
CT: control target
= control target key end

     0   :  { %s14262_s0 = inlined_call_operand.hbm [shape: bf16[2,256,256], index: 0, kind: input, shape index: {}]   ;;  %s14263_s1 = inlined_call_operand.hbm [shape: f32[2,1,256], index: 1, kind: input, shape index: {}]   ;;  %s14264_s2 = inlined_call_operand.hbm [shape: bf16[256,256], index: 2, kind: input, shape index: {}]   ;;  %s14265_s3 = inlined_call_operand.vmem [shape: f32[1,256], index: 3, kind: input, shape index: {}]   ;;  %s14266_s4 = inlined_call_operand.hbm [shape: bf16[256,256], index: 4, kind: input, shape index: {}]   ;;  %s14267_s5 = inlined_call_operand.vmem [shape: f32[1,256], index: 5, kind: input, shape index: {}]   ;;  %s14268_s6 = inlined_call_operand.hbm [shape: bf16[256,256], index: 6, kind: input, shape index: {}]   ;;  %s14269_s7 = inlined_call_operand.vmem [shape: f32[1,256], index: 7, kind: input, shape index: {}]   ;;  %s14270_s8 = inlined_call_operand.hbm [shape: bf16[256,256], index: 8, kind: input, shape index: {}]   ;;  %s14271_s9 = inlined_call_operand.vmem [shape: f32[1,256], index: 9, kind: input, shape index: {}]   ;;  %s14272_s10 = inlined_call_operand.vmem [shape: f32[1,256], index: 10, kind: input, shape index: {}]   ;;  %s14273_s11 = inlined_call_operand.vmem [shape: f32[1,256], index: 11, kind: input, shape index: {}]   ;;  %s14274_s12 = inlined_call_operand.hbm [shape: bf16[256,512], index: 12, kind: input, shape index: {}]   ;;  %s14275_s13 = inlined_call_operand.vmem [shape: f32[1,512], index: 13, kind: input, shape index: {}]   ;;  %s14276_s14 = inlined_call_operand.hbm [shape: bf16[512,256], index: 14, kind: input, shape index: {}]   ;;  %s14277_s15 = inlined_call_operand.vmem [shape: f32[1,256], index: 15, kind: input, shape index: {}]   ;;  %s14278_s16 = inlined_call_operand.vmem [shape: f32[1,256], index: 16, kind: input, shape index: {}]   ;;  %s14279_s17 = inlined_call_operand.vmem [shape: f32[1,256], index: 17, kind: input, shape index: {}]   ;;  %s14280_s18 = inlined_call_operand.hbm [shape: bf16[2,256,256], index: 18, kind: output, shape index: {}]  }
   0x1   :  { %14343 = sst [smem:[#allocation77_spill]] %s14262_s0 }
   0x2   :  { %14344 = sst [smem:[#allocation78_spill]] %s14263_s1 }
   0x3   :  { %14345 = sst [smem:[#allocation79_spill]] %s14264_s2 }
   0x4   :  { %14346 = sst [smem:[#allocation80_spill]] %s14265_s3 }
   0x5   :  { %14347 = sst [smem:[#allocation81_spill]] %s14266_s4 }
   0x6   :  { %14348 = sst [smem:[#allocation82_spill]] %s14268_s6 }
   0x7   :  { %14349 = sst [smem:[#allocation83_spill]] %s14270_s8 }
   0x8   :  { %14350 = sst [smem:[#allocation84_spill]] %s14271_s9 }
   0x9   :  { %14351 = sst [smem:[#allocation85_spill]] %s14272_s10 }
   0xa   :  { %14352 = sst [smem:[#allocation86_spill]] %s14273_s11 }
   0xb   :  { %14353 = sst [smem:[#allocation87_spill]] %s14274_s12 }
   0xc   :  { %14354 = sst [smem:[#allocation88_spill]] %s14275_s13 }
   0xd   :  { %14355 = sst [smem:[#allocation89_spill]] %s14276_s14 }
   0xe   :  { %14356 = sst [smem:[#allocation90_spill]] %s14277_s15 }
   0xf   :  { %14357 = sst [smem:[#allocation91_spill]] %s14278_s16 }
  0x10   :  { %14358 = sst [smem:[#allocation92_spill]] %s14279_s17 }
  0x11   :  { %14359 = sst [smem:[#allocation93_spill]] %s14280_s18 }
  0x12   :  { %23 = vsyncpa [#allocation7], 0 }
  0x13   :  { %25 = vsyncpa [#allocation7 + $0x1], 0 }
  0x14   :  { %26 = vsyncpa [#allocation10], 0 }
  0x15   :  { %28 = vsyncpa [#allocation10 + $0x1], 0 }
  0x16   :  { %29 = vsyncpa [#allocation13], 0 }
  0x17   :  { %30 = vsyncpa [#allocation16], 0 }
  0x18   :  { %31 = vsyncpa [#allocation19], 0 }
  0x19   :  { %32 = vsyncpa [#allocation8], 0 }
  0x1a   :  { %34 = vsyncpa [#allocation8 + $0x1], 0  ;;  %s11294_s27 = smov 0   ;;  %s11296_s28 = smov 0  }
  0x1b   :  { %s11298_s29 = smov 0   ;;  %s11300_s30 = smov 0  }
  0x1c   :  { %s11302_s0 = smov 0   ;;  %s11304_s19 = smov 0  }
  0x1d   :  { %s11306_s1 = smov 0   ;;  %s11308_s20 = smov 0  }
  0x1e   :  { %s11310_s21 = smov 0   ;;  %s11312_s22 = smov 0  }
  0x1f   :  { %s11314_s2 = smov 0  }
  0x20 LB: > { %14360 = sst [smem:[#allocation28_spill]] %s11141_s27  ;;  %s11350_s23 = sadd.s32 4294967295, %s11181_s2   ;;  %s11181_s2 = sphi %s11314_s2, %s40_s2   ;;  %s11177_s22 = sphi %s11312_s22, %s14540_s22   ;;  %s11173_s21 = sphi %s11310_s21, %s14532_s21   ;;  %s11169_s20 = sphi %s11308_s20, %s14539_s20   ;;  %s11165_s1 = sphi %s11306_s1, %s14531_s1   ;;  %s11161_s19 = sphi %s11304_s19, %s14538_s19   ;;  %s11157_s0 = sphi %s11302_s0, %s14537_s0   ;;  %s11153_s30 = sphi %s11300_s30, %s14536_s30   ;;  %s11149_s29 = sphi %s11298_s29, %s14528_s29   ;;  %s11145_s28 = sphi %s11296_s28, %s14535_s28   ;;  %s11141_s27 = sphi %s11294_s27, %s14534_s27  }
  0x21   : > { %14361 = sst [smem:[#allocation29_spill]] %s11149_s29  ;;  %p8269_p0 = scmp.ge.s32.totalorder %s11181_s2, 1 }
  0x22   : > { %14362 = sst [smem:[#allocation30_spill]] %s11161_s19  ;;  %p73_p1 = scmp.eq.s32.totalorder %s11350_s23, 0 }
  0x23   : > { %14363 = sst [smem:[#allocation31_spill]] %s11169_s20  ;;  %p473_p3 = scmp.lt.s32.totalorder %s11181_s2, 5 }
  0x24   : > { %14364 = sst [smem:[#allocation32_spill]] %s11173_s21  ;;  %s11183_s25 = smov [#allocation11]  }
  0x25   : > { %p11356_p4 = pnand %p8269_p0, %p473_p3  ;;  %s485_s26 = sshll.u32 %s11183_s25, 4  ;;  %s486_s26 = int_to_ptr.vmem [resolvable:$true] %s485_s26 }
  0x26   : > { %s11184_s20 = smov [#allocation12]   ;;  %s11185_s16 = smov [#allocation15]  }
  0x27   : > { %p9756_p5 = pneg %p11356_p4  ;;  %s501_s17 = sshll.u32 %s11184_s20, 4  ;;  %s11368_s17 = int_to_ptr.vmem [resolvable:$true] %s501_s17 }
  0x28   : > { %s533_s15 = sshll.u32 %s11185_s16, 4  ;;  %s10840_s13 = scalar_lea.vmem %s486_s26, 4096  ;;  %s11370_s15 = int_to_ptr.vmem [resolvable:$true] %s533_s15 }
  0x29   : > { %p11364_p6 = pnand %p9756_p5, %p73_p1  ;;  %p10841_p8 = scmp.ne.s32.totalorder %s486_s26, %s10840_s13 }
  0x2a   : > { %p10848_p11 = scmp.lt.s32.totalorder %s486_s26, %s486_s26  ;;  %p10849_p12 = scmp.lt.s32.totalorder %s10840_s13, %s10840_s13 }
  0x2b   : > { %p11374_p7 = pneg %p11364_p6 }
  0x2c   : > { %p10850_p13 = por %p10849_p12, %p10848_p11 }
  0x2d   : > { %p10843_p9 = pnand %p10841_p8, %p11374_p7 }
  0x2f   : > { %p10844_p10 = pneg %p10843_p9 }
  0x31   : > { %p10851_p0 = pnand %p10850_p13, %p10844_p10 }
  0x33   : > { %10854 = shalt.err (!%p10851_p0)
}
  0x34   : > { %s14282_s20 = smov 128   ;;  %s14283_s16 = smov 8  }
  0x35   : > { %s14368_s9 = sld [smem:[#allocation79_spill]]  ;;  %s10866_s3 = scalar_lea.vmem %s11368_s17, 4096 }
  0x36   : > { %p10867_p3 = scmp.ne.s32.totalorder %s11368_s17, %s10866_s3  ;;  %p10874_p9 = scmp.lt.s32.totalorder %s11368_s17, %s11368_s17 }
  0x37   : > { %p10875_p10 = scmp.lt.s32.totalorder %s10866_s3, %s10866_s3 }
  0x38   : > { %p10869_p5 = pnand %p10867_p3, %p11374_p7 }
  0x39   : > { %p10876_p11 = por %p10875_p10, %p10874_p9 }
  0x3a   : > { %p10870_p8 = pneg %p10869_p5 }
  0x3b   : > { %9759 = dma.hbm_to_vmem [thread:$0]  (!%p11364_p6), %s14368_s9, 4096, %s486_s26, [#allocation10], %s14282_s20, %s14282_s20, %s14283_s16  }
  0x3c   : > { %p10877_p12 = pnand %p10876_p11, %p10870_p8 }
  0x3e   : > { %10880 = shalt.err (!%p10877_p12)
}
  0x3f   : > { %s14369_s4 = sld [smem:[#allocation81_spill]]  ;;  %s10892_s9 = scalar_lea.vmem %s11370_s15, 4096 }
  0x40   : > { %p10893_p13 = scmp.ne.s32.totalorder %s11370_s15, %s10892_s9  ;;  %p10900_p5 = scmp.lt.s32.totalorder %s11370_s15, %s11370_s15 }
  0x41   : > { %p10901_p8 = scmp.lt.s32.totalorder %s10892_s9, %s10892_s9 }
  0x42   : > { %p10895_p0 = pnand %p10893_p13, %p11374_p7 }
  0x43   : > { %p10902_p9 = por %p10901_p8, %p10900_p5 }
  0x44   : > { %p10896_p3 = pneg %p10895_p0 }
  0x45   : > { %9762 = dma.hbm_to_vmem [thread:$0]  (!%p11364_p6), %s14369_s4, 4096, %s11368_s17, [#allocation13], %s14282_s20, %s14282_s20, %s14283_s16  }
  0x46   : > { %p10903_p10 = pnand %p10902_p9, %p10896_p3 }
  0x48   : > { %10906 = shalt.err (!%p10903_p10)
}
  0x49   : > { %s14370_s8 = sld [smem:[#allocation83_spill]]  ;;  %s11188_s17 = smov [#allocation14]  }
  0x4a   : > { %s517_s26 = sshll.u32 %s11188_s17, 4  ;;  %s11189_s13 = smov [#allocation17]   ;;  %s518_s26 = int_to_ptr.vmem [resolvable:$true] %s517_s26 }
  0x4b   : > { %s555_s10 = sshll.u32 %s11189_s13, 4  ;;  %s10918_s9 = scalar_lea.vmem %s518_s26, 4096  ;;  %s556_s10 = int_to_ptr.vmem [resolvable:$true] %s555_s10 }
  0x4c   : > { %p10919_p11 = scmp.ne.s32.totalorder %s518_s26, %s10918_s9  ;;  %p10926_p0 = scmp.lt.s32.totalorder %s518_s26, %s518_s26 }
  0x4d   : > { %p10927_p3 = scmp.lt.s32.totalorder %s10918_s9, %s10918_s9 }
  0x4e   : > { %p10921_p12 = pnand %p10919_p11, %p11374_p7 }
  0x4f   : > { %9768 = dma.hbm_to_vmem [thread:$0]  (!%p11364_p6), %s14370_s8, 4096, %s11370_s15, [#allocation16], %s14282_s20, %s14282_s20, %s14283_s16  }
  0x50   : > { %p10922_p13 = pneg %p10921_p12  ;;  %p10928_p5 = por %p10927_p3, %p10926_p0 }
  0x52   : > { %p10929_p8 = pnand %p10928_p5, %p10922_p13 }
  0x54   : > { %10932 = shalt.err (!%p10929_p8)
}
  0x55   : > { %s14371_s6 = sld [smem:[#allocation82_spill]]  ;;  %s10944_s11 = scalar_lea.vmem %s556_s10, 8192 }
  0x56   : > { %p10945_p9 = scmp.ne.s32.totalorder %s556_s10, %s10944_s11  ;;  %p10952_p12 = scmp.lt.s32.totalorder %s556_s10, %s556_s10 }
  0x57   : > { %p10953_p2 = scmp.lt.s32.totalorder %s10944_s11, %s10944_s11 }
  0x58   : > { %p10947_p10 = pnand %p10945_p9, %p11374_p7 }
  0x59   : > { %p10954_p0 = por %p10953_p2, %p10952_p12 }
  0x5a   : > { %p10948_p11 = pneg %p10947_p10 }
  0x5b   : > { %9765 = dma.hbm_to_vmem [thread:$0]  (!%p11364_p6), %s14371_s6, 4096, %s518_s26, [#allocation13], %s14282_s20, %s14282_s20, %s14283_s16  }
  0x5c   : > { %p10955_p13 = pnand %p10954_p0, %p10948_p11 }
  0x5e   : > { %10958 = shalt.err (!%p10955_p13)
}
  0x5f   : > { %s11190_s17 = smov 256   ;;  %s11191_s13 = smov 16  }
  0x60   : > { %s14372_s12 = sld [smem:[#allocation87_spill]]  ;;  %s11192_s26 = smov [#allocation18]  }
  0x61   : > { %s571_s15 = sshll.u32 %s11192_s26, 4  ;;  %s572_s15 = int_to_ptr.vmem [resolvable:$true] %s571_s15 }
  0x62   : > { %s10970_s3 = scalar_lea.vmem %s572_s15, 8192  ;;  %p10978_p2 = scmp.lt.s32.totalorder %s572_s15, %s572_s15 }
  0x63   : > { %p10971_p3 = scmp.ne.s32.totalorder %s572_s15, %s10970_s3  ;;  %p10979_p9 = scmp.lt.s32.totalorder %s10970_s3, %s10970_s3 }
  0x65   : > { %p10973_p5 = pnand %p10971_p3, %p11374_p7  ;;  %p10980_p10 = por %p10979_p9, %p10978_p2 }
  0x66   : > { %9771 = dma.hbm_to_vmem [thread:$0]  (!%p11364_p6), %s14372_s12, 8192, %s556_s10, [#allocation16], %s11190_s17, %s11190_s17, %s11191_s13  }
  0x67   : > { %p10974_p8 = pneg %p10973_p5 }
  0x69   : > { %p10981_p11 = pnand %p10980_p10, %p10974_p8 }
  0x6b   : > { %10984 = shalt.err (!%p10981_p11)
}
  0x6c   : > { %s14373_s14 = sld [smem:[#allocation89_spill]]  ;;  %s8268_s18 = sadd.s32 4294967294, %s11181_s2  }
  0x6d   : > { %s49_s25 = sadd.s32 1, %s11173_s21  ;;  %s52_s11 = sadd.s32 1, %s11177_s22 }
  0x6e   : > { %p50_p7 = scmp.ge.s32.totalorder %s49_s25, 2  ;;  %s59_s17 = sadd.s32 1, %s11161_s19 }
  0x6f   : > { %p66_p12 = scmp.ne.s32.totalorder %s11161_s19, %s11157_s0  ;;  %p67_p0 = scmp.eq.s32.totalorder %s11181_s2, 0 }
  0x70   : > { %s14542_s25 = smov (%p50_p7, %s49_s25), 0  ;;  %s14544_s11 = smov (!%p50_p7, %s52_s11), %s11177_s22 }
  0x71   : > { %14374 = sst [smem:[#allocation33_spill]] %s14542_s25  ;;  %p11455_p13 = por %p67_p0, %p66_p12 }
  0x72   : > { %9774 = dma.hbm_to_vmem [thread:$0]  (!%p11364_p6), %s14373_s14, 8192, %s572_s15, [#allocation19], %s14282_s20, %s14282_s20, %s14283_s16  }
  0x73   : > { %p72_p6 = scmp.ne.s32.totalorder %s11157_s0, %s11153_s30  ;;  %p54_p3 = scmp.ge.s32.totalorder %s14544_s11, 2 }
  0x74   : > { %s445_s9 = ssub.s32 %s11173_s21, %s14542_s25  ;;  %s449_s15 = sadd.s32 1, %s11149_s29 }
  0x75   : > { %p11465_p5 = por %p73_p1, %p72_p6  ;;  %s14546_s11 = smov (%p54_p3, %s14544_s11), 0 }
  0x76   : > { %14377 = sst [smem:[#allocation34_spill]] %s14546_s11  ;;  %p459_p8 = scmp.ne.s32.totalorder %s11149_s29, %s11145_s28 }
  0x77   : > { %p465_p2 = scmp.ne.s32.totalorder %s11145_s28, %s11141_s27  ;;  %s56_s3 = ssub.s32 %s11177_s22, %s14546_s11 }
  0x78   : > { %p466_p9 = scmp.eq.s32.totalorder %s8268_s18, 3  ;;  %p57_p10 = scmp.eq.s32.totalorder %s56_s3, 0 }
  0x79   : > { %s446_s30 = sor.u32 %s445_s9, %s56_s3  ;;  %p14378_p7 = scmp.eq.s32.totalorder %s11350_s23, 3 }
  0x7a   : > { %p447_p11 = scmp.eq.s32.totalorder %s446_s30, 0  ;;  %p11490_p0 = por %p466_p9, %p465_p2 }
  0x7b   : > { %p11480_p12 = por %p14378_p7, %p459_p8  ;;  %p9792_p6 = scmp.lt.s32.totalorder %s11181_s2, 4 }
  0x7c   : > { %s11485_s10 = scalar_select %p57_p10, %s11161_s19, %s59_s17  }
  0x7d   : > { %s11488_s20 = scalar_select %p447_p11, %s11149_s29, %s449_s15  }
  0x7e   : > { %14380 = sst [smem:[#allocation35_spill]] %s11485_s10  ;;  %s11496_s6 = sand.u32 1, %s11161_s19  }
  0x7f   : > { %14381 = sst [smem:[#allocation36_spill]] %s11488_s20  ;;  %s8864_s18 = sshll.u32 %s11177_s22, 12 }
  0x80   : > { %s14382_s16 = scalar_select %p11490_p0, 1, 0 }
  0x81   : > { %s8277_s9 = sshll.u32 %s11496_s6, 8  ;;  %s14384_s8 = sld [smem:[#allocation77_spill]] }
  0x82   : > { %14383 = sst [smem:[#allocation37_spill]] %s14382_s16  ;;  %s598_s14 = scalar_lea.vmem [#allocation6], %s8277_s9 }
  0x83   : > { %s605_s17 = sshll.u32 %s598_s14, 4  ;;  %p11505_p3 = pnand %p9792_p6, %p11455_p13  ;;  %s606_s17 = int_to_ptr.vmem [resolvable:$true] %s605_s17 }
  0x84   : > { %s615_s11 = sand.u32 1, %s11181_s2   ;;  %s595_s25 = scalar_lea.sflag [#allocation7], %s11496_s6 }
  0x85   : > { %p10987_p8 = pneg %p11505_p3  ;;  %s10998_s21 = scalar_lea.vmem %s606_s17, 4096 }
  0x86   : > { %p10999_p2 = scmp.ne.s32.totalorder %s606_s17, %s10998_s21 }
  0x87   : > { %s604_s12 = scalar_lea.hbm %s14384_s8, %s8864_s18  ;;  %s11193_s8 = smov [#allocation6]  }
  0x88   : > { %p11001_p9 = pnand %p10999_p2, %p10987_p8  ;;  %s11003_s14 = sshll.u32 %s11193_s8, 4  ;;  %s11004_s14 = int_to_ptr.vmem [resolvable:$false] %s11003_s14 }
  0x89   : > { %s11005_s13 = scalar_lea.vmem %s11004_s14, 8192  ;;  %p11006_p13 = scmp.lt.s32.totalorder %s606_s17, %s11004_s14 }
  0x8a   : > { %p11002_p10 = pneg %p11001_p9  ;;  %p11007_p11 = scmp.lt.s32.totalorder %s11005_s13, %s10998_s21 }
  0x8c   : > { %p11008_p7 = por %p11007_p11, %p11006_p13 }
  0x8e   : > { %p11009_p6 = pnand %p11008_p7, %p11002_p10 }
  0x90   : > { %11012 = shalt.err (!%p11009_p6)
}
  0x91   : > { %s14386_s18 = smov 8   ;;  %s14387_s9 = smov 128  }
  0x92   : > { %9778 = dma.hbm_to_vmem [thread:$0]  (!%p11505_p3), %s604_s12, 4096, %s606_s17, %s595_s25, %s14387_s9, %s14387_s9, %s14386_s18  }
  0x93   : > { %s8280_s3 = sshll.u32 %s11496_s6, 1  ;;  %s8865_s30 = sshll.u32 %s11177_s22, 5 }
  0x94   : > { %s14388_s19 = sld [smem:[#allocation78_spill]]  ;;  %s619_s14 = scalar_lea.vmem [#allocation9], %s8280_s3 }
  0x95   : > { %s627_s21 = sshll.u32 %s619_s14, 4  ;;  %s616_s13 = scalar_lea.sflag [#allocation10], %s615_s11  ;;  %s628_s21 = int_to_ptr.vmem [resolvable:$true] %s627_s21 }
  0x96   : > { %s11026_s29 = scalar_lea.vmem %s628_s21, 32  ;;  %s11194_s16 = smov [#allocation9]  }
  0x97   : > { %p11027_p2 = scmp.ne.s32.totalorder %s628_s21, %s11026_s29  ;;  %s11031_s27 = sshll.u32 %s11194_s16, 4  ;;  %s11032_s27 = int_to_ptr.vmem [resolvable:$false] %s11031_s27 }
  0x98   : > { %s11033_s12 = scalar_lea.vmem %s11032_s27, 64  ;;  %p11034_p13 = scmp.lt.s32.totalorder %s628_s21, %s11032_s27 }
  0x99   : > { %p11029_p9 = pnand %p11027_p2, %p10987_p8  ;;  %p11035_p11 = scmp.lt.s32.totalorder %s11033_s12, %s11026_s29 }
  0x9a   : > { %s625_s20 = scalar_lea.hbm %s14388_s19, %s8865_s30 }
  0x9b   : > { %p11030_p10 = pneg %p11029_p9  ;;  %p11036_p7 = por %p11035_p11, %p11034_p13 }
  0x9d   : > { %p11037_p6 = pnand %p11036_p7, %p11030_p10 }
  0x9f   : > { %11040 = shalt.err (!%p11037_p6)
}
  0xa0   : > { %9781 = dma.hbm_to_vmem [thread:$0]  (!%p11505_p3), %s625_s20, 32, %s628_s21, %s616_s13  }
  0xa1   : > { %636 = sbr.rel (%p11356_p4) target bundleno = 3700 (0xe74), region = 92 }
  0xa6   : > { %s638_s6 = sand.u32 1, %s11157_s0  }
  0xa7   : > { %s8284_s19 = sshll.u32 %s638_s6, 8  ;;  %s639_s25 = scalar_lea.sflag [#allocation7], %s638_s6 }
  0xa8   : > { %s11534_s11 = scalar_lea.vmem [#allocation6], %s8284_s19 }
  0xa9   : > { %11112 = dma.done.wait (%p11465_p5), %s639_s25, 4096  }
  0xaa   : > { %11114 = vsyncadd (%p11465_p5), %s639_s25, 4294963200  ;;  %s647_s27 = sand.u32 1, %s11350_s23   ;;  %s8285_s29 = sshll.u32 %s638_s6, 1 }
  0xab   : > { %s648_s20 = scalar_lea.sflag [#allocation10], %s647_s27  ;;  %s11541_s16 = scalar_lea.vmem [#allocation9], %s8285_s29 }
  0xac   : > { %11116 = dma.done.wait (%p11465_p5), %s648_s20, 32  }
  0xad   : > { %11118 = vsyncadd (%p11465_p5), %s648_s20, 4294967264 }
  0xae   : > { %11120 = dma.done.wait (%p73_p1), [#allocation10], 4096  }
  0xaf   : > { %11122 = vsyncadd (%p73_p1), [#allocation10], 4294963200 }
  0xb0   : > { %11124 = dma.done.wait (%p73_p1), [#allocation13], 8192  }
  0xb1   : > { %11126 = vsyncadd (%p73_p1), [#allocation13], 4294959104 }
  0xb2   : > { %11128 = dma.done.wait (%p73_p1), [#allocation16], 12288  }
  0xb3   : > { %11130 = vsyncadd (%p73_p1), [#allocation16], 4294955008 }
  0xb4   : > { %11132 = dma.done.wait (%p73_p1), [#allocation19], 8192  }
  0xb5   : > { %11134 = vsyncadd (%p73_p1), [#allocation19], 4294959104  ;;  %s730_s24 = sand.u32 1, %s11145_s28   ;;  %p8293_p4 = scmp.ne.s32.totalorder %s11165_s1, 0 }
  0xb6   : > { %s8292_s26 = sshll.u32 %s730_s24, 7 }
  0xb7   : > { %s11566_s10 = scalar_lea.vmem [#allocation20], %s8292_s26  ;;  %738 = sbr.rel (%p8293_p4) target bundleno = 578 (0x242), region = 128 }
  0xbc   : > { %v9901_v0 = vld [vmem:[#allocation12 + $0x74] ss:$8 sps:$4 sm:$0xff]   ;;  %v9905_v2 = vld [vmem:[#allocation12 + $0x70] ss:$8 sps:$4 sm:$0xff]   ;;  %v9907_v4 = vld [vmem:[#allocation12 + $0x64] ss:$8 sps:$4 sm:$0xff]  }
  0xbd   : > { %v9903_v1 = vld [vmem:[#allocation14 + $0x74] ss:$8 sps:$4 sm:$0xff]   ;;  %1135 = vmatprep.subr.bf16.mxu0 %v9901_v0  ;;  %v9906_v3 = vld [vmem:[#allocation14 + $0x70] ss:$8 sps:$4 sm:$0xff]   ;;  %v9909_v5 = vld [vmem:[#allocation14 + $0x64] ss:$8 sps:$4 sm:$0xff]  }
  0xbe   : > { %1532 = vmatprep.subr.bf16.mxu1 %v9903_v1  ;;  %1136 = vmatpush1.bf16.msra.mxu0 %v9905_v2  ;;  %v9911_v6 = vld [vmem:[#allocation12 + $0x60] ss:$8 sps:$4 sm:$0xff]   ;;  %v9913_v8 = vld [vmem:[#allocation12 + $0x54] ss:$8 sps:$4 sm:$0xff]   ;;  %v9917_v10 = vld [vmem:[#allocation12 + $0x50] ss:$8 sps:$4 sm:$0xff]  }
  0xbf   : > { %1533 = vmatpush1.bf16.msra.mxu1 %v9906_v3  ;;  %1137 = vmatprep.subr.bf16.mxu0 %v9907_v4  ;;  %v9912_v7 = vld [vmem:[#allocation14 + $0x60] ss:$8 sps:$4 sm:$0xff]   ;;  %v9915_v9 = vld [vmem:[#allocation14 + $0x54] ss:$8 sps:$4 sm:$0xff]   ;;  %v9918_v11 = vld [vmem:[#allocation14 + $0x50] ss:$8 sps:$4 sm:$0xff]  }
  0xc0   : > { %1534 = vmatprep.subr.bf16.mxu1 %v9909_v5  ;;  %v9919_v12 = vld [vmem:[#allocation12 + $0x44] ss:$8 sps:$4 sm:$0xff]   ;;  %v9923_v14 = vld [vmem:[#allocation12 + $0x40] ss:$8 sps:$4 sm:$0xff]   ;;  %v9925_v16 = vld [vmem:[#allocation12 + $0x34] ss:$8 sps:$4 sm:$0xff]  }
  0xc1   : > { %v9921_v13 = vld [vmem:[#allocation14 + $0x44] ss:$8 sps:$4 sm:$0xff]   ;;  %v9924_v15 = vld [vmem:[#allocation14 + $0x40] ss:$8 sps:$4 sm:$0xff]   ;;  %v9927_v17 = vld [vmem:[#allocation14 + $0x34] ss:$8 sps:$4 sm:$0xff]  }
  0xc2   : > { %1138 = vmatpush1.bf16.msra.mxu0 %v9911_v6  ;;  %v9929_v18 = vld [vmem:[#allocation12 + $0x30] ss:$8 sps:$4 sm:$0xff]   ;;  %v9931_v20 = vld [vmem:[#allocation12 + $0x24] ss:$8 sps:$4 sm:$0xff]   ;;  %v9935_v22 = vld [vmem:[#allocation12 + $0x20] ss:$8 sps:$4 sm:$0xff]  }
  0xc3   : > { %1535 = vmatpush1.bf16.msra.mxu1 %v9912_v7  ;;  %1139 = vmatprep.subr.bf16.mxu0 %v9913_v8  ;;  %v9930_v19 = vld [vmem:[#allocation14 + $0x30] ss:$8 sps:$4 sm:$0xff]   ;;  %v9933_v21 = vld [vmem:[#allocation14 + $0x24] ss:$8 sps:$4 sm:$0xff]   ;;  %v9936_v23 = vld [vmem:[#allocation14 + $0x20] ss:$8 sps:$4 sm:$0xff]  }
  0xc4   : > { %1536 = vmatprep.subr.bf16.mxu1 %v9915_v9  ;;  %v9937_v24 = vld [vmem:[#allocation12 + $0x14] ss:$8 sps:$4 sm:$0xff]   ;;  %v9941_v26 = vld [vmem:[#allocation12 + $0x10] ss:$8 sps:$4 sm:$0xff]   ;;  %v9943_v28 = vld [vmem:[#allocation12 + $0x4] ss:$8 sps:$4 sm:$0xff]  }
  0xc5   : > { %v9939_v25 = vld [vmem:[#allocation14 + $0x14] ss:$8 sps:$4 sm:$0xff]   ;;  %v9942_v27 = vld [vmem:[#allocation14 + $0x10] ss:$8 sps:$4 sm:$0xff]   ;;  %v9945_v29 = vld [vmem:[#allocation14 + $0x4] ss:$8 sps:$4 sm:$0xff]  }
  0xc6   : > { %1140 = vmatpush1.bf16.msra.mxu0 %v9917_v10  ;;  %v9947_v30 = vld [vmem:[#allocation12] ss:$8 sps:$4 sm:$0xff]   ;;  %v9949_v32 = vld [vmem:[#allocation12 + $0xf4] ss:$8 sps:$4 sm:$0xff]   ;;  %v9953_v34 = vld [vmem:[#allocation12 + $0xf0] ss:$8 sps:$4 sm:$0xff]  }
  0xc7   : > { %1537 = vmatpush1.bf16.msra.mxu1 %v9918_v11  ;;  %1141 = vmatprep.subr.bf16.mxu0 %v9919_v12  ;;  %v9948_v31 = vld [vmem:[#allocation14] ss:$8 sps:$4 sm:$0xff]   ;;  %v9951_v33 = vld [vmem:[#allocation14 + $0xf4] ss:$8 sps:$4 sm:$0xff]   ;;  %v9954_v35 = vld [vmem:[#allocation14 + $0xf0] ss:$8 sps:$4 sm:$0xff]  }
  0xc8   : > { %1538 = vmatprep.subr.bf16.mxu1 %v9921_v13  ;;  %v9955_v36 = vld [vmem:[#allocation12 + $0xe4] ss:$8 sps:$4 sm:$0xff]   ;;  %v9959_v38 = vld [vmem:[#allocation12 + $0xe0] ss:$8 sps:$4 sm:$0xff]   ;;  %v9961_v40 = vld [vmem:[#allocation12 + $0xd4] ss:$8 sps:$4 sm:$0xff]  }
  0xc9   : > { %v9957_v37 = vld [vmem:[#allocation14 + $0xe4] ss:$8 sps:$4 sm:$0xff]   ;;  %v9960_v39 = vld [vmem:[#allocation14 + $0xe0] ss:$8 sps:$4 sm:$0xff]   ;;  %v9963_v41 = vld [vmem:[#allocation14 + $0xd4] ss:$8 sps:$4 sm:$0xff]  }
  0xca   : > { %1142 = vmatpush1.bf16.msra.mxu0 %v9923_v14  ;;  %v9965_v42 = vld [vmem:[#allocation12 + $0xd0] ss:$8 sps:$4 sm:$0xff]   ;;  %v9967_v44 = vld [vmem:[#allocation12 + $0xc4] ss:$8 sps:$4 sm:$0xff]   ;;  %v9971_v46 = vld [vmem:[#allocation12 + $0xc0] ss:$8 sps:$4 sm:$0xff]  }
  0xcb   : > { %1539 = vmatpush1.bf16.msra.mxu1 %v9924_v15  ;;  %1143 = vmatprep.subr.bf16.mxu0 %v9925_v16  ;;  %v9966_v43 = vld [vmem:[#allocation14 + $0xd0] ss:$8 sps:$4 sm:$0xff]   ;;  %v9969_v45 = vld [vmem:[#allocation14 + $0xc4] ss:$8 sps:$4 sm:$0xff]   ;;  %v9972_v47 = vld [vmem:[#allocation14 + $0xc0] ss:$8 sps:$4 sm:$0xff]  }
  0xcc   : > { %1540 = vmatprep.subr.bf16.mxu1 %v9927_v17  ;;  %v9999_v48 = vld [vmem:[%s11534_s11 + $0x4] ss:$8 sps:$4 sm:$0xff]   ;;  %v9973_v49 = vld [vmem:[#allocation12 + $0xb4] ss:$8 sps:$4 sm:$0xff]   ;;  %v9977_v51 = vld [vmem:[#allocation12 + $0xb0] ss:$8 sps:$4 sm:$0xff]  }
  0xcd   : > { %v9975_v50 = vld [vmem:[#allocation14 + $0xb4] ss:$8 sps:$4 sm:$0xff]   ;;  %1167 = vmatprep.mubr.bf16.mxu0 %v9999_v48  ;;  %1564 = vmatprep.mubr.bf16.mxu1 %v9999_v48  ;;  %v9978_v52 = vld [vmem:[#allocation14 + $0xb0] ss:$8 sps:$4 sm:$0xff]   ;;  %v9979_v53 = vld [vmem:[#allocation12 + $0xa4] ss:$8 sps:$4 sm:$0xff]  }
  0xce   : > { %1144 = vmatpush1.bf16.msra.mxu0 %v9929_v18  ;;  %v9981_v54 = vld [vmem:[#allocation14 + $0xa4] ss:$8 sps:$4 sm:$0xff]   ;;  %v9983_v55 = vld [vmem:[#allocation12 + $0xa0] ss:$8 sps:$4 sm:$0xff]   ;;  %v9985_v57 = vld [vmem:[#allocation12 + $0x94] ss:$8 sps:$4 sm:$0xff]  }
  0xcf   : > { %1541 = vmatpush1.bf16.msra.mxu1 %v9930_v19  ;;  %1145 = vmatprep.subr.bf16.mxu0 %v9931_v20  ;;  %v9984_v56 = vld [vmem:[#allocation14 + $0xa0] ss:$8 sps:$4 sm:$0xff]   ;;  %v9987_v58 = vld [vmem:[#allocation14 + $0x94] ss:$8 sps:$4 sm:$0xff]   ;;  %v9989_v59 = vld [vmem:[#allocation12 + $0x90] ss:$8 sps:$4 sm:$0xff]  }
  0xd0   : > { %1542 = vmatprep.subr.bf16.mxu1 %v9933_v21  ;;  %v9990_v60 = vld [vmem:[#allocation14 + $0x90] ss:$8 sps:$4 sm:$0xff]   ;;  %v9991_v61 = vld [vmem:[#allocation12 + $0x84] ss:$8 sps:$4 sm:$0xff]   ;;  %v9995_v63 = vld [vmem:[#allocation12 + $0x80] ss:$8 sps:$4 sm:$0xff]  }
  0xd1   : > { %v9993_v62 = vld [vmem:[#allocation14 + $0x84] ss:$8 sps:$4 sm:$0xff]   ;;  %v9996_v0 = vld [vmem:[#allocation14 + $0x80] ss:$8 sps:$4 sm:$0xff]   ;;  %v10000_v2 = vld [vmem:[%s11534_s11 + $0x14] ss:$8 sps:$4 sm:$0xff]  }
  0xd2   : > { %1146 = vmatpush1.bf16.msra.mxu0 %v9935_v22  ;;  %v9997_v1 = vld [vmem:[%s11534_s11] ss:$8 sps:$4 sm:$0xff]   ;;  %v10002_v3 = vld [vmem:[%s11534_s11 + $0x10] ss:$8 sps:$4 sm:$0xff]   ;;  %v10003_v4 = vld [vmem:[%s11534_s11 + $0x24] ss:$8 sps:$4 sm:$0xff]  }
  0xd3   : > { %1543 = vmatpush1.bf16.msra.mxu1 %v9936_v23  ;;  %1147 = vmatprep.subr.bf16.mxu0 %v9937_v24  ;;  %v10005_v5 = vld [vmem:[%s11534_s11 + $0x20] ss:$8 sps:$4 sm:$0xff]   ;;  %v10006_v6 = vld [vmem:[%s11534_s11 + $0x34] ss:$8 sps:$4 sm:$0xff]   ;;  %v10008_v7 = vld [vmem:[%s11534_s11 + $0x30] ss:$8 sps:$4 sm:$0xff]  }
  0xd4   : > { %1544 = vmatprep.subr.bf16.mxu1 %v9939_v25  ;;  %v10009_v8 = vld [vmem:[%s11534_s11 + $0x44] ss:$8 sps:$4 sm:$0xff]   ;;  %v10011_v9 = vld [vmem:[%s11534_s11 + $0x40] ss:$8 sps:$4 sm:$0xff]   ;;  %v10012_v10 = vld [vmem:[%s11534_s11 + $0x54] ss:$8 sps:$4 sm:$0xff]  }
  0xd5   : > { %v10014_v11 = vld [vmem:[%s11534_s11 + $0x50] ss:$8 sps:$4 sm:$0xff]   ;;  %v10015_v12 = vld [vmem:[%s11534_s11 + $0x64] ss:$8 sps:$4 sm:$0xff]   ;;  %v10017_v13 = vld [vmem:[%s11534_s11 + $0x60] ss:$8 sps:$4 sm:$0xff]  }
  0xd6   : > { %1148 = vmatpush1.bf16.msra.mxu0 %v9941_v26  ;;  %v10018_v14 = vld [vmem:[%s11534_s11 + $0x74] ss:$8 sps:$4 sm:$0xff]   ;;  %v10020_v15 = vld [vmem:[%s11534_s11 + $0x70] ss:$8 sps:$4 sm:$0xff]   ;;  %v10021_v16 = vld [vmem:[%s11534_s11 + $0x84] ss:$8 sps:$4 sm:$0xff]  }
  0xd7   : > { %1545 = vmatpush1.bf16.msra.mxu1 %v9942_v27  ;;  %1149 = vmatprep.subr.bf16.mxu0 %v9943_v28  ;;  %v10023_v17 = vld [vmem:[%s11534_s11 + $0x80] ss:$8 sps:$4 sm:$0xff]   ;;  %v10024_v18 = vld [vmem:[%s11534_s11 + $0x94] ss:$8 sps:$4 sm:$0xff]   ;;  %v10026_v19 = vld [vmem:[%s11534_s11 + $0x90] ss:$8 sps:$4 sm:$0xff]  }
  0xd8   : > { %1546 = vmatprep.subr.bf16.mxu1 %v9945_v29  ;;  %v10027_v20 = vld [vmem:[%s11534_s11 + $0xa4] ss:$8 sps:$4 sm:$0xff]   ;;  %v10029_v21 = vld [vmem:[%s11534_s11 + $0xa0] ss:$8 sps:$4 sm:$0xff]   ;;  %v10030_v22 = vld [vmem:[%s11534_s11 + $0xb4] ss:$8 sps:$4 sm:$0xff]  }
  0xd9   : > { %v10032_v23 = vld [vmem:[%s11534_s11 + $0xb0] ss:$8 sps:$4 sm:$0xff]   ;;  %v10033_v24 = vld [vmem:[%s11534_s11 + $0xc4] ss:$8 sps:$4 sm:$0xff]   ;;  %v10035_v25 = vld [vmem:[%s11534_s11 + $0xc0] ss:$8 sps:$4 sm:$0xff]  }
  0xda   : > { %1150 = vmatpush1.bf16.msra.mxu0 %v9947_v30  ;;  %v10036_v26 = vld [vmem:[%s11534_s11 + $0xd4] ss:$8 sps:$4 sm:$0xff]   ;;  %v10038_v27 = vld [vmem:[%s11534_s11 + $0xd0] ss:$8 sps:$4 sm:$0xff]   ;;  %v10039_v28 = vld [vmem:[%s11534_s11 + $0xe4] ss:$8 sps:$4 sm:$0xff]  }
  0xdb   : > { %1547 = vmatpush1.bf16.msra.mxu1 %v9948_v31  ;;  %1151 = vmatprep.subr.bf16.mxu0 %v9949_v32  ;;  %v10041_v29 = vld [vmem:[%s11534_s11 + $0xe0] ss:$8 sps:$4 sm:$0xff]   ;;  %v10042_v30 = vld [vmem:[%s11534_s11 + $0xf4] ss:$8 sps:$4 sm:$0xff]   ;;  %v10044_v31 = vld [vmem:[%s11534_s11 + $0xf0] ss:$8 sps:$4 sm:$0xff]   ;;  %v805_v32 = vlaneseq }
  0xdc   : > { %1548 = vmatprep.subr.bf16.mxu1 %v9951_v33 }
  0xdd   : > { %v806_v33 = vshrl.u32 %v805_v32, 7 }
  0xde   : > { %1152 = vmatpush2.bf16.msra.mxu0 %v9953_v34 }
  0xdf   : > { %1549 = vmatpush2.bf16.msra.mxu1 %v9954_v35  ;;  %1153 = vmatprep.subr.bf16.mxu0 %v9955_v36  ;;  %v807_v34 = vsub.s32 0, %v806_v33  ;;  %v803_v35 = vld [vmem:[%s14267_s5] sm:$0x3] }
  0xe0   : > { %1550 = vmatprep.subr.bf16.mxu1 %v9957_v37  ;;  %v1360_v36 = vld [vmem:[%s14269_s7] sm:$0x3]  ;;  %v811_v37 = vsub.s32 1, %v806_v33 }
  0xe2   : > { %1154 = vmatpush2.bf16.msra.mxu0 %v9959_v38 }
  0xe3   : > { %1551 = vmatpush2.bf16.msra.mxu1 %v9960_v39  ;;  %1155 = vmatprep.subr.bf16.mxu0 %v9961_v40  ;;  %v11607_v40 = vrot.slane %v803_v35, %v807_v34 }
  0xe4   : > { %1552 = vmatprep.subr.bf16.mxu1 %v9963_v41  ;;  %v11609_v41 = vrot.slane %v1360_v36, %v807_v34 }
  0xe6   : > { %1156 = vmatpush2.bf16.msra.mxu0 %v9965_v42  ;;  %v11611_v42 = vrot.slane %v803_v35, %v811_v37 }
  0xe7   : > { %1553 = vmatpush2.bf16.msra.mxu1 %v9966_v43  ;;  %1157 = vmatprep.subr.bf16.mxu0 %v9967_v44  ;;  %v11613_v44 = vrot.slane %v1360_v36, %v811_v37 }
  0xe8   : > { %1554 = vmatprep.subr.bf16.mxu1 %v9969_v45 }
  0xea   : > { %1158 = vmatpush2.bf16.msra.mxu0 %v9971_v46 }
  0xeb   : > { %1555 = vmatpush2.bf16.msra.mxu1 %v9972_v47  ;;  %1159 = vmatprep.subr.bf16.mxu0 %v9973_v49 }
  0xec   : > { %1556 = vmatprep.subr.bf16.mxu1 %v9975_v50 }
  0xee   : > { %1160 = vmatpush2.bf16.msra.mxu0 %v9977_v51 }
  0xef   : > { %1557 = vmatpush2.bf16.msra.mxu1 %v9978_v52  ;;  %1161 = vmatprep.subr.bf16.mxu0 %v9979_v53 }
  0xf0   : > { %1558 = vmatprep.subr.bf16.mxu1 %v9981_v54 }
  0xf2   : > { %1162 = vmatpush2.bf16.msra.mxu0 %v9983_v55 }
  0xf3   : > { %1559 = vmatpush2.bf16.msra.mxu1 %v9984_v56  ;;  %1163 = vmatprep.subr.bf16.mxu0 %v9985_v57 }
  0xf4   : > { %1560 = vmatprep.subr.bf16.mxu1 %v9987_v58 }
  0xf6   : > { %1164 = vmatpush2.bf16.msra.mxu0 %v9989_v59 }
  0xf7   : > { %1561 = vmatpush2.bf16.msra.mxu1 %v9990_v60  ;;  %1165 = vmatprep.subr.bf16.mxu0 %v9991_v61 }
  0xf8   : > { %1562 = vmatprep.subr.bf16.mxu1 %v9993_v62 }
  0xfa   : > { %1166 = vmatpush2.bf16.msra.mxu0 %v9995_v63 }
  0xfb   : > { %1563 = vmatpush2.bf16.msra.mxu1 %v9996_v0 }
  0xfd   : > { %1168 = vmatmul.mubr.bf16.vlgmr.msra.gmra.mxu0 %v9997_v1 }
  0xfe   : > { %1565 = vmatmul.mubr.bf16.vlgmr.msra.gmra.mxu1 %v9997_v1  ;;  %1177 = vmatprep.mubr.bf16.mxu0 %v10000_v2 }
  0xff   : > { %1574 = vmatprep.mubr.bf16.mxu1 %v10000_v2 }
 0x105   : > { %1178 = vmatmul.mubr.bf16.gmra.mxu0 %v10002_v3 }
 0x106   : > { %1575 = vmatmul.mubr.bf16.gmra.mxu1 %v10002_v3  ;;  %1187 = vmatprep.mubr.bf16.mxu0 %v10003_v4 }
 0x107   : > { %1584 = vmatprep.mubr.bf16.mxu1 %v10003_v4 }
 0x10d   : > { %1188 = vmatmul.mubr.bf16.gmra.mxu0 %v10005_v5 }
 0x10e   : > { %1585 = vmatmul.mubr.bf16.gmra.mxu1 %v10005_v5  ;;  %1197 = vmatprep.mubr.bf16.mxu0 %v10006_v6 }
 0x10f   : > { %1594 = vmatprep.mubr.bf16.mxu1 %v10006_v6 }
 0x115   : > { %1198 = vmatmul.mubr.bf16.gmra.mxu0 %v10008_v7 }
 0x116   : > { %1595 = vmatmul.mubr.bf16.gmra.mxu1 %v10008_v7  ;;  %1207 = vmatprep.mubr.bf16.mxu0 %v10009_v8 }
 0x117   : > { %1604 = vmatprep.mubr.bf16.mxu1 %v10009_v8 }
 0x11d   : > { %1208 = vmatmul.mubr.bf16.gmra.mxu0 %v10011_v9 }
 0x11e   : > { %1605 = vmatmul.mubr.bf16.gmra.mxu1 %v10011_v9  ;;  %1217 = vmatprep.mubr.bf16.mxu0 %v10012_v10 }
 0x11f   : > { %1614 = vmatprep.mubr.bf16.mxu1 %v10012_v10 }
 0x125   : > { %1218 = vmatmul.mubr.bf16.gmra.mxu0 %v10014_v11 }
 0x126   : > { %1615 = vmatmul.mubr.bf16.gmra.mxu1 %v10014_v11  ;;  %1227 = vmatprep.mubr.bf16.mxu0 %v10015_v12 }
 0x127   : > { %1624 = vmatprep.mubr.bf16.mxu1 %v10015_v12 }
 0x12d   : > { %1228 = vmatmul.mubr.bf16.gmra.mxu0 %v10017_v13 }
 0x12e   : > { %1625 = vmatmul.mubr.bf16.gmra.mxu1 %v10017_v13  ;;  %1237 = vmatprep.mubr.bf16.mxu0 %v10018_v14 }
 0x12f   : > { %1634 = vmatprep.mubr.bf16.mxu1 %v10018_v14 }
 0x135   : > { %1238 = vmatmul.mubr.bf16.gmra.mxu0 %v10020_v15 }
 0x136   : > { %1635 = vmatmul.mubr.bf16.gmra.mxu1 %v10020_v15  ;;  %1247 = vmatprep.mubr.bf16.mxu0 %v10021_v16 }
 0x137   : > { %1644 = vmatprep.mubr.bf16.mxu1 %v10021_v16 }
 0x13d   : > { %1248 = vmatmul.mubr.bf16.gmra.mxu0 %v10023_v17 }
 0x13e   : > { %1645 = vmatmul.mubr.bf16.gmra.mxu1 %v10023_v17  ;;  %1257 = vmatprep.mubr.bf16.mxu0 %v10024_v18 }
 0x13f   : > { %1654 = vmatprep.mubr.bf16.mxu1 %v10024_v18 }
 0x145   : > { %1258 = vmatmul.mubr.bf16.gmra.mxu0 %v10026_v19 }
 0x146   : > { %1655 = vmatmul.mubr.bf16.gmra.mxu1 %v10026_v19  ;;  %1267 = vmatprep.mubr.bf16.mxu0 %v10027_v20 }
 0x147   : > { %1664 = vmatprep.mubr.bf16.mxu1 %v10027_v20 }
 0x14d   : > { %1268 = vmatmul.mubr.bf16.gmra.mxu0 %v10029_v21 }
 0x14e   : > { %1665 = vmatmul.mubr.bf16.gmra.mxu1 %v10029_v21  ;;  %1277 = vmatprep.mubr.bf16.mxu0 %v10030_v22 }
 0x14f   : > { %1674 = vmatprep.mubr.bf16.mxu1 %v10030_v22 }
 0x155   : > { %1278 = vmatmul.mubr.bf16.gmra.mxu0 %v10032_v23 }
 0x156   : > { %1675 = vmatmul.mubr.bf16.gmra.mxu1 %v10032_v23  ;;  %1287 = vmatprep.mubr.bf16.mxu0 %v10033_v24 }
 0x157   : > { %1684 = vmatprep.mubr.bf16.mxu1 %v10033_v24 }
 0x15d   : > { %1288 = vmatmul.mubr.bf16.gmra.mxu0 %v10035_v25 }
 0x15e   : > { %1685 = vmatmul.mubr.bf16.gmra.mxu1 %v10035_v25  ;;  %1297 = vmatprep.mubr.bf16.mxu0 %v10036_v26 }
 0x15f   : > { %1694 = vmatprep.mubr.bf16.mxu1 %v10036_v26 }
 0x165   : > { %1298 = vmatmul.mubr.bf16.gmra.mxu0 %v10038_v27 }
 0x166   : > { %1695 = vmatmul.mubr.bf16.gmra.mxu1 %v10038_v27  ;;  %1307 = vmatprep.mubr.bf16.mxu0 %v10039_v28 }
 0x167   : > { %1704 = vmatprep.mubr.bf16.mxu1 %v10039_v28 }
 0x16d   : > { %1308 = vmatmul.mubr.bf16.gmra.mxu0 %v10041_v29 }
 0x16e   : > { %1705 = vmatmul.mubr.bf16.gmra.mxu1 %v10041_v29  ;;  %1317 = vmatprep.mubr.bf16.mxu0 %v10042_v30 }
 0x16f   : > { %1714 = vmatprep.mubr.bf16.mxu1 %v10042_v30 }
 0x175   : > { %1318 = vmatmul.mubr.bf16.gmra.mxu0 %v10044_v31 }
 0x176   : > { %1715 = vmatmul.mubr.bf16.gmra.mxu1 %v10044_v31 }
 0x1bd   : > { %v1169_v38 = vpop.f32.mrf.mxu0 }
 0x1be   : > { %v1566_v39 = vpop.f32.mrf.mxu1  ;;  %v1170_v48 = vadd.f32 %v1169_v38, %v11607_v40 }
 0x1bf   : > { %v1171_v43 = vpop.f32.mrf.mxu0  ;;  %v1567_v49 = vadd.f32 %v1566_v39, %v11609_v41 }
 0x1c0   : > { %v1568_v45 = vpop.f32.mrf.mxu1  ;;  %v1172_v52 = vadd.f32 %v1171_v43, %v11611_v42 }
 0x1c1   : > { %v1173_v46 = vpop.f32.mrf.mxu0  ;;  %v1569_v53 = vadd.f32 %v1568_v45, %v11613_v44 }
 0x1c2   : > { %v1570_v47 = vpop.f32.mrf.mxu1  ;;  %v1174_v50 = vadd.f32 %v1173_v46, %v11607_v40 }
 0x1c3   : > { %v1571_v51 = vadd.f32 %v1570_v47, %v11609_v41  ;;  %v1175_v54 = vpop.f32.mrf.mxu0 }
 0x1c4   : > { %v1572_v55 = vpop.f32.mrf.mxu1  ;;  %v9047_v56 = vpack.c.bf16 %v1174_v50, %v1170_v48  ;;  %v1176_v58 = vadd.f32 %v1175_v54, %v11611_v42 }
 0x1c5   : > { %v9127_v57 = vpack.c.bf16 %v1571_v51, %v1567_v49  ;;  %v1573_v59 = vadd.f32 %v1572_v55, %v11613_v44  ;;  %v1179_v60 = vpop.f32.mrf.mxu0 }
 0x1c6   : > { %v1576_v61 = vpop.f32.mrf.mxu1  ;;  %9048 = vst [vmem:[#allocation2] sm:$0xff] %v9047_v56   ;;  %v9207_v62 = vpack.c.bf16 %v1176_v58, %v1172_v52  ;;  %v1180_v4 = vadd.f32 %v1179_v60, %v11607_v40 }
 0x1c7   : > { %9128 = vst [vmem:[#allocation3] sm:$0xff] %v9127_v57   ;;  %v9287_v63 = vpack.c.bf16 %v1573_v59, %v1569_v53  ;;  %v1181_v0 = vpop.f32.mrf.mxu0  ;;  %v1577_v5 = vadd.f32 %v1576_v61, %v11609_v41 }
 0x1c8   : > { %v1578_v1 = vpop.f32.mrf.mxu1  ;;  %9208 = vst [vmem:[#allocation2 + $0x80] sm:$0xff] %v9207_v62   ;;  %v1182_v8 = vadd.f32 %v1181_v0, %v11611_v42 }
 0x1c9   : > { %9288 = vst [vmem:[#allocation3 + $0x80] sm:$0xff] %v9287_v63   ;;  %v1183_v2 = vpop.f32.mrf.mxu0  ;;  %v1579_v9 = vadd.f32 %v1578_v1, %v11613_v44 }
 0x1ca   : > { %v1580_v3 = vpop.f32.mrf.mxu1  ;;  %v1184_v6 = vadd.f32 %v1183_v2, %v11607_v40 }
 0x1cb   : > { %v1581_v7 = vadd.f32 %v1580_v3, %v11609_v41  ;;  %v1185_v10 = vpop.f32.mrf.mxu0 }
 0x1cc   : > { %v1582_v11 = vpop.f32.mrf.mxu1  ;;  %v9052_v12 = vpack.c.bf16 %v1184_v6, %v1180_v4  ;;  %v1186_v14 = vadd.f32 %v1185_v10, %v11611_v42 }
 0x1cd   : > { %v9132_v13 = vpack.c.bf16 %v1581_v7, %v1577_v5  ;;  %v1583_v15 = vadd.f32 %v1582_v11, %v11613_v44  ;;  %v1189_v16 = vpop.f32.mrf.mxu0 }
 0x1ce   : > { %v1586_v17 = vpop.f32.mrf.mxu1  ;;  %9444 = vst [vmem:[#allocation2 + $0x8] sm:$0xff] %v9052_v12   ;;  %v9212_v18 = vpack.c.bf16 %v1186_v14, %v1182_v8  ;;  %v1190_v24 = vadd.f32 %v1189_v16, %v11607_v40 }
 0x1cf   : > { %9459 = vst [vmem:[#allocation3 + $0x8] sm:$0xff] %v9132_v13   ;;  %v9292_v19 = vpack.c.bf16 %v1583_v15, %v1579_v9  ;;  %v1191_v20 = vpop.f32.mrf.mxu0  ;;  %v1587_v25 = vadd.f32 %v1586_v17, %v11609_v41 }
 0x1d0   : > { %v1588_v21 = vpop.f32.mrf.mxu1  ;;  %9474 = vst [vmem:[#allocation2 + $0x88] sm:$0xff] %v9212_v18   ;;  %v1192_v28 = vadd.f32 %v1191_v20, %v11611_v42 }
 0x1d1   : > { %9489 = vst [vmem:[#allocation3 + $0x88] sm:$0xff] %v9292_v19   ;;  %v1193_v22 = vpop.f32.mrf.mxu0  ;;  %v1589_v29 = vadd.f32 %v1588_v21, %v11613_v44 }
 0x1d2   : > { %v1590_v23 = vpop.f32.mrf.mxu1  ;;  %v1194_v26 = vadd.f32 %v1193_v22, %v11607_v40 }
 0x1d3   : > { %v1591_v27 = vadd.f32 %v1590_v23, %v11609_v41  ;;  %v1195_v30 = vpop.f32.mrf.mxu0 }
 0x1d4   : > { %v1592_v31 = vpop.f32.mrf.mxu1  ;;  %v9057_v32 = vpack.c.bf16 %v1194_v26, %v1190_v24  ;;  %v1196_v34 = vadd.f32 %v1195_v30, %v11611_v42 }
 0x1d5   : > { %v9137_v33 = vpack.c.bf16 %v1591_v27, %v1587_v25  ;;  %v1593_v35 = vadd.f32 %v1592_v31, %v11613_v44  ;;  %v1199_v36 = vpop.f32.mrf.mxu0 }
 0x1d6   : > { %v1596_v37 = vpop.f32.mrf.mxu1  ;;  %9445 = vst [vmem:[#allocation2 + $0x10] sm:$0xff] %v9057_v32   ;;  %v9217_v38 = vpack.c.bf16 %v1196_v34, %v1192_v28  ;;  %v1200_v48 = vadd.f32 %v1199_v36, %v11607_v40 }
 0x1d7   : > { %9460 = vst [vmem:[#allocation3 + $0x10] sm:$0xff] %v9137_v33   ;;  %v9297_v39 = vpack.c.bf16 %v1593_v35, %v1589_v29  ;;  %v1201_v43 = vpop.f32.mrf.mxu0  ;;  %v1597_v49 = vadd.f32 %v1596_v37, %v11609_v41 }
 0x1d8   : > { %v1598_v45 = vpop.f32.mrf.mxu1  ;;  %9475 = vst [vmem:[#allocation2 + $0x90] sm:$0xff] %v9217_v38   ;;  %v1202_v52 = vadd.f32 %v1201_v43, %v11611_v42 }
 0x1d9   : > { %9490 = vst [vmem:[#allocation3 + $0x90] sm:$0xff] %v9297_v39   ;;  %v1203_v46 = vpop.f32.mrf.mxu0  ;;  %v1599_v53 = vadd.f32 %v1598_v45, %v11613_v44 }
 0x1da   : > { %v1600_v47 = vpop.f32.mrf.mxu1  ;;  %v1204_v50 = vadd.f32 %v1203_v46, %v11607_v40 }
 0x1db   : > { %v1601_v51 = vadd.f32 %v1600_v47, %v11609_v41  ;;  %v1205_v54 = vpop.f32.mrf.mxu0 }
 0x1dc   : > { %v1602_v55 = vpop.f32.mrf.mxu1  ;;  %v9062_v56 = vpack.c.bf16 %v1204_v50, %v1200_v48  ;;  %v1206_v58 = vadd.f32 %v1205_v54, %v11611_v42 }
 0x1dd   : > { %v9142_v57 = vpack.c.bf16 %v1601_v51, %v1597_v49  ;;  %v1603_v59 = vadd.f32 %v1602_v55, %v11613_v44  ;;  %v1209_v60 = vpop.f32.mrf.mxu0 }
 0x1de   : > { %v1606_v61 = vpop.f32.mrf.mxu1  ;;  %9446 = vst [vmem:[#allocation2 + $0x18] sm:$0xff] %v9062_v56   ;;  %v9222_v62 = vpack.c.bf16 %v1206_v58, %v1202_v52  ;;  %v1210_v4 = vadd.f32 %v1209_v60, %v11607_v40 }
 0x1df   : > { %9461 = vst [vmem:[#allocation3 + $0x18] sm:$0xff] %v9142_v57   ;;  %v9302_v63 = vpack.c.bf16 %v1603_v59, %v1599_v53  ;;  %v1211_v0 = vpop.f32.mrf.mxu0  ;;  %v1607_v5 = vadd.f32 %v1606_v61, %v11609_v41 }
 0x1e0   : > { %v1608_v1 = vpop.f32.mrf.mxu1  ;;  %9476 = vst [vmem:[#allocation2 + $0x98] sm:$0xff] %v9222_v62   ;;  %v1212_v8 = vadd.f32 %v1211_v0, %v11611_v42 }
 0x1e1   : > { %9491 = vst [vmem:[#allocation3 + $0x98] sm:$0xff] %v9302_v63   ;;  %v1213_v2 = vpop.f32.mrf.mxu0  ;;  %v1609_v9 = vadd.f32 %v1608_v1, %v11613_v44 }
 0x1e2   : > { %v1610_v3 = vpop.f32.mrf.mxu1  ;;  %v1214_v6 = vadd.f32 %v1213_v2, %v11607_v40 }
 0x1e3   : > { %v1611_v7 = vadd.f32 %v1610_v3, %v11609_v41  ;;  %v1215_v10 = vpop.f32.mrf.mxu0 }
 0x1e4   : > { %v1612_v11 = vpop.f32.mrf.mxu1  ;;  %v9067_v12 = vpack.c.bf16 %v1214_v6, %v1210_v4  ;;  %v1216_v14 = vadd.f32 %v1215_v10, %v11611_v42 }
 0x1e5   : > { %v9147_v13 = vpack.c.bf16 %v1611_v7, %v1607_v5  ;;  %v1613_v15 = vadd.f32 %v1612_v11, %v11613_v44  ;;  %v1219_v16 = vpop.f32.mrf.mxu0 }
 0x1e6   : > { %v1616_v17 = vpop.f32.mrf.mxu1  ;;  %9447 = vst [vmem:[#allocation2 + $0x20] sm:$0xff] %v9067_v12   ;;  %v9227_v18 = vpack.c.bf16 %v1216_v14, %v1212_v8  ;;  %v1220_v24 = vadd.f32 %v1219_v16, %v11607_v40 }
 0x1e7   : > { %9462 = vst [vmem:[#allocation3 + $0x20] sm:$0xff] %v9147_v13   ;;  %v9307_v19 = vpack.c.bf16 %v1613_v15, %v1609_v9  ;;  %v1221_v20 = vpop.f32.mrf.mxu0  ;;  %v1617_v25 = vadd.f32 %v1616_v17, %v11609_v41 }
 0x1e8   : > { %v1618_v21 = vpop.f32.mrf.mxu1  ;;  %9477 = vst [vmem:[#allocation2 + $0xa0] sm:$0xff] %v9227_v18   ;;  %v1222_v28 = vadd.f32 %v1221_v20, %v11611_v42 }
 0x1e9   : > { %9492 = vst [vmem:[#allocation3 + $0xa0] sm:$0xff] %v9307_v19   ;;  %v1223_v22 = vpop.f32.mrf.mxu0  ;;  %v1619_v29 = vadd.f32 %v1618_v21, %v11613_v44 }
 0x1ea   : > { %v1620_v23 = vpop.f32.mrf.mxu1  ;;  %v1224_v26 = vadd.f32 %v1223_v22, %v11607_v40 }
 0x1eb   : > { %v1621_v27 = vadd.f32 %v1620_v23, %v11609_v41  ;;  %v1225_v30 = vpop.f32.mrf.mxu0 }
 0x1ec   : > { %v1622_v31 = vpop.f32.mrf.mxu1  ;;  %v9072_v32 = vpack.c.bf16 %v1224_v26, %v1220_v24  ;;  %v1226_v34 = vadd.f32 %v1225_v30, %v11611_v42 }
 0x1ed   : > { %v9152_v33 = vpack.c.bf16 %v1621_v27, %v1617_v25  ;;  %v1623_v35 = vadd.f32 %v1622_v31, %v11613_v44  ;;  %v1229_v36 = vpop.f32.mrf.mxu0 }
 0x1ee   : > { %v1626_v37 = vpop.f32.mrf.mxu1  ;;  %9448 = vst [vmem:[#allocation2 + $0x28] sm:$0xff] %v9072_v32   ;;  %v9232_v38 = vpack.c.bf16 %v1226_v34, %v1222_v28  ;;  %v1230_v48 = vadd.f32 %v1229_v36, %v11607_v40 }
 0x1ef   : > { %9463 = vst [vmem:[#allocation3 + $0x28] sm:$0xff] %v9152_v33   ;;  %v9312_v39 = vpack.c.bf16 %v1623_v35, %v1619_v29  ;;  %v1231_v43 = vpop.f32.mrf.mxu0  ;;  %v1627_v49 = vadd.f32 %v1626_v37, %v11609_v41 }
 0x1f0   : > { %v1628_v45 = vpop.f32.mrf.mxu1  ;;  %9478 = vst [vmem:[#allocation2 + $0xa8] sm:$0xff] %v9232_v38   ;;  %v1232_v52 = vadd.f32 %v1231_v43, %v11611_v42 }
 0x1f1   : > { %9493 = vst [vmem:[#allocation3 + $0xa8] sm:$0xff] %v9312_v39   ;;  %v1233_v46 = vpop.f32.mrf.mxu0  ;;  %v1629_v53 = vadd.f32 %v1628_v45, %v11613_v44 }
 0x1f2   : > { %v1630_v47 = vpop.f32.mrf.mxu1  ;;  %v1234_v50 = vadd.f32 %v1233_v46, %v11607_v40 }
 0x1f3   : > { %v1631_v51 = vadd.f32 %v1630_v47, %v11609_v41  ;;  %v1235_v54 = vpop.f32.mrf.mxu0 }
 0x1f4   : > { %v1632_v55 = vpop.f32.mrf.mxu1  ;;  %v9077_v56 = vpack.c.bf16 %v1234_v50, %v1230_v48  ;;  %v1236_v58 = vadd.f32 %v1235_v54, %v11611_v42 }
 0x1f5   : > { %v9157_v57 = vpack.c.bf16 %v1631_v51, %v1627_v49  ;;  %v1633_v59 = vadd.f32 %v1632_v55, %v11613_v44  ;;  %v1239_v60 = vpop.f32.mrf.mxu0 }
 0x1f6   : > { %v1636_v61 = vpop.f32.mrf.mxu1  ;;  %9449 = vst [vmem:[#allocation2 + $0x30] sm:$0xff] %v9077_v56   ;;  %v9237_v62 = vpack.c.bf16 %v1236_v58, %v1232_v52  ;;  %v1240_v4 = vadd.f32 %v1239_v60, %v11607_v40 }
 0x1f7   : > { %9464 = vst [vmem:[#allocation3 + $0x30] sm:$0xff] %v9157_v57   ;;  %v9317_v63 = vpack.c.bf16 %v1633_v59, %v1629_v53  ;;  %v1241_v0 = vpop.f32.mrf.mxu0  ;;  %v1637_v5 = vadd.f32 %v1636_v61, %v11609_v41 }
 0x1f8   : > { %v1638_v1 = vpop.f32.mrf.mxu1  ;;  %9479 = vst [vmem:[#allocation2 + $0xb0] sm:$0xff] %v9237_v62   ;;  %v1242_v8 = vadd.f32 %v1241_v0, %v11611_v42 }
 0x1f9   : > { %9494 = vst [vmem:[#allocation3 + $0xb0] sm:$0xff] %v9317_v63   ;;  %v1243_v2 = vpop.f32.mrf.mxu0  ;;  %v1639_v9 = vadd.f32 %v1638_v1, %v11613_v44 }
 0x1fa   : > { %v1640_v3 = vpop.f32.mrf.mxu1  ;;  %v1244_v6 = vadd.f32 %v1243_v2, %v11607_v40 }
 0x1fb   : > { %v1641_v7 = vadd.f32 %v1640_v3, %v11609_v41  ;;  %v1245_v10 = vpop.f32.mrf.mxu0 }
 0x1fc   : > { %v1642_v11 = vpop.f32.mrf.mxu1  ;;  %v9082_v12 = vpack.c.bf16 %v1244_v6, %v1240_v4  ;;  %v1246_v14 = vadd.f32 %v1245_v10, %v11611_v42 }
 0x1fd   : > { %v9162_v13 = vpack.c.bf16 %v1641_v7, %v1637_v5  ;;  %v1643_v15 = vadd.f32 %v1642_v11, %v11613_v44  ;;  %v1249_v16 = vpop.f32.mrf.mxu0 }
 0x1fe   : > { %v1646_v17 = vpop.f32.mrf.mxu1  ;;  %9450 = vst [vmem:[#allocation2 + $0x38] sm:$0xff] %v9082_v12   ;;  %v9242_v18 = vpack.c.bf16 %v1246_v14, %v1242_v8  ;;  %v1250_v24 = vadd.f32 %v1249_v16, %v11607_v40 }
 0x1ff   : > { %9465 = vst [vmem:[#allocation3 + $0x38] sm:$0xff] %v9162_v13   ;;  %v9322_v19 = vpack.c.bf16 %v1643_v15, %v1639_v9  ;;  %v1251_v20 = vpop.f32.mrf.mxu0  ;;  %v1647_v25 = vadd.f32 %v1646_v17, %v11609_v41 }
 0x200   : > { %v1648_v21 = vpop.f32.mrf.mxu1  ;;  %9480 = vst [vmem:[#allocation2 + $0xb8] sm:$0xff] %v9242_v18   ;;  %v1252_v28 = vadd.f32 %v1251_v20, %v11611_v42 }
 0x201   : > { %9495 = vst [vmem:[#allocation3 + $0xb8] sm:$0xff] %v9322_v19   ;;  %v1253_v22 = vpop.f32.mrf.mxu0  ;;  %v1649_v29 = vadd.f32 %v1648_v21, %v11613_v44 }
 0x202   : > { %v1650_v23 = vpop.f32.mrf.mxu1  ;;  %v1254_v26 = vadd.f32 %v1253_v22, %v11607_v40 }
 0x203   : > { %v1651_v27 = vadd.f32 %v1650_v23, %v11609_v41  ;;  %v1255_v30 = vpop.f32.mrf.mxu0 }
 0x204   : > { %v1652_v31 = vpop.f32.mrf.mxu1  ;;  %v9087_v32 = vpack.c.bf16 %v1254_v26, %v1250_v24  ;;  %v1256_v34 = vadd.f32 %v1255_v30, %v11611_v42 }
 0x205   : > { %v9167_v33 = vpack.c.bf16 %v1651_v27, %v1647_v25  ;;  %v1653_v35 = vadd.f32 %v1652_v31, %v11613_v44  ;;  %v1259_v36 = vpop.f32.mrf.mxu0 }
 0x206   : > { %v1656_v37 = vpop.f32.mrf.mxu1  ;;  %9451 = vst [vmem:[#allocation2 + $0x40] sm:$0xff] %v9087_v32   ;;  %v9247_v38 = vpack.c.bf16 %v1256_v34, %v1252_v28  ;;  %v1260_v48 = vadd.f32 %v1259_v36, %v11607_v40 }
 0x207   : > { %9466 = vst [vmem:[#allocation3 + $0x40] sm:$0xff] %v9167_v33   ;;  %v9327_v39 = vpack.c.bf16 %v1653_v35, %v1649_v29  ;;  %v1261_v43 = vpop.f32.mrf.mxu0  ;;  %v1657_v49 = vadd.f32 %v1656_v37, %v11609_v41 }
 0x208   : > { %v1658_v45 = vpop.f32.mrf.mxu1  ;;  %9481 = vst [vmem:[#allocation2 + $0xc0] sm:$0xff] %v9247_v38   ;;  %v1262_v52 = vadd.f32 %v1261_v43, %v11611_v42 }
 0x209   : > { %9496 = vst [vmem:[#allocation3 + $0xc0] sm:$0xff] %v9327_v39   ;;  %v1263_v46 = vpop.f32.mrf.mxu0  ;;  %v1659_v53 = vadd.f32 %v1658_v45, %v11613_v44 }
 0x20a   : > { %v1660_v47 = vpop.f32.mrf.mxu1  ;;  %v1264_v50 = vadd.f32 %v1263_v46, %v11607_v40 }
 0x20b   : > { %v1661_v51 = vadd.f32 %v1660_v47, %v11609_v41  ;;  %v1265_v54 = vpop.f32.mrf.mxu0 }
 0x20c   : > { %v1662_v55 = vpop.f32.mrf.mxu1  ;;  %v9092_v56 = vpack.c.bf16 %v1264_v50, %v1260_v48  ;;  %v1266_v58 = vadd.f32 %v1265_v54, %v11611_v42 }
 0x20d   : > { %v9172_v57 = vpack.c.bf16 %v1661_v51, %v1657_v49  ;;  %v1663_v59 = vadd.f32 %v1662_v55, %v11613_v44  ;;  %v1269_v60 = vpop.f32.mrf.mxu0 }
 0x20e   : > { %v1666_v61 = vpop.f32.mrf.mxu1  ;;  %9452 = vst [vmem:[#allocation2 + $0x48] sm:$0xff] %v9092_v56   ;;  %v9252_v62 = vpack.c.bf16 %v1266_v58, %v1262_v52  ;;  %v1270_v4 = vadd.f32 %v1269_v60, %v11607_v40 }
 0x20f   : > { %9467 = vst [vmem:[#allocation3 + $0x48] sm:$0xff] %v9172_v57   ;;  %v9332_v63 = vpack.c.bf16 %v1663_v59, %v1659_v53  ;;  %v1271_v0 = vpop.f32.mrf.mxu0  ;;  %v1667_v5 = vadd.f32 %v1666_v61, %v11609_v41 }
 0x210   : > { %v1668_v1 = vpop.f32.mrf.mxu1  ;;  %9482 = vst [vmem:[#allocation2 + $0xc8] sm:$0xff] %v9252_v62   ;;  %v1272_v8 = vadd.f32 %v1271_v0, %v11611_v42 }
 0x211   : > { %9497 = vst [vmem:[#allocation3 + $0xc8] sm:$0xff] %v9332_v63   ;;  %v1273_v2 = vpop.f32.mrf.mxu0  ;;  %v1669_v9 = vadd.f32 %v1668_v1, %v11613_v44 }
 0x212   : > { %v1670_v3 = vpop.f32.mrf.mxu1  ;;  %v1274_v6 = vadd.f32 %v1273_v2, %v11607_v40 }
 0x213   : > { %v1671_v7 = vadd.f32 %v1670_v3, %v11609_v41  ;;  %v1275_v10 = vpop.f32.mrf.mxu0 }
 0x214   : > { %v1672_v11 = vpop.f32.mrf.mxu1  ;;  %v9097_v12 = vpack.c.bf16 %v1274_v6, %v1270_v4  ;;  %v1276_v14 = vadd.f32 %v1275_v10, %v11611_v42 }
 0x215   : > { %v9177_v13 = vpack.c.bf16 %v1671_v7, %v1667_v5  ;;  %v1673_v15 = vadd.f32 %v1672_v11, %v11613_v44  ;;  %v1279_v16 = vpop.f32.mrf.mxu0 }
 0x216   : > { %v1676_v17 = vpop.f32.mrf.mxu1  ;;  %9453 = vst [vmem:[#allocation2 + $0x50] sm:$0xff] %v9097_v12   ;;  %v9257_v18 = vpack.c.bf16 %v1276_v14, %v1272_v8  ;;  %v1280_v24 = vadd.f32 %v1279_v16, %v11607_v40 }
 0x217   : > { %9468 = vst [vmem:[#allocation3 + $0x50] sm:$0xff] %v9177_v13   ;;  %v9337_v19 = vpack.c.bf16 %v1673_v15, %v1669_v9  ;;  %v1281_v20 = vpop.f32.mrf.mxu0  ;;  %v1677_v25 = vadd.f32 %v1676_v17, %v11609_v41 }
 0x218   : > { %v1678_v21 = vpop.f32.mrf.mxu1  ;;  %9483 = vst [vmem:[#allocation2 + $0xd0] sm:$0xff] %v9257_v18   ;;  %v1282_v28 = vadd.f32 %v1281_v20, %v11611_v42 }
 0x219   : > { %9498 = vst [vmem:[#allocation3 + $0xd0] sm:$0xff] %v9337_v19   ;;  %v1283_v22 = vpop.f32.mrf.mxu0  ;;  %v1679_v29 = vadd.f32 %v1678_v21, %v11613_v44 }
 0x21a   : > { %v1680_v23 = vpop.f32.mrf.mxu1  ;;  %v1284_v26 = vadd.f32 %v1283_v22, %v11607_v40 }
 0x21b   : > { %v1681_v27 = vadd.f32 %v1680_v23, %v11609_v41  ;;  %v1285_v30 = vpop.f32.mrf.mxu0 }
 0x21c   : > { %v1682_v31 = vpop.f32.mrf.mxu1  ;;  %v9102_v32 = vpack.c.bf16 %v1284_v26, %v1280_v24  ;;  %v1286_v34 = vadd.f32 %v1285_v30, %v11611_v42 }
 0x21d   : > { %v9182_v33 = vpack.c.bf16 %v1681_v27, %v1677_v25  ;;  %v1683_v35 = vadd.f32 %v1682_v31, %v11613_v44  ;;  %v1289_v36 = vpop.f32.mrf.mxu0 }
 0x21e   : > { %v1686_v37 = vpop.f32.mrf.mxu1  ;;  %9454 = vst [vmem:[#allocation2 + $0x58] sm:$0xff] %v9102_v32   ;;  %v9262_v38 = vpack.c.bf16 %v1286_v34, %v1282_v28  ;;  %v1290_v48 = vadd.f32 %v1289_v36, %v11607_v40 }
 0x21f   : > { %9469 = vst [vmem:[#allocation3 + $0x58] sm:$0xff] %v9182_v33   ;;  %v9342_v39 = vpack.c.bf16 %v1683_v35, %v1679_v29  ;;  %v1291_v43 = vpop.f32.mrf.mxu0  ;;  %v1687_v49 = vadd.f32 %v1686_v37, %v11609_v41 }
 0x220   : > { %v1688_v45 = vpop.f32.mrf.mxu1  ;;  %9484 = vst [vmem:[#allocation2 + $0xd8] sm:$0xff] %v9262_v38   ;;  %v1292_v52 = vadd.f32 %v1291_v43, %v11611_v42 }
 0x221   : > { %9499 = vst [vmem:[#allocation3 + $0xd8] sm:$0xff] %v9342_v39   ;;  %v1293_v46 = vpop.f32.mrf.mxu0  ;;  %v1689_v53 = vadd.f32 %v1688_v45, %v11613_v44 }
 0x222   : > { %v1690_v47 = vpop.f32.mrf.mxu1  ;;  %v1294_v50 = vadd.f32 %v1293_v46, %v11607_v40 }
 0x223   : > { %v1691_v51 = vadd.f32 %v1690_v47, %v11609_v41  ;;  %v1295_v54 = vpop.f32.mrf.mxu0 }
 0x224   : > { %v1692_v55 = vpop.f32.mrf.mxu1  ;;  %v9107_v56 = vpack.c.bf16 %v1294_v50, %v1290_v48  ;;  %v1296_v58 = vadd.f32 %v1295_v54, %v11611_v42 }
 0x225   : > { %v9187_v57 = vpack.c.bf16 %v1691_v51, %v1687_v49  ;;  %v1693_v59 = vadd.f32 %v1692_v55, %v11613_v44  ;;  %v1299_v60 = vpop.f32.mrf.mxu0 }
 0x226   : > { %v1696_v61 = vpop.f32.mrf.mxu1  ;;  %9455 = vst [vmem:[#allocation2 + $0x60] sm:$0xff] %v9107_v56   ;;  %v9267_v62 = vpack.c.bf16 %v1296_v58, %v1292_v52  ;;  %v1300_v4 = vadd.f32 %v1299_v60, %v11607_v40 }
 0x227   : > { %9470 = vst [vmem:[#allocation3 + $0x60] sm:$0xff] %v9187_v57   ;;  %v9347_v63 = vpack.c.bf16 %v1693_v59, %v1689_v53  ;;  %v1301_v0 = vpop.f32.mrf.mxu0  ;;  %v1697_v5 = vadd.f32 %v1696_v61, %v11609_v41 }
 0x228   : > { %v1698_v1 = vpop.f32.mrf.mxu1  ;;  %9485 = vst [vmem:[#allocation2 + $0xe0] sm:$0xff] %v9267_v62   ;;  %v1302_v8 = vadd.f32 %v1301_v0, %v11611_v42 }
 0x229   : > { %9500 = vst [vmem:[#allocation3 + $0xe0] sm:$0xff] %v9347_v63   ;;  %v1303_v2 = vpop.f32.mrf.mxu0  ;;  %v1699_v9 = vadd.f32 %v1698_v1, %v11613_v44 }
 0x22a   : > { %v1700_v3 = vpop.f32.mrf.mxu1  ;;  %v1304_v6 = vadd.f32 %v1303_v2, %v11607_v40 }
 0x22b   : > { %v1701_v7 = vadd.f32 %v1700_v3, %v11609_v41  ;;  %v1305_v10 = vpop.f32.mrf.mxu0 }
 0x22c   : > { %v1702_v11 = vpop.f32.mrf.mxu1  ;;  %v9112_v12 = vpack.c.bf16 %v1304_v6, %v1300_v4  ;;  %v1306_v14 = vadd.f32 %v1305_v10, %v11611_v42 }
 0x22d   : > { %v9192_v13 = vpack.c.bf16 %v1701_v7, %v1697_v5  ;;  %v1703_v15 = vadd.f32 %v1702_v11, %v11613_v44  ;;  %v1309_v16 = vpop.f32.mrf.mxu0 }
 0x22e   : > { %v1706_v17 = vpop.f32.mrf.mxu1  ;;  %9456 = vst [vmem:[#allocation2 + $0x68] sm:$0xff] %v9112_v12   ;;  %v9272_v18 = vpack.c.bf16 %v1306_v14, %v1302_v8  ;;  %v1310_v24 = vadd.f32 %v1309_v16, %v11607_v40 }
 0x22f   : > { %9471 = vst [vmem:[#allocation3 + $0x68] sm:$0xff] %v9192_v13   ;;  %v9352_v19 = vpack.c.bf16 %v1703_v15, %v1699_v9  ;;  %v1311_v20 = vpop.f32.mrf.mxu0  ;;  %v1707_v25 = vadd.f32 %v1706_v17, %v11609_v41 }
 0x230   : > { %v1708_v21 = vpop.f32.mrf.mxu1  ;;  %9486 = vst [vmem:[#allocation2 + $0xe8] sm:$0xff] %v9272_v18   ;;  %v1312_v28 = vadd.f32 %v1311_v20, %v11611_v42 }
 0x231   : > { %9501 = vst [vmem:[#allocation3 + $0xe8] sm:$0xff] %v9352_v19   ;;  %v1313_v22 = vpop.f32.mrf.mxu0  ;;  %v1709_v29 = vadd.f32 %v1708_v21, %v11613_v44 }
 0x232   : > { %v1710_v23 = vpop.f32.mrf.mxu1  ;;  %v1314_v26 = vadd.f32 %v1313_v22, %v11607_v40 }
 0x233   : > { %v1711_v27 = vadd.f32 %v1710_v23, %v11609_v41  ;;  %v1315_v30 = vpop.f32.mrf.mxu0 }
 0x234   : > { %v1712_v31 = vpop.f32.mrf.mxu1  ;;  %v9117_v32 = vpack.c.bf16 %v1314_v26, %v1310_v24  ;;  %v1316_v34 = vadd.f32 %v1315_v30, %v11611_v42 }
 0x235   : > { %v9197_v33 = vpack.c.bf16 %v1711_v27, %v1707_v25  ;;  %v1713_v35 = vadd.f32 %v1712_v31, %v11613_v44  ;;  %v1319_v36 = vpop.f32.mrf.mxu0 }
 0x236   : > { %v1716_v37 = vpop.f32.mrf.mxu1  ;;  %9457 = vst [vmem:[#allocation2 + $0x70] sm:$0xff] %v9117_v32   ;;  %v9277_v38 = vpack.c.bf16 %v1316_v34, %v1312_v28  ;;  %v1320_v48 = vadd.f32 %v1319_v36, %v11607_v40 }
 0x237   : > { %9472 = vst [vmem:[#allocation3 + $0x70] sm:$0xff] %v9197_v33   ;;  %v9357_v39 = vpack.c.bf16 %v1713_v35, %v1709_v29  ;;  %v1321_v43 = vpop.f32.mrf.mxu0  ;;  %v1717_v49 = vadd.f32 %v1716_v37, %v11609_v41 }
 0x238   : > { %v1718_v45 = vpop.f32.mrf.mxu1  ;;  %9487 = vst [vmem:[#allocation2 + $0xf0] sm:$0xff] %v9277_v38   ;;  %v1322_v52 = vadd.f32 %v1321_v43, %v11611_v42 }
 0x239   : > { %9502 = vst [vmem:[#allocation3 + $0xf0] sm:$0xff] %v9357_v39   ;;  %v1323_v46 = vpop.f32.mrf.mxu0  ;;  %v1719_v53 = vadd.f32 %v1718_v45, %v11613_v44 }
 0x23a   : > { %v1720_v47 = vpop.f32.mrf.mxu1  ;;  %v1324_v50 = vadd.f32 %v1323_v46, %v11607_v40 }
 0x23b   : > { %v1721_v51 = vadd.f32 %v1720_v47, %v11609_v41  ;;  %v1325_v54 = vpop.f32.mrf.mxu0 }
 0x23c   : > { %v1722_v55 = vpop.f32.mrf.mxu1  ;;  %v9122_v56 = vpack.c.bf16 %v1324_v50, %v1320_v48  ;;  %v1326_v58 = vadd.f32 %v1325_v54, %v11611_v42 }
 0x23d   : > { %v9202_v57 = vpack.c.bf16 %v1721_v51, %v1717_v49  ;;  %v1723_v59 = vadd.f32 %v1722_v55, %v11613_v44 }
 0x23e   : > { %9458 = vst [vmem:[#allocation2 + $0x78] sm:$0xff] %v9122_v56   ;;  %v9282_v60 = vpack.c.bf16 %v1326_v58, %v1322_v52 }
 0x23f   : > { %9473 = vst [vmem:[#allocation3 + $0x78] sm:$0xff] %v9202_v57   ;;  %v9362_v61 = vpack.c.bf16 %v1723_v59, %v1719_v53 }
 0x240   : > { %9488 = vst [vmem:[#allocation2 + $0xf8] sm:$0xff] %v9282_v60  }
 0x241   : > { %9503 = vst [vmem:[#allocation3 + $0xf8] sm:$0xff] %v9362_v61  }
 0x242 PF: > { %v10045_v40 = vld [vmem:[#allocation11 + $0x74] ss:$8 sps:$4 sm:$0xff]   ;;  %v10047_v41 = vld [vmem:[#allocation11 + $0x70] ss:$8 sps:$4 sm:$0xff]   ;;  %v10048_v62 = vld [vmem:[#allocation11 + $0x64] ss:$8 sps:$4 sm:$0xff]  }
 0x243   : > { %2673 = vmatprep.subr.bf16.mxu0 %v10045_v40  ;;  %v10050_v63 = vld [vmem:[#allocation11 + $0x60] ss:$8 sps:$4 sm:$0xff]   ;;  %v10051_v0 = vld [vmem:[#allocation11 + $0x54] ss:$8 sps:$4 sm:$0xff]   ;;  %v10053_v42 = vld [vmem:[#allocation11 + $0x50] ss:$8 sps:$4 sm:$0xff]  }
 0x244   : > { %2674 = vmatpush1.bf16.msra.mxu0 %v10047_v41  ;;  %v10054_v44 = vld [vmem:[#allocation11 + $0x44] ss:$8 sps:$4 sm:$0xff]   ;;  %v10056_v1 = vld [vmem:[#allocation11 + $0x40] ss:$8 sps:$4 sm:$0xff]   ;;  %v10057_v2 = vld [vmem:[#allocation11 + $0x34] ss:$8 sps:$4 sm:$0xff]  }
 0x245   : > { %2675 = vmatprep.subr.bf16.mxu0 %v10048_v62  ;;  %v10059_v3 = vld [vmem:[#allocation11 + $0x30] ss:$8 sps:$4 sm:$0xff]   ;;  %s8518_s9 = sshll.u32 %s11165_s1, 7  ;;  %v10060_v4 = vld [vmem:[#allocation11 + $0x24] ss:$8 sps:$4 sm:$0xff]   ;;  %v10115_v27 = vld [vmem:[#allocation2 + $0x60] sm:$0xff]  }
 0x246   : > { %s11745_s3 = scalar_lea.vmem %s11534_s11, %s8518_s9 [#allocation6]  ;;  %v10062_v5 = vld [vmem:[#allocation11 + $0x20] ss:$8 sps:$4 sm:$0xff]   ;;  %v10063_v6 = vld [vmem:[#allocation11 + $0x14] ss:$8 sps:$4 sm:$0xff]   ;;  %v10065_v10 = vld [vmem:[#allocation11 + $0x10] ss:$8 sps:$4 sm:$0xff]  }
 0x247   : > { %v11748_v7 = vld [vmem:[%s11745_s3] sm:$0xff]  ;;  %v11751_v8 = vld [vmem:[%s11745_s3 + $0x8] sm:$0xff]  ;;  %v10109_v14 = vld [vmem:[#allocation2 + $0x78] sm:$0xff]   ;;  %s14391_s14 = sld [smem:[#allocation80_spill]]  ;;  %s9043_s13 = sshll.u32 %s11165_s1, 5 }
 0x248   : > { %2676 = vmatpush1.bf16.msra.mxu0 %v10050_v63  ;;  %v8522_v9 = vcombine.high %v11748_v7, %v11751_v8  ;;  %v10066_v11 = vld [vmem:[#allocation11 + $0x4] ss:$8 sps:$4 sm:$0xff]   ;;  %v10068_v12 = vld [vmem:[#allocation11] ss:$8 sps:$4 sm:$0xff]   ;;  %v10069_v13 = vld [vmem:[#allocation11 + $0xf4] ss:$8 sps:$4 sm:$0xff]   ;;  %9518 = vmatprep.subr.bf16.mxu1 %v10109_v14  ;;  %v8521_v46 = vcombine.low %v11748_v7, %v11751_v8 }
 0x249   : > { %2677 = vmatprep.subr.bf16.mxu0 %v10051_v0  ;;  %v10110_v15 = vld [vmem:[#allocation2 + $0x38] sm:$0xff]   ;;  %v10111_v16 = vld [vmem:[#allocation2 + $0x70] sm:$0xff]   ;;  %v10074_v19 = vld [vmem:[#allocation11 + $0xe0] ss:$8 sps:$4 sm:$0xff]   ;;  %s14412_s12 = sld [smem:[#allocation84_spill]]  ;;  %s8097_s6 = sshll.u32 %s11566_s10, 4  ;;  %s14192_s6 = int_to_ptr.vmem [resolvable:$true] %s8097_s6 }
 0x24a   : > { %2705 = vmatprep.mubr.bf16.mxu0 %v8522_v9  ;;  %9519 = vmatpush3.bf16.xpose.msra.mxu1 %v10110_v15  ;;  %v10071_v17 = vld [vmem:[#allocation11 + $0xf0] ss:$8 sps:$4 sm:$0xff]   ;;  %v10072_v18 = vld [vmem:[#allocation11 + $0xe4] ss:$8 sps:$4 sm:$0xff]   ;;  %v10075_v22 = vld [vmem:[#allocation11 + $0xd4] ss:$8 sps:$4 sm:$0xff]  }
 0x24b   : > { %9520 = vmatprep.subr.bf16.mxu1 %v10111_v16  ;;  %v10112_v20 = vld [vmem:[#allocation2 + $0x30] sm:$0xff]   ;;  %v10113_v21 = vld [vmem:[#allocation2 + $0x68] sm:$0xff]   ;;  %v10081_v28 = vld [vmem:[#allocation11 + $0xb4] ss:$8 sps:$4 sm:$0xff]   ;;  %s14431_s25 = sld [smem:[#allocation85_spill]]  ;;  %s14202_s20 = scalar_lea.sflag [#allocation8], %s730_s24 }
 0x24c   : > { %2678 = vmatpush1.bf16.msra.mxu0 %v10053_v42  ;;  %v10077_v23 = vld [vmem:[#allocation11 + $0xd0] ss:$8 sps:$4 sm:$0xff]   ;;  %v10078_v24 = vld [vmem:[#allocation11 + $0xc4] ss:$8 sps:$4 sm:$0xff]   ;;  %v10080_v26 = vld [vmem:[#allocation11 + $0xc0] ss:$8 sps:$4 sm:$0xff]  }
 0x24d   : > { %2679 = vmatprep.subr.bf16.mxu0 %v10054_v44  ;;  %v10114_v25 = vld [vmem:[#allocation2 + $0x28] sm:$0xff]   ;;  %v10083_v29 = vld [vmem:[#allocation11 + $0xb0] ss:$8 sps:$4 sm:$0xff]   ;;  %v10116_v31 = vld [vmem:[#allocation2 + $0x20] sm:$0xff]   ;;  %s14432_s29 = sld [smem:[#allocation86_spill]]  ;;  %s11196_s23 = smov [#allocation20]  }
 0x24e   : > { %v10084_v30 = vld [vmem:[#allocation11 + $0xa4] ss:$8 sps:$4 sm:$0xff]   ;;  %v10086_v32 = vld [vmem:[#allocation11 + $0xa0] ss:$8 sps:$4 sm:$0xff]   ;;  %v10117_v33 = vld [vmem:[#allocation2 + $0x58] sm:$0xff]   ;;  %s14466_s26 = sld [smem:[#allocation88_spill]] }
 0x24f   : > { %v10087_v34 = vld [vmem:[#allocation11 + $0x94] ss:$8 sps:$4 sm:$0xff]   ;;  %v10089_v35 = vld [vmem:[#allocation11 + $0x90] ss:$8 sps:$4 sm:$0xff]   ;;  %v10090_v36 = vld [vmem:[#allocation11 + $0x84] ss:$8 sps:$4 sm:$0xff]  }
 0x250   : > { %2680 = vmatpush1.bf16.msra.mxu0 %v10056_v1  ;;  %v10118_v37 = vld [vmem:[#allocation2 + $0x18] sm:$0xff]   ;;  %v10092_v38 = vld [vmem:[#allocation11 + $0x80] ss:$8 sps:$4 sm:$0xff]   ;;  %v10119_v39 = vld [vmem:[#allocation2 + $0x50] sm:$0xff]   ;;  %s14485_s15 = sld [smem:[#allocation90_spill]]  ;;  %s11045_s17 = sshll.u32 %s11196_s23, 4  ;;  %s11046_s17 = int_to_ptr.vmem [resolvable:$false] %s11045_s17 }
 0x251   : > { %2681 = vmatprep.subr.bf16.mxu0 %v10057_v2  ;;  %v2375_v43 = vld [vmem:[%s11745_s3 + $0x10] sm:$0xff]  ;;  %v2376_v45 = vld [vmem:[%s11745_s3 + $0x18] sm:$0xff]  ;;  %v2377_v49 = vld [vmem:[%s11745_s3 + $0x20] sm:$0xff]  ;;  %s14522_s21 = sld [smem:[#allocation31_spill]]  ;;  %p11048_p8 = scmp.lt.s32.totalorder %s14192_s6, %s11046_s17 }
 0x252   : > { %9521 = vmatpush3.bf16.xpose.msra.mxu1 %v10112_v20  ;;  %v8524_v47 = vcombine.high %v2375_v43, %v2376_v45  ;;  %v10120_v48 = vld [vmem:[#allocation2 + $0x10] sm:$0xff]   ;;  %v2378_v50 = vld [vmem:[%s11745_s3 + $0x28] sm:$0xff]  ;;  %v8523_v51 = vcombine.low %v2375_v43, %v2376_v45  ;;  %v2380_v54 = vld [vmem:[%s11745_s3 + $0x38] sm:$0xff]  ;;  %s14523_s27 = sld [smem:[#allocation93_spill]] }
 0x253   : > { %9522 = vmatprep.subr.bf16.mxu1 %v10113_v21  ;;  %v8526_v52 = vcombine.high %v2377_v49, %v2378_v50  ;;  %v2379_v53 = vld [vmem:[%s11745_s3 + $0x30] sm:$0xff]  ;;  %v8525_v55 = vcombine.low %v2377_v49, %v2378_v50  ;;  %v2381_v57 = vld [vmem:[%s11745_s3 + $0x40] sm:$0xff]  ;;  %v2382_v58 = vld [vmem:[%s11745_s3 + $0x48] sm:$0xff] }
 0x254   : > { %2682 = vmatpush1.bf16.msra.mxu0 %v10059_v3  ;;  %v8528_v56 = vcombine.high %v2379_v53, %v2380_v54  ;;  %v8527_v59 = vcombine.low %v2379_v53, %v2380_v54  ;;  %v8530_v60 = vcombine.high %v2381_v57, %v2382_v58  ;;  %v2383_v61 = vld [vmem:[%s11745_s3 + $0x50] sm:$0xff]  ;;  %v2384_v40 = vld [vmem:[%s11745_s3 + $0x58] sm:$0xff]  ;;  %v8529_v41 = vcombine.low %v2381_v57, %v2382_v58  ;;  %v2385_v63 = vld [vmem:[%s11745_s3 + $0x60] sm:$0xff] }
 0x255   : > { %2683 = vmatprep.subr.bf16.mxu0 %v10060_v4  ;;  %v8532_v62 = vcombine.high %v2383_v61, %v2384_v40  ;;  %v2386_v0 = vld [vmem:[%s11745_s3 + $0x68] sm:$0xff]  ;;  %v8531_v42 = vcombine.low %v2383_v61, %v2384_v40  ;;  %v2387_v1 = vld [vmem:[%s11745_s3 + $0x70] sm:$0xff]  ;;  %v2388_v2 = vld [vmem:[%s11745_s3 + $0x78] sm:$0xff] }
 0x256   : > { %v8534_v44 = vcombine.high %v2385_v63, %v2386_v0  ;;  %v8533_v3 = vcombine.low %v2385_v63, %v2386_v0  ;;  %v8536_v4 = vcombine.high %v2387_v1, %v2388_v2  ;;  %v10122_v7 = vld [vmem:[#allocation2 + $0x8] sm:$0xff]   ;;  %v10123_v8 = vld [vmem:[#allocation2 + $0x40] sm:$0xff]  }
 0x257   : > { %v10124_v9 = vld [vmem:[#allocation2] sm:$0xff]  }
 0x258   : > { %2684 = vmatpush1.bf16.msra.mxu0 %v10062_v5  ;;  %v8535_v5 = vcombine.low %v2387_v1, %v2388_v2 }
 0x259   : > { %2685 = vmatprep.subr.bf16.mxu0 %v10063_v6  ;;  %v10121_v6 = vld [vmem:[#allocation2 + $0x48] sm:$0xff]  }
 0x25a   : > { %9523 = vmatpush3.bf16.xpose.msra.mxu1 %v10114_v25 }
 0x25b   : > { %9524 = vmatprep.subr.bf16.mxu1 %v10115_v27 }
 0x25c   : > { %2686 = vmatpush1.bf16.msra.mxu0 %v10065_v10  ;;  %v2423_v10 = vlaneseq }
 0x25d   : > { %2687 = vmatprep.subr.bf16.mxu0 %v10066_v11 }
 0x25e   : > { %v11771_v11 = vshrl.u32 %v2423_v10, 7 }
 0x260   : > { %2688 = vmatpush1.bf16.msra.mxu0 %v10068_v12  ;;  %14389 = vst [vmem:[#allocation38_spill] sm:$0xff] %v11771_v11  ;;  %v11774_v12 = vsub.s32 0, %v11771_v11  ;;  %v11780_v14 = vsub.s32 1, %v11771_v11 }
 0x261   : > { %2689 = vmatprep.subr.bf16.mxu0 %v10069_v13  ;;  %v2421_v13 = vld [vmem:[%s14391_s14] sm:$0x3]  ;;  %s14521_s14 = sld [smem:[#allocation92_spill]] }
 0x262   : > { %9525 = vmatpush3.bf16.xpose.msra.mxu1 %v10116_v31  ;;  %14390 = vst [vmem:[#allocation39_spill] sm:$0xff] %v11774_v12  ;;  %14392 = vst [vmem:[#allocation40_spill] sm:$0xff] %v11780_v14  ;;  %v11783_v15 = vrot.slane %v2421_v13, %v11774_v12 }
 0x263   : > { %9526 = vmatprep.subr.bf16.mxu1 %v10117_v33 }
 0x264   : > { %2690 = vmatpush2.bf16.msra.mxu0 %v10071_v17  ;;  %v11786_v17 = vrot.slane %v2421_v13, %v11780_v14 }
 0x265   : > { %2691 = vmatprep.subr.bf16.mxu0 %v10072_v18 }
 0x268   : > { %2692 = vmatpush2.bf16.msra.mxu0 %v10074_v19 }
 0x269   : > { %2693 = vmatprep.subr.bf16.mxu0 %v10075_v22 }
 0x26a   : > { %9527 = vmatpush3.bf16.xpose.msra.mxu1 %v10118_v37 }
 0x26b   : > { %9528 = vmatprep.subr.bf16.mxu1 %v10119_v39 }
 0x26c   : > { %2694 = vmatpush2.bf16.msra.mxu0 %v10077_v23 }
 0x26d   : > { %2695 = vmatprep.subr.bf16.mxu0 %v10078_v24 }
 0x270   : > { %2696 = vmatpush2.bf16.msra.mxu0 %v10080_v26 }
 0x271   : > { %2697 = vmatprep.subr.bf16.mxu0 %v10081_v28 }
 0x272   : > { %9529 = vmatpush3.bf16.xpose.msra.mxu1 %v10120_v48 }
 0x273   : > { %9530 = vmatprep.subr.bf16.mxu1 %v10121_v6 }
 0x274   : > { %2698 = vmatpush2.bf16.msra.mxu0 %v10083_v29 }
 0x275   : > { %2699 = vmatprep.subr.bf16.mxu0 %v10084_v30 }
 0x278   : > { %2700 = vmatpush2.bf16.msra.mxu0 %v10086_v32 }
 0x279   : > { %2701 = vmatprep.subr.bf16.mxu0 %v10087_v34 }
 0x27a   : > { %9531 = vmatpush3.bf16.xpose.msra.mxu1 %v10122_v7 }
 0x27b   : > { %9532 = vmatprep.subr.bf16.mxu1 %v10123_v8 }
 0x27c   : > { %2702 = vmatpush2.bf16.msra.mxu0 %v10089_v35 }
 0x27d   : > { %2703 = vmatprep.subr.bf16.mxu0 %v10090_v36 }
 0x280   : > { %2704 = vmatpush2.bf16.msra.mxu0 %v10092_v38 }
 0x282   : > { %9533 = vmatpush3.bf16.xpose.msra.mxu1 %v10124_v9 }
 0x283   : > { %2706 = vmatmul.mubr.bf16.vlgmr.msra.gmra.mxu0 %v8521_v46 }
 0x284   : > { %2715 = vmatprep.mubr.bf16.mxu0 %v8524_v47 }
 0x28b   : > { %2716 = vmatmul.mubr.bf16.gmra.mxu0 %v8523_v51 }
 0x28c   : > { %2725 = vmatprep.mubr.bf16.mxu0 %v8526_v52 }
 0x293   : > { %2726 = vmatmul.mubr.bf16.gmra.mxu0 %v8525_v55 }
 0x294   : > { %2735 = vmatprep.mubr.bf16.mxu0 %v8528_v56 }
 0x29b   : > { %2736 = vmatmul.mubr.bf16.gmra.mxu0 %v8527_v59 }
 0x29c   : > { %2745 = vmatprep.mubr.bf16.mxu0 %v8530_v60 }
 0x2a3   : > { %2746 = vmatmul.mubr.bf16.gmra.mxu0 %v8529_v41 }
 0x2a4   : > { %2755 = vmatprep.mubr.bf16.mxu0 %v8532_v62 }
 0x2ab   : > { %2756 = vmatmul.mubr.bf16.gmra.mxu0 %v8531_v42 }
 0x2ac   : > { %2765 = vmatprep.mubr.bf16.mxu0 %v8534_v44 }
 0x2b3   : > { %2766 = vmatmul.mubr.bf16.gmra.mxu0 %v8533_v3 }
 0x2b4   : > { %2775 = vmatprep.mubr.bf16.mxu0 %v8536_v4 }
 0x2bb   : > { %2776 = vmatmul.mubr.bf16.gmra.mxu0 %v8535_v5 }
 0x343   : > { %v2707_v16 = vpop.f32.mrf.mxu0 }
 0x344   : > { %v2708_v19 = vadd.f32 %v2707_v16, %v11783_v15 }
 0x345   : > { %v2709_v18 = vpop.f32.mrf.mxu0 }
 0x346   : > { %v2710_v21 = vadd.f32 %v2709_v18, %v11786_v17  ;;  %v2786_v24 = vmul.f32 0.088388346, %v2708_v19 }
 0x347   : > { %v2711_v20 = vpop.f32.mrf.mxu0 }
 0x348   : > { %v2712_v22 = vadd.f32 %v2711_v20, %v11783_v15  ;;  %v2787_v28 = vmul.f32 0.088388346, %v2710_v21 }
 0x349   : > { %v2713_v23 = vpop.f32.mrf.mxu0 }
 0x34a   : > { %v2788_v25 = vmul.f32 0.088388346, %v2712_v22  ;;  %v2714_v26 = vadd.f32 %v2713_v23, %v11786_v17 }
 0x34b   : > { %v2717_v27 = vpop.f32.mrf.mxu0 }
 0x34c   : > { %v9367_v29 = vpack.c.bf16 %v2788_v25, %v2786_v24  ;;  %v2789_v30 = vmul.f32 0.088388346, %v2714_v26  ;;  %v2718_v33 = vadd.f32 %v2717_v27, %v11783_v15 }
 0x34d   : > { %v2719_v31 = vpop.f32.mrf.mxu0 }
 0x34e   : > { %9368 = vst [vmem:[#allocation4] sm:$0xff] %v9367_v29   ;;  %v9407_v32 = vpack.c.bf16 %v2789_v30, %v2787_v28  ;;  %v2720_v35 = vadd.f32 %v2719_v31, %v11786_v17  ;;  %v2790_v38 = vmul.f32 0.088388346, %v2718_v33 }
 0x34f   : > { %v2721_v34 = vpop.f32.mrf.mxu0 }
 0x350   : > { %9408 = vst [vmem:[#allocation4 + $0x40] sm:$0xff] %v9407_v32   ;;  %v2722_v36 = vadd.f32 %v2721_v34, %v11783_v15  ;;  %v2791_v46 = vmul.f32 0.088388346, %v2720_v35 }
 0x351   : > { %v2723_v37 = vpop.f32.mrf.mxu0 }
 0x352   : > { %v2792_v39 = vmul.f32 0.088388346, %v2722_v36  ;;  %v2724_v43 = vadd.f32 %v2723_v37, %v11786_v17 }
 0x353   : > { %v2727_v45 = vpop.f32.mrf.mxu0 }
 0x354   : > { %v9372_v47 = vpack.c.bf16 %v2792_v39, %v2790_v38  ;;  %v2793_v48 = vmul.f32 0.088388346, %v2724_v43  ;;  %v2728_v52 = vadd.f32 %v2727_v45, %v11783_v15 }
 0x355   : > { %v2729_v49 = vpop.f32.mrf.mxu0  ;;  %v10125_v50 = vld [vmem:[#allocation4] sm:$0xff]  }
 0x356   : > { %9504 = vst [vmem:[#allocation4 + $0x8] sm:$0xff] %v9372_v47   ;;  %v9412_v51 = vpack.c.bf16 %v2793_v48, %v2791_v46  ;;  %9534 = vmatprep.mubr.bf16.mxu1 %v10125_v50  ;;  %v2730_v54 = vadd.f32 %v2729_v49, %v11786_v17  ;;  %v2794_v57 = vmul.f32 0.088388346, %v2728_v52 }
 0x357   : > { %v2731_v53 = vpop.f32.mrf.mxu0  ;;  %9535 = vmatmul.mubr.bf16.vlgmr.msra.gmra.mxu1 %v10125_v50 }
 0x358   : > { %9511 = vst [vmem:[#allocation4 + $0x48] sm:$0xff] %v9412_v51   ;;  %v2732_v55 = vadd.f32 %v2731_v53, %v11783_v15  ;;  %v2795_v61 = vmul.f32 0.088388346, %v2730_v54 }
 0x359   : > { %v2733_v56 = vpop.f32.mrf.mxu0 }
 0x35a   : > { %v2796_v58 = vmul.f32 0.088388346, %v2732_v55  ;;  %v2734_v59 = vadd.f32 %v2733_v56, %v11786_v17 }
 0x35b   : > { %v2737_v60 = vpop.f32.mrf.mxu0 }
 0x35c   : > { %v9377_v40 = vpack.c.bf16 %v2796_v58, %v2794_v57  ;;  %v2797_v41 = vmul.f32 0.088388346, %v2734_v59  ;;  %v2738_v42 = vadd.f32 %v2737_v60, %v11783_v15 }
 0x35d   : > { %v2739_v62 = vpop.f32.mrf.mxu0  ;;  %v10126_v63 = vld [vmem:[#allocation4 + $0x8] sm:$0xff]  }
 0x35e   : > { %9505 = vst [vmem:[#allocation4 + $0x10] sm:$0xff] %v9377_v40   ;;  %v9417_v0 = vpack.c.bf16 %v2797_v41, %v2795_v61  ;;  %9536 = vmatprep.mubr.bf16.mxu1 %v10126_v63  ;;  %v2740_v1 = vadd.f32 %v2739_v62, %v11786_v17  ;;  %v2798_v4 = vmul.f32 0.088388346, %v2738_v42 }
 0x35f   : > { %v2741_v44 = vpop.f32.mrf.mxu0  ;;  %9537 = vmatmul.mubr.bf16.gmra.mxu1 %v10126_v63 }
 0x360   : > { %9512 = vst [vmem:[#allocation4 + $0x50] sm:$0xff] %v9417_v0   ;;  %v2742_v2 = vadd.f32 %v2741_v44, %v11783_v15  ;;  %v2799_v8 = vmul.f32 0.088388346, %v2740_v1 }
 0x361   : > { %v2743_v3 = vpop.f32.mrf.mxu0 }
 0x362   : > { %v2800_v5 = vmul.f32 0.088388346, %v2742_v2  ;;  %v2744_v6 = vadd.f32 %v2743_v3, %v11786_v17 }
 0x363   : > { %v2747_v7 = vpop.f32.mrf.mxu0 }
 0x364   : > { %v9382_v9 = vpack.c.bf16 %v2800_v5, %v2798_v4  ;;  %v2801_v10 = vmul.f32 0.088388346, %v2744_v6  ;;  %v2748_v19 = vadd.f32 %v2747_v7, %v11783_v15 }
 0x365   : > { %v2749_v13 = vpop.f32.mrf.mxu0  ;;  %v10127_v16 = vld [vmem:[#allocation4 + $0x10] sm:$0xff]  }
 0x366   : > { %9506 = vst [vmem:[#allocation4 + $0x18] sm:$0xff] %v9382_v9   ;;  %v9422_v18 = vpack.c.bf16 %v2801_v10, %v2799_v8  ;;  %9538 = vmatprep.mubr.bf16.mxu1 %v10127_v16  ;;  %v2750_v21 = vadd.f32 %v2749_v13, %v11786_v17  ;;  %v2802_v24 = vmul.f32 0.088388346, %v2748_v19 }
 0x367   : > { %v2751_v20 = vpop.f32.mrf.mxu0  ;;  %9539 = vmatmul.mubr.bf16.gmra.mxu1 %v10127_v16 }
 0x368   : > { %9513 = vst [vmem:[#allocation4 + $0x58] sm:$0xff] %v9422_v18   ;;  %v2752_v22 = vadd.f32 %v2751_v20, %v11783_v15  ;;  %v2803_v28 = vmul.f32 0.088388346, %v2750_v21 }
 0x369   : > { %v2753_v23 = vpop.f32.mrf.mxu0 }
 0x36a   : > { %v2804_v25 = vmul.f32 0.088388346, %v2752_v22  ;;  %v2754_v26 = vadd.f32 %v2753_v23, %v11786_v17 }
 0x36b   : > { %v2757_v27 = vpop.f32.mrf.mxu0 }
 0x36c   : > { %v9387_v29 = vpack.c.bf16 %v2804_v25, %v2802_v24  ;;  %v2805_v30 = vmul.f32 0.088388346, %v2754_v26  ;;  %v2758_v34 = vadd.f32 %v2757_v27, %v11783_v15 }
 0x36d   : > { %v2759_v31 = vpop.f32.mrf.mxu0  ;;  %v10128_v32 = vld [vmem:[#allocation4 + $0x18] sm:$0xff]  }
 0x36e   : > { %9507 = vst [vmem:[#allocation4 + $0x20] sm:$0xff] %v9387_v29   ;;  %v9427_v33 = vpack.c.bf16 %v2805_v30, %v2803_v28  ;;  %9540 = vmatprep.mubr.bf16.mxu1 %v10128_v32  ;;  %v2760_v36 = vadd.f32 %v2759_v31, %v11786_v17  ;;  %v2806_v39 = vmul.f32 0.088388346, %v2758_v34 }
 0x36f   : > { %v2761_v35 = vpop.f32.mrf.mxu0  ;;  %9541 = vmatmul.mubr.bf16.gmra.mxu1 %v10128_v32 }
 0x370   : > { %9514 = vst [vmem:[#allocation4 + $0x60] sm:$0xff] %v9427_v33   ;;  %v2762_v37 = vadd.f32 %v2761_v35, %v11783_v15  ;;  %v2807_v47 = vmul.f32 0.088388346, %v2760_v36 }
 0x371   : > { %v2763_v38 = vpop.f32.mrf.mxu0 }
 0x372   : > { %v2808_v43 = vmul.f32 0.088388346, %v2762_v37  ;;  %v2764_v45 = vadd.f32 %v2763_v38, %v11786_v17 }
 0x373   : > { %v2767_v46 = vpop.f32.mrf.mxu0 }
 0x374   : > { %v9392_v48 = vpack.c.bf16 %v2808_v43, %v2806_v39  ;;  %v2809_v49 = vmul.f32 0.088388346, %v2764_v45  ;;  %v2768_v53 = vadd.f32 %v2767_v46, %v11783_v15 }
 0x375   : > { %v2769_v50 = vpop.f32.mrf.mxu0  ;;  %v10129_v51 = vld [vmem:[#allocation4 + $0x20] sm:$0xff]  }
 0x376   : > { %9508 = vst [vmem:[#allocation4 + $0x28] sm:$0xff] %v9392_v48   ;;  %v9432_v52 = vpack.c.bf16 %v2809_v49, %v2807_v47  ;;  %9542 = vmatprep.mubr.bf16.mxu1 %v10129_v51  ;;  %v2770_v55 = vadd.f32 %v2769_v50, %v11786_v17  ;;  %v2810_v58 = vmul.f32 0.088388346, %v2768_v53 }
 0x377   : > { %v2771_v54 = vpop.f32.mrf.mxu0  ;;  %9543 = vmatmul.mubr.bf16.gmra.mxu1 %v10129_v51 }
 0x378   : > { %9515 = vst [vmem:[#allocation4 + $0x68] sm:$0xff] %v9432_v52   ;;  %v2772_v56 = vadd.f32 %v2771_v54, %v11783_v15  ;;  %v2811_v40 = vmul.f32 0.088388346, %v2770_v55 }
 0x379   : > { %v2773_v57 = vpop.f32.mrf.mxu0 }
 0x37a   : > { %v2812_v59 = vmul.f32 0.088388346, %v2772_v56  ;;  %v2774_v60 = vadd.f32 %v2773_v57, %v11786_v17 }
 0x37b   : > { %v2777_v61 = vpop.f32.mrf.mxu0 }
 0x37c   : > { %v9397_v41 = vpack.c.bf16 %v2812_v59, %v2810_v58  ;;  %v2813_v62 = vmul.f32 0.088388346, %v2774_v60  ;;  %v2778_v44 = vadd.f32 %v2777_v61, %v11783_v15 }
 0x37d   : > { %v2779_v63 = vpop.f32.mrf.mxu0  ;;  %v10130_v0 = vld [vmem:[#allocation4 + $0x28] sm:$0xff]  }
 0x37e   : > { %9509 = vst [vmem:[#allocation4 + $0x30] sm:$0xff] %v9397_v41   ;;  %v9437_v42 = vpack.c.bf16 %v2813_v62, %v2811_v40  ;;  %9544 = vmatprep.mubr.bf16.mxu1 %v10130_v0  ;;  %v2780_v2 = vadd.f32 %v2779_v63, %v11786_v17  ;;  %v2814_v5 = vmul.f32 0.088388346, %v2778_v44 }
 0x37f   : > { %v2781_v1 = vpop.f32.mrf.mxu0  ;;  %9545 = vmatmul.mubr.bf16.gmra.mxu1 %v10130_v0 }
 0x380   : > { %9516 = vst [vmem:[#allocation4 + $0x70] sm:$0xff] %v9437_v42   ;;  %v2782_v3 = vadd.f32 %v2781_v1, %v11783_v15  ;;  %v2815_v8 = vmul.f32 0.088388346, %v2780_v2  ;;  %v2979_v15 = vld [vmem:[%s11541_s16] sm:$0x3]  ;;  %s14524_s16 = smov %s14523_s27 }
 0x381   : > { %v2783_v4 = vpop.f32.mrf.mxu0  ;;  %v11822_v19 = vrot.slane %v2979_v15, %v11774_v12  ;;  %v11825_v20 = vrot.slane %v2979_v15, %v11780_v14 }
 0x382   : > { %v2816_v6 = vmul.f32 0.088388346, %v2782_v3  ;;  %v2784_v7 = vadd.f32 %v2783_v4, %v11786_v17 }
 0x384   : > { %v9402_v9 = vpack.c.bf16 %v2816_v6, %v2814_v5  ;;  %v2817_v10 = vmul.f32 0.088388346, %v2784_v7 }
 0x385   : > { %v10131_v13 = vld [vmem:[#allocation4 + $0x30] sm:$0xff]  }
 0x386   : > { %9510 = vst [vmem:[#allocation4 + $0x38] sm:$0xff] %v9402_v9   ;;  %v9442_v16 = vpack.c.bf16 %v2817_v10, %v2815_v8  ;;  %9546 = vmatprep.mubr.bf16.mxu1 %v10131_v13 }
 0x387   : > { %9547 = vmatmul.mubr.bf16.gmra.mxu1 %v10131_v13 }
 0x388   : > { %9517 = vst [vmem:[#allocation4 + $0x78] sm:$0xff] %v9442_v16  }
 0x38d   : > { %v10132_v18 = vld [vmem:[#allocation4 + $0x38] sm:$0xff]  }
 0x38e   : > { %9548 = vmatprep.mubr.bf16.mxu1 %v10132_v18 }
 0x38f   : > { %9549 = vmatmul.mubr.bf16.gmra.mxu1 %v10132_v18 }
 0x417   : > { %v3281_v17 = vpop.f32.mrf.mxu1 }
 0x418   : > { %v11828_v22 = vadd.f32 %v3281_v17, %v11822_v19 }
 0x419   : > { %v3283_v21 = vpop.f32.mrf.mxu1 }
 0x41a   : > { %v11831_v23 = vadd.f32 %v3283_v21, %v11825_v20 }
 0x41b   : > { %v3285_v24 = vpop.f32.mrf.mxu1 }
 0x41c   : > { %v3360_v25 = vmax.f32 %v11828_v22, %v11831_v23  ;;  %v11836_v27 = vadd.f32 %v3285_v24, %v11822_v19 }
 0x41d   : > { %v3287_v26 = vpop.f32.mrf.mxu1 }
 0x41e   : > { %v11839_v28 = vadd.f32 %v3287_v26, %v11825_v20  ;;  %3361 = vmax.xlane.f32.xlu0 %v3360_v25 }
 0x41f   : > { %v3291_v29 = vpop.f32.mrf.mxu1 }
 0x420   : > { %v3363_v30 = vmax.f32 %v11836_v27, %v11839_v28  ;;  %v11844_v32 = vadd.f32 %v3291_v29, %v11822_v19 }
 0x421   : > { %v3293_v31 = vpop.f32.mrf.mxu1 }
 0x422   : > { %v11847_v33 = vadd.f32 %v3293_v31, %v11825_v20  ;;  %3364 = vmax.xlane.f32.xlu0 %v3363_v30 }
 0x423   : > { %v3295_v34 = vpop.f32.mrf.mxu1 }
 0x424   : > { %v3366_v35 = vmax.f32 %v11844_v32, %v11847_v33  ;;  %v11852_v37 = vadd.f32 %v3295_v34, %v11822_v19 }
 0x425   : > { %v3297_v36 = vpop.f32.mrf.mxu1 }
 0x426   : > { %v11855_v38 = vadd.f32 %v3297_v36, %v11825_v20  ;;  %3367 = vmax.xlane.f32.xlu1 %v3366_v35 }
 0x427   : > { %v3301_v39 = vpop.f32.mrf.mxu1 }
 0x428   : > { %v3369_v43 = vmax.f32 %v11852_v37, %v11855_v38  ;;  %v11860_v46 = vadd.f32 %v3301_v39, %v11822_v19 }
 0x429   : > { %v3303_v45 = vpop.f32.mrf.mxu1 }
 0x42a   : > { %v11863_v47 = vadd.f32 %v3303_v45, %v11825_v20  ;;  %3370 = vmax.xlane.f32.xlu1 %v3369_v43 }
 0x42b   : > { %v3305_v48 = vpop.f32.mrf.mxu1 }
 0x42c   : > { %v3372_v49 = vmax.f32 %v11860_v46, %v11863_v47  ;;  %v11868_v51 = vadd.f32 %v3305_v48, %v11822_v19 }
 0x42d   : > { %v3307_v50 = vpop.f32.mrf.mxu1 }
 0x42e   : > { %v11871_v52 = vadd.f32 %v3307_v50, %v11825_v20  ;;  %3373 = vmax.xlane.f32.xlu0 %v3372_v49 }
 0x42f   : > { %v3311_v53 = vpop.f32.mrf.mxu1 }
 0x430   : > { %v3375_v54 = vmax.f32 %v11868_v51, %v11871_v52  ;;  %v11876_v56 = vadd.f32 %v3311_v53, %v11822_v19 }
 0x431   : > { %v3313_v55 = vpop.f32.mrf.mxu1 }
 0x432   : > { %v11879_v57 = vadd.f32 %v3313_v55, %v11825_v20  ;;  %3376 = vmax.xlane.f32.xlu1 %v3375_v54 }
 0x433   : > { %v3315_v58 = vpop.f32.mrf.mxu1 }
 0x434   : > { %v3378_v59 = vmax.f32 %v11876_v56, %v11879_v57  ;;  %v11884_v61 = vadd.f32 %v3315_v58, %v11822_v19 }
 0x435   : > { %v3317_v60 = vpop.f32.mrf.mxu1 }
 0x436   : > { %v11887_v40 = vadd.f32 %v3317_v60, %v11825_v20  ;;  %3379 = vmax.xlane.f32.xlu0 %v3378_v59  ;;  %v10133_v59 = vld [vmem:[#allocation3 + $0x78] sm:$0xff]  }
 0x437   : > { %v3321_v41 = vpop.f32.mrf.mxu1  ;;  %v10134_v60 = vld [vmem:[#allocation3 + $0x38] sm:$0xff]   ;;  %9550 = vmatprep.subr.bf16.mxu0 %v10133_v59 }
 0x438   : > { %v3381_v62 = vmax.f32 %v11884_v61, %v11887_v40  ;;  %v11892_v0 = vadd.f32 %v3321_v41, %v11822_v19  ;;  %v10135_v41 = vld [vmem:[#allocation3 + $0x70] sm:$0xff]   ;;  %9551 = vmatpush3.bf16.msra.mxu0 %v10134_v60 }
 0x439   : > { %v3323_v63 = vpop.f32.mrf.mxu1  ;;  %9552 = vmatprep.subr.bf16.mxu0 %v10135_v41 }
 0x43a   : > { %v11895_v42 = vadd.f32 %v3323_v63, %v11825_v20  ;;  %3382 = vmax.xlane.f32.xlu1 %v3381_v62  ;;  %v10136_v62 = vld [vmem:[#allocation3 + $0x30] sm:$0xff]   ;;  %v10137_v63 = vld [vmem:[#allocation3 + $0x68] sm:$0xff]  }
 0x43b   : > { %v3325_v44 = vpop.f32.mrf.mxu1 }
 0x43c   : > { %v3384_v1 = vmax.f32 %v11892_v0, %v11895_v42  ;;  %v11900_v3 = vadd.f32 %v3325_v44, %v11822_v19  ;;  %9553 = vmatpush3.bf16.msra.mxu0 %v10136_v62  ;;  %v10138_v44 = vld [vmem:[#allocation3 + $0x28] sm:$0xff]  }
 0x43d   : > { %v3327_v2 = vpop.f32.mrf.mxu1  ;;  %9554 = vmatprep.subr.bf16.mxu0 %v10137_v63 }
 0x43e   : > { %v11903_v4 = vadd.f32 %v3327_v2, %v11825_v20  ;;  %3385 = vmax.xlane.f32.xlu0 %v3384_v1  ;;  %v10139_v1 = vld [vmem:[#allocation3 + $0x60] sm:$0xff]  }
 0x43f   : > { %v3331_v5 = vpop.f32.mrf.mxu1  ;;  %v10140_v2 = vld [vmem:[#allocation3 + $0x20] sm:$0xff]  }
 0x440   : > { %v3387_v6 = vmax.f32 %v11900_v3, %v11903_v4  ;;  %v11908_v8 = vadd.f32 %v3331_v5, %v11822_v19  ;;  %9555 = vmatpush3.bf16.msra.mxu0 %v10138_v44  ;;  %v10141_v5 = vld [vmem:[#allocation3 + $0x58] sm:$0xff]  }
 0x441   : > { %v3333_v7 = vpop.f32.mrf.mxu1  ;;  %9556 = vmatprep.subr.bf16.mxu0 %v10139_v1 }
 0x442   : > { %v11911_v9 = vadd.f32 %v3333_v7, %v11825_v20  ;;  %3388 = vmax.xlane.f32.xlu1 %v3387_v6  ;;  %v10142_v6 = vld [vmem:[#allocation3 + $0x18] sm:$0xff]   ;;  %v10143_v7 = vld [vmem:[#allocation3 + $0x50] sm:$0xff]  }
 0x443   : > { %v3335_v10 = vpop.f32.mrf.mxu1 }
 0x444   : > { %v3390_v13 = vmax.f32 %v11908_v8, %v11911_v9  ;;  %v11916_v18 = vadd.f32 %v3335_v10, %v11822_v19  ;;  %9557 = vmatpush3.bf16.msra.mxu0 %v10140_v2  ;;  %v10144_v10 = vld [vmem:[#allocation3 + $0x10] sm:$0xff]  }
 0x445   : > { %v3337_v16 = vpop.f32.mrf.mxu1  ;;  %9558 = vmatprep.subr.bf16.mxu0 %v10141_v5 }
 0x446   : > { %v11919_v15 = vadd.f32 %v3337_v16, %v11825_v20  ;;  %3391 = vmax.xlane.f32.xlu0 %v3390_v13 }
 0x447   : > { %v3341_v17 = vpop.f32.mrf.mxu1 }
 0x448   : > { %v3393_v21 = vmax.f32 %v11916_v18, %v11919_v15  ;;  %v11924_v25 = vadd.f32 %v3341_v17, %v11822_v19  ;;  %9559 = vmatpush3.bf16.msra.mxu0 %v10142_v6 }
 0x449   : > { %v3343_v24 = vpop.f32.mrf.mxu1  ;;  %9560 = vmatprep.subr.bf16.mxu0 %v10143_v7 }
 0x44a   : > { %v11927_v26 = vadd.f32 %v3343_v24, %v11825_v20  ;;  %3394 = vmax.xlane.f32.xlu1 %v3393_v21 }
 0x44b   : > { %v3345_v29 = vpop.f32.mrf.mxu1 }
 0x44c   : > { %v3396_v30 = vmax.f32 %v11924_v25, %v11927_v26  ;;  %v11932_v34 = vadd.f32 %v3345_v29, %v11822_v19  ;;  %9561 = vmatpush3.bf16.msra.mxu0 %v10144_v10 }
 0x44d   : > { %v3347_v31 = vpop.f32.mrf.mxu1 }
 0x44e   : > { %v11935_v35 = vadd.f32 %v3347_v31, %v11825_v20  ;;  %3397 = vmax.xlane.f32.xlu0 %v3396_v30 }
 0x44f   : > { %v3351_v36 = vpop.f32.mrf.mxu1 }
 0x450   : > { %v3399_v39 = vmax.f32 %v11932_v34, %v11935_v35  ;;  %v11940_v45 = vadd.f32 %v3351_v36, %v11822_v19 }
 0x451   : > { %v3353_v43 = vpop.f32.mrf.mxu1 }
 0x452   : > { %v11943_v48 = vadd.f32 %v3353_v43, %v11825_v20  ;;  %3400 = vmax.xlane.f32.xlu1 %v3399_v39 }
 0x453   : > { %v3355_v49 = vpop.f32.mrf.mxu1 }
 0x454   : > { %v3402_v50 = vmax.f32 %v11940_v45, %v11943_v48  ;;  %v11948_v54 = vadd.f32 %v3355_v49, %v11822_v19 }
 0x455   : > { %v3357_v53 = vpop.f32.mrf.mxu1 }
 0x456   : > { %v11951_v55 = vadd.f32 %v3357_v53, %v11825_v20  ;;  %3403 = vmax.xlane.f32.xlu0 %v3402_v50 }
 0x458   : > { %v3405_v58 = vmax.f32 %v11948_v54, %v11951_v55 }
 0x45a   : > { %3406 = vmax.xlane.f32.xlu1 %v3405_v58 }
 0x4a7   : > { %v3362_v13 = vpop.xlane.xlu0 %3361 }
 0x4a8   : > { %v3408_v16 = vsub.f32 %v11828_v22, %v3362_v13  ;;  %v3409_v17 = vsub.f32 %v11831_v23, %v3362_v13 }
 0x4aa   : > { %v3440_v21 = vmul.f32 1.442695, %v3408_v16  ;;  %v3442_v24 = vmul.f32 1.442695, %v3409_v17 }
 0x4ab   : > { %v3365_v29 = vpop.xlane.xlu0 %3364 }
 0x4ac   : > { %10429 = vpow2.f32 %v3440_v21  ;;  %v3410_v30 = vsub.f32 %v11836_v27, %v3365_v29  ;;  %v3411_v31 = vsub.f32 %v11839_v28, %v3365_v29 }
 0x4ad   : > { %10431 = vpow2.f32 %v3442_v24 }
 0x4ae   : > { %v3444_v36 = vmul.f32 1.442695, %v3410_v30  ;;  %v3446_v39 = vmul.f32 1.442695, %v3411_v31 }
 0x4af   : > { %v3368_v43 = vpop.xlane.xlu1 %3367 }
 0x4b0   : > { %10433 = vpow2.f32 %v3444_v36  ;;  %v3412_v49 = vsub.f32 %v11844_v32, %v3368_v43  ;;  %v3413_v50 = vsub.f32 %v11847_v33, %v3368_v43 }
 0x4b1   : > { %10435 = vpow2.f32 %v3446_v39 }
 0x4b2   : > { %v3448_v22 = vmul.f32 1.442695, %v3412_v49  ;;  %v3450_v23 = vmul.f32 1.442695, %v3413_v50 }
 0x4b3   : > { %v3371_v53 = vpop.xlane.xlu1 %3370 }
 0x4b4   : > { %10437 = vpow2.f32 %v3448_v22  ;;  %v3414_v58 = vsub.f32 %v11852_v37, %v3371_v53  ;;  %v3415_v27 = vsub.f32 %v11855_v38, %v3371_v53 }
 0x4b5   : > { %10439 = vpow2.f32 %v3450_v23 }
 0x4b6   : > { %v3452_v28 = vmul.f32 1.442695, %v3414_v58  ;;  %v3454_v59 = vmul.f32 1.442695, %v3415_v27 }
 0x4b7   : > { %v3374_v60 = vpop.xlane.xlu0 %3373 }
 0x4b8   : > { %10441 = vpow2.f32 %v3452_v28  ;;  %v3416_v41 = vsub.f32 %v11860_v46, %v3374_v60  ;;  %v3417_v32 = vsub.f32 %v11863_v47, %v3374_v60  ;;  %v10145_v28 = vld [vmem:[#allocation3 + $0x48] sm:$0xff]  }
 0x4b9   : > { %v11965_v62 = vpop.eup %10429  ;;  %10443 = vpow2.f32 %v3454_v59  ;;  %v10146_v59 = vld [vmem:[#allocation3 + $0x8] sm:$0xff]   ;;  %9562 = vmatprep.subr.bf16.mxu0 %v10145_v28 }
 0x4ba   : > { %v11967_v33 = vpop.eup %10431  ;;  %v3456_v63 = vmul.f32 1.442695, %v3416_v41  ;;  %v3458_v44 = vmul.f32 1.442695, %v3417_v32  ;;  %9563 = vmatpush3.bf16.msra.mxu0 %v10146_v59 }
 0x4bb   : > { %v3377_v1 = vpop.xlane.xlu1 %3376  ;;  %v3504_v37 = vadd.f32 %v11967_v33, %v11965_v62 }
 0x4bc   : > { %10445 = vpow2.f32 %v3456_v63  ;;  %v3418_v38 = vsub.f32 %v11868_v51, %v3377_v1  ;;  %v3419_v2 = vsub.f32 %v11871_v52, %v3377_v1 }
 0x4bd   : > { %v11973_v5 = vpop.eup %10433  ;;  %10447 = vpow2.f32 %v3458_v44  ;;  %3505 = vadd.xlane.f32.xlu0 %v3504_v37 }
 0x4be   : > { %v11975_v46 = vpop.eup %10435  ;;  %v3460_v47 = vmul.f32 1.442695, %v3418_v38  ;;  %v3462_v6 = vmul.f32 1.442695, %v3419_v2 }
 0x4bf   : > { %v3380_v7 = vpop.xlane.xlu0 %3379  ;;  %v3507_v10 = vadd.f32 %v11975_v46, %v11973_v5 }
 0x4c0   : > { %10449 = vpow2.f32 %v3460_v47  ;;  %v3420_v13 = vsub.f32 %v11876_v56, %v3380_v7  ;;  %v3421_v16 = vsub.f32 %v11879_v57, %v3380_v7 }
 0x4c1   : > { %v11981_v51 = vpop.eup %10437  ;;  %10451 = vpow2.f32 %v3462_v6  ;;  %3508 = vadd.xlane.f32.xlu1 %v3507_v10  ;;  %v10147_v10 = vld [vmem:[#allocation3 + $0x40] sm:$0xff]  }
 0x4c2   : > { %v11983_v52 = vpop.eup %10439  ;;  %v3464_v17 = vmul.f32 1.442695, %v3420_v13  ;;  %v3466_v21 = vmul.f32 1.442695, %v3421_v16  ;;  %v10148_v13 = vld [vmem:[#allocation3] sm:$0xff]   ;;  %9564 = vmatprep.subr.bf16.mxu0 %v10147_v10 }
 0x4c3   : > { %v3383_v24 = vpop.xlane.xlu1 %3382  ;;  %v3510_v29 = vadd.f32 %v11983_v52, %v11981_v51  ;;  %9565 = vmatpush3.bf16.msra.mxu0 %v10148_v13 }
 0x4c4   : > { %10453 = vpow2.f32 %v3464_v17  ;;  %v3422_v30 = vsub.f32 %v11884_v61, %v3383_v24  ;;  %v3423_v31 = vsub.f32 %v11887_v40, %v3383_v24 }
 0x4c5   : > { %v11989_v56 = vpop.eup %10441  ;;  %10455 = vpow2.f32 %v3466_v21  ;;  %3511 = vadd.xlane.f32.xlu0 %v3510_v29 }
 0x4c6   : > { %v11991_v57 = vpop.eup %10443  ;;  %v3468_v36 = vmul.f32 1.442695, %v3422_v30  ;;  %v3470_v39 = vmul.f32 1.442695, %v3423_v31 }
 0x4c7   : > { %v3386_v43 = vpop.xlane.xlu0 %3385  ;;  %v3513_v49 = vadd.f32 %v11991_v57, %v11989_v56 }
 0x4c8   : > { %10457 = vpow2.f32 %v3468_v36  ;;  %v3424_v50 = vsub.f32 %v11892_v0, %v3386_v43  ;;  %v3425_v22 = vsub.f32 %v11895_v42, %v3386_v43 }
 0x4c9   : > { %v11997_v61 = vpop.eup %10445  ;;  %10459 = vpow2.f32 %v3470_v39  ;;  %3514 = vadd.xlane.f32.xlu1 %v3513_v49 }
 0x4ca   : > { %v11999_v40 = vpop.eup %10447  ;;  %v3472_v23 = vmul.f32 1.442695, %v3424_v50  ;;  %v3474_v53 = vmul.f32 1.442695, %v3425_v22 }
 0x4cb   : > { %v3389_v58 = vpop.xlane.xlu1 %3388  ;;  %v3516_v27 = vadd.f32 %v11999_v40, %v11997_v61 }
 0x4cc   : > { %10461 = vpow2.f32 %v3472_v23  ;;  %v3426_v60 = vsub.f32 %v11900_v3, %v3389_v58  ;;  %v3427_v0 = vsub.f32 %v11903_v4, %v3389_v58 }
 0x4cd   : > { %v12005_v42 = vpop.eup %10449  ;;  %10463 = vpow2.f32 %v3474_v53  ;;  %3517 = vadd.xlane.f32.xlu0 %v3516_v27 }
 0x4ce   : > { %v12007_v41 = vpop.eup %10451  ;;  %v3476_v32 = vmul.f32 1.442695, %v3426_v60  ;;  %v3478_v63 = vmul.f32 1.442695, %v3427_v0 }
 0x4cf   : > { %v3392_v44 = vpop.xlane.xlu0 %3391  ;;  %v3519_v1 = vadd.f32 %v12007_v41, %v12005_v42 }
 0x4d0   : > { %10465 = vpow2.f32 %v3476_v32  ;;  %v3428_v37 = vsub.f32 %v11908_v8, %v3392_v44  ;;  %v3429_v3 = vsub.f32 %v11911_v9, %v3392_v44 }
 0x4d1   : > { %v12013_v4 = vpop.eup %10453  ;;  %10467 = vpow2.f32 %v3478_v63  ;;  %3520 = vadd.xlane.f32.xlu1 %v3519_v1 }
 0x4d2   : > { %v12015_v38 = vpop.eup %10455  ;;  %v3480_v2 = vmul.f32 1.442695, %v3428_v37  ;;  %v3482_v47 = vmul.f32 1.442695, %v3429_v3 }
 0x4d3   : > { %v3395_v6 = vpop.xlane.xlu1 %3394  ;;  %v3522_v7 = vadd.f32 %v12015_v38, %v12013_v4 }
 0x4d4   : > { %10469 = vpow2.f32 %v3480_v2  ;;  %v3430_v16 = vsub.f32 %v11916_v18, %v3395_v6  ;;  %v3431_v8 = vsub.f32 %v11919_v15, %v3395_v6 }
 0x4d5   : > { %v12021_v9 = vpop.eup %10457  ;;  %10471 = vpow2.f32 %v3482_v47  ;;  %3523 = vadd.xlane.f32.xlu0 %v3522_v7 }
 0x4d6   : > { %v12023_v17 = vpop.eup %10459  ;;  %v3484_v21 = vmul.f32 1.442695, %v3430_v16  ;;  %v3486_v24 = vmul.f32 1.442695, %v3431_v8 }
 0x4d7   : > { %v3398_v29 = vpop.xlane.xlu0 %3397  ;;  %v3525_v30 = vadd.f32 %v12023_v17, %v12021_v9 }
 0x4d8   : > { %10473 = vpow2.f32 %v3484_v21  ;;  %v3432_v31 = vsub.f32 %v11924_v25, %v3398_v29  ;;  %v3433_v18 = vsub.f32 %v11927_v26, %v3398_v29  ;;  %v12037_v25 = vld [vmem:[#allocation2 + $0xf8] sm:$0xff]  }
 0x4d9   : > { %v12029_v15 = vpop.eup %10461  ;;  %10475 = vpow2.f32 %v3486_v24  ;;  %3526 = vadd.xlane.f32.xlu1 %v3525_v30  ;;  %9614 = vmatprep.subr.bf16.mxu0 %v12037_v25 }
 0x4da   : > { %v12031_v36 = vpop.eup %10463  ;;  %v3488_v39 = vmul.f32 1.442695, %v3432_v31  ;;  %v3490_v43 = vmul.f32 1.442695, %v3433_v18  ;;  %v10169_v18 = vld [vmem:[#allocation15 + $0x70] ss:$8 sps:$4 sm:$0xff]  }
 0x4db   : > { %v3401_v49 = vpop.xlane.xlu1 %3400  ;;  %v3528_v50 = vadd.f32 %v12031_v36, %v12029_v15 }
 0x4dc   : > { %10477 = vpow2.f32 %v3488_v39  ;;  %v3434_v22 = vsub.f32 %v11932_v34, %v3401_v49  ;;  %v3435_v23 = vsub.f32 %v11935_v35, %v3401_v49  ;;  %v10171_v39 = vld [vmem:[#allocation15 + $0x74] ss:$8 sps:$4 sm:$0xff]   ;;  %v10172_v49 = vld [vmem:[#allocation15 + $0x60] ss:$8 sps:$4 sm:$0xff]  }
 0x4dd   : > { %v12039_v26 = vpop.eup %10465  ;;  %10479 = vpow2.f32 %v3490_v43  ;;  %3529 = vadd.xlane.f32.xlu0 %v3528_v50  ;;  %v10174_v43 = vld [vmem:[#allocation15 + $0x64] ss:$8 sps:$4 sm:$0xff]   ;;  %3948 = vmatprep.subr.bf16.mxu1 %v10171_v39  ;;  %v10177_v50 = vld [vmem:[#allocation15 + $0x54] ss:$8 sps:$4 sm:$0xff]  }
 0x4de   : > { %v12041_v53 = vpop.eup %10467  ;;  %v3492_v58 = vmul.f32 1.442695, %v3434_v22  ;;  %v3494_v27 = vmul.f32 1.442695, %v3435_v23  ;;  %3949 = vmatpush1.bf16.msra.mxu1 %v10169_v18  ;;  %v10175_v22 = vld [vmem:[#allocation15 + $0x50] ss:$8 sps:$4 sm:$0xff]  }
 0x4df   : > { %v3404_v28 = vpop.xlane.xlu0 %3403  ;;  %v3531_v59 = vadd.f32 %v12041_v53, %v12039_v26  ;;  %3950 = vmatprep.subr.bf16.mxu1 %v10174_v43  ;;  %v10180_v23 = vld [vmem:[#allocation15 + $0x44] ss:$8 sps:$4 sm:$0xff]   ;;  %v12090_v43 = vld [vmem:[#allocation2 + $0xb8] sm:$0xff]  }
 0x4e0   : > { %10481 = vpow2.f32 %v3492_v58  ;;  %v3436_v34 = vsub.f32 %v11940_v45, %v3404_v28  ;;  %v3437_v35 = vsub.f32 %v11943_v48, %v3404_v28  ;;  %v10178_v58 = vld [vmem:[#allocation15 + $0x40] ss:$8 sps:$4 sm:$0xff]   ;;  %v10181_v28 = vld [vmem:[#allocation15 + $0x30] ss:$8 sps:$4 sm:$0xff]  }
 0x4e1   : > { %v12048_v60 = vpop.eup %10469  ;;  %10483 = vpow2.f32 %v3494_v27  ;;  %3532 = vadd.xlane.f32.xlu1 %v3531_v59  ;;  %v10183_v27 = vld [vmem:[#allocation15 + $0x34] ss:$8 sps:$4 sm:$0xff]  }
 0x4e2   : > { %v12050_v0 = vpop.eup %10471  ;;  %v3496_v32 = vmul.f32 1.442695, %v3436_v34  ;;  %v3498_v63 = vmul.f32 1.442695, %v3437_v35  ;;  %3951 = vmatpush1.bf16.msra.mxu1 %v10172_v49  ;;  %v10186_v34 = vld [vmem:[#allocation15 + $0x24] ss:$8 sps:$4 sm:$0xff]  }
 0x4e3   : > { %v3407_v44 = vpop.xlane.xlu1 %3406  ;;  %v3534_v1 = vadd.f32 %v12050_v0, %v12048_v60  ;;  %3952 = vmatprep.subr.bf16.mxu1 %v10177_v50  ;;  %v10184_v35 = vld [vmem:[#allocation15 + $0x20] ss:$8 sps:$4 sm:$0xff]   ;;  %v12092_v49 = vld [vmem:[#allocation2 + $0xf0] sm:$0xff]  }
 0x4e4   : > { %10485 = vpow2.f32 %v3496_v32  ;;  %v3438_v37 = vsub.f32 %v11948_v54, %v3407_v44  ;;  %v3439_v3 = vsub.f32 %v11951_v55, %v3407_v44  ;;  %v10187_v44 = vld [vmem:[#allocation15 + $0x10] ss:$8 sps:$4 sm:$0xff]  }
 0x4e5   : > { %v12056_v45 = vpop.eup %10473  ;;  %10487 = vpow2.f32 %v3498_v63  ;;  %3535 = vadd.xlane.f32.xlu0 %v3534_v1  ;;  %v10189_v63 = vld [vmem:[#allocation15 + $0x14] ss:$8 sps:$4 sm:$0xff]  }
 0x4e6   : > { %v12058_v48 = vpop.eup %10475  ;;  %v3500_v2 = vmul.f32 1.442695, %v3438_v37  ;;  %v3502_v47 = vmul.f32 1.442695, %v3439_v3  ;;  %3953 = vmatpush1.bf16.msra.mxu1 %v10175_v22 }
 0x4e7   : > { %v3537_v6 = vadd.f32 %v12058_v48, %v12056_v45  ;;  %3954 = vmatprep.subr.bf16.mxu1 %v10180_v23 }
 0x4e8   : > { %10489 = vpow2.f32 %v3500_v2 }
 0x4e9   : > { %v12062_v7 = vpop.eup %10477  ;;  %10491 = vpow2.f32 %v3502_v47  ;;  %3538 = vadd.xlane.f32.xlu1 %v3537_v6 }
 0x4ea   : > { %v12064_v10 = vpop.eup %10479  ;;  %3955 = vmatpush1.bf16.msra.mxu1 %v10178_v58 }
 0x4eb   : > { %v3540_v54 = vadd.f32 %v12064_v10, %v12062_v7  ;;  %3956 = vmatprep.subr.bf16.mxu1 %v10183_v27 }
 0x4ed   : > { %v12068_v55 = vpop.eup %10481  ;;  %3541 = vadd.xlane.f32.xlu0 %v3540_v54 }
 0x4ee   : > { %v12070_v13 = vpop.eup %10483  ;;  %3957 = vmatpush1.bf16.msra.mxu1 %v10181_v28 }
 0x4ef   : > { %v3543_v16 = vadd.f32 %v12070_v13, %v12068_v55  ;;  %3958 = vmatprep.subr.bf16.mxu1 %v10186_v34  ;;  %v12102_v34 = vld [vmem:[#allocation2 + $0xe8] sm:$0xff]  }
 0x4f1   : > { %v12074_v8 = vpop.eup %10485  ;;  %3544 = vadd.xlane.f32.xlu1 %v3543_v16 }
 0x4f2   : > { %v12076_v21 = vpop.eup %10487  ;;  %3959 = vmatpush1.bf16.msra.mxu1 %v10184_v35 }
 0x4f3   : > { %v3546_v24 = vadd.f32 %v12076_v21, %v12074_v8  ;;  %3960 = vmatprep.subr.bf16.mxu1 %v10189_v63 }
 0x4f5   : > { %v12080_v29 = vpop.eup %10489  ;;  %3547 = vadd.xlane.f32.xlu0 %v3546_v24 }
 0x4f6   : > { %v12082_v30 = vpop.eup %10491  ;;  %3961 = vmatpush1.bf16.msra.mxu1 %v10187_v44 }
 0x4f7   : > { %v3549_v31 = vadd.f32 %v12082_v30, %v12080_v29 }
 0x4f9   : > { %3550 = vadd.xlane.f32.xlu1 %v3549_v31 }
 0x546   : > { %v3506_v59 = vpop.xlane.xlu0 %3505 }
 0x547   : > { %10493 = vrcp.f32 %v3506_v59  ;;  %v12100_v59 = vld [vmem:[#allocation2 + $0xb0] sm:$0xff]  }
 0x54a   : > { %v3509_v32 = vpop.xlane.xlu1 %3508 }
 0x54b   : > { %10495 = vrcp.f32 %v3509_v32 }
 0x54e   : > { %v3512_v1 = vpop.xlane.xlu0 %3511 }
 0x54f   : > { %10497 = vrcp.f32 %v3512_v1 }
 0x552   : > { %v3515_v37 = vpop.xlane.xlu1 %3514 }
 0x553   : > { %10499 = vrcp.f32 %v3515_v37 }
 0x554   : > { %v10494_v3 = vpop.eup %10493 }
 0x555   : > { %v3569_v6 = vmul.f32 %v10494_v3, %v11967_v33  ;;  %v3568_v16 = vmul.f32 %v10494_v3, %v11965_v62  ;;  %v12110_v3 = vld [vmem:[#allocation2 + $0xa8] sm:$0xff]  }
 0x556   : > { %v3518_v2 = vpop.xlane.xlu0 %3517 }
 0x557   : > { %10501 = vrcp.f32 %v3518_v2  ;;  %v12112_v2 = vld [vmem:[#allocation2 + $0xe0] sm:$0xff]  }
 0x558   : > { %v10496_v47 = vpop.eup %10495 }
 0x559   : > { %v3571_v54 = vmul.f32 %v10496_v47, %v11975_v46  ;;  %v3570_v24 = vmul.f32 %v10496_v47, %v11973_v5 }
 0x55a   : > { %v3521_v31 = vpop.xlane.xlu1 %3520 }
 0x55b   : > { %10503 = vrcp.f32 %v3521_v31  ;;  %v3601_v18 = vpack.c.bf16 %v3571_v54, %v3569_v6  ;;  %v3600_v39 = vpack.c.bf16 %v3570_v24, %v3568_v16 }
 0x55c   : > { %v10498_v50 = vpop.eup %10497 }
 0x55d   : > { %3744 = vmatprep.mubr.bf16.mxu0 %v3601_v18  ;;  %v3573_v46 = vmul.f32 %v10498_v50, %v11983_v52  ;;  %v3572_v5 = vmul.f32 %v10498_v50, %v11981_v51  ;;  %v12120_v18 = vld [vmem:[#allocation2 + $0xa0] sm:$0xff]  }
 0x55e   : > { %3745 = vmatmul.mubr.bf16.vlgmr.msra.gmra.mxu0 %v3600_v39  ;;  %v3524_v22 = vpop.xlane.xlu0 %3523  ;;  %v12122_v39 = vld [vmem:[#allocation2 + $0xd8] sm:$0xff]  }
 0x55f   : > { %9615 = vmatpush3.bf16.xpose.msra.mxu0 %v12090_v43  ;;  %10505 = vrcp.f32 %v3524_v22 }
 0x560   : > { %v10500_v33 = vpop.eup %10499  ;;  %9616 = vmatprep.subr.bf16.mxu0 %v12092_v49 }
 0x561   : > { %v3575_v62 = vmul.f32 %v10500_v33, %v11991_v57  ;;  %v3574_v23 = vmul.f32 %v10500_v33, %v11989_v56 }
 0x562   : > { %v3527_v58 = vpop.xlane.xlu1 %3526 }
 0x563   : > { %10507 = vrcp.f32 %v3527_v58  ;;  %v3603_v27 = vpack.c.bf16 %v3575_v62, %v3573_v46  ;;  %v3602_v28 = vpack.c.bf16 %v3574_v23, %v3572_v5  ;;  %v12130_v23 = vld [vmem:[#allocation2 + $0x98] sm:$0xff]   ;;  %v12132_v58 = vld [vmem:[#allocation2 + $0xd0] sm:$0xff]  }
 0x564   : > { %v10502_v35 = vpop.eup %10501 }
 0x565   : > { %3752 = vmatprep.mubr.bf16.mxu0 %v3603_v27  ;;  %v3577_v51 = vmul.f32 %v10502_v35, %v11999_v40  ;;  %v3576_v57 = vmul.f32 %v10502_v35, %v11997_v61 }
 0x566   : > { %3753 = vmatmul.mubr.bf16.gmra.mxu0 %v3602_v28  ;;  %v3530_v52 = vpop.xlane.xlu0 %3529 }
 0x567   : > { %9617 = vmatpush3.bf16.xpose.msra.mxu0 %v12100_v59  ;;  %10509 = vrcp.f32 %v3530_v52 }
 0x568   : > { %v10504_v32 = vpop.eup %10503  ;;  %9618 = vmatprep.subr.bf16.mxu0 %v12102_v34 }
 0x569   : > { %v3579_v56 = vmul.f32 %v10504_v32, %v12007_v41  ;;  %v3578_v63 = vmul.f32 %v10504_v32, %v12005_v42 }
 0x56a   : > { %v3533_v44 = vpop.xlane.xlu1 %3532 }
 0x56b   : > { %10511 = vrcp.f32 %v3533_v44  ;;  %v3605_v1 = vpack.c.bf16 %v3579_v56, %v3577_v51  ;;  %v3604_v37 = vpack.c.bf16 %v3578_v63, %v3576_v57  ;;  %v12140_v56 = vld [vmem:[#allocation2 + $0x90] sm:$0xff]   ;;  %v12142_v57 = vld [vmem:[#allocation2 + $0xc8] sm:$0xff]  }
 0x56c   : > { %v10506_v47 = vpop.eup %10505 }
 0x56d   : > { %3760 = vmatprep.mubr.bf16.mxu0 %v3605_v1  ;;  %v3581_v61 = vmul.f32 %v10506_v47, %v12015_v38  ;;  %v3580_v41 = vmul.f32 %v10506_v47, %v12013_v4  ;;  %v12150_v47 = vld [vmem:[#allocation2 + $0x88] sm:$0xff]  }
 0x56e   : > { %3761 = vmatmul.mubr.bf16.gmra.mxu0 %v3604_v37  ;;  %v3536_v6 = vpop.xlane.xlu0 %3535 }
 0x56f   : > { %9619 = vmatpush3.bf16.xpose.msra.mxu0 %v12110_v3  ;;  %10513 = vrcp.f32 %v3536_v6  ;;  %v12152_v6 = vld [vmem:[#allocation2 + $0xc0] sm:$0xff]  }
 0x570   : > { %v10508_v40 = vpop.eup %10507  ;;  %9620 = vmatprep.subr.bf16.mxu0 %v12112_v2 }
 0x571   : > { %v3583_v42 = vmul.f32 %v10508_v40, %v12023_v17  ;;  %v3582_v54 = vmul.f32 %v10508_v40, %v12021_v9 }
 0x572   : > { %v3539_v16 = vpop.xlane.xlu1 %3538 }
 0x573   : > { %10515 = vrcp.f32 %v3539_v16  ;;  %v3607_v24 = vpack.c.bf16 %v3583_v42, %v3581_v61  ;;  %v3606_v31 = vpack.c.bf16 %v3582_v54, %v3580_v41  ;;  %v12160_v54 = vld [vmem:[#allocation2 + $0x80] sm:$0xff]  }
 0x574   : > { %v10510_v50 = vpop.eup %10509  ;;  %v10165_v16 = vld [vmem:[#allocation4 + $0x40] sm:$0xff]  }
 0x575   : > { %3768 = vmatprep.mubr.bf16.mxu0 %v3607_v24  ;;  %v3585_v17 = vmul.f32 %v10510_v50, %v12031_v36  ;;  %v3584_v9 = vmul.f32 %v10510_v50, %v12029_v15  ;;  %v10166_v24 = vld [vmem:[#allocation4 + $0x48] sm:$0xff]  }
 0x576   : > { %3769 = vmatmul.mubr.bf16.gmra.mxu0 %v3606_v31  ;;  %v3542_v22 = vpop.xlane.xlu0 %3541  ;;  %v10192_v31 = vld [vmem:[#allocation15 + $0x4] ss:$8 sps:$4 sm:$0xff]  }
 0x577   : > { %9621 = vmatpush3.bf16.xpose.msra.mxu0 %v12120_v18  ;;  %10517 = vrcp.f32 %v3542_v22  ;;  %3962 = vmatprep.subr.bf16.mxu1 %v10192_v31 }
 0x578   : > { %v10512_v38 = vpop.eup %10511  ;;  %9622 = vmatprep.subr.bf16.mxu0 %v12122_v39 }
 0x579   : > { %v3587_v4 = vmul.f32 %v10512_v38, %v12041_v53  ;;  %v3586_v33 = vmul.f32 %v10512_v38, %v12039_v26 }
 0x57a   : > { %v3545_v46 = vpop.xlane.xlu1 %3544 }
 0x57b   : > { %10519 = vrcp.f32 %v3545_v46  ;;  %v3609_v62 = vpack.c.bf16 %v3587_v4, %v3585_v17  ;;  %v3608_v5 = vpack.c.bf16 %v3586_v33, %v3584_v9 }
 0x57c   : > { %v10514_v27 = vpop.eup %10513 }
 0x57d   : > { %3776 = vmatprep.mubr.bf16.mxu0 %v3609_v62  ;;  %v3589_v53 = vmul.f32 %v10514_v27, %v12050_v0  ;;  %v3588_v26 = vmul.f32 %v10514_v27, %v12048_v60 }
 0x57e   : > { %3777 = vmatmul.mubr.bf16.gmra.mxu0 %v3608_v5  ;;  %v3548_v36 = vpop.xlane.xlu0 %3547 }
 0x57f   : > { %9623 = vmatpush3.bf16.xpose.msra.mxu0 %v12130_v23  ;;  %10521 = vrcp.f32 %v3548_v36 }
 0x580   : > { %v10516_v28 = vpop.eup %10515  ;;  %9624 = vmatprep.subr.bf16.mxu0 %v12132_v58 }
 0x581   : > { %v3591_v15 = vmul.f32 %v10516_v28, %v12058_v48  ;;  %v3590_v35 = vmul.f32 %v10516_v28, %v12056_v45 }
 0x582   : > { %v3551_v52 = vpop.xlane.xlu1 %3550 }
 0x583   : > { %10523 = vrcp.f32 %v3551_v52  ;;  %v3611_v32 = vpack.c.bf16 %v3591_v15, %v3589_v53  ;;  %v3610_v51 = vpack.c.bf16 %v3590_v35, %v3588_v26 }
 0x584   : > { %v10518_v63 = vpop.eup %10517 }
 0x585   : > { %3784 = vmatprep.mubr.bf16.mxu0 %v3611_v32  ;;  %v3593_v60 = vmul.f32 %v10518_v63, %v12064_v10  ;;  %v3592_v48 = vmul.f32 %v10518_v63, %v12062_v7 }
 0x586   : > { %3785 = vmatmul.mubr.bf16.gmra.mxu0 %v3610_v51 }
 0x587   : > { %9625 = vmatpush3.bf16.xpose.msra.mxu0 %v12140_v56 }
 0x588   : > { %v10520_v0 = vpop.eup %10519  ;;  %9626 = vmatprep.subr.bf16.mxu0 %v12142_v57 }
 0x589   : > { %v3595_v45 = vmul.f32 %v10520_v0, %v12070_v13  ;;  %v3594_v44 = vmul.f32 %v10520_v0, %v12068_v55 }
 0x58b   : > { %v3613_v1 = vpack.c.bf16 %v3595_v45, %v3593_v60  ;;  %v3612_v37 = vpack.c.bf16 %v3594_v44, %v3592_v48 }
 0x58c   : > { %v10522_v40 = vpop.eup %10521 }
 0x58d   : > { %3792 = vmatprep.mubr.bf16.mxu0 %v3613_v1  ;;  %v3597_v10 = vmul.f32 %v10522_v40, %v12076_v21  ;;  %v3596_v55 = vmul.f32 %v10522_v40, %v12074_v8  ;;  %v10190_v21 = vld [vmem:[#allocation15] ss:$8 sps:$4 sm:$0xff]   ;;  %v10167_v8 = vld [vmem:[#allocation4 + $0x50] sm:$0xff]  }
 0x58e   : > { %3793 = vmatmul.mubr.bf16.gmra.mxu0 %v3612_v37  ;;  %3963 = vmatpush1.bf16.msra.mxu1 %v10190_v21 }
 0x58f   : > { %9627 = vmatpush3.bf16.xpose.msra.mxu0 %v12150_v47  ;;  %9710 = vmatprep.subr.bf16.mxu1 %v12037_v25 }
 0x590   : > { %v10524_v61 = vpop.eup %10523  ;;  %9628 = vmatprep.subr.bf16.mxu0 %v12152_v6 }
 0x591   : > { %v3599_v7 = vmul.f32 %v10524_v61, %v12082_v30  ;;  %v3598_v13 = vmul.f32 %v10524_v61, %v12080_v29  ;;  %v14291_v29 = vmov 0   ;;  %v10168_v30 = vld [vmem:[#allocation4 + $0x58] sm:$0xff]  }
 0x592   : > { %3980 = vmatprep.mubr.bf16.mxu1 %v14291_v29 }
 0x593   : > { %v3615_v42 = vpack.c.bf16 %v3599_v7, %v3597_v10  ;;  %v3614_v41 = vpack.c.bf16 %v3598_v13, %v3596_v55 }
 0x595   : > { %3800 = vmatprep.mubr.bf16.mxu0 %v3615_v42 }
 0x596   : > { %3801 = vmatmul.mubr.bf16.gmra.mxu0 %v3614_v41 }
 0x597   : > { %9629 = vmatpush3.bf16.xpose.msra.mxu0 %v12160_v54  ;;  %9630 = vmatprep.mubr.bf16.mxu0 %v10165_v16 }
 0x59e   : > { %9631 = vmatmul.mubr.bf16.vlgmr.msra.gmra.mxu0 %v10165_v16 }
 0x59f   : > { %9632 = vmatprep.mubr.bf16.mxu0 %v10166_v24 }
 0x5a6   : > { %9633 = vmatmul.mubr.bf16.gmra.mxu0 %v10166_v24 }
 0x5a7   : > { %9634 = vmatprep.mubr.bf16.mxu0 %v10167_v8 }
 0x5ae   : > { %9635 = vmatmul.mubr.bf16.gmra.mxu0 %v10167_v8 }
 0x5af   : > { %9636 = vmatprep.mubr.bf16.mxu0 %v10168_v30 }
 0x5b6   : > { %9637 = vmatmul.mubr.bf16.gmra.mxu0 %v10168_v30 }
 0x5b7   : > { %5084 = vmatprep.mubr.bf16.mxu0 %v14291_v29 }
 0x61e   : > { %v9566_v50 = vpop.f32.mrf.mxu0 }
 0x620   : > { %v9567_v22 = vpop.f32.mrf.mxu0 }
 0x621   : > { %v9568_v4 = vadd.f32 %v9567_v22, %v9566_v50 }
 0x622   : > { %v9569_v38 = vpop.f32.mrf.mxu0 }
 0x624   : > { %v9570_v17 = vpop.f32.mrf.mxu0 }
 0x625   : > { %v9571_v9 = vadd.f32 %v9570_v17, %v9569_v38  ;;  %v10193_v17 = vld [vmem:[#allocation4 + $0x60] sm:$0xff]  }
 0x626   : > { %v9572_v33 = vpop.f32.mrf.mxu0 }
 0x627   : > { %v3860_v46 = vpack.c.bf16 %v9571_v9, %v9568_v4 }
 0x628   : > { %v9573_v25 = vpop.f32.mrf.mxu0 }
 0x629   : > { %3981 = vmatmul.mubr.bf16.vlgmr.msra.gmra.mxu1 %v3860_v46  ;;  %v9574_v27 = vadd.f32 %v9573_v25, %v9572_v33 }
 0x62a   : > { %9718 = vmatpush3.bf16.xpose.msra.mxu1 %v12090_v43  ;;  %v9575_v62 = vpop.f32.mrf.mxu0  ;;  %3990 = vmatprep.mubr.bf16.mxu1 %v14291_v29 }
 0x62b   : > { %9711 = vmatprep.subr.bf16.mxu1 %v12092_v49 }
 0x62c   : > { %v9576_v5 = vpop.f32.mrf.mxu0 }
 0x62d   : > { %v9577_v36 = vadd.f32 %v9576_v5, %v9575_v62 }
 0x62e   : > { %v9578_v28 = vpop.f32.mrf.mxu0 }
 0x62f   : > { %v3861_v53 = vpack.c.bf16 %v9577_v36, %v9574_v27  ;;  %v10194_v36 = vld [vmem:[#allocation4 + $0x68] sm:$0xff]  }
 0x630   : > { %v9579_v15 = vpop.f32.mrf.mxu0 }
 0x631   : > { %3991 = vmatmul.mubr.bf16.gmra.mxu1 %v3861_v53  ;;  %v9580_v35 = vadd.f32 %v9579_v15, %v9578_v28 }
 0x632   : > { %9719 = vmatpush3.bf16.xpose.msra.mxu1 %v12100_v59  ;;  %v9581_v26 = vpop.f32.mrf.mxu0  ;;  %4000 = vmatprep.mubr.bf16.mxu1 %v14291_v29 }
 0x633   : > { %9712 = vmatprep.subr.bf16.mxu1 %v12102_v34 }
 0x634   : > { %v9582_v43 = vpop.f32.mrf.mxu0 }
 0x635   : > { %v9583_v52 = vadd.f32 %v9582_v43, %v9581_v26 }
 0x636   : > { %v9584_v32 = vpop.f32.mrf.mxu0 }
 0x637   : > { %v3862_v51 = vpack.c.bf16 %v9583_v52, %v9580_v35 }
 0x638   : > { %v9585_v49 = vpop.f32.mrf.mxu0 }
 0x639   : > { %4001 = vmatmul.mubr.bf16.gmra.mxu1 %v3862_v51  ;;  %v9586_v0 = vadd.f32 %v9585_v49, %v9584_v32  ;;  %v10195_v49 = vld [vmem:[#allocation4 + $0x70] sm:$0xff]  }
 0x63a   : > { %9720 = vmatpush3.bf16.xpose.msra.mxu1 %v12110_v3  ;;  %v9587_v63 = vpop.f32.mrf.mxu0  ;;  %4010 = vmatprep.mubr.bf16.mxu1 %v14291_v29 }
 0x63b   : > { %9713 = vmatprep.subr.bf16.mxu1 %v12112_v2 }
 0x63c   : > { %v9588_v59 = vpop.f32.mrf.mxu0 }
 0x63d   : > { %v9589_v60 = vadd.f32 %v9588_v59, %v9587_v63 }
 0x63e   : > { %v9590_v45 = vpop.f32.mrf.mxu0 }
 0x63f   : > { %v3863_v48 = vpack.c.bf16 %v9589_v60, %v9586_v0 }
 0x640   : > { %v9591_v34 = vpop.f32.mrf.mxu0 }
 0x641   : > { %4011 = vmatmul.mubr.bf16.gmra.mxu1 %v3863_v48  ;;  %v9592_v1 = vadd.f32 %v9591_v34, %v9590_v45 }
 0x642   : > { %9721 = vmatpush3.bf16.xpose.msra.mxu1 %v12120_v18  ;;  %v9593_v44 = vpop.f32.mrf.mxu0  ;;  %4020 = vmatprep.mubr.bf16.mxu1 %v14291_v29 }
 0x643   : > { %9714 = vmatprep.subr.bf16.mxu1 %v12122_v39 }
 0x644   : > { %v9594_v3 = vpop.f32.mrf.mxu0 }
 0x645   : > { %v9595_v37 = vadd.f32 %v9594_v3, %v9593_v44 }
 0x646   : > { %v9596_v40 = vpop.f32.mrf.mxu0 }
 0x647   : > { %v3864_v61 = vpack.c.bf16 %v9595_v37, %v9592_v1  ;;  %v10196_v37 = vld [vmem:[#allocation4 + $0x78] sm:$0xff]  }
 0x648   : > { %v9597_v2 = vpop.f32.mrf.mxu0 }
 0x649   : > { %4021 = vmatmul.mubr.bf16.gmra.mxu1 %v3864_v61  ;;  %v9598_v7 = vadd.f32 %v9597_v2, %v9596_v40 }
 0x64a   : > { %9722 = vmatpush3.bf16.xpose.msra.mxu1 %v12130_v23  ;;  %v9599_v10 = vpop.f32.mrf.mxu0  ;;  %4030 = vmatprep.mubr.bf16.mxu1 %v14291_v29 }
 0x64b   : > { %9715 = vmatprep.subr.bf16.mxu1 %v12132_v58 }
 0x64c   : > { %v9600_v18 = vpop.f32.mrf.mxu0 }
 0x64d   : > { %v9601_v55 = vadd.f32 %v9600_v18, %v9599_v10 }
 0x64e   : > { %v9602_v13 = vpop.f32.mrf.mxu0 }
 0x64f   : > { %v3865_v42 = vpack.c.bf16 %v9601_v55, %v9598_v7 }
 0x650   : > { %v9603_v39 = vpop.f32.mrf.mxu0 }
 0x651   : > { %4031 = vmatmul.mubr.bf16.gmra.mxu1 %v3865_v42  ;;  %v9604_v16 = vadd.f32 %v9603_v39, %v9602_v13 }
 0x652   : > { %9723 = vmatpush3.bf16.xpose.msra.mxu1 %v12140_v56  ;;  %v9605_v41 = vpop.f32.mrf.mxu0  ;;  %4040 = vmatprep.mubr.bf16.mxu1 %v14291_v29 }
 0x653   : > { %9716 = vmatprep.subr.bf16.mxu1 %v12142_v57 }
 0x654   : > { %v9606_v23 = vpop.f32.mrf.mxu0 }
 0x655   : > { %v9607_v24 = vadd.f32 %v9606_v23, %v9605_v41 }
 0x656   : > { %v9608_v21 = vpop.f32.mrf.mxu0 }
 0x657   : > { %v3866_v31 = vpack.c.bf16 %v9607_v24, %v9604_v16 }
 0x658   : > { %v9609_v58 = vpop.f32.mrf.mxu0 }
 0x659   : > { %4041 = vmatmul.mubr.bf16.gmra.mxu1 %v3866_v31  ;;  %v9610_v30 = vadd.f32 %v9609_v58, %v9608_v21 }
 0x65a   : > { %9724 = vmatpush3.bf16.xpose.msra.mxu1 %v12150_v47  ;;  %v9611_v8 = vpop.f32.mrf.mxu0  ;;  %4050 = vmatprep.mubr.bf16.mxu1 %v14291_v29 }
 0x65b   : > { %9717 = vmatprep.subr.bf16.mxu1 %v12152_v6 }
 0x65c   : > { %v9612_v56 = vpop.f32.mrf.mxu0 }
 0x65d   : > { %v9613_v50 = vadd.f32 %v9612_v56, %v9611_v8 }
 0x65e   : > { %v4385_v22 = vpop.f32.mrf.mxu0 }
 0x65f   : > { %v3867_v38 = vpack.c.bf16 %v9613_v50, %v9610_v30  ;;  %v12188_v4 = vadd.f32 %v4385_v22, %v11822_v19 }
 0x660   : > { %v4387_v57 = vpop.f32.mrf.mxu0 }
 0x661   : > { %v12191_v9 = vadd.f32 %v4387_v57, %v11825_v20  ;;  %4051 = vmatmul.mubr.bf16.gmra.mxu1 %v3867_v38 }
 0x662   : > { %9725 = vmatpush3.bf16.xpose.msra.mxu1 %v12160_v54  ;;  %v4389_v47 = vpop.f32.mrf.mxu0  ;;  %9638 = vmatprep.mubr.bf16.mxu1 %v10193_v17 }
 0x663   : > { %v4464_v6 = vmax.f32 %v12188_v4, %v12191_v9  ;;  %v12197_v46 = vadd.f32 %v4389_v47, %v11822_v19 }
 0x664   : > { %v4391_v33 = vpop.f32.mrf.mxu0 }
 0x665   : > { %v12200_v25 = vadd.f32 %v4391_v33, %v11825_v20  ;;  %4465 = vmax.xlane.f32.xlu0 %v4464_v6 }
 0x666   : > { %v4395_v62 = vpop.f32.mrf.mxu0 }
 0x667   : > { %v4467_v5 = vmax.f32 %v12197_v46, %v12200_v25  ;;  %v12205_v54 = vadd.f32 %v4395_v62, %v11822_v19 }
 0x668   : > { %v4397_v27 = vpop.f32.mrf.mxu0 }
 0x669   : > { %v12208_v28 = vadd.f32 %v4397_v27, %v11825_v20  ;;  %4468 = vmax.xlane.f32.xlu1 %v4467_v5  ;;  %9639 = vmatmul.mubr.bf16.vlgmr.msra.gmra.mxu1 %v10193_v17 }
 0x66a   : > { %v4399_v53 = vpop.f32.mrf.mxu0  ;;  %9640 = vmatprep.mubr.bf16.mxu1 %v10194_v36 }
 0x66b   : > { %v4470_v15 = vmax.f32 %v12205_v54, %v12208_v28  ;;  %v12213_v43 = vadd.f32 %v4399_v53, %v11822_v19 }
 0x66c   : > { %v4401_v26 = vpop.f32.mrf.mxu0 }
 0x66d   : > { %v12216_v35 = vadd.f32 %v4401_v26, %v11825_v20  ;;  %4471 = vmax.xlane.f32.xlu0 %v4470_v15 }
 0x66e   : > { %v4405_v52 = vpop.f32.mrf.mxu0 }
 0x66f   : > { %v4473_v32 = vmax.f32 %v12213_v43, %v12216_v35  ;;  %v12221_v63 = vadd.f32 %v4405_v52, %v11822_v19 }
 0x670   : > { %v4407_v51 = vpop.f32.mrf.mxu0 }
 0x671   : > { %v12224_v59 = vadd.f32 %v4407_v51, %v11825_v20  ;;  %4474 = vmax.xlane.f32.xlu1 %v4473_v32  ;;  %9641 = vmatmul.mubr.bf16.gmra.mxu1 %v10194_v36 }
 0x672   : > { %v4409_v0 = vpop.f32.mrf.mxu0  ;;  %9642 = vmatprep.mubr.bf16.mxu1 %v10195_v49 }
 0x673   : > { %v4476_v60 = vmax.f32 %v12221_v63, %v12224_v59  ;;  %v12229_v48 = vadd.f32 %v4409_v0, %v11822_v19 }
 0x674   : > { %v4411_v45 = vpop.f32.mrf.mxu0 }
 0x675   : > { %v12232_v34 = vadd.f32 %v4411_v45, %v11825_v20  ;;  %4477 = vmax.xlane.f32.xlu0 %v4476_v60 }
 0x676   : > { %v4415_v44 = vpop.f32.mrf.mxu0 }
 0x677   : > { %v4479_v3 = vmax.f32 %v12229_v48, %v12232_v34  ;;  %v12237_v40 = vadd.f32 %v4415_v44, %v11822_v19 }
 0x678   : > { %v4417_v1 = vpop.f32.mrf.mxu0 }
 0x679   : > { %v12240_v61 = vadd.f32 %v4417_v1, %v11825_v20  ;;  %4480 = vmax.xlane.f32.xlu1 %v4479_v3  ;;  %9643 = vmatmul.mubr.bf16.gmra.mxu1 %v10195_v49 }
 0x67a   : > { %v4419_v2 = vpop.f32.mrf.mxu0  ;;  %9644 = vmatprep.mubr.bf16.mxu1 %v10196_v37 }
 0x67b   : > { %v4482_v10 = vmax.f32 %v12237_v40, %v12240_v61  ;;  %v12245_v7 = vadd.f32 %v4419_v2, %v11822_v19 }
 0x67c   : > { %v4421_v18 = vpop.f32.mrf.mxu0 }
 0x67d   : > { %v12248_v55 = vadd.f32 %v4421_v18, %v11825_v20  ;;  %4483 = vmax.xlane.f32.xlu0 %v4482_v10 }
 0x67f   : > { %v4485_v13 = vmax.f32 %v12245_v7, %v12248_v55 }
 0x681   : > { %4486 = vmax.xlane.f32.xlu1 %v4485_v13  ;;  %9645 = vmatmul.mubr.bf16.gmra.mxu1 %v10196_v37 }
 0x6e9   : > { %v12252_v42 = vpop.f32.mrf.mxu1 }
 0x6eb   : > { %v12254_v39 = vpop.f32.mrf.mxu1 }
 0x6ed   : > { %v12256_v41 = vpop.f32.mrf.mxu1 }
 0x6ee   : > { %v4466_v1 = vpop.xlane.xlu0 %4465 }
 0x6ef   : > { %v12258_v23 = vpop.f32.mrf.mxu1  ;;  %v4512_v13 = vsub.f32 %v12188_v4, %v4466_v1 }
 0x6f1   : > { %v12260_v16 = vpop.f32.mrf.mxu1  ;;  %v4544_v4 = vmul.f32 1.442695, %v4512_v13 }
 0x6f2   : > { %v4469_v10 = vpop.xlane.xlu1 %4468 }
 0x6f3   : > { %v12262_v24 = vpop.f32.mrf.mxu1  ;;  %10525 = vpow2.f32 %v4544_v4 }
 0x6f5   : > { %v12264_v21 = vpop.f32.mrf.mxu1 }
 0x6f7   : > { %v12266_v31 = vpop.f32.mrf.mxu1 }
 0x6f9   : > { %v12268_v58 = vpop.f32.mrf.mxu1 }
 0x6fb   : > { %v12270_v8 = vpop.f32.mrf.mxu1 }
 0x6fd   : > { %v12272_v56 = vpop.f32.mrf.mxu1 }
 0x6ff   : > { %v12274_v30 = vpop.f32.mrf.mxu1 }
 0x701   : > { %v12276_v50 = vpop.f32.mrf.mxu1 }
 0x703   : > { %v12278_v22 = vpop.f32.mrf.mxu1 }
 0x705   : > { %v12280_v38 = vpop.f32.mrf.mxu1 }
 0x706   : > { %14393 = vst [vmem:[#allocation41_spill] sm:$0xff] %v12280_v38 }
 0x707   : > { %v12282_v57 = vpop.f32.mrf.mxu1 }
 0x708   : > { %14394 = vst [vmem:[#allocation42_spill] sm:$0xff] %v12282_v57 }
 0x709   : > { %v12284_v17 = vpop.f32.mrf.mxu1 }
 0x70a   : > { %14395 = vst [vmem:[#allocation43_spill] sm:$0xff] %v12284_v17 }
 0x70b   : > { %v12286_v47 = vpop.f32.mrf.mxu1 }
 0x70c   : > { %14396 = vst [vmem:[#allocation44_spill] sm:$0xff] %v12286_v47 }
 0x70d   : > { %v12288_v6 = vpop.f32.mrf.mxu1 }
 0x70e   : > { %14397 = vst [vmem:[#allocation45_spill] sm:$0xff] %v12288_v6 }
 0x70f   : > { %v12290_v33 = vpop.f32.mrf.mxu1 }
 0x710   : > { %14398 = vst [vmem:[#allocation46_spill] sm:$0xff] %v12290_v33  ;;  %v10209_v33 = vld [vmem:[#allocation3 + $0xc8] sm:$0xff]  }
 0x711   : > { %v12292_v62 = vpop.f32.mrf.mxu1 }
 0x712   : > { %14399 = vst [vmem:[#allocation47_spill] sm:$0xff] %v12292_v62  ;;  %v10207_v62 = vld [vmem:[#allocation3 + $0xd0] sm:$0xff]  }
 0x713   : > { %v12294_v5 = vpop.f32.mrf.mxu1 }
 0x714   : > { %14400 = vst [vmem:[#allocation48_spill] sm:$0xff] %v12294_v5  ;;  %v10206_v5 = vld [vmem:[#allocation3 + $0x98] sm:$0xff]  }
 0x715   : > { %v12296_v27 = vpop.f32.mrf.mxu1 }
 0x716   : > { %14401 = vst [vmem:[#allocation49_spill] sm:$0xff] %v12296_v27 }
 0x717   : > { %v12298_v36 = vpop.f32.mrf.mxu1 }
 0x718   : > { %14402 = vst [vmem:[#allocation50_spill] sm:$0xff] %v12298_v36 }
 0x719   : > { %v12300_v53 = vpop.f32.mrf.mxu1 }
 0x71a   : > { %14403 = vst [vmem:[#allocation51_spill] sm:$0xff] %v12300_v53 }
 0x71b   : > { %v12302_v15 = vpop.f32.mrf.mxu1 }
 0x71c   : > { %14404 = vst [vmem:[#allocation52_spill] sm:$0xff] %v12302_v15 }
 0x71d   : > { %v12304_v26 = vpop.f32.mrf.mxu1 }
 0x71e   : > { %14405 = vst [vmem:[#allocation53_spill] sm:$0xff] %v12304_v26  ;;  %v4475_v26 = vpop.xlane.xlu1 %4474 }
 0x71f   : > { %v12306_v52 = vpop.f32.mrf.mxu1  ;;  %v4518_v13 = vsub.f32 %v12213_v43, %v4475_v26 }
 0x720   : > { %14406 = vst [vmem:[#allocation54_spill] sm:$0xff] %v12306_v52 }
 0x721   : > { %v12308_v32 = vpop.f32.mrf.mxu1 }
 0x722   : > { %14407 = vst [vmem:[#allocation55_spill] sm:$0xff] %v12308_v32  ;;  %v4515_v32 = vsub.f32 %v12200_v25, %v4469_v10  ;;  %v4481_v36 = vpop.xlane.xlu1 %4480 }
 0x723   : > { %v12310_v51 = vpop.f32.mrf.mxu1  ;;  %v4522_v4 = vsub.f32 %v12229_v48, %v4481_v36 }
 0x724   : > { %14408 = vst [vmem:[#allocation56_spill] sm:$0xff] %v12310_v51 }
 0x725   : > { %v12312_v49 = vpop.f32.mrf.mxu1 }
 0x726   : > { %14409 = vst [vmem:[#allocation57_spill] sm:$0xff] %v12312_v49  ;;  %v4472_v49 = vpop.xlane.xlu0 %4471 }
 0x727   : > { %v12314_v0 = vpop.f32.mrf.mxu1  ;;  %v4517_v15 = vsub.f32 %v12208_v28, %v4472_v49 }
 0x728   : > { %14410 = vst [vmem:[#allocation58_spill] sm:$0xff] %v12314_v0  ;;  %v4514_v0 = vsub.f32 %v12197_v46, %v4469_v10  ;;  %v4550_v10 = vmul.f32 1.442695, %v4515_v32 }
 0x729   : > { %v4425_v60 = vpop.f32.mrf.mxu1  ;;  %v4554_v32 = vmul.f32 1.442695, %v4517_v15 }
 0x72a   : > { %v12317_v44 = vadd.f32 %v4425_v60, %v11822_v19  ;;  %v4513_v60 = vsub.f32 %v12191_v9, %v4466_v1  ;;  %v4516_v1 = vsub.f32 %v12205_v54, %v4472_v49  ;;  %v4478_v53 = vpop.xlane.xlu0 %4477 }
 0x72b   : > { %v4427_v45 = vpop.f32.mrf.mxu1  ;;  %v4520_v49 = vsub.f32 %v12221_v63, %v4478_v53  ;;  %v4521_v43 = vsub.f32 %v12224_v59, %v4478_v53 }
 0x72c   : > { %v12320_v3 = vadd.f32 %v4427_v45, %v11825_v20  ;;  %v4546_v9 = vmul.f32 1.442695, %v4513_v60  ;;  %v4552_v28 = vmul.f32 1.442695, %v4516_v1 }
 0x72d   : > { %v4429_v37 = vpop.f32.mrf.mxu1  ;;  %v4560_v59 = vmul.f32 1.442695, %v4520_v49 }
 0x72e   : > { %v4488_v2 = vmax.f32 %v12317_v44, %v12320_v3  ;;  %v12326_v29 = vadd.f32 %v4429_v37, %v11822_v19  ;;  %10527 = vpow2.f32 %v4546_v9  ;;  %v4484_v60 = vpop.xlane.xlu0 %4483  ;;  %v4523_v9 = vsub.f32 %v12232_v34, %v4481_v36 }
 0x72f   : > { %v4431_v18 = vpop.f32.mrf.mxu1  ;;  %v4524_v53 = vsub.f32 %v12237_v40, %v4484_v60  ;;  %v4525_v48 = vsub.f32 %v12240_v61, %v4484_v60  ;;  %v4564_v36 = vmul.f32 1.442695, %v4522_v4  ;;  %v12386_v4 = vpop.eup %10525 }
 0x730   : > { %v12329_v11 = vadd.f32 %v4431_v18, %v11825_v20  ;;  %4489 = vmax.xlane.f32.xlu0 %v4488_v2  ;;  %v4548_v2 = vmul.f32 1.442695, %v4514_v0 }
 0x731   : > { %v4435_v45 = vpop.f32.mrf.mxu1  ;;  %v4568_v40 = vmul.f32 1.442695, %v4524_v53 }
 0x732   : > { %v4491_v51 = vmax.f32 %v12326_v29, %v12329_v11  ;;  %v12337_v37 = vadd.f32 %v4435_v45, %v11822_v19  ;;  %10529 = vpow2.f32 %v4548_v2  ;;  %v4562_v2 = vmul.f32 1.442695, %v4521_v43 }
 0x733   : > { %v4437_v52 = vpop.f32.mrf.mxu1  ;;  %10531 = vpow2.f32 %v4550_v10 }
 0x734   : > { %v12340_v18 = vadd.f32 %v4437_v52, %v11825_v20  ;;  %4492 = vmax.xlane.f32.xlu1 %v4491_v51  ;;  %v4519_v52 = vsub.f32 %v12216_v35, %v4475_v26  ;;  %v4556_v26 = vmul.f32 1.442695, %v4518_v13  ;;  %10533 = vpow2.f32 %v4552_v28 }
 0x735   : > { %v4439_v46 = vpop.f32.mrf.mxu1  ;;  %10535 = vpow2.f32 %v4554_v32  ;;  %v4566_v13 = vmul.f32 1.442695, %v4523_v9 }
 0x736   : > { %v4494_v25 = vmax.f32 %v12337_v37, %v12340_v18  ;;  %v12349_v51 = vadd.f32 %v4439_v46, %v11822_v19  ;;  %10537 = vpow2.f32 %v4556_v26 }
 0x737   : > { %v4441_v45 = vpop.f32.mrf.mxu1 }
 0x738   : > { %v12352_v54 = vadd.f32 %v4441_v45, %v11825_v20  ;;  %4495 = vmax.xlane.f32.xlu0 %v4494_v25  ;;  %v4558_v45 = vmul.f32 1.442695, %v4519_v52  ;;  %v4487_v25 = vpop.xlane.xlu1 %4486 }
 0x739   : > { %v4445_v0 = vpop.f32.mrf.mxu1  ;;  %v4526_v61 = vsub.f32 %v12245_v7, %v4487_v25  ;;  %v4527_v32 = vsub.f32 %v12248_v55, %v4487_v25 }
 0x73a   : > { %v4497_v35 = vmax.f32 %v12349_v51, %v12352_v54  ;;  %v12361_v1 = vadd.f32 %v4445_v0, %v11822_v19  ;;  %10539 = vpow2.f32 %v4558_v45  ;;  %v4570_v0 = vmul.f32 1.442695, %v4525_v48 }
 0x73b   : > { %v4447_v46 = vpop.f32.mrf.mxu1  ;;  %10541 = vpow2.f32 %v4560_v59  ;;  %v4572_v7 = vmul.f32 1.442695, %v4526_v61  ;;  %v12388_v45 = vpop.eup %10527  ;;  %v4574_v55 = vmul.f32 1.442695, %v4527_v32 }
 0x73c   : > { %v12364_v63 = vadd.f32 %v4447_v46, %v11825_v20  ;;  %4498 = vmax.xlane.f32.xlu1 %v4497_v35  ;;  %10543 = vpow2.f32 %v4562_v2 }
 0x73d   : > { %v4449_v15 = vpop.f32.mrf.mxu1  ;;  %10545 = vpow2.f32 %v4564_v36  ;;  %v4608_v36 = vadd.f32 %v12388_v45, %v12386_v4 }
 0x73e   : > { %v4500_v34 = vmax.f32 %v12361_v1, %v12364_v63  ;;  %v12371_v52 = vadd.f32 %v4449_v15, %v11822_v19  ;;  %10547 = vpow2.f32 %v4566_v13 }
 0x73f   : > { %v4451_v10 = vpop.f32.mrf.mxu1  ;;  %10549 = vpow2.f32 %v4568_v40  ;;  %v12392_v59 = vpop.eup %10529  ;;  %v10198_v40 = vld [vmem:[#allocation3 + $0xb8] sm:$0xff]  }
 0x740   : > { %v12374_v28 = vadd.f32 %v4451_v10, %v11825_v20  ;;  %4501 = vmax.xlane.f32.xlu0 %v4500_v34  ;;  %10551 = vpow2.f32 %v4570_v0  ;;  %v12394_v15 = vpop.eup %10531 }
 0x741   : > { %v4455_v49 = vpop.f32.mrf.mxu1  ;;  %10553 = vpow2.f32 %v4572_v7  ;;  %v12402_v25 = vpop.eup %10533 }
 0x742   : > { %v4503_v43 = vmax.f32 %v12371_v52, %v12374_v28  ;;  %v12381_v35 = vadd.f32 %v4455_v49, %v11822_v19  ;;  %10555 = vpow2.f32 %v4574_v55  ;;  %v12408_v10 = vpop.eup %10535  ;;  %v4611_v49 = vadd.f32 %v12394_v15, %v12392_v59 }
 0x743   : > { %v4457_v60 = vpop.f32.mrf.mxu1  ;;  %v12410_v13 = vpop.eup %10537  ;;  %v4614_v0 = vadd.f32 %v12408_v10, %v12402_v25 }
 0x744   : > { %v12384_v26 = vadd.f32 %v4457_v60, %v11825_v20  ;;  %4504 = vmax.xlane.f32.xlu1 %v4503_v43  ;;  %v10199_v60 = vld [vmem:[#allocation3 + $0xf0] sm:$0xff]  }
 0x745   : > { %v4459_v46 = vpop.f32.mrf.mxu1 }
 0x746   : > { %v4506_v9 = vmax.f32 %v12381_v35, %v12384_v26  ;;  %v12397_v2 = vadd.f32 %v4459_v46, %v11822_v19  ;;  %v10197_v19 = vld [vmem:[#allocation3 + $0xf8] sm:$0xff]   ;;  %v10200_v46 = vld [vmem:[#allocation3 + $0xb0] sm:$0xff]  }
 0x747   : > { %v4461_v53 = vpop.f32.mrf.mxu1  ;;  %9646 = vmatprep.subr.bf16.mxu1 %v10197_v19 }
 0x748   : > { %v12400_v48 = vadd.f32 %v4461_v53, %v11825_v20  ;;  %4507 = vmax.xlane.f32.xlu0 %v4506_v9  ;;  %v12412_v20 = vpop.eup %10539  ;;  %9647 = vmatpush3.bf16.msra.mxu1 %v10198_v40 }
 0x749   : > { %v12414_v61 = vpop.eup %10541  ;;  %v4617_v9 = vadd.f32 %v12412_v20, %v12410_v13  ;;  %9648 = vmatprep.subr.bf16.mxu1 %v10199_v60  ;;  %v10203_v60 = vld [vmem:[#allocation3 + $0xe0] sm:$0xff]  }
 0x74a   : > { %v4509_v34 = vmax.f32 %v12397_v2, %v12400_v48  ;;  %v12420_v32 = vpop.eup %10543 }
 0x74b   : > { %v12422_v43 = vpop.eup %10545  ;;  %v4620_v53 = vadd.f32 %v12420_v32, %v12414_v61 }
 0x74c   : > { %4510 = vmax.xlane.f32.xlu1 %v4509_v34  ;;  %4609 = vadd.xlane.f32.xlu0 %v4608_v36  ;;  %v12424_v7 = vpop.eup %10547  ;;  %v10201_v36 = vld [vmem:[#allocation3 + $0xe8] sm:$0xff]  }
 0x74d   : > { %v12426_v55 = vpop.eup %10549  ;;  %9649 = vmatpush3.bf16.msra.mxu1 %v10200_v46  ;;  %v4623_v40 = vadd.f32 %v12424_v7, %v12422_v43 }
 0x74e   : > { %v12432_v34 = vpop.eup %10551  ;;  %9650 = vmatprep.subr.bf16.mxu1 %v10201_v36  ;;  %v10208_v36 = vld [vmem:[#allocation3 + $0x90] sm:$0xff]  }
 0x74f   : > { %v12434_v19 = vpop.eup %10553 }
 0x750   : > { %4612 = vadd.xlane.f32.xlu1 %v4611_v49  ;;  %4615 = vadd.xlane.f32.xlu0 %v4614_v0  ;;  %v4626_v49 = vadd.f32 %v12432_v34, %v12426_v55  ;;  %v10202_v0 = vld [vmem:[#allocation3 + $0xa8] sm:$0xff]   ;;  %v12440_v27 = vpop.eup %10555 }
 0x751   : > { %9651 = vmatpush3.bf16.msra.mxu1 %v10202_v0  ;;  %v4629_v46 = vadd.f32 %v12440_v27, %v12434_v19  ;;  %v10212_v0 = vld [vmem:[#allocation3 + $0x80] sm:$0xff]  }
 0x752   : > { %9652 = vmatprep.subr.bf16.mxu1 %v10203_v60 }
 0x754   : > { %4618 = vadd.xlane.f32.xlu1 %v4617_v9  ;;  %4621 = vadd.xlane.f32.xlu0 %v4620_v53  ;;  %v10204_v9 = vld [vmem:[#allocation3 + $0xa0] sm:$0xff]   ;;  %v10205_v53 = vld [vmem:[#allocation3 + $0xd8] sm:$0xff]  }
 0x755   : > { %9653 = vmatpush3.bf16.msra.mxu1 %v10204_v9 }
 0x756   : > { %9654 = vmatprep.subr.bf16.mxu1 %v10205_v53 }
 0x758   : > { %4624 = vadd.xlane.f32.xlu1 %v4623_v40  ;;  %4627 = vadd.xlane.f32.xlu0 %v4626_v49  ;;  %v10210_v40 = vld [vmem:[#allocation3 + $0x88] sm:$0xff]   ;;  %v10211_v49 = vld [vmem:[#allocation3 + $0xc0] sm:$0xff]  }
 0x759   : > { %9655 = vmatpush3.bf16.msra.mxu1 %v10206_v5 }
 0x75a   : > { %9656 = vmatprep.subr.bf16.mxu1 %v10207_v62 }
 0x75c   : > { %4630 = vadd.xlane.f32.xlu1 %v4629_v46 }
 0x75d   : > { %9657 = vmatpush3.bf16.msra.mxu1 %v10208_v36 }
 0x75e   : > { %9658 = vmatprep.subr.bf16.mxu1 %v10209_v33 }
 0x761   : > { %9659 = vmatpush3.bf16.msra.mxu1 %v10210_v40 }
 0x762   : > { %9660 = vmatprep.subr.bf16.mxu1 %v10211_v49 }
 0x765   : > { %9661 = vmatpush3.bf16.msra.mxu1 %v10212_v0 }
 0x7b9   : > { %v4490_v60 = vpop.xlane.xlu0 %4489 }
 0x7ba   : > { %v4528_v46 = vsub.f32 %v12317_v44, %v4490_v60  ;;  %v4529_v9 = vsub.f32 %v12320_v3, %v4490_v60 }
 0x7bc   : > { %v4576_v53 = vmul.f32 1.442695, %v4528_v46  ;;  %v4578_v6 = vmul.f32 1.442695, %v4529_v9 }
 0x7bd   : > { %v4493_v47 = vpop.xlane.xlu1 %4492 }
 0x7be   : > { %10557 = vpow2.f32 %v4576_v53  ;;  %v4530_v62 = vsub.f32 %v12326_v29, %v4493_v47  ;;  %v4531_v5 = vsub.f32 %v12329_v11, %v4493_v47 }
 0x7bf   : > { %10559 = vpow2.f32 %v4578_v6 }
 0x7c0   : > { %v4580_v33 = vmul.f32 1.442695, %v4530_v62  ;;  %v4582_v36 = vmul.f32 1.442695, %v4531_v5 }
 0x7c1   : > { %v4496_v40 = vpop.xlane.xlu0 %4495 }
 0x7c2   : > { %10561 = vpow2.f32 %v4580_v33  ;;  %v4532_v49 = vsub.f32 %v12337_v37, %v4496_v40  ;;  %v4533_v0 = vsub.f32 %v12340_v18, %v4496_v40 }
 0x7c3   : > { %10563 = vpow2.f32 %v4582_v36 }
 0x7c4   : > { %v4584_v44 = vmul.f32 1.442695, %v4532_v49  ;;  %v4586_v3 = vmul.f32 1.442695, %v4533_v0 }
 0x7c5   : > { %v4499_v60 = vpop.xlane.xlu1 %4498 }
 0x7c6   : > { %10565 = vpow2.f32 %v4584_v44  ;;  %v4534_v46 = vsub.f32 %v12349_v51, %v4499_v60  ;;  %v4535_v29 = vsub.f32 %v12352_v54, %v4499_v60 }
 0x7c7   : > { %10567 = vpow2.f32 %v4586_v3 }
 0x7c8   : > { %v4588_v11 = vmul.f32 1.442695, %v4534_v46  ;;  %v4590_v47 = vmul.f32 1.442695, %v4535_v29 }
 0x7c9   : > { %v4502_v6 = vpop.xlane.xlu0 %4501 }
 0x7ca   : > { %10569 = vpow2.f32 %v4588_v11  ;;  %v4536_v9 = vsub.f32 %v12361_v1, %v4502_v6  ;;  %v4537_v37 = vsub.f32 %v12364_v63, %v4502_v6 }
 0x7cb   : > { %v12454_v53 = vpop.eup %10557  ;;  %10571 = vpow2.f32 %v4590_v47 }
 0x7cc   : > { %v12456_v18 = vpop.eup %10559  ;;  %v4592_v62 = vmul.f32 1.442695, %v4536_v9  ;;  %v4594_v5 = vmul.f32 1.442695, %v4537_v37 }
 0x7cd   : > { %v4505_v33 = vpop.xlane.xlu1 %4504  ;;  %v4632_v51 = vadd.f32 %v12456_v18, %v12454_v53 }
 0x7ce   : > { %10573 = vpow2.f32 %v4592_v62  ;;  %v4538_v54 = vsub.f32 %v12371_v52, %v4505_v33  ;;  %v4539_v36 = vsub.f32 %v12374_v28, %v4505_v33 }
 0x7cf   : > { %v12462_v40 = vpop.eup %10561  ;;  %10575 = vpow2.f32 %v4594_v5  ;;  %4633 = vadd.xlane.f32.xlu0 %v4632_v51 }
 0x7d0   : > { %v12464_v1 = vpop.eup %10563  ;;  %v4596_v63 = vmul.f32 1.442695, %v4538_v54  ;;  %v4598_v49 = vmul.f32 1.442695, %v4539_v36 }
 0x7d1   : > { %v4508_v0 = vpop.xlane.xlu0 %4507  ;;  %v4635_v44 = vadd.f32 %v12464_v1, %v12462_v40 }
 0x7d2   : > { %10577 = vpow2.f32 %v4596_v63  ;;  %v4540_v3 = vsub.f32 %v12381_v35, %v4508_v0  ;;  %v4541_v60 = vsub.f32 %v12384_v26, %v4508_v0 }
 0x7d3   : > { %v12470_v52 = vpop.eup %10565  ;;  %10579 = vpow2.f32 %v4598_v49  ;;  %4636 = vadd.xlane.f32.xlu1 %v4635_v44 }
 0x7d4   : > { %v12472_v28 = vpop.eup %10567  ;;  %v4600_v46 = vmul.f32 1.442695, %v4540_v3  ;;  %v4602_v29 = vmul.f32 1.442695, %v4541_v60 }
 0x7d5   : > { %v4511_v11 = vpop.xlane.xlu1 %4510  ;;  %v4610_v47 = vpop.xlane.xlu0 %4609  ;;  %v4638_v6 = vadd.f32 %v12472_v28, %v12470_v52 }
 0x7d6   : > { %10581 = vpow2.f32 %v4600_v46  ;;  %v4542_v9 = vsub.f32 %v12397_v2, %v4511_v11  ;;  %v4543_v35 = vsub.f32 %v12400_v48, %v4511_v11 }
 0x7d7   : > { %v12478_v37 = vpop.eup %10569  ;;  %10583 = vpow2.f32 %v4602_v29  ;;  %4639 = vadd.xlane.f32.xlu0 %v4638_v6 }
 0x7d8   : > { %v12480_v26 = vpop.eup %10571  ;;  %v4604_v62 = vmul.f32 1.442695, %v4542_v9  ;;  %v4606_v5 = vmul.f32 1.442695, %v4543_v35  ;;  %10585 = vrcp.f32 %v4610_v47 }
 0x7d9   : > { %v4613_v33 = vpop.xlane.xlu1 %4612  ;;  %v4641_v51 = vadd.f32 %v12480_v26, %v12478_v37  ;;  %v4616_v54 = vpop.xlane.xlu0 %4615 }
 0x7da   : > { %10587 = vpow2.f32 %v4604_v62 }
 0x7db   : > { %v12484_v36 = vpop.eup %10573  ;;  %10589 = vpow2.f32 %v4606_v5  ;;  %4642 = vadd.xlane.f32.xlu1 %v4641_v51 }
 0x7dc   : > { %v12486_v2 = vpop.eup %10575  ;;  %10591 = vrcp.f32 %v4613_v33 }
 0x7dd   : > { %10593 = vrcp.f32 %v4616_v54  ;;  %v4619_v48 = vpop.xlane.xlu1 %4618  ;;  %v4644_v63 = vadd.f32 %v12486_v2, %v12484_v36  ;;  %v4622_v44 = vpop.xlane.xlu0 %4621 }
 0x7de   : > { %10595 = vrcp.f32 %v4619_v48 }
 0x7df   : > { %v12490_v49 = vpop.eup %10577  ;;  %4645 = vadd.xlane.f32.xlu0 %v4644_v63 }
 0x7e0   : > { %v12492_v0 = vpop.eup %10579 }
 0x7e1   : > { %v4625_v3 = vpop.xlane.xlu1 %4624  ;;  %v4647_v60 = vadd.f32 %v12492_v0, %v12490_v49  ;;  %v4628_v62 = vpop.xlane.xlu0 %4627 }
 0x7e2   : > { %10597 = vrcp.f32 %v4625_v3 }
 0x7e3   : > { %v12496_v46 = vpop.eup %10581  ;;  %4648 = vadd.xlane.f32.xlu1 %v4647_v60  ;;  %10599 = vrcp.f32 %v4622_v44 }
 0x7e4   : > { %v12498_v29 = vpop.eup %10583 }
 0x7e5   : > { %v4650_v11 = vadd.f32 %v12498_v29, %v12496_v46  ;;  %v10586_v47 = vpop.eup %10585  ;;  %v4631_v6 = vpop.xlane.xlu1 %4630 }
 0x7e6   : > { %10601 = vrcp.f32 %v4631_v6  ;;  %v4673_v54 = vmul.f32 %v10586_v47, %v12388_v45  ;;  %v4672_v63 = vmul.f32 %v10586_v47, %v12386_v4 }
 0x7e7   : > { %v12502_v9 = vpop.eup %10587  ;;  %4651 = vadd.xlane.f32.xlu0 %v4650_v11  ;;  %10603 = vrcp.f32 %v4628_v62 }
 0x7e8   : > { %v12504_v35 = vpop.eup %10589 }
 0x7e9   : > { %v10592_v5 = vpop.eup %10591  ;;  %v4653_v33 = vadd.f32 %v12504_v35, %v12502_v9 }
 0x7ea   : > { %v10594_v51 = vpop.eup %10593  ;;  %v4675_v48 = vmul.f32 %v10592_v5, %v12394_v15  ;;  %v4674_v44 = vmul.f32 %v10592_v5, %v12392_v59 }
 0x7eb   : > { %v10596_v3 = vpop.eup %10595  ;;  %4654 = vadd.xlane.f32.xlu1 %v4653_v33  ;;  %v4677_v17 = vmul.f32 %v10594_v51, %v12408_v10  ;;  %v4676_v59 = vmul.f32 %v10594_v51, %v12402_v25 }
 0x7ec   : > { %v4705_v60 = vpack.c.bf16 %v4675_v48, %v4673_v54  ;;  %v4704_v11 = vpack.c.bf16 %v4674_v44, %v4672_v63  ;;  %v4679_v6 = vmul.f32 %v10596_v3, %v12412_v20  ;;  %v4678_v15 = vmul.f32 %v10596_v3, %v12410_v13  ;;  %v10213_v48 = vld [vmem:[#allocation15 + $0xf0] ss:$8 sps:$4 sm:$0xff]   ;;  %v10215_v63 = vld [vmem:[#allocation15 + $0xf4] ss:$8 sps:$4 sm:$0xff]   ;;  %v10218_v44 = vld [vmem:[#allocation15 + $0xe4] ss:$8 sps:$4 sm:$0xff]  }
 0x7ed   : > { %5052 = vmatprep.subr.bf16.mxu0 %v10215_v63  ;;  %v10230_v3 = vld [vmem:[#allocation15 + $0xa4] ss:$8 sps:$4 sm:$0xff]  }
 0x7ee   : > { %4848 = vmatprep.mubr.bf16.mxu1 %v4705_v60  ;;  %v4707_v57 = vpack.c.bf16 %v4679_v6, %v4677_v17  ;;  %v4706_v62 = vpack.c.bf16 %v4678_v15, %v4676_v59  ;;  %5053 = vmatpush1.bf16.msra.mxu0 %v10213_v48  ;;  %v10228_v60 = vld [vmem:[#allocation15 + $0xa0] ss:$8 sps:$4 sm:$0xff]   ;;  %v10231_v6 = vld [vmem:[#allocation15 + $0x90] ss:$8 sps:$4 sm:$0xff]  }
 0x7ef   : > { %v10598_v38 = vpop.eup %10597  ;;  %4849 = vmatmul.mubr.bf16.vlgmr.msra.gmra.mxu1 %v4704_v11  ;;  %5054 = vmatprep.subr.bf16.mxu0 %v10218_v44  ;;  %v10233_v11 = vld [vmem:[#allocation15 + $0x94] ss:$8 sps:$4 sm:$0xff]   ;;  %v10234_v15 = vld [vmem:[#allocation15 + $0x80] ss:$8 sps:$4 sm:$0xff]  }
 0x7f0   : > { %4856 = vmatprep.mubr.bf16.mxu1 %v4707_v57  ;;  %v10600_v45 = vpop.eup %10599  ;;  %v4683_v4 = vmul.f32 %v10598_v38, %v12424_v7  ;;  %v4682_v17 = vmul.f32 %v10598_v38, %v12422_v43  ;;  %v10216_v38 = vld [vmem:[#allocation15 + $0xe0] ss:$8 sps:$4 sm:$0xff]   ;;  %v10224_v43 = vld [vmem:[#allocation15 + $0xc4] ss:$8 sps:$4 sm:$0xff]  }
 0x7f1   : > { %v4681_v47 = vmul.f32 %v10600_v45, %v12420_v32  ;;  %v4680_v57 = vmul.f32 %v10600_v45, %v12414_v61  ;;  %v10219_v61 = vld [vmem:[#allocation15 + $0xd0] ss:$8 sps:$4 sm:$0xff]   ;;  %v10236_v45 = vld [vmem:[#allocation15 + $0x84] ss:$8 sps:$4 sm:$0xff]  }
 0x7f2   : > { %5055 = vmatpush1.bf16.msra.mxu0 %v10216_v38 }
 0x7f3   : > { %v10602_v5 = vpop.eup %10601  ;;  %v4709_v33 = vpack.c.bf16 %v4683_v4, %v4681_v47  ;;  %v4708_v54 = vpack.c.bf16 %v4682_v17, %v4680_v57 }
 0x7f4   : > { %v10604_v10 = vpop.eup %10603  ;;  %v4687_v20 = vmul.f32 %v10602_v5, %v12440_v27  ;;  %v4686_v25 = vmul.f32 %v10602_v5, %v12434_v19  ;;  %v10221_v27 = vld [vmem:[#allocation15 + $0xd4] ss:$8 sps:$4 sm:$0xff]  }
 0x7f5   : > { %v4685_v13 = vmul.f32 %v10604_v10, %v12432_v34  ;;  %v4684_v32 = vmul.f32 %v10604_v10, %v12426_v55  ;;  %5056 = vmatprep.subr.bf16.mxu0 %v10221_v27  ;;  %v10222_v34 = vld [vmem:[#allocation15 + $0xc0] ss:$8 sps:$4 sm:$0xff]   ;;  %v10227_v19 = vld [vmem:[#allocation15 + $0xb4] ss:$8 sps:$4 sm:$0xff]   ;;  %v10225_v55 = vld [vmem:[#allocation15 + $0xb0] ss:$8 sps:$4 sm:$0xff]  }
 0x7f6   : > { %5057 = vmatpush1.bf16.msra.mxu0 %v10219_v61 }
 0x7f7   : > { %4857 = vmatmul.mubr.bf16.gmra.mxu1 %v4706_v62  ;;  %v4711_v7 = vpack.c.bf16 %v4687_v20, %v4685_v13  ;;  %v4710_v51 = vpack.c.bf16 %v4686_v25, %v4684_v32  ;;  %5058 = vmatprep.subr.bf16.mxu0 %v10224_v43 }
 0x7f8   : > { %4864 = vmatprep.mubr.bf16.mxu1 %v4709_v33 }
 0x7fa   : > { %5059 = vmatpush1.bf16.msra.mxu0 %v10222_v34 }
 0x7fb   : > { %5060 = vmatprep.subr.bf16.mxu0 %v10227_v19 }
 0x7fe   : > { %5061 = vmatpush1.bf16.msra.mxu0 %v10225_v55 }
 0x7ff   : > { %4865 = vmatmul.mubr.bf16.gmra.mxu1 %v4708_v54  ;;  %5062 = vmatprep.subr.bf16.mxu0 %v10230_v3 }
 0x800   : > { %4872 = vmatprep.mubr.bf16.mxu1 %v4711_v7 }
 0x802   : > { %5063 = vmatpush1.bf16.msra.mxu0 %v10228_v60 }
 0x803   : > { %5064 = vmatprep.subr.bf16.mxu0 %v10233_v11 }
 0x806   : > { %5065 = vmatpush1.bf16.msra.mxu0 %v10231_v6 }
 0x807   : > { %4873 = vmatmul.mubr.bf16.gmra.mxu1 %v4710_v51  ;;  %5066 = vmatprep.subr.bf16.mxu0 %v10236_v45 }
 0x80a   : > { %5067 = vmatpush1.bf16.msra.mxu0 %v10234_v15 }
 0x858   : > { %v4634_v4 = vpop.xlane.xlu0 %4633 }
 0x859   : > { %10605 = vrcp.f32 %v4634_v4 }
 0x85c   : > { %v4637_v59 = vpop.xlane.xlu1 %4636 }
 0x85d   : > { %10607 = vrcp.f32 %v4637_v59 }
 0x860   : > { %v4640_v47 = vpop.xlane.xlu0 %4639 }
 0x861   : > { %10609 = vrcp.f32 %v4640_v47 }
 0x864   : > { %v4643_v62 = vpop.xlane.xlu1 %4642 }
 0x865   : > { %10611 = vrcp.f32 %v4643_v62 }
 0x866   : > { %v10606_v5 = vpop.eup %10605 }
 0x867   : > { %v4689_v17 = vmul.f32 %v10606_v5, %v12456_v18  ;;  %v4688_v57 = vmul.f32 %v10606_v5, %v12454_v53 }
 0x868   : > { %v4646_v33 = vpop.xlane.xlu0 %4645 }
 0x869   : > { %10613 = vrcp.f32 %v4646_v33 }
 0x86a   : > { %v10608_v10 = vpop.eup %10607 }
 0x86b   : > { %v4691_v20 = vmul.f32 %v10608_v10, %v12464_v1  ;;  %v4690_v13 = vmul.f32 %v10608_v10, %v12462_v40 }
 0x86c   : > { %v4649_v54 = vpop.xlane.xlu1 %4648 }
 0x86d   : > { %10615 = vrcp.f32 %v4649_v54  ;;  %v4713_v7 = vpack.c.bf16 %v4691_v20, %v4689_v17  ;;  %v4712_v25 = vpack.c.bf16 %v4690_v13, %v4688_v57 }
 0x86e   : > { %v10610_v32 = vpop.eup %10609 }
 0x86f   : > { %4880 = vmatprep.mubr.bf16.mxu1 %v4713_v7  ;;  %v4693_v63 = vmul.f32 %v10610_v32, %v12472_v28  ;;  %v4692_v1 = vmul.f32 %v10610_v32, %v12470_v52 }
 0x870   : > { %4881 = vmatmul.mubr.bf16.gmra.mxu1 %v4712_v25  ;;  %v4652_v51 = vpop.xlane.xlu0 %4651 }
 0x871   : > { %10617 = vrcp.f32 %v4652_v51 }
 0x872   : > { %v10612_v48 = vpop.eup %10611 }
 0x873   : > { %v4695_v18 = vmul.f32 %v10612_v48, %v12480_v26  ;;  %v4694_v53 = vmul.f32 %v10612_v48, %v12478_v37 }
 0x874   : > { %v4655_v44 = vpop.xlane.xlu1 %4654 }
 0x875   : > { %10619 = vrcp.f32 %v4655_v44  ;;  %v4715_v40 = vpack.c.bf16 %v4695_v18, %v4693_v63  ;;  %v4714_v38 = vpack.c.bf16 %v4694_v53, %v4692_v1 }
 0x876   : > { %v10614_v27 = vpop.eup %10613 }
 0x877   : > { %4888 = vmatprep.mubr.bf16.mxu1 %v4715_v40  ;;  %v4697_v43 = vmul.f32 %v10614_v27, %v12486_v2  ;;  %v4696_v28 = vmul.f32 %v10614_v27, %v12484_v36 }
 0x878   : > { %4889 = vmatmul.mubr.bf16.gmra.mxu1 %v4714_v38 }
 0x87a   : > { %v10616_v61 = vpop.eup %10615 }
 0x87b   : > { %v4699_v34 = vmul.f32 %v10616_v61, %v12492_v0  ;;  %v4698_v26 = vmul.f32 %v10616_v61, %v12490_v49 }
 0x87d   : > { %v4717_v19 = vpack.c.bf16 %v4699_v34, %v4697_v43  ;;  %v4716_v52 = vpack.c.bf16 %v4698_v26, %v4696_v28 }
 0x87e   : > { %v10618_v37 = vpop.eup %10617 }
 0x87f   : > { %4896 = vmatprep.mubr.bf16.mxu1 %v4717_v19  ;;  %v4701_v3 = vmul.f32 %v10618_v37, %v12498_v29  ;;  %v4700_v11 = vmul.f32 %v10618_v37, %v12496_v46 }
 0x880   : > { %4897 = vmatmul.mubr.bf16.gmra.mxu1 %v4716_v52 }
 0x882   : > { %v10620_v55 = vpop.eup %10619 }
 0x883   : > { %v4703_v60 = vmul.f32 %v10620_v55, %v12504_v35  ;;  %v4702_v2 = vmul.f32 %v10620_v55, %v12502_v9  ;;  %v14411_v35 = vmov 0  }
 0x885   : > { %v4719_v6 = vpack.c.bf16 %v4703_v60, %v4701_v3  ;;  %v4718_v0 = vpack.c.bf16 %v4702_v2, %v4700_v11 }
 0x887   : > { %4904 = vmatprep.mubr.bf16.mxu1 %v4719_v6 }
 0x888   : > { %4905 = vmatmul.mubr.bf16.gmra.mxu1 %v4718_v0 }
 0x8af   : > { %v9662_v36 = vpop.f32.mrf.mxu1 }
 0x8b1   : > { %v9663_v49 = vpop.f32.mrf.mxu1 }
 0x8b2   : > { %v9664_v4 = vadd.f32 %v9663_v49, %v9662_v36 }
 0x8b3   : > { %v9665_v45 = vpop.f32.mrf.mxu1 }
 0x8b5   : > { %v9666_v15 = vpop.f32.mrf.mxu1 }
 0x8b6   : > { %v9667_v59 = vadd.f32 %v9666_v15, %v9665_v45 }
 0x8b7   : > { %v9668_v47 = vpop.f32.mrf.mxu1 }
 0x8b8   : > { %v4964_v62 = vpack.c.bf16 %v9667_v59, %v9664_v4 }
 0x8b9   : > { %v9669_v5 = vpop.f32.mrf.mxu1 }
 0x8ba   : > { %5085 = vmatmul.mubr.bf16.vlgmr.msra.gmra.mxu0 %v4964_v62  ;;  %v9670_v33 = vadd.f32 %v9669_v5, %v9668_v47 }
 0x8bb   : > { %v9671_v29 = vpop.f32.mrf.mxu1  ;;  %5094 = vmatprep.mubr.bf16.mxu0 %v14411_v35 }
 0x8bd   : > { %v9672_v46 = vpop.f32.mrf.mxu1 }
 0x8be   : > { %v9673_v9 = vadd.f32 %v9672_v46, %v9671_v29  ;;  %v5261_v29 = vld [vmem:[%s14412_s12] sm:$0x3]  ;;  %s8860_s12 = sshll.u32 %s14522_s21, 6 }
 0x8bf   : > { %v9674_v10 = vpop.f32.mrf.mxu1  ;;  %v12551_v46 = vrot.slane %v5261_v29, %v11774_v12  ;;  %s8094_s1 = sadd.s32 %s9043_s13, %s8860_s12 }
 0x8c0   : > { %v4965_v17 = vpack.c.bf16 %v9673_v9, %v9670_v33  ;;  %s8861_s19 = sshll.u32 %s8094_s1, 6 }
 0x8c1   : > { %v9675_v20 = vpop.f32.mrf.mxu1 }
 0x8c2   : > { %5095 = vmatmul.mubr.bf16.gmra.mxu0 %v4965_v17  ;;  %v9676_v54 = vadd.f32 %v9675_v20, %v9674_v10  ;;  %v12555_v10 = vrot.slane %v5261_v29, %v11780_v14 }
 0x8c3   : > { %v9677_v57 = vpop.f32.mrf.mxu1  ;;  %5104 = vmatprep.mubr.bf16.mxu0 %v14411_v35 }
 0x8c5   : > { %v9678_v13 = vpop.f32.mrf.mxu1 }
 0x8c6   : > { %v9679_v7 = vadd.f32 %v9678_v13, %v9677_v57  ;;  %v10813_v57 = vld [vmem:[%s11745_s3] sm:$0xff] }
 0x8c7   : > { %v9680_v25 = vpop.f32.mrf.mxu1  ;;  %v5305_v13 = vunpack.c.l.bf16 %v10813_v57 }
 0x8c8   : > { %v4966_v32 = vpack.c.bf16 %v9679_v7, %v9676_v54  ;;  %v5306_v54 = vunpack.c.h.bf16 %v10813_v57  ;;  %v10818_v57 = vld [vmem:[%s11745_s3 + $0x28] sm:$0xff] }
 0x8c9   : > { %v9681_v51 = vpop.f32.mrf.mxu1 }
 0x8ca   : > { %5105 = vmatmul.mubr.bf16.gmra.mxu0 %v4966_v32  ;;  %v9682_v18 = vadd.f32 %v9681_v51, %v9680_v25 }
 0x8cb   : > { %v9683_v48 = vpop.f32.mrf.mxu1  ;;  %5114 = vmatprep.mubr.bf16.mxu0 %v14411_v35 }
 0x8cd   : > { %v9684_v63 = vpop.f32.mrf.mxu1 }
 0x8ce   : > { %v9685_v1 = vadd.f32 %v9684_v63, %v9683_v48  ;;  %v10814_v48 = vld [vmem:[%s11745_s3 + $0x8] sm:$0xff] }
 0x8cf   : > { %v5308_v63 = vunpack.c.h.bf16 %v10814_v48 }
 0x8d0   : > { %v4967_v53 = vpack.c.bf16 %v9685_v1, %v9682_v18 }
 0x8d2   : > { %5115 = vmatmul.mubr.bf16.gmra.mxu0 %v4967_v53 }
 0x8d3   : > { %5124 = vmatprep.mubr.bf16.mxu0 %v14411_v35 }
 0x930   : > { %v9686_v44 = vpop.f32.mrf.mxu1 }
 0x932   : > { %v9687_v40 = vpop.f32.mrf.mxu1 }
 0x933   : > { %v9688_v61 = vadd.f32 %v9687_v40, %v9686_v44 }
 0x934   : > { %v9689_v38 = vpop.f32.mrf.mxu1 }
 0x936   : > { %v9690_v27 = vpop.f32.mrf.mxu1 }
 0x937   : > { %v9691_v43 = vadd.f32 %v9690_v27, %v9689_v38 }
 0x938   : > { %v9692_v34 = vpop.f32.mrf.mxu1 }
 0x939   : > { %v4968_v28 = vpack.c.bf16 %v9691_v43, %v9688_v61  ;;  %v10815_v61 = vld [vmem:[%s11745_s3 + $0x10] sm:$0xff] }
 0x93a   : > { %v9693_v26 = vpop.f32.mrf.mxu1  ;;  %v5309_v43 = vunpack.c.l.bf16 %v10815_v61 }
 0x93b   : > { %5125 = vmatmul.mubr.bf16.gmra.mxu0 %v4968_v28  ;;  %v9694_v37 = vadd.f32 %v9693_v26, %v9692_v34  ;;  %v5310_v34 = vunpack.c.h.bf16 %v10815_v61  ;;  %v14413_v61 = vld [vmem:[#allocation41_spill] sm:$0xff] }
 0x93c   : > { %v9695_v19 = vpop.f32.mrf.mxu1  ;;  %5134 = vmatprep.mubr.bf16.mxu0 %v14411_v35 }
 0x93e   : > { %v9696_v52 = vpop.f32.mrf.mxu1 }
 0x93f   : > { %v9697_v55 = vadd.f32 %v9696_v52, %v9695_v19 }
 0x940   : > { %v9698_v3 = vpop.f32.mrf.mxu1 }
 0x941   : > { %v4969_v60 = vpack.c.bf16 %v9697_v55, %v9694_v37 }
 0x942   : > { %v9699_v11 = vpop.f32.mrf.mxu1 }
 0x943   : > { %5135 = vmatmul.mubr.bf16.gmra.mxu0 %v4969_v60  ;;  %v9700_v0 = vadd.f32 %v9699_v11, %v9698_v3  ;;  %v10816_v60 = vld [vmem:[%s11745_s3 + $0x18] sm:$0xff] }
 0x944   : > { %v9701_v2 = vpop.f32.mrf.mxu1  ;;  %5144 = vmatprep.mubr.bf16.mxu0 %v14411_v35  ;;  %v5311_v11 = vunpack.c.l.bf16 %v10816_v60 }
 0x946   : > { %v9702_v6 = vpop.f32.mrf.mxu1 }
 0x947   : > { %v9703_v36 = vadd.f32 %v9702_v6, %v9701_v2  ;;  %v5312_v2 = vunpack.c.h.bf16 %v10816_v60 }
 0x948   : > { %v9704_v49 = vpop.f32.mrf.mxu1 }
 0x949   : > { %v4970_v45 = vpack.c.bf16 %v9703_v36, %v9700_v0 }
 0x94a   : > { %v9705_v15 = vpop.f32.mrf.mxu1 }
 0x94b   : > { %5145 = vmatmul.mubr.bf16.gmra.mxu0 %v4970_v45  ;;  %v9706_v47 = vadd.f32 %v9705_v15, %v9704_v49 }
 0x94c   : > { %v9707_v4 = vpop.f32.mrf.mxu1  ;;  %5154 = vmatprep.mubr.bf16.mxu0 %v14411_v35 }
 0x94e   : > { %v9708_v59 = vpop.f32.mrf.mxu1 }
 0x94f   : > { %v9709_v62 = vadd.f32 %v9708_v59, %v9707_v4  ;;  %v10817_v59 = vld [vmem:[%s11745_s3 + $0x20] sm:$0xff] }
 0x951   : > { %v4971_v5 = vpack.c.bf16 %v9709_v62, %v9706_v47  ;;  %v5313_v47 = vunpack.c.l.bf16 %v10817_v59  ;;  %v5314_v62 = vunpack.c.h.bf16 %v10817_v59  ;;  %v10245_v59 = vld [vmem:[#allocation17 + $0xc4] ss:$16 sps:$4 sm:$0xff]  }
 0x953   : > { %5155 = vmatmul.mubr.bf16.gmra.mxu0 %v4971_v5 }
 0x97a   : > { %v5086_v33 = vpop.f32.mrf.mxu0 }
 0x97b   : > { %v5165_v9 = vadd.f32 %v5086_v33, %v12252_v42  ;;  %v5307_v42 = vunpack.c.l.bf16 %v10814_v48 }
 0x97c   : > { %v5088_v35 = vpop.f32.mrf.mxu0 }
 0x97d   : > { %v5273_v17 = vadd.f32 %v12551_v46, %v5165_v9  ;;  %v5166_v20 = vadd.f32 %v5088_v35, %v12254_v39 }
 0x97e   : > { %v5090_v7 = vpop.f32.mrf.mxu0 }
 0x97f   : > { %v5274_v25 = vadd.f32 %v12555_v10, %v5166_v20  ;;  %v5167_v32 = vadd.f32 %v5090_v7, %v12256_v41  ;;  %v12565_v53 = vadd.f32 %v5305_v13, %v5273_v17  ;;  %v5315_v13 = vunpack.c.l.bf16 %v10818_v57 }
 0x980   : > { %v5092_v51 = vpop.f32.mrf.mxu0 }
 0x981   : > { %v5275_v18 = vadd.f32 %v12551_v46, %v5167_v32  ;;  %v5168_v1 = vadd.f32 %v5092_v51, %v12258_v23  ;;  %v12567_v39 = vadd.f32 %v5306_v54, %v5274_v25  ;;  %v5316_v54 = vunpack.c.h.bf16 %v10818_v57 }
 0x982   : > { %v5096_v44 = vpop.f32.mrf.mxu0 }
 0x983   : > { %v5276_v40 = vadd.f32 %v12555_v10, %v5168_v1  ;;  %v5169_v38 = vadd.f32 %v5096_v44, %v12260_v16  ;;  %v5369_v41 = vadd.f32 %v12567_v39, %v12565_v53  ;;  %v12576_v26 = vadd.f32 %v5307_v42, %v5275_v18  ;;  %v10819_v18 = vld [vmem:[%s11745_s3 + $0x30] sm:$0xff] }
 0x984   : > { %v5098_v27 = vpop.f32.mrf.mxu0  ;;  %v5317_v1 = vunpack.c.l.bf16 %v10819_v18  ;;  %v5318_v44 = vunpack.c.h.bf16 %v10819_v18 }
 0x985   : > { %v5277_v28 = vadd.f32 %v12551_v46, %v5169_v38  ;;  %v5170_v23 = vadd.f32 %v5098_v27, %v12262_v24  ;;  %5370 = vadd.xlane.f32.xlu0 %v5369_v41  ;;  %v12578_v19 = vadd.f32 %v5308_v63, %v5276_v40 }
 0x986   : > { %v5100_v52 = vpop.f32.mrf.mxu0 }
 0x987   : > { %v5278_v16 = vadd.f32 %v12555_v10, %v5170_v23  ;;  %v5171_v37 = vadd.f32 %v5100_v52, %v12264_v21  ;;  %v5372_v55 = vadd.f32 %v12578_v19, %v12576_v26  ;;  %v12587_v0 = vadd.f32 %v5309_v43, %v5277_v28  ;;  %v10820_v23 = vld [vmem:[%s11745_s3 + $0x38] sm:$0xff] }
 0x988   : > { %v5102_v3 = vpop.f32.mrf.mxu0  ;;  %v5319_v52 = vunpack.c.l.bf16 %v10820_v23 }
 0x989   : > { %v5279_v24 = vadd.f32 %v12551_v46, %v5171_v37  ;;  %v5172_v6 = vadd.f32 %v5102_v3, %v12266_v31  ;;  %5373 = vadd.xlane.f32.xlu1 %v5372_v55  ;;  %v12589_v36 = vadd.f32 %v5310_v34, %v5278_v16  ;;  %v5320_v16 = vunpack.c.h.bf16 %v10820_v23 }
 0x98a   : > { %v5106_v49 = vpop.f32.mrf.mxu0 }
 0x98b   : > { %v5280_v21 = vadd.f32 %v12555_v10, %v5172_v6  ;;  %v5173_v45 = vadd.f32 %v5106_v49, %v12268_v58  ;;  %v5375_v15 = vadd.f32 %v12589_v36, %v12587_v0  ;;  %v12598_v29 = vadd.f32 %v5311_v11, %v5279_v24 }
 0x98c   : > { %v5108_v4 = vpop.f32.mrf.mxu0 }
 0x98d   : > { %v5281_v31 = vadd.f32 %v12551_v46, %v5173_v45  ;;  %v5174_v5 = vadd.f32 %v5108_v4, %v12270_v8  ;;  %5376 = vadd.xlane.f32.xlu0 %v5375_v15  ;;  %v12600_v33 = vadd.f32 %v5312_v2, %v5280_v21  ;;  %v10237_v21 = vld [vmem:[#allocation17 + $0xe0] ss:$16 sps:$4 sm:$0xff]   ;;  %v10239_v45 = vld [vmem:[#allocation17 + $0xe4] ss:$16 sps:$4 sm:$0xff]   ;;  %v10240_v15 = vld [vmem:[#allocation17 + $0xe8] ss:$16 sps:$4 sm:$0xff]  }
 0x98e   : > { %v5110_v9 = vpop.f32.mrf.mxu0  ;;  %v10242_v4 = vld [vmem:[#allocation17 + $0xec] ss:$16 sps:$4 sm:$0xff]   ;;  %6136 = vmatprep.subr.bf16.mxu1 %v10239_v45 }
 0x98f   : > { %v5282_v58 = vadd.f32 %v12555_v10, %v5174_v5  ;;  %v5175_v35 = vadd.f32 %v5110_v9, %v12272_v56  ;;  %v5378_v17 = vadd.f32 %v12600_v33, %v12598_v29  ;;  %v12609_v25 = vadd.f32 %v5313_v47, %v5281_v31  ;;  %v10248_v47 = vld [vmem:[#allocation17 + $0xcc] ss:$16 sps:$4 sm:$0xff]   ;;  %6249 = vmatprep.subr.bf16.mxu0 %v10242_v4  ;;  %v10246_v31 = vld [vmem:[#allocation17 + $0xc8] ss:$16 sps:$4 sm:$0xff]  }
 0x990   : > { %v5112_v20 = vpop.f32.mrf.mxu0  ;;  %6137 = vmatpush1.bf16.msra.mxu1 %v10237_v21  ;;  %6250 = vmatpush1.bf16.msra.mxu0 %v10240_v15  ;;  %v14415_v9 = vld [vmem:[#allocation43_spill] sm:$0xff]  ;;  %v14421_v4 = vld [vmem:[#allocation49_spill] sm:$0xff] }
 0x991   : > { %v5283_v8 = vadd.f32 %v12551_v46, %v5175_v35  ;;  %v5176_v7 = vadd.f32 %v5112_v20, %v12274_v30  ;;  %5379 = vadd.xlane.f32.xlu1 %v5378_v17  ;;  %v12611_v32 = vadd.f32 %v5314_v62, %v5282_v58  ;;  %v10243_v62 = vld [vmem:[#allocation17 + $0xc0] ss:$16 sps:$4 sm:$0xff]   ;;  %6138 = vmatprep.subr.bf16.mxu1 %v10245_v59 }
 0x992   : > { %v5116_v51 = vpop.f32.mrf.mxu0  ;;  %6251 = vmatprep.subr.bf16.mxu0 %v10248_v47  ;;  %v14416_v20 = vld [vmem:[#allocation44_spill] sm:$0xff] }
 0x993   : > { %v5284_v56 = vadd.f32 %v12555_v10, %v5176_v7  ;;  %v5177_v48 = vadd.f32 %v5116_v51, %v12276_v50  ;;  %v5381_v42 = vadd.f32 %v12611_v32, %v12609_v25  ;;  %v12620_v38 = vadd.f32 %v5315_v13, %v5283_v8  ;;  %v10821_v13 = vld [vmem:[%s11745_s3 + $0x40] sm:$0xff] }
 0x994   : > { %v5118_v63 = vpop.f32.mrf.mxu0  ;;  %6139 = vmatpush1.bf16.msra.mxu1 %v10243_v62  ;;  %6252 = vmatpush1.bf16.msra.mxu0 %v10246_v31  ;;  %v5322_v8 = vunpack.c.h.bf16 %v10821_v13  ;;  %v10824_v31 = vld [vmem:[%s11745_s3 + $0x58] sm:$0xff] }
 0x995   : > { %v5285_v30 = vadd.f32 %v12551_v46, %v5177_v48  ;;  %v5178_v40 = vadd.f32 %v5118_v63, %v12278_v22  ;;  %5382 = vadd.xlane.f32.xlu0 %v5381_v42  ;;  %v12622_v41 = vadd.f32 %v5316_v54, %v5284_v56  ;;  %v14414_v22 = vld [vmem:[#allocation42_spill] sm:$0xff]  ;;  %v5321_v54 = vunpack.c.l.bf16 %v10821_v13  ;;  %v14417_v56 = vld [vmem:[#allocation45_spill] sm:$0xff] }
 0x996   : > { %v5120_v27 = vpop.f32.mrf.mxu0  ;;  %v10822_v63 = vld [vmem:[%s11745_s3 + $0x48] sm:$0xff] }
 0x997   : > { %v5286_v50 = vadd.f32 %v12555_v10, %v5178_v40  ;;  %v5179_v43 = vadd.f32 %v5120_v27, %v14413_v61  ;;  %v5384_v34 = vadd.f32 %v12622_v41, %v12620_v38  ;;  %v12631_v3 = vadd.f32 %v5317_v1, %v5285_v30  ;;  %v14418_v30 = vld [vmem:[#allocation46_spill] sm:$0xff] }
 0x998   : > { %v5122_v28 = vpop.f32.mrf.mxu0  ;;  %v5323_v18 = vunpack.c.l.bf16 %v10822_v63  ;;  %v5324_v1 = vunpack.c.h.bf16 %v10822_v63 }
 0x999   : > { %v5287_v37 = vadd.f32 %v12551_v46, %v5179_v43  ;;  %v5180_v55 = vadd.f32 %v5122_v28, %v14414_v22  ;;  %5385 = vadd.xlane.f32.xlu1 %v5384_v34  ;;  %v12633_v60 = vadd.f32 %v5318_v44, %v5286_v50  ;;  %v14419_v34 = vld [vmem:[#allocation47_spill] sm:$0xff] }
 0x99b   : > { %v5288_v11 = vadd.f32 %v12555_v10, %v5180_v55  ;;  %v5387_v2 = vadd.f32 %v12633_v60, %v12631_v3  ;;  %v12638_v24 = vadd.f32 %v5319_v52, %v5287_v37 }
 0x99d   : > { %5388 = vadd.xlane.f32.xlu0 %v5387_v2  ;;  %v12640_v6 = vadd.f32 %v5320_v16, %v5288_v11  ;;  %v10823_v16 = vld [vmem:[%s11745_s3 + $0x50] sm:$0xff] }
 0x99e   : > { %v5325_v37 = vunpack.c.l.bf16 %v10823_v16  ;;  %v5326_v22 = vunpack.c.h.bf16 %v10823_v16  ;;  %v14420_v11 = vld [vmem:[#allocation48_spill] sm:$0xff] }
 0x99f   : > { %v5390_v49 = vadd.f32 %v12640_v6, %v12638_v24 }
 0x9a1   : > { %5391 = vadd.xlane.f32.xlu1 %v5390_v49 }
 0x9fb   : > { %v5126_v5 = vpop.f32.mrf.mxu0 }
 0x9fc   : > { %v5181_v58 = vadd.f32 %v5126_v5, %v14415_v9  ;;  %v5327_v5 = vunpack.c.l.bf16 %v10824_v31  ;;  %v5328_v9 = vunpack.c.h.bf16 %v10824_v31  ;;  %v10252_v31 = vld [vmem:[#allocation17 + $0xa8] ss:$16 sps:$4 sm:$0xff]  }
 0x9fd   : > { %v5128_v35 = vpop.f32.mrf.mxu0 }
 0x9fe   : > { %v5289_v17 = vadd.f32 %v12551_v46, %v5181_v58  ;;  %v5182_v57 = vadd.f32 %v5128_v35, %v14416_v20  ;;  %v14422_v35 = vld [vmem:[#allocation50_spill] sm:$0xff] }
 0x9ff   : > { %v5130_v7 = vpop.f32.mrf.mxu0 }
 0xa00   : > { %v5290_v51 = vadd.f32 %v12555_v10, %v5182_v57  ;;  %v5183_v48 = vadd.f32 %v5130_v7, %v14417_v56  ;;  %v12653_v27 = vadd.f32 %v5321_v54, %v5289_v17 }
 0xa01   : > { %v5132_v42 = vpop.f32.mrf.mxu0 }
 0xa02   : > { %v5291_v44 = vadd.f32 %v12551_v46, %v5183_v48  ;;  %v5184_v40 = vadd.f32 %v5132_v42, %v14418_v30  ;;  %v12655_v50 = vadd.f32 %v5322_v8, %v5290_v51  ;;  %v14423_v8 = vld [vmem:[#allocation51_spill] sm:$0xff]  ;;  %v10825_v48 = vld [vmem:[%s11745_s3 + $0x60] sm:$0xff] }
 0xa03   : > { %v5136_v61 = vpop.f32.mrf.mxu0  ;;  %v5329_v42 = vunpack.c.l.bf16 %v10825_v48  ;;  %v5330_v63 = vunpack.c.h.bf16 %v10825_v48 }
 0xa04   : > { %v5292_v43 = vadd.f32 %v12555_v10, %v5184_v40  ;;  %v5185_v28 = vadd.f32 %v5136_v61, %v14419_v34  ;;  %v5393_v23 = vadd.f32 %v12655_v50, %v12653_v27  ;;  %v12664_v49 = vadd.f32 %v5323_v18, %v5291_v44 }
 0xa05   : > { %v5138_v52 = vpop.f32.mrf.mxu0 }
 0xa06   : > { %v5293_v55 = vadd.f32 %v12551_v46, %v5185_v28  ;;  %v5186_v2 = vadd.f32 %v5138_v52, %v14420_v11  ;;  %5394 = vadd.xlane.f32.xlu0 %v5393_v23  ;;  %v12666_v21 = vadd.f32 %v5324_v1, %v5292_v43  ;;  %v14424_v1 = vld [vmem:[#allocation52_spill] sm:$0xff]  ;;  %v14425_v28 = vld [vmem:[#allocation53_spill] sm:$0xff] }
 0xa07   : > { %v5140_v45 = vpop.f32.mrf.mxu0 }
 0xa08   : > { %v5294_v15 = vadd.f32 %v12555_v10, %v5186_v2  ;;  %v5187_v59 = vadd.f32 %v5140_v45, %v14421_v4  ;;  %v5396_v47 = vadd.f32 %v12666_v21, %v12664_v49  ;;  %v12675_v20 = vadd.f32 %v5325_v37, %v5293_v55  ;;  %v10826_v37 = vld [vmem:[%s11745_s3 + $0x68] sm:$0xff] }
 0xa09   : > { %v5142_v62 = vpop.f32.mrf.mxu0  ;;  %v5332_v55 = vunpack.c.h.bf16 %v10826_v37  ;;  %v14426_v45 = vld [vmem:[#allocation54_spill] sm:$0xff] }
 0xa0a   : > { %v5295_v58 = vadd.f32 %v12551_v46, %v5187_v59  ;;  %v5188_v17 = vadd.f32 %v5142_v62, %v14422_v35  ;;  %5397 = vadd.xlane.f32.xlu1 %v5396_v47  ;;  %v12677_v57 = vadd.f32 %v5326_v22, %v5294_v15  ;;  %v5331_v22 = vunpack.c.l.bf16 %v10826_v37  ;;  %v10249_v47 = vld [vmem:[#allocation17 + $0xa0] ss:$16 sps:$4 sm:$0xff]   ;;  %v10251_v62 = vld [vmem:[#allocation17 + $0xa4] ss:$16 sps:$4 sm:$0xff]   ;;  %v10260_v37 = vld [vmem:[#allocation17 + $0x8c] ss:$16 sps:$4 sm:$0xff]  }
 0xa0b   : > { %v5146_v13 = vpop.f32.mrf.mxu0  ;;  %6140 = vmatprep.subr.bf16.mxu1 %v10251_v62  ;;  %v10828_v62 = vld [vmem:[%s11745_s3 + $0x78] sm:$0xff] }
 0xa0c   : > { %v5296_v54 = vadd.f32 %v12555_v10, %v5188_v17  ;;  %v5189_v7 = vadd.f32 %v5146_v13, %v14423_v8  ;;  %v5399_v51 = vadd.f32 %v12677_v57, %v12675_v20  ;;  %v12686_v30 = vadd.f32 %v5327_v5, %v5295_v58  ;;  %v10254_v58 = vld [vmem:[#allocation17 + $0xac] ss:$16 sps:$4 sm:$0xff]   ;;  %6141 = vmatpush1.bf16.msra.mxu1 %v10249_v47 }
 0xa0d   : > { %v5148_v56 = vpop.f32.mrf.mxu0  ;;  %v14427_v17 = vld [vmem:[#allocation55_spill] sm:$0xff]  ;;  %6253 = vmatprep.subr.bf16.mxu0 %v10254_v58 }
 0xa0e   : > { %v5297_v18 = vadd.f32 %v12551_v46, %v5189_v7  ;;  %v5190_v44 = vadd.f32 %v5148_v56, %v14424_v1  ;;  %5400 = vadd.xlane.f32.xlu0 %v5399_v51  ;;  %v12688_v40 = vadd.f32 %v5328_v9, %v5296_v54  ;;  %v5371_v34 = vpop.xlane.xlu0 %5370  ;;  %v10827_v56 = vld [vmem:[%s11745_s3 + $0x70] sm:$0xff]  ;;  %6254 = vmatpush1.bf16.msra.mxu0 %v10252_v31  ;;  %v5335_v31 = vunpack.c.l.bf16 %v10828_v62  ;;  %s14520_s3 = sld [smem:[#allocation91_spill]] }
 0xa0f   : > { %v5150_v61 = vpop.f32.mrf.mxu0  ;;  %v5418_v5 = vmul.f32 0.00390625, %v5371_v34  ;;  %v5333_v48 = vunpack.c.l.bf16 %v10827_v56  ;;  %v10257_v34 = vld [vmem:[#allocation17 + $0x84] ss:$16 sps:$4 sm:$0xff]   ;;  %6255 = vmatprep.subr.bf16.mxu0 %v10260_v37  ;;  %v10270_v37 = vld [vmem:[#allocation17 + $0x48] ss:$16 sps:$4 sm:$0xff]  }
 0xa10   : > { %v5298_v43 = vadd.f32 %v12555_v10, %v5190_v44  ;;  %v5191_v23 = vadd.f32 %v5150_v61, %v14425_v28  ;;  %v5402_v52 = vadd.f32 %v12688_v40, %v12686_v30  ;;  %v12697_v4 = vadd.f32 %v5329_v42, %v5297_v18  ;;  %v10258_v28 = vld [vmem:[#allocation17 + $0x88] ss:$16 sps:$4 sm:$0xff]   ;;  %6142 = vmatprep.subr.bf16.mxu1 %v10257_v34 }
 0xa11   : > { %v5152_v16 = vpop.f32.mrf.mxu0  ;;  %v5334_v61 = vunpack.c.h.bf16 %v10827_v56 }
 0xa12   : > { %v5299_v11 = vadd.f32 %v12551_v46, %v5191_v23  ;;  %v5374_v2 = vpop.xlane.xlu1 %5373  ;;  %v5192_v15 = vadd.f32 %v5152_v16, %v14426_v45  ;;  %5403 = vadd.xlane.f32.xlu1 %v5402_v52  ;;  %v12699_v59 = vadd.f32 %v5330_v63, %v5298_v43  ;;  %v14428_v63 = vld [vmem:[#allocation56_spill] sm:$0xff]  ;;  %v12713_v23 = vsub.f32 %v12565_v53, %v5418_v5 }
 0xa13   : > { %v5156_v9 = vpop.f32.mrf.mxu0  ;;  %v5419_v8 = vmul.f32 0.00390625, %v5374_v2  ;;  %v10255_v43 = vld [vmem:[#allocation17 + $0x80] ss:$16 sps:$4 sm:$0xff]   ;;  %v14429_v2 = vld [vmem:[#allocation57_spill] sm:$0xff]  ;;  %6256 = vmatpush1.bf16.msra.mxu0 %v10258_v28 }
 0xa14   : > { %v5300_v35 = vadd.f32 %v12555_v10, %v5192_v15  ;;  %v5193_v13 = vadd.f32 %v5156_v9, %v14427_v17  ;;  %v5405_v54 = vadd.f32 %v12699_v59, %v12697_v4  ;;  %v12705_v51 = vadd.f32 %v5331_v22, %v5299_v11  ;;  %6143 = vmatpush1.bf16.msra.mxu1 %v10255_v43  ;;  %v14430_v9 = vld [vmem:[#allocation58_spill] sm:$0xff] }
 0xa15   : > { %v5158_v7 = vpop.f32.mrf.mxu0  ;;  %v12716_v22 = vsub.f32 %v12567_v39, %v5418_v5  ;;  %v12723_v15 = vsub.f32 %v12576_v26, %v5419_v8  ;;  %v5336_v17 = vunpack.c.h.bf16 %v10828_v62  ;;  %v10263_v26 = vld [vmem:[#allocation17 + $0x64] ss:$16 sps:$4 sm:$0xff]  }
 0xa16   : > { %v5301_v42 = vadd.f32 %v12551_v46, %v5193_v13  ;;  %v5194_v18 = vadd.f32 %v5158_v7, %v14428_v63  ;;  %v5377_v1 = vpop.xlane.xlu0 %5376  ;;  %5406 = vadd.xlane.f32.xlu0 %v5405_v54  ;;  %v12710_v44 = vadd.f32 %v5332_v55, %v5300_v35  ;;  %v10261_v13 = vld [vmem:[#allocation17 + $0x60] ss:$16 sps:$4 sm:$0xff]   ;;  %v10264_v54 = vld [vmem:[#allocation17 + $0x68] ss:$16 sps:$4 sm:$0xff]   ;;  %v12733_v7 = vsub.f32 %v12578_v19, %v5419_v8  ;;  %v10269_v43 = vld [vmem:[#allocation17 + $0x44] ss:$16 sps:$4 sm:$0xff]  }
 0xa17   : > { %v5420_v52 = vmul.f32 0.00390625, %v5377_v1  ;;  %v5160_v16 = vpop.f32.mrf.mxu0  ;;  %v5467_v19 = vmul.f32 %v12716_v22, %v12716_v22  ;;  %6144 = vmatprep.subr.bf16.mxu1 %v10263_v26 }
 0xa18   : > { %v5302_v11 = vadd.f32 %v12555_v10, %v5194_v18  ;;  %v5195_v55 = vadd.f32 %v5160_v16, %v14429_v2  ;;  %v5408_v45 = vadd.f32 %v12710_v44, %v12705_v51  ;;  %v12725_v53 = vadd.f32 %v5333_v48, %v5301_v42  ;;  %v10266_v42 = vld [vmem:[#allocation17 + $0x6c] ss:$16 sps:$4 sm:$0xff]   ;;  %6145 = vmatpush1.bf16.msra.mxu1 %v10261_v13 }
 0xa19   : > { %v5162_v47 = vpop.f32.mrf.mxu0  ;;  %v12736_v56 = vsub.f32 %v12587_v0, %v5420_v52  ;;  %v12739_v48 = vsub.f32 %v12589_v36, %v5420_v52  ;;  %6257 = vmatprep.subr.bf16.mxu0 %v10266_v42  ;;  %v5469_v28 = vmul.f32 %v12733_v7, %v12733_v7  ;;  %6146 = vmatprep.subr.bf16.mxu1 %v10269_v43  ;;  %v10278_v13 = vld [vmem:[#allocation17 + $0x2c] ss:$16 sps:$4 sm:$0xff]  }
 0xa1a   : > { %v5303_v39 = vadd.f32 %v12551_v46, %v5195_v55  ;;  %v5380_v5 = vpop.xlane.xlu1 %5379  ;;  %v5196_v58 = vadd.f32 %v5162_v47, %v14430_v9  ;;  %5409 = vadd.xlane.f32.xlu1 %v5408_v45  ;;  %v12730_v35 = vadd.f32 %v5334_v61, %v5302_v11  ;;  %v5466_v46 = vmul.f32 %v12713_v23, %v12713_v23  ;;  %v10272_v11 = vld [vmem:[#allocation17 + $0x4c] ss:$16 sps:$4 sm:$0xff]  }
 0xa1b   : > { %v5421_v63 = vmul.f32 0.00390625, %v5380_v5  ;;  %v5468_v61 = vmul.f32 %v12723_v15, %v12723_v15  ;;  %6258 = vmatpush1.bf16.msra.mxu0 %v10264_v54  ;;  %v5470_v52 = vmul.f32 %v12736_v56, %v12736_v56  ;;  %v5471_v16 = vmul.f32 %v12739_v48, %v12739_v48  ;;  %v10275_v5 = vld [vmem:[#allocation17 + $0x24] ss:$16 sps:$4 sm:$0xff]  }
 0xa1c   : > { %v5304_v18 = vadd.f32 %v12555_v10, %v5196_v58  ;;  %v5411_v1 = vadd.f32 %v12730_v35, %v12725_v53  ;;  %v12748_v36 = vadd.f32 %v5335_v31, %v5303_v39  ;;  %v10267_v10 = vld [vmem:[#allocation17 + $0x40] ss:$16 sps:$4 sm:$0xff]   ;;  %v5498_v47 = vadd.f32 %v5467_v19, %v5466_v46  ;;  %6259 = vmatprep.subr.bf16.mxu0 %v10272_v11 }
 0xa1d   : > { %v12761_v2 = vsub.f32 %v12598_v29, %v5421_v63  ;;  %v12764_v55 = vsub.f32 %v12600_v33, %v5421_v63  ;;  %6147 = vmatpush1.bf16.msra.mxu1 %v10267_v10  ;;  %v10273_v29 = vld [vmem:[#allocation17 + $0x20] ss:$16 sps:$4 sm:$0xff]   ;;  %v5501_v9 = vadd.f32 %v5469_v28, %v5468_v61  ;;  %v5504_v58 = vadd.f32 %v5471_v16, %v5470_v52  ;;  %v10284_v61 = vld [vmem:[#allocation17 + $0xc] ss:$16 sps:$4 sm:$0xff]  }
 0xa1e   : > { %v5383_v0 = vpop.xlane.xlu0 %5382  ;;  %5412 = vadd.xlane.f32.xlu0 %v5411_v1  ;;  %v12750_v8 = vadd.f32 %v5336_v17, %v5304_v18  ;;  %v10276_v17 = vld [vmem:[#allocation17 + $0x28] ss:$16 sps:$4 sm:$0xff]   ;;  %6148 = vmatprep.subr.bf16.mxu1 %v10275_v5  ;;  %v10279_v18 = vld [vmem:[#allocation17] ss:$16 sps:$4 sm:$0xff]   ;;  %v10281_v1 = vld [vmem:[#allocation17 + $0x4] ss:$16 sps:$4 sm:$0xff]  }
 0xa1f   : > { %v5422_v34 = vmul.f32 0.00390625, %v5383_v0  ;;  %6260 = vmatpush1.bf16.msra.mxu0 %v10270_v37  ;;  %v10282_v0 = vld [vmem:[#allocation17 + $0x8] ss:$16 sps:$4 sm:$0xff]   ;;  %v10285_v16 = vld [vmem:[#allocation17 + $0x1e0] ss:$16 sps:$4 sm:$0xff]  }
 0xa20   : > { %v5414_v45 = vadd.f32 %v12750_v8, %v12748_v36  ;;  %6261 = vmatprep.subr.bf16.mxu0 %v10278_v13  ;;  %v10287_v37 = vld [vmem:[#allocation17 + $0x1e4] ss:$16 sps:$4 sm:$0xff]   ;;  %v10296_v13 = vld [vmem:[#allocation17 + $0x1cc] ss:$16 sps:$4 sm:$0xff]  }
 0xa21   : > { %v12769_v62 = vsub.f32 %v12609_v25, %v5422_v34  ;;  %v12772_v31 = vsub.f32 %v12611_v32, %v5422_v34  ;;  %v5472_v25 = vmul.f32 %v12761_v2, %v12761_v2  ;;  %v5473_v32 = vmul.f32 %v12764_v55, %v12764_v55  ;;  %6149 = vmatpush1.bf16.msra.mxu1 %v10273_v29 }
 0xa22   : > { %v5386_v39 = vpop.xlane.xlu1 %5385  ;;  %5415 = vadd.xlane.f32.xlu1 %v5414_v45  ;;  %5499 = vadd.xlane.f32.xlu0 %v5498_v47 }
 0xa23   : > { %v5423_v33 = vmul.f32 0.00390625, %v5386_v39  ;;  %v5474_v26 = vmul.f32 %v12769_v62, %v12769_v62  ;;  %v5475_v54 = vmul.f32 %v12772_v31, %v12772_v31  ;;  %6262 = vmatpush1.bf16.msra.mxu0 %v10276_v17  ;;  %v5507_v10 = vadd.f32 %v5473_v32, %v5472_v25  ;;  %6150 = vmatprep.subr.bf16.mxu1 %v10281_v1  ;;  %v10290_v39 = vld [vmem:[#allocation17 + $0x1ec] ss:$16 sps:$4 sm:$0xff]   ;;  %v10293_v17 = vld [vmem:[#allocation17 + $0x1c4] ss:$16 sps:$4 sm:$0xff]  }
 0xa24   : > { %6263 = vmatprep.subr.bf16.mxu0 %v10284_v61  ;;  %v10291_v25 = vld [vmem:[#allocation17 + $0x1c0] ss:$16 sps:$4 sm:$0xff]   ;;  %v10308_v1 = vld [vmem:[#allocation17 + $0x18c] ss:$16 sps:$4 sm:$0xff]   ;;  %v10311_v61 = vld [vmem:[#allocation17 + $0x164] ss:$16 sps:$4 sm:$0xff]  }
 0xa25   : > { %v12783_v46 = vsub.f32 %v12620_v38, %v5423_v33  ;;  %v12786_v42 = vsub.f32 %v12622_v41, %v5423_v33  ;;  %v5510_v43 = vadd.f32 %v5475_v54, %v5474_v26  ;;  %6151 = vmatpush1.bf16.msra.mxu1 %v10279_v18  ;;  %v10302_v26 = vld [vmem:[#allocation17 + $0x1ac] ss:$16 sps:$4 sm:$0xff]   ;;  %v10297_v54 = vld [vmem:[#allocation17 + $0x1a0] ss:$16 sps:$4 sm:$0xff]   ;;  %v10305_v18 = vld [vmem:[#allocation17 + $0x184] ss:$16 sps:$4 sm:$0xff]  }
 0xa26   : > { %v5389_v63 = vpop.xlane.xlu0 %5388  ;;  %5502 = vadd.xlane.f32.xlu1 %v5501_v9  ;;  %5505 = vadd.xlane.f32.xlu0 %v5504_v58 }
 0xa27   : > { %v5424_v19 = vmul.f32 0.00390625, %v5389_v63  ;;  %v5476_v38 = vmul.f32 %v12783_v46, %v12783_v46  ;;  %v5477_v41 = vmul.f32 %v12786_v42, %v12786_v42  ;;  %6264 = vmatpush1.bf16.msra.mxu0 %v10282_v0  ;;  %6152 = vmatprep.subr.bf16.mxu1 %v10287_v37  ;;  %v10300_v63 = vld [vmem:[#allocation17 + $0x1a8] ss:$16 sps:$4 sm:$0xff]  }
 0xa28   : > { %6265 = vmatprep.subr.bf16.mxu0 %v10290_v39  ;;  %v10306_v0 = vld [vmem:[#allocation17 + $0x188] ss:$16 sps:$4 sm:$0xff]   ;;  %v10329_v39 = vld [vmem:[#allocation17 + $0x104] ss:$16 sps:$4 sm:$0xff]  }
 0xa29   : > { %v12793_v34 = vsub.f32 %v12631_v3, %v5424_v19  ;;  %v12796_v28 = vsub.f32 %v12633_v60, %v5424_v19  ;;  %v10288_v3 = vld [vmem:[#allocation17 + $0x1e8] ss:$16 sps:$4 sm:$0xff]   ;;  %v5513_v29 = vadd.f32 %v5477_v41, %v5476_v38  ;;  %6153 = vmatpush2.bf16.msra.mxu1 %v10285_v16  ;;  %v10303_v19 = vld [vmem:[#allocation17 + $0x180] ss:$16 sps:$4 sm:$0xff]   ;;  %v10317_v41 = vld [vmem:[#allocation17 + $0x144] ss:$16 sps:$4 sm:$0xff]  }
 0xa2a   : > { %v5392_v52 = vpop.xlane.xlu1 %5391  ;;  %5508 = vadd.xlane.f32.xlu1 %v5507_v10  ;;  %5511 = vadd.xlane.f32.xlu0 %v5510_v43  ;;  %v10314_v10 = vld [vmem:[#allocation17 + $0x16c] ss:$16 sps:$4 sm:$0xff]   ;;  %v10309_v43 = vld [vmem:[#allocation17 + $0x160] ss:$16 sps:$4 sm:$0xff]   ;;  %v10312_v38 = vld [vmem:[#allocation17 + $0x168] ss:$16 sps:$4 sm:$0xff]  }
 0xa2b   : > { %v5425_v11 = vmul.f32 0.00390625, %v5392_v52  ;;  %v5478_v45 = vmul.f32 %v12793_v34, %v12793_v34  ;;  %v5479_v47 = vmul.f32 %v12796_v28, %v12796_v28  ;;  %6266 = vmatpush2.bf16.msra.mxu0 %v10288_v3  ;;  %6154 = vmatprep.subr.bf16.mxu1 %v10293_v17  ;;  %v10320_v52 = vld [vmem:[#allocation17 + $0x14c] ss:$16 sps:$4 sm:$0xff]   ;;  %v10315_v16 = vld [vmem:[#allocation17 + $0x140] ss:$16 sps:$4 sm:$0xff]  }
 0xa2c   : > { %6267 = vmatprep.subr.bf16.mxu0 %v10296_v13  ;;  %v10318_v37 = vld [vmem:[#allocation17 + $0x148] ss:$16 sps:$4 sm:$0xff]  }
 0xa2d   : > { %v12803_v60 = vsub.f32 %v12638_v24, %v5425_v11  ;;  %v12806_v5 = vsub.f32 %v12640_v6, %v5425_v11  ;;  %v5516_v33 = vadd.f32 %v5479_v47, %v5478_v45  ;;  %v10294_v24 = vld [vmem:[#allocation17 + $0x1c8] ss:$16 sps:$4 sm:$0xff]   ;;  %6155 = vmatpush2.bf16.msra.mxu1 %v10291_v25  ;;  %v10299_v6 = vld [vmem:[#allocation17 + $0x1a4] ss:$16 sps:$4 sm:$0xff]   ;;  %v10326_v45 = vld [vmem:[#allocation17 + $0x12c] ss:$16 sps:$4 sm:$0xff]  }
 0xa2e   : > { %5514 = vadd.xlane.f32.xlu1 %v5513_v29  ;;  %6156 = vmatprep.subr.bf16.mxu1 %v10299_v6  ;;  %v10323_v11 = vld [vmem:[#allocation17 + $0x124] ss:$16 sps:$4 sm:$0xff]   ;;  %v10321_v47 = vld [vmem:[#allocation17 + $0x120] ss:$16 sps:$4 sm:$0xff]   ;;  %v10324_v3 = vld [vmem:[#allocation17 + $0x128] ss:$16 sps:$4 sm:$0xff]  }
 0xa2f   : > { %5517 = vadd.xlane.f32.xlu0 %v5516_v33  ;;  %v5480_v9 = vmul.f32 %v12803_v60, %v12803_v60  ;;  %v5481_v58 = vmul.f32 %v12806_v5, %v12806_v5  ;;  %6268 = vmatpush2.bf16.msra.mxu0 %v10294_v24  ;;  %v10332_v29 = vld [vmem:[#allocation17 + $0x10c] ss:$16 sps:$4 sm:$0xff]   ;;  %v10327_v33 = vld [vmem:[#allocation17 + $0x100] ss:$16 sps:$4 sm:$0xff]  }
 0xa30   : > { %6269 = vmatprep.subr.bf16.mxu0 %v10302_v26 }
 0xa31   : > { %v5519_v32 = vadd.f32 %v5481_v58, %v5480_v9  ;;  %6157 = vmatpush2.bf16.msra.mxu1 %v10297_v54  ;;  %v10330_v9 = vld [vmem:[#allocation17 + $0x108] ss:$16 sps:$4 sm:$0xff]  }
 0xa32   : > { %6158 = vmatprep.subr.bf16.mxu1 %v10305_v18 }
 0xa33   : > { %5520 = vadd.xlane.f32.xlu1 %v5519_v32  ;;  %6270 = vmatpush2.bf16.msra.mxu0 %v10300_v63 }
 0xa34   : > { %6271 = vmatprep.subr.bf16.mxu0 %v10308_v1 }
 0xa35   : > { %6159 = vmatpush2.bf16.msra.mxu1 %v10303_v19 }
 0xa36   : > { %6160 = vmatprep.subr.bf16.mxu1 %v10311_v61 }
 0xa37   : > { %6272 = vmatpush2.bf16.msra.mxu0 %v10306_v0 }
 0xa38   : > { %6273 = vmatprep.subr.bf16.mxu0 %v10314_v10 }
 0xa39   : > { %6161 = vmatpush2.bf16.msra.mxu1 %v10309_v43 }
 0xa3a   : > { %6162 = vmatprep.subr.bf16.mxu1 %v10317_v41 }
 0xa3b   : > { %6274 = vmatpush2.bf16.msra.mxu0 %v10312_v38 }
 0xa3c   : > { %6275 = vmatprep.subr.bf16.mxu0 %v10320_v52 }
 0xa3d   : > { %6163 = vmatpush2.bf16.msra.mxu1 %v10315_v16 }
 0xa3e   : > { %6164 = vmatprep.subr.bf16.mxu1 %v10323_v11 }
 0xa3f   : > { %6276 = vmatpush2.bf16.msra.mxu0 %v10318_v37 }
 0xa40   : > { %6277 = vmatprep.subr.bf16.mxu0 %v10326_v45 }
 0xa41   : > { %6165 = vmatpush2.bf16.msra.mxu1 %v10321_v47 }
 0xa42   : > { %6166 = vmatprep.subr.bf16.mxu1 %v10329_v39 }
 0xa43   : > { %6278 = vmatpush2.bf16.msra.mxu0 %v10324_v3 }
 0xa44   : > { %6279 = vmatprep.subr.bf16.mxu0 %v10332_v29 }
 0xa45   : > { %6167 = vmatpush2.bf16.msra.mxu1 %v10327_v33 }
 0xa47   : > { %6280 = vmatpush2.bf16.msra.mxu0 %v10330_v9 }
 0xa8f   : > { %v5395_v58 = vpop.xlane.xlu0 %5394 }
 0xa90   : > { %v5426_v17 = vmul.f32 0.00390625, %v5395_v58 }
 0xa92   : > { %v12813_v13 = vsub.f32 %v12653_v27, %v5426_v17  ;;  %v12816_v25 = vsub.f32 %v12655_v50, %v5426_v17 }
 0xa93   : > { %v5398_v24 = vpop.xlane.xlu1 %5397 }
 0xa94   : > { %v5427_v32 = vmul.f32 0.00390625, %v5398_v24  ;;  %v5482_v6 = vmul.f32 %v12813_v13, %v12813_v13  ;;  %v5483_v26 = vmul.f32 %v12816_v25, %v12816_v25 }
 0xa96   : > { %v12823_v54 = vsub.f32 %v12664_v49, %v5427_v32  ;;  %v12826_v63 = vsub.f32 %v12666_v21, %v5427_v32  ;;  %v5522_v18 = vadd.f32 %v5483_v26, %v5482_v6 }
 0xa97   : > { %v5401_v27 = vpop.xlane.xlu0 %5400 }
 0xa98   : > { %v5428_v1 = vmul.f32 0.00390625, %v5401_v27  ;;  %5523 = vadd.xlane.f32.xlu0 %v5522_v18  ;;  %v5484_v50 = vmul.f32 %v12823_v54, %v12823_v54  ;;  %v5485_v19 = vmul.f32 %v12826_v63, %v12826_v63 }
 0xa9a   : > { %v12833_v0 = vsub.f32 %v12675_v20, %v5428_v1  ;;  %v12836_v61 = vsub.f32 %v12677_v57, %v5428_v1  ;;  %v5525_v49 = vadd.f32 %v5485_v19, %v5484_v50 }
 0xa9b   : > { %v5404_v10 = vpop.xlane.xlu1 %5403 }
 0xa9c   : > { %v5429_v21 = vmul.f32 0.00390625, %v5404_v10  ;;  %5526 = vadd.xlane.f32.xlu1 %v5525_v49  ;;  %v5486_v43 = vmul.f32 %v12833_v0, %v12833_v0  ;;  %v5487_v38 = vmul.f32 %v12836_v61, %v12836_v61 }
 0xa9e   : > { %v12843_v41 = vsub.f32 %v12686_v30, %v5429_v21  ;;  %v12846_v52 = vsub.f32 %v12688_v40, %v5429_v21  ;;  %v5528_v20 = vadd.f32 %v5487_v38, %v5486_v43 }
 0xa9f   : > { %v5407_v16 = vpop.xlane.xlu0 %5406 }
 0xaa0   : > { %v5430_v57 = vmul.f32 0.00390625, %v5407_v16  ;;  %5529 = vadd.xlane.f32.xlu0 %v5528_v20  ;;  %v5488_v37 = vmul.f32 %v12843_v41, %v12843_v41  ;;  %v5489_v11 = vmul.f32 %v12846_v52, %v12846_v52 }
 0xaa2   : > { %v12853_v45 = vsub.f32 %v12697_v4, %v5430_v57  ;;  %v12856_v47 = vsub.f32 %v12699_v59, %v5430_v57  ;;  %v5531_v30 = vadd.f32 %v5489_v11, %v5488_v37 }
 0xaa3   : > { %v5410_v3 = vpop.xlane.xlu1 %5409 }
 0xaa4   : > { %v5431_v40 = vmul.f32 0.00390625, %v5410_v3  ;;  %5532 = vadd.xlane.f32.xlu1 %v5531_v30  ;;  %v5490_v39 = vmul.f32 %v12853_v45, %v12853_v45  ;;  %v5491_v29 = vmul.f32 %v12856_v47, %v12856_v47 }
 0xaa6   : > { %v12863_v33 = vsub.f32 %v12705_v51, %v5431_v40  ;;  %v12866_v9 = vsub.f32 %v12710_v44, %v5431_v40  ;;  %v5534_v4 = vadd.f32 %v5491_v29, %v5490_v39 }
 0xaa7   : > { %v5413_v58 = vpop.xlane.xlu0 %5412 }
 0xaa8   : > { %v5432_v59 = vmul.f32 0.00390625, %v5413_v58  ;;  %5535 = vadd.xlane.f32.xlu0 %v5534_v4  ;;  %v5492_v17 = vmul.f32 %v12863_v33, %v12863_v33  ;;  %v5493_v24 = vmul.f32 %v12866_v9, %v12866_v9 }
 0xaaa   : > { %v12873_v32 = vsub.f32 %v12725_v53, %v5432_v59  ;;  %v12876_v6 = vsub.f32 %v12730_v35, %v5432_v59  ;;  %v5537_v51 = vadd.f32 %v5493_v24, %v5492_v17  ;;  %v5626_v17 = vld [vmem:[%s14431_s25] sm:$0x3] }
 0xaab   : > { %v5416_v26 = vpop.xlane.xlu1 %5415  ;;  %v5500_v44 = vpop.xlane.xlu0 %5499 }
 0xaac   : > { %v5433_v18 = vmul.f32 0.00390625, %v5416_v26  ;;  %v5546_v27 = vmul.f32 0.00390625, %v5500_v44  ;;  %5538 = vadd.xlane.f32.xlu1 %v5537_v51  ;;  %v5494_v1 = vmul.f32 %v12873_v32, %v12873_v32  ;;  %v5495_v50 = vmul.f32 %v12876_v6, %v12876_v6 }
 0xaae   : > { %v12883_v19 = vsub.f32 %v12748_v36, %v5433_v18  ;;  %v12886_v53 = vsub.f32 %v12750_v8, %v5433_v18  ;;  %v5562_v35 = vadd.f32 1e-12, %v5546_v27  ;;  %v5540_v49 = vadd.f32 %v5495_v50, %v5494_v1  ;;  %v5670_v50 = vld [vmem:[%s14432_s29] sm:$0x3]  ;;  %s14197_s29 = scalar_lea.hbm %s14523_s27, %s8861_s19 }
 0xaaf   : > { %v5503_v10 = vpop.xlane.xlu1 %5502  ;;  %v5506_v21 = vpop.xlane.xlu0 %5505  ;;  %v12896_v18 = vrot.slane %v5626_v17, %v11774_v12  ;;  %v12899_v1 = vrot.slane %v5626_v17, %v11780_v14 }
 0xab0   : > { %10621 = vrsqrt.f32 %v5562_v35  ;;  %v5547_v43 = vmul.f32 0.00390625, %v5503_v10  ;;  %v5548_v38 = vmul.f32 0.00390625, %v5506_v21  ;;  %5541 = vadd.xlane.f32.xlu0 %v5540_v49  ;;  %v5496_v20 = vmul.f32 %v12883_v19, %v12883_v19 }
 0xab1   : > { %v5497_v16 = vmul.f32 %v12886_v53, %v12886_v53  ;;  %v12907_v21 = vrot.slane %v5670_v50, %v11774_v12 }
 0xab2   : > { %v5563_v57 = vadd.f32 1e-12, %v5547_v43  ;;  %v5564_v36 = vadd.f32 1e-12, %v5548_v38 }
 0xab3   : > { %v5509_v37 = vpop.xlane.xlu1 %5508  ;;  %v5512_v11 = vpop.xlane.xlu0 %5511  ;;  %v5543_v8 = vadd.f32 %v5497_v16, %v5496_v20  ;;  %v12912_v16 = vrot.slane %v5670_v50, %v11780_v14 }
 0xab4   : > { %10623 = vrsqrt.f32 %v5563_v57  ;;  %v5549_v30 = vmul.f32 0.00390625, %v5509_v37  ;;  %v5550_v3 = vmul.f32 0.00390625, %v5512_v11 }
 0xab5   : > { %10625 = vrsqrt.f32 %v5564_v36  ;;  %5544 = vadd.xlane.f32.xlu1 %v5543_v8 }
 0xab6   : > { %v5565_v40 = vadd.f32 1e-12, %v5549_v30  ;;  %v5566_v39 = vadd.f32 1e-12, %v5550_v3 }
 0xab7   : > { %v5515_v29 = vpop.xlane.xlu1 %5514 }
 0xab8   : > { %10627 = vrsqrt.f32 %v5565_v40  ;;  %v5551_v4 = vmul.f32 0.00390625, %v5515_v29  ;;  %v5518_v58 = vpop.xlane.xlu0 %5517 }
 0xab9   : > { %10629 = vrsqrt.f32 %v5566_v39  ;;  %v5552_v59 = vmul.f32 0.00390625, %v5518_v58 }
 0xaba   : > { %v5567_v24 = vadd.f32 1e-12, %v5551_v4 }
 0xabb   : > { %v5568_v51 = vadd.f32 1e-12, %v5552_v59 }
 0xabc   : > { %10631 = vrsqrt.f32 %v5567_v24  ;;  %v5521_v26 = vpop.xlane.xlu1 %5520 }
 0xabd   : > { %v10622_v44 = vpop.eup %10621  ;;  %v5553_v27 = vmul.f32 0.00390625, %v5521_v26  ;;  %10633 = vrsqrt.f32 %v5568_v51 }
 0xabe   : > { %v5594_v35 = vmul.f32 %v10622_v44, %v12713_v23  ;;  %v5595_v49 = vmul.f32 %v10622_v44, %v12716_v22 }
 0xabf   : > { %v5569_v10 = vadd.f32 1e-12, %v5553_v27 }
 0xac0   : > { %v5638_v38 = vmul.f32 %v12896_v18, %v5594_v35  ;;  %v5639_v20 = vmul.f32 %v12899_v1, %v5595_v49 }
 0xac1   : > { %v10624_v43 = vpop.eup %10623  ;;  %10635 = vrsqrt.f32 %v5569_v10 }
 0xac2   : > { %v10626_v57 = vpop.eup %10625  ;;  %v5596_v36 = vmul.f32 %v10624_v43, %v12723_v15  ;;  %v5597_v23 = vmul.f32 %v10624_v43, %v12733_v7  ;;  %v12920_v30 = vadd.f32 %v12912_v16, %v5639_v20  ;;  %v12923_v3 = vadd.f32 %v12907_v21, %v5638_v38 }
 0xac3   : > { %v5599_v22 = vmul.f32 %v10626_v57, %v12739_v48  ;;  %v5598_v4 = vmul.f32 %v10626_v57, %v12736_v56 }
 0xac4   : > { %v5640_v37 = vmul.f32 %v12896_v18, %v5596_v36  ;;  %v5641_v11 = vmul.f32 %v12899_v1, %v5597_v23  ;;  %14433 = vst [vmem:[#allocation41_spill] sm:$0xff] %v12920_v30  ;;  %14434 = vst [vmem:[#allocation42_spill] sm:$0xff] %v12923_v3 }
 0xac5   : > { %v10628_v8 = vpop.eup %10627  ;;  %v5643_v40 = vmul.f32 %v12899_v1, %v5599_v22  ;;  %v5642_v44 = vmul.f32 %v12896_v18, %v5598_v4 }
 0xac6   : > { %v10630_v39 = vpop.eup %10629  ;;  %v12927_v15 = vadd.f32 %v12912_v16, %v5641_v11  ;;  %v12930_v7 = vadd.f32 %v12907_v21, %v5640_v37  ;;  %v5601_v48 = vmul.f32 %v10628_v8, %v12764_v55  ;;  %v5600_v29 = vmul.f32 %v10628_v8, %v12761_v2 }
 0xac7   : > { %v5603_v24 = vmul.f32 %v10630_v39, %v12772_v31  ;;  %v12943_v55 = vadd.f32 %v12912_v16, %v5643_v40  ;;  %v12962_v38 = vadd.f32 %v12907_v21, %v5642_v44  ;;  %v5602_v20 = vmul.f32 %v10630_v39, %v12769_v62 }
 0xac8   : > { %14435 = vst [vmem:[#allocation43_spill] sm:$0xff] %v12927_v15  ;;  %14436 = vst [vmem:[#allocation44_spill] sm:$0xff] %v12930_v7  ;;  %v5715_v58 = vpack.c.bf16 %v12927_v15, %v12920_v30  ;;  %v5714_v59 = vpack.c.bf16 %v12930_v7, %v12923_v3  ;;  %v5645_v17 = vmul.f32 %v12899_v1, %v5601_v48 }
 0xac9   : > { %v10632_v51 = vpop.eup %10631  ;;  %v5644_v26 = vmul.f32 %v12896_v18, %v5600_v29  ;;  %14437 = vst [vmem:[#allocation45_spill] sm:$0xff] %v12943_v55  ;;  %v5647_v27 = vmul.f32 %v12899_v1, %v5603_v24  ;;  %14441 = vst [vmem:[#allocation49_spill] sm:$0xff] %v12962_v38  ;;  %v5646_v62 = vmul.f32 %v12896_v18, %v5602_v20  ;;  %v10336_v24 = vld [vmem:[#allocation18 + $0x170] ss:$8 sps:$4 sm:$0xff]  }
 0xaca   : > { %6168 = vmatprep.mubr.bf16.mxu1 %v5715_v58  ;;  %6281 = vmatprep.mubr.bf16.mxu0 %v5715_v58  ;;  %v12946_v56 = vadd.f32 %v12912_v16, %v5645_v17  ;;  %v5605_v2 = vmul.f32 %v10632_v51, %v12786_v42  ;;  %v10634_v35 = vpop.eup %10633  ;;  %v5604_v10 = vmul.f32 %v10632_v51, %v12783_v46  ;;  %v10335_v17 = vld [vmem:[#allocation18 + $0x74] ss:$8 sps:$4 sm:$0xff]   ;;  %v10345_v20 = vld [vmem:[#allocation18 + $0x50] ss:$8 sps:$4 sm:$0xff]  }
 0xacb   : > { %6169 = vmatmul.mubr.bf16.vlgmr.msra.gmra.mxu1 %v5714_v59  ;;  %6282 = vmatmul.mubr.bf16.vlgmr.msra.gmra.mxu0 %v5714_v59  ;;  %v12955_v49 = vadd.f32 %v12907_v21, %v5644_v26  ;;  %v12967_v36 = vadd.f32 %v12912_v16, %v5647_v27  ;;  %v5607_v23 = vmul.f32 %v10634_v35, %v12796_v28  ;;  %v10338_v26 = vld [vmem:[#allocation18 + $0x174] ss:$8 sps:$4 sm:$0xff]   ;;  %v10342_v27 = vld [vmem:[#allocation18 + $0x160] ss:$8 sps:$4 sm:$0xff]  }
 0xacc   : > { %14438 = vst [vmem:[#allocation46_spill] sm:$0xff] %v12946_v56  ;;  %v5717_v31 = vpack.c.bf16 %v12946_v56, %v12943_v55  ;;  %v5649_v50 = vmul.f32 %v12899_v1, %v5605_v2  ;;  %v5648_v22 = vmul.f32 %v12896_v18, %v5604_v10  ;;  %v12986_v39 = vadd.f32 %v12907_v21, %v5646_v62  ;;  %v10344_v2 = vld [vmem:[#allocation18 + $0x164] ss:$8 sps:$4 sm:$0xff]   ;;  %v10350_v10 = vld [vmem:[#allocation18 + $0x154] ss:$8 sps:$4 sm:$0xff]  }
 0xacd   : > { %14439 = vst [vmem:[#allocation47_spill] sm:$0xff] %v12955_v49  ;;  %14442 = vst [vmem:[#allocation50_spill] sm:$0xff] %v12967_v36  ;;  %v5716_v46 = vpack.c.bf16 %v12955_v49, %v12962_v38  ;;  %v5606_v48 = vmul.f32 %v10634_v35, %v12793_v34  ;;  %v10341_v34 = vld [vmem:[#allocation18 + $0x64] ss:$8 sps:$4 sm:$0xff]   ;;  %7366 = vmatprep.subr.bf16.mxu1 %v10335_v17  ;;  %7479 = vmatprep.subr.bf16.mxu0 %v10338_v26  ;;  %v10347_v35 = vld [vmem:[#allocation18 + $0x54] ss:$8 sps:$4 sm:$0xff]  }
 0xace   : > { %v10636_v43 = vpop.eup %10635  ;;  %6178 = vmatprep.mubr.bf16.mxu1 %v5717_v31  ;;  %6291 = vmatprep.mubr.bf16.mxu0 %v5717_v31  ;;  %v12959_v42 = vadd.f32 %v12912_v16, %v5649_v50  ;;  %v12979_v28 = vadd.f32 %v12907_v21, %v5648_v22  ;;  %14445 = vst [vmem:[#allocation53_spill] sm:$0xff] %v12986_v39  ;;  %v10339_v31 = vld [vmem:[#allocation18 + $0x60] ss:$8 sps:$4 sm:$0xff]   ;;  %v10362_v62 = vld [vmem:[#allocation18 + $0x134] ss:$8 sps:$4 sm:$0xff]  }
 0xacf   : > { %v5609_v57 = vmul.f32 %v10636_v43, %v12806_v5  ;;  %v5651_v5 = vmul.f32 %v12899_v1, %v5607_v23  ;;  %v5608_v8 = vmul.f32 %v10636_v43, %v12803_v60  ;;  %v10333_v60 = vld [vmem:[#allocation18 + $0x70] ss:$8 sps:$4 sm:$0xff]   ;;  %v5650_v51 = vmul.f32 %v12896_v18, %v5606_v48  ;;  %7480 = vmatpush1.bf16.msra.mxu0 %v10336_v24  ;;  %v10353_v23 = vld [vmem:[#allocation18 + $0x44] ss:$8 sps:$4 sm:$0xff]   ;;  %v10351_v22 = vld [vmem:[#allocation18 + $0x40] ss:$8 sps:$4 sm:$0xff]  }
 0xad0   : > { %14440 = vst [vmem:[#allocation48_spill] sm:$0xff] %v12959_v42  ;;  %v5719_v37 = vpack.c.bf16 %v12959_v42, %v12967_v36  ;;  %14443 = vst [vmem:[#allocation51_spill] sm:$0xff] %v12979_v28  ;;  %v5718_v4 = vpack.c.bf16 %v12979_v28, %v12986_v39  ;;  %7367 = vmatpush1.bf16.msra.mxu1 %v10333_v60  ;;  %7481 = vmatprep.subr.bf16.mxu0 %v10344_v2  ;;  %v10365_v48 = vld [vmem:[#allocation18 + $0x24] ss:$8 sps:$4 sm:$0xff]   ;;  %v10371_v60 = vld [vmem:[#allocation18 + $0x14] ss:$8 sps:$4 sm:$0xff]  }
 0xad1   : > { %v5653_v11 = vmul.f32 %v12899_v1, %v5609_v57  ;;  %v12990_v29 = vadd.f32 %v12912_v16, %v5651_v5  ;;  %v5652_v58 = vmul.f32 %v12896_v18, %v5608_v8  ;;  %v13002_v50 = vadd.f32 %v12907_v21, %v5650_v51  ;;  %7368 = vmatprep.subr.bf16.mxu1 %v10341_v34  ;;  %v10348_v57 = vld [vmem:[#allocation18 + $0x150] ss:$8 sps:$4 sm:$0xff]   ;;  %v10374_v17 = vld [vmem:[#allocation18 + $0x114] ss:$8 sps:$4 sm:$0xff]   ;;  %v10377_v26 = vld [vmem:[#allocation18 + $0x4] ss:$8 sps:$4 sm:$0xff]  }
 0xad2   : > { %v10357_v5 = vld [vmem:[#allocation18 + $0x30] ss:$8 sps:$4 sm:$0xff]   ;;  %v10380_v34 = vld [vmem:[#allocation18 + $0x104] ss:$8 sps:$4 sm:$0xff]   ;;  %v10375_v2 = vld [vmem:[#allocation18] ss:$8 sps:$4 sm:$0xff]  }
 0xad3   : > { %6179 = vmatmul.mubr.bf16.gmra.mxu1 %v5716_v46  ;;  %6292 = vmatmul.mubr.bf16.gmra.mxu0 %v5716_v46  ;;  %v12983_v40 = vadd.f32 %v12912_v16, %v5653_v11  ;;  %14446 = vst [vmem:[#allocation54_spill] sm:$0xff] %v12990_v29  ;;  %v12999_v44 = vadd.f32 %v12907_v21, %v5652_v58  ;;  %14448 = vst [vmem:[#allocation56_spill] sm:$0xff] %v13002_v50  ;;  %v10356_v46 = vld [vmem:[#allocation18 + $0x144] ss:$8 sps:$4 sm:$0xff]   ;;  %v10359_v11 = vld [vmem:[#allocation18 + $0x34] ss:$8 sps:$4 sm:$0xff]  }
 0xad4   : > { %6188 = vmatprep.mubr.bf16.mxu1 %v5719_v37  ;;  %6301 = vmatprep.mubr.bf16.mxu0 %v5719_v37  ;;  %v10354_v37 = vld [vmem:[#allocation18 + $0x140] ss:$8 sps:$4 sm:$0xff]   ;;  %v10360_v8 = vld [vmem:[#allocation18 + $0x130] ss:$8 sps:$4 sm:$0xff]  }
 0xad5   : > { %14444 = vst [vmem:[#allocation52_spill] sm:$0xff] %v12983_v40  ;;  %v5721_v59 = vpack.c.bf16 %v12983_v40, %v12990_v29  ;;  %14447 = vst [vmem:[#allocation55_spill] sm:$0xff] %v12999_v44  ;;  %v5720_v43 = vpack.c.bf16 %v12999_v44, %v13002_v50  ;;  %7369 = vmatpush1.bf16.msra.mxu1 %v10339_v31  ;;  %7482 = vmatpush1.bf16.msra.mxu0 %v10342_v27  ;;  %v10363_v58 = vld [vmem:[#allocation18 + $0x20] ss:$8 sps:$4 sm:$0xff]   ;;  %v10369_v24 = vld [vmem:[#allocation18 + $0x10] ss:$8 sps:$4 sm:$0xff]  }
 0xad6   : > { %7370 = vmatprep.subr.bf16.mxu1 %v10347_v35  ;;  %7483 = vmatprep.subr.bf16.mxu0 %v10350_v10  ;;  %v10372_v51 = vld [vmem:[#allocation18 + $0x110] ss:$8 sps:$4 sm:$0xff]   ;;  %v10378_v31 = vld [vmem:[#allocation18 + $0x100] ss:$8 sps:$4 sm:$0xff]   ;;  %v10383_v27 = vld [vmem:[#allocation18 + $0xf4] ss:$8 sps:$4 sm:$0xff]  }
 0xad7   : > { %v10386_v35 = vld [vmem:[#allocation18 + $0x1f4] ss:$8 sps:$4 sm:$0xff]   ;;  %v10381_v10 = vld [vmem:[#allocation18 + $0xf0] ss:$8 sps:$4 sm:$0xff]  }
 0xad9   : > { %7371 = vmatpush1.bf16.msra.mxu1 %v10345_v20  ;;  %7484 = vmatpush1.bf16.msra.mxu0 %v10348_v57  ;;  %v10389_v20 = vld [vmem:[#allocation18 + $0xe4] ss:$8 sps:$4 sm:$0xff]  }
 0xada   : > { %7372 = vmatprep.subr.bf16.mxu1 %v10353_v23  ;;  %7485 = vmatprep.subr.bf16.mxu0 %v10356_v46  ;;  %v10392_v57 = vld [vmem:[#allocation18 + $0x1e4] ss:$8 sps:$4 sm:$0xff]   ;;  %v10387_v46 = vld [vmem:[#allocation18 + $0xe0] ss:$8 sps:$4 sm:$0xff]  }
 0xadb   : > { %6189 = vmatmul.mubr.bf16.gmra.mxu1 %v5718_v4  ;;  %6302 = vmatmul.mubr.bf16.gmra.mxu0 %v5718_v4  ;;  %v10368_v4 = vld [vmem:[#allocation18 + $0x124] ss:$8 sps:$4 sm:$0xff]  }
 0xadc   : > { %6198 = vmatprep.mubr.bf16.mxu1 %v5721_v59  ;;  %6311 = vmatprep.mubr.bf16.mxu0 %v5721_v59  ;;  %v10366_v59 = vld [vmem:[#allocation18 + $0x120] ss:$8 sps:$4 sm:$0xff]  }
 0xadd   : > { %7373 = vmatpush1.bf16.msra.mxu1 %v10351_v22  ;;  %7486 = vmatpush1.bf16.msra.mxu0 %v10354_v37  ;;  %v10390_v22 = vld [vmem:[#allocation18 + $0x1e0] ss:$8 sps:$4 sm:$0xff]  }
 0xade   : > { %7374 = vmatprep.subr.bf16.mxu1 %v10359_v11  ;;  %7487 = vmatprep.subr.bf16.mxu0 %v10362_v62 }
 0xae1   : > { %7375 = vmatpush1.bf16.msra.mxu1 %v10357_v5  ;;  %7488 = vmatpush1.bf16.msra.mxu0 %v10360_v8 }
 0xae2   : > { %7376 = vmatprep.subr.bf16.mxu1 %v10365_v48  ;;  %7489 = vmatprep.subr.bf16.mxu0 %v10368_v4 }
 0xae3   : > { %6199 = vmatmul.mubr.bf16.gmra.mxu1 %v5720_v43  ;;  %6312 = vmatmul.mubr.bf16.gmra.mxu0 %v5720_v43  ;;  %v10384_v43 = vld [vmem:[#allocation18 + $0x1f0] ss:$8 sps:$4 sm:$0xff]  }
 0xae5   : > { %7377 = vmatpush1.bf16.msra.mxu1 %v10363_v58  ;;  %7490 = vmatpush1.bf16.msra.mxu0 %v10366_v59  ;;  %v10395_v59 = vld [vmem:[#allocation18 + $0xd4] ss:$8 sps:$4 sm:$0xff]  }
 0xae6   : > { %7378 = vmatprep.subr.bf16.mxu1 %v10371_v60  ;;  %7491 = vmatprep.subr.bf16.mxu0 %v10374_v17  ;;  %v10398_v60 = vld [vmem:[#allocation18 + $0x1d4] ss:$8 sps:$4 sm:$0xff]  }
 0xae9   : > { %7379 = vmatpush1.bf16.msra.mxu1 %v10369_v24  ;;  %7492 = vmatpush1.bf16.msra.mxu0 %v10372_v51  ;;  %v10393_v24 = vld [vmem:[#allocation18 + $0xd0] ss:$8 sps:$4 sm:$0xff]  }
 0xaea   : > { %7380 = vmatprep.subr.bf16.mxu1 %v10377_v26  ;;  %7493 = vmatprep.subr.bf16.mxu0 %v10380_v34  ;;  %v10396_v51 = vld [vmem:[#allocation18 + $0x1d0] ss:$8 sps:$4 sm:$0xff]  }
 0xaed   : > { %7381 = vmatpush1.bf16.msra.mxu1 %v10375_v2  ;;  %7494 = vmatpush1.bf16.msra.mxu0 %v10378_v31 }
 0xaee   : > { %7382 = vmatprep.subr.bf16.mxu1 %v10383_v27  ;;  %7495 = vmatprep.subr.bf16.mxu0 %v10386_v35 }
 0xaf1   : > { %7383 = vmatpush2.bf16.msra.mxu1 %v10381_v10  ;;  %7496 = vmatpush2.bf16.msra.mxu0 %v10384_v43 }
 0xaf2   : > { %7384 = vmatprep.subr.bf16.mxu1 %v10389_v20  ;;  %7497 = vmatprep.subr.bf16.mxu0 %v10392_v57  ;;  %v10401_v20 = vld [vmem:[#allocation18 + $0xc4] ss:$8 sps:$4 sm:$0xff]  }
 0xaf3   : > { %v10404_v57 = vld [vmem:[#allocation18 + $0x1c4] ss:$8 sps:$4 sm:$0xff]  }
 0xaf5   : > { %7385 = vmatpush2.bf16.msra.mxu1 %v10387_v46  ;;  %7498 = vmatpush2.bf16.msra.mxu0 %v10390_v22  ;;  %v10399_v46 = vld [vmem:[#allocation18 + $0xc0] ss:$8 sps:$4 sm:$0xff]  }
 0xaf6   : > { %7386 = vmatprep.subr.bf16.mxu1 %v10395_v59  ;;  %7499 = vmatprep.subr.bf16.mxu0 %v10398_v60  ;;  %v10402_v22 = vld [vmem:[#allocation18 + $0x1c0] ss:$8 sps:$4 sm:$0xff]  }
 0xaf9   : > { %7387 = vmatpush2.bf16.msra.mxu1 %v10393_v24  ;;  %7500 = vmatpush2.bf16.msra.mxu0 %v10396_v51 }
 0xafa   : > { %7388 = vmatprep.subr.bf16.mxu1 %v10401_v20  ;;  %7501 = vmatprep.subr.bf16.mxu0 %v10404_v57  ;;  %v10408_v20 = vld [vmem:[#allocation18 + $0x1b0] ss:$8 sps:$4 sm:$0xff]  }
 0xafd   : > { %7389 = vmatpush2.bf16.msra.mxu1 %v10399_v46  ;;  %7502 = vmatpush2.bf16.msra.mxu0 %v10402_v22 }
 0xb21   : > { %v5524_v23 = vpop.xlane.xlu0 %5523 }
 0xb22   : > { %v5554_v37 = vmul.f32 0.00390625, %v5524_v23 }
 0xb24   : > { %v5570_v11 = vadd.f32 1e-12, %v5554_v37 }
 0xb25   : > { %v5527_v62 = vpop.xlane.xlu1 %5526 }
 0xb26   : > { %10637 = vrsqrt.f32 %v5570_v11  ;;  %v5555_v5 = vmul.f32 0.00390625, %v5527_v62 }
 0xb28   : > { %v5571_v8 = vadd.f32 1e-12, %v5555_v5 }
 0xb29   : > { %v5530_v48 = vpop.xlane.xlu0 %5529 }
 0xb2a   : > { %10639 = vrsqrt.f32 %v5571_v8  ;;  %v5556_v4 = vmul.f32 0.00390625, %v5530_v48 }
 0xb2c   : > { %v5572_v58 = vadd.f32 1e-12, %v5556_v4 }
 0xb2d   : > { %v5533_v17 = vpop.xlane.xlu1 %5532 }
 0xb2e   : > { %10641 = vrsqrt.f32 %v5572_v58  ;;  %v5557_v26 = vmul.f32 0.00390625, %v5533_v17 }
 0xb30   : > { %v5573_v34 = vadd.f32 1e-12, %v5557_v26 }
 0xb31   : > { %v5536_v2 = vpop.xlane.xlu0 %5535 }
 0xb32   : > { %10643 = vrsqrt.f32 %v5573_v34  ;;  %v5558_v31 = vmul.f32 0.00390625, %v5536_v2  ;;  %v10407_v2 = vld [vmem:[#allocation18 + $0xb4] ss:$8 sps:$4 sm:$0xff]  }
 0xb33   : > { %v10638_v27 = vpop.eup %10637  ;;  %7390 = vmatprep.subr.bf16.mxu1 %v10407_v2  ;;  %v10416_v2 = vld [vmem:[#allocation18 + $0x1a4] ss:$8 sps:$4 sm:$0xff]  }
 0xb34   : > { %v5574_v35 = vadd.f32 1e-12, %v5558_v31  ;;  %v5611_v10 = vmul.f32 %v10638_v27, %v12816_v25  ;;  %v5610_v43 = vmul.f32 %v10638_v27, %v12813_v13  ;;  %v10410_v31 = vld [vmem:[#allocation18 + $0x1b4] ss:$8 sps:$4 sm:$0xff]  }
 0xb35   : > { %v5539_v23 = vpop.xlane.xlu1 %5538  ;;  %7503 = vmatprep.subr.bf16.mxu0 %v10410_v31  ;;  %v10414_v31 = vld [vmem:[#allocation18 + $0x1a0] ss:$8 sps:$4 sm:$0xff]  }
 0xb36   : > { %10645 = vrsqrt.f32 %v5574_v35  ;;  %v5559_v37 = vmul.f32 0.00390625, %v5539_v23  ;;  %v5655_v62 = vmul.f32 %v12899_v1, %v5611_v10  ;;  %v5654_v5 = vmul.f32 %v12896_v18, %v5610_v43  ;;  %v10405_v43 = vld [vmem:[#allocation18 + $0xb0] ss:$8 sps:$4 sm:$0xff]   ;;  %7504 = vmatpush2.bf16.msra.mxu0 %v10408_v20 }
 0xb37   : > { %v10640_v11 = vpop.eup %10639  ;;  %7391 = vmatpush2.bf16.msra.mxu1 %v10405_v43  ;;  %7505 = vmatprep.subr.bf16.mxu0 %v10416_v2  ;;  %v5794_v2 = vld [vmem:[%s14466_s26] sm:$0xf]  ;;  %s11041_s26 = scalar_lea.vmem %s14192_s6, 2048 }
 0xb38   : > { %v5575_v8 = vadd.f32 1e-12, %v5559_v37  ;;  %v5613_v25 = vmul.f32 %v10640_v11, %v12826_v63  ;;  %v5612_v13 = vmul.f32 %v10640_v11, %v12823_v54  ;;  %v13015_v17 = vadd.f32 %v12912_v16, %v5655_v62  ;;  %p11042_p1 = scmp.ne.s32.totalorder %s14192_s6, %s11041_s26 }
 0xb39   : > { %v5542_v48 = vpop.xlane.xlu0 %5541  ;;  %v13018_v24 = vadd.f32 %v12907_v21, %v5654_v5 }
 0xb3a   : > { %10647 = vrsqrt.f32 %v5575_v8  ;;  %v5560_v4 = vmul.f32 0.00390625, %v5542_v48  ;;  %v5657_v58 = vmul.f32 %v12899_v1, %v5613_v25  ;;  %v5656_v59 = vmul.f32 %v12896_v18, %v5612_v13  ;;  %14449 = vst [vmem:[#allocation57_spill] sm:$0xff] %v13015_v17  ;;  %7506 = vmatpush2.bf16.msra.mxu0 %v10414_v31  ;;  %p11043_p5 = pnand %p11042_p1, %p11480_p12 }
 0xb3b   : > { %v10642_v60 = vpop.eup %10641  ;;  %14450 = vst [vmem:[#allocation58_spill] sm:$0xff] %v13018_v24 }
 0xb3c   : > { %v5576_v51 = vadd.f32 1e-12, %v5560_v4  ;;  %v13021_v26 = vadd.f32 %v12912_v16, %v5657_v58  ;;  %v13024_v54 = vadd.f32 %v12907_v21, %v5656_v59  ;;  %v5615_v63 = vmul.f32 %v10642_v60, %v12836_v61  ;;  %p11044_p3 = pneg %p11043_p5 }
 0xb3d   : > { %v5614_v34 = vmul.f32 %v10642_v60, %v12833_v0 }
 0xb3e   : > { %14451 = vst [vmem:[#allocation59_spill] sm:$0xff] %v13021_v26  ;;  %14452 = vst [vmem:[#allocation60_spill] sm:$0xff] %v13024_v54  ;;  %10649 = vrsqrt.f32 %v5576_v51  ;;  %v5545_v27 = vpop.xlane.xlu1 %5544  ;;  %v5723_v35 = vpack.c.bf16 %v13021_v26, %v13015_v17  ;;  %v5722_v10 = vpack.c.bf16 %v13024_v54, %v13018_v24  ;;  %v5659_v46 = vmul.f32 %v12899_v1, %v5615_v63 }
 0xb3f   : > { %v10644_v57 = vpop.eup %10643  ;;  %v5561_v23 = vmul.f32 0.00390625, %v5545_v27  ;;  %v5658_v61 = vmul.f32 %v12896_v18, %v5614_v34 }
 0xb40   : > { %6208 = vmatprep.mubr.bf16.mxu1 %v5723_v35  ;;  %6321 = vmatprep.mubr.bf16.mxu0 %v5723_v35  ;;  %v5617_v0 = vmul.f32 %v10644_v57, %v12846_v52  ;;  %v5616_v22 = vmul.f32 %v10644_v57, %v12843_v41  ;;  %v13039_v8 = vadd.f32 %v12912_v16, %v5659_v46  ;;  %v10422_v46 = vld [vmem:[#allocation18 + $0x194] ss:$8 sps:$4 sm:$0xff]  }
 0xb41   : > { %v5577_v37 = vadd.f32 1e-12, %v5561_v23  ;;  %6209 = vmatmul.mubr.bf16.gmra.mxu1 %v5722_v10  ;;  %6322 = vmatmul.mubr.bf16.gmra.mxu0 %v5722_v10  ;;  %v13042_v25 = vadd.f32 %v12907_v21, %v5658_v61  ;;  %v10419_v23 = vld [vmem:[#allocation18 + $0x94] ss:$8 sps:$4 sm:$0xff]  }
 0xb42   : > { %v5661_v11 = vmul.f32 %v12899_v1, %v5617_v0  ;;  %v5660_v62 = vmul.f32 %v12896_v18, %v5616_v22  ;;  %14453 = vst [vmem:[#allocation61_spill] sm:$0xff] %v13039_v8  ;;  %v10417_v0 = vld [vmem:[#allocation18 + $0x90] ss:$8 sps:$4 sm:$0xff]   ;;  %7507 = vmatprep.subr.bf16.mxu0 %v10422_v46 }
 0xb43   : > { %v10646_v5 = vpop.eup %10645  ;;  %10651 = vrsqrt.f32 %v5577_v37  ;;  %14454 = vst [vmem:[#allocation62_spill] sm:$0xff] %v13042_v25 }
 0xb44   : > { %v13045_v52 = vadd.f32 %v12912_v16, %v5661_v11  ;;  %v13048_v41 = vadd.f32 %v12907_v21, %v5660_v62  ;;  %v5619_v13 = vmul.f32 %v10646_v5, %v12856_v47  ;;  %v5618_v48 = vmul.f32 %v10646_v5, %v12853_v45  ;;  %v10413_v47 = vld [vmem:[#allocation18 + $0xa4] ss:$8 sps:$4 sm:$0xff]   ;;  %v10411_v45 = vld [vmem:[#allocation18 + $0xa0] ss:$8 sps:$4 sm:$0xff]   ;;  %v10420_v11 = vld [vmem:[#allocation18 + $0x190] ss:$8 sps:$4 sm:$0xff]  }
 0xb45   : > { %7392 = vmatprep.subr.bf16.mxu1 %v10413_v47  ;;  %v10425_v5 = vld [vmem:[#allocation18 + $0x84] ss:$8 sps:$4 sm:$0xff]   ;;  %7508 = vmatpush2.bf16.msra.mxu0 %v10420_v11 }
 0xb46   : > { %14455 = vst [vmem:[#allocation63_spill] sm:$0xff] %v13045_v52  ;;  %14456 = vst [vmem:[#allocation64_spill] sm:$0xff] %v13048_v41  ;;  %v5725_v4 = vpack.c.bf16 %v13045_v52, %v13039_v8  ;;  %v5724_v58 = vpack.c.bf16 %v13048_v41, %v13042_v25  ;;  %v5663_v60 = vmul.f32 %v12899_v1, %v5619_v13  ;;  %7393 = vmatpush2.bf16.msra.mxu1 %v10411_v45  ;;  %v10428_v13 = vld [vmem:[#allocation18 + $0x184] ss:$8 sps:$4 sm:$0xff]  }
 0xb47   : > { %v10648_v59 = vpop.eup %10647  ;;  %v5662_v34 = vmul.f32 %v12896_v18, %v5618_v48  ;;  %7394 = vmatprep.subr.bf16.mxu1 %v10419_v23  ;;  %7509 = vmatprep.subr.bf16.mxu0 %v10428_v13  ;;  %v14465_v47 = vld [vmem:[#allocation38_spill] sm:$0xff]  ;;  %v13108_v45 = vrot.slane %v5794_v2, %v11774_v12 }
 0xb48   : > { %6218 = vmatprep.mubr.bf16.mxu1 %v5725_v4  ;;  %6331 = vmatprep.mubr.bf16.mxu0 %v5725_v4  ;;  %v5621_v51 = vmul.f32 %v10648_v59, %v12866_v9  ;;  %v5620_v63 = vmul.f32 %v10648_v59, %v12863_v33  ;;  %v13063_v43 = vadd.f32 %v12912_v16, %v5663_v60  ;;  %v10426_v59 = vld [vmem:[#allocation18 + $0x180] ss:$8 sps:$4 sm:$0xff]  }
 0xb49   : > { %6219 = vmatmul.mubr.bf16.gmra.mxu1 %v5724_v58  ;;  %6332 = vmatmul.mubr.bf16.gmra.mxu0 %v5724_v58  ;;  %v13069_v9 = vadd.f32 %v12907_v21, %v5662_v34  ;;  %v10423_v58 = vld [vmem:[#allocation18 + $0x80] ss:$8 sps:$4 sm:$0xff]   ;;  %14467 = vst [vmem:[#allocation38_spill] sm:$0xff] %v13108_v45 }
 0xb4a   : > { %v5665_v27 = vmul.f32 %v12899_v1, %v5621_v51  ;;  %v5664_v35 = vmul.f32 %v12896_v18, %v5620_v63  ;;  %14457 = vst [vmem:[#allocation65_spill] sm:$0xff] %v13063_v43  ;;  %7395 = vmatpush2.bf16.msra.mxu1 %v10417_v0  ;;  %7510 = vmatpush2.bf16.msra.mxu0 %v10426_v59 }
 0xb4b   : > { %v10650_v10 = vpop.eup %10649  ;;  %14459 = vst [vmem:[#allocation67_spill] sm:$0xff] %v13069_v9  ;;  %7396 = vmatprep.subr.bf16.mxu1 %v10425_v5 }
 0xb4c   : > { %v13066_v33 = vadd.f32 %v12912_v16, %v5665_v27  ;;  %v13072_v20 = vadd.f32 %v12907_v21, %v5664_v35  ;;  %v5623_v57 = vmul.f32 %v10650_v10, %v12876_v6  ;;  %v5622_v61 = vmul.f32 %v10650_v10, %v12873_v32 }
 0xb4d   : > { %v13113_v27 = vrot.slane %v5794_v2, %v11780_v14 }
 0xb4e   : > { %14458 = vst [vmem:[#allocation66_spill] sm:$0xff] %v13066_v33  ;;  %14460 = vst [vmem:[#allocation68_spill] sm:$0xff] %v13072_v20  ;;  %v5727_v22 = vpack.c.bf16 %v13066_v33, %v13063_v43  ;;  %v5726_v37 = vpack.c.bf16 %v13072_v20, %v13069_v9  ;;  %v5667_v6 = vmul.f32 %v12899_v1, %v5623_v57  ;;  %7397 = vmatpush2.bf16.msra.mxu1 %v10423_v58 }
 0xb4f   : > { %v5666_v4 = vmul.f32 %v12896_v18, %v5622_v61  ;;  %14469 = vst [vmem:[#allocation74_spill] sm:$0xff] %v13113_v27 }
 0xb50   : > { %v10652_v62 = vpop.eup %10651  ;;  %6228 = vmatprep.mubr.bf16.mxu1 %v5727_v22  ;;  %6341 = vmatprep.mubr.bf16.mxu0 %v5727_v22  ;;  %v13087_v63 = vadd.f32 %v12912_v16, %v5667_v6 }
 0xb51   : > { %6229 = vmatmul.mubr.bf16.gmra.mxu1 %v5726_v37  ;;  %6342 = vmatmul.mubr.bf16.gmra.mxu0 %v5726_v37  ;;  %v5625_v32 = vmul.f32 %v10652_v62, %v12886_v53  ;;  %v5624_v48 = vmul.f32 %v10652_v62, %v12883_v19  ;;  %v13093_v19 = vadd.f32 %v12907_v21, %v5666_v4 }
 0xb52   : > { %14461 = vst [vmem:[#allocation69_spill] sm:$0xff] %v13087_v63 }
 0xb53   : > { %v5669_v60 = vmul.f32 %v12899_v1, %v5625_v32  ;;  %v5668_v51 = vmul.f32 %v12896_v18, %v5624_v48  ;;  %14463 = vst [vmem:[#allocation71_spill] sm:$0xff] %v13093_v19 }
 0xb55   : > { %v13090_v34 = vadd.f32 %v12912_v16, %v5669_v60  ;;  %v13096_v53 = vadd.f32 %v12907_v21, %v5668_v51  ;;  %v5806_v16 = vsub.s32 2, %v14465_v47  ;;  %v5810_v21 = vsub.s32 3, %v14465_v47 }
 0xb57   : > { %14462 = vst [vmem:[#allocation70_spill] sm:$0xff] %v13090_v34  ;;  %14464 = vst [vmem:[#allocation72_spill] sm:$0xff] %v13096_v53  ;;  %v5729_v1 = vpack.c.bf16 %v13090_v34, %v13087_v63  ;;  %v5728_v18 = vpack.c.bf16 %v13096_v53, %v13093_v19  ;;  %v13110_v31 = vrot.slane %v5794_v2, %v5806_v16 }
 0xb58   : > { %v13115_v35 = vrot.slane %v5794_v2, %v5810_v21 }
 0xb59   : > { %6238 = vmatprep.mubr.bf16.mxu1 %v5729_v1  ;;  %6351 = vmatprep.mubr.bf16.mxu0 %v5729_v1  ;;  %14468 = vst [vmem:[#allocation73_spill] sm:$0xff] %v13110_v31 }
 0xb5a   : > { %6239 = vmatmul.mubr.bf16.gmra.mxu1 %v5728_v18  ;;  %6352 = vmatmul.mubr.bf16.gmra.mxu0 %v5728_v18  ;;  %14470 = vst [vmem:[#allocation75_spill] sm:$0xff] %v13115_v35 }
 0xb8b   : > { %v6170_v10 = vpop.f32.mrf.mxu1  ;;  %v6283_v57 = vpop.f32.mrf.mxu0 }
 0xb8c   : > { %v13118_v23 = vadd.f32 %v6170_v10, %v13108_v45  ;;  %v13121_v46 = vadd.f32 %v6283_v57, %v13110_v31 }
 0xb8d   : > { %v6172_v61 = vpop.f32.mrf.mxu1  ;;  %v6285_v0 = vpop.f32.mrf.mxu0 }
 0xb8e   : > { %v6362_v22 = vmul.f32 %v13118_v23, %v13118_v23  ;;  %v6364_v37 = vmul.f32 %v13121_v46, %v13121_v46  ;;  %v13128_v11 = vadd.f32 %v6172_v61, %v13113_v27  ;;  %v13131_v62 = vadd.f32 %v6285_v0, %v13115_v35 }
 0xb8f   : > { %v6174_v6 = vpop.f32.mrf.mxu1  ;;  %v6287_v5 = vpop.f32.mrf.mxu0 }
 0xb90   : > { %v6426_v13 = vmul.f32 %v6362_v22, %v13118_v23  ;;  %v6428_v32 = vmul.f32 %v6364_v37, %v13121_v46  ;;  %v6363_v48 = vmul.f32 %v13128_v11, %v13128_v11  ;;  %v13138_v4 = vadd.f32 %v6174_v6, %v13108_v45 }
 0xb91   : > { %v13141_v58 = vadd.f32 %v6287_v5, %v13110_v31  ;;  %v6176_v59 = vpop.f32.mrf.mxu1  ;;  %v6289_v60 = vpop.f32.mrf.mxu0  ;;  %v6365_v18 = vmul.f32 %v13131_v62, %v13131_v62 }
 0xb92   : > { %v6490_v51 = vmul.f32 0.044715, %v6426_v13  ;;  %v6492_v1 = vmul.f32 0.044715, %v6428_v32  ;;  %v6366_v47 = vmul.f32 %v13138_v4, %v13138_v4  ;;  %v13150_v2 = vadd.f32 %v6176_v59, %v13113_v27 }
 0xb93   : > { %v6368_v16 = vmul.f32 %v13141_v58, %v13141_v58  ;;  %v13153_v21 = vadd.f32 %v6289_v60, %v13115_v35  ;;  %v6180_v10 = vpop.f32.mrf.mxu1  ;;  %v6293_v0 = vpop.f32.mrf.mxu0  ;;  %v6427_v22 = vmul.f32 %v6363_v48, %v13128_v11 }
 0xb94   : > { %v6554_v57 = vadd.f32 %v6490_v51, %v13118_v23  ;;  %v6556_v61 = vadd.f32 %v6492_v1, %v13121_v46  ;;  %v6430_v37 = vmul.f32 %v6366_v47, %v13138_v4  ;;  %v6367_v5 = vmul.f32 %v13150_v2, %v13150_v2 }
 0xb95   : > { %v6432_v6 = vmul.f32 %v6368_v16, %v13141_v58  ;;  %v6369_v32 = vmul.f32 %v13153_v21, %v13153_v21  ;;  %v6182_v59 = vpop.f32.mrf.mxu1  ;;  %v6429_v51 = vmul.f32 %v6365_v18, %v13131_v62  ;;  %v13166_v53 = vadd.f32 %v6180_v10, %v13108_v45  ;;  %v6295_v48 = vpop.f32.mrf.mxu0 }
 0xb96   : > { %v6618_v13 = vmul.f32 0.7978846, %v6554_v57  ;;  %v6620_v60 = vmul.f32 0.7978846, %v6556_v61  ;;  %v6494_v34 = vmul.f32 0.044715, %v6430_v37  ;;  %v6431_v57 = vmul.f32 %v6367_v5, %v13150_v2 }
 0xb97   : > { %v6496_v1 = vmul.f32 0.044715, %v6432_v6  ;;  %v6491_v47 = vmul.f32 0.044715, %v6427_v22  ;;  %v6433_v19 = vmul.f32 %v6369_v32, %v13153_v21  ;;  %v6370_v61 = vmul.f32 %v13166_v53, %v13166_v53  ;;  %v6184_v37 = vpop.f32.mrf.mxu1 }
 0xb98   : > { %v6558_v16 = vadd.f32 %v6494_v34, %v13138_v4  ;;  %10653 = vtanh.f32 %v6618_v13  ;;  %v13175_v18 = vadd.f32 %v6293_v0, %v13110_v31  ;;  %v6493_v10 = vmul.f32 0.044715, %v6429_v51  ;;  %v6297_v13 = vpop.f32.mrf.mxu0 }
 0xb99   : > { %v6560_v63 = vadd.f32 %v6496_v1, %v13141_v58  ;;  %10655 = vtanh.f32 %v6620_v60  ;;  %v6434_v34 = vmul.f32 %v6370_v61, %v13166_v53  ;;  %v13181_v5 = vadd.f32 %v6182_v59, %v13113_v27 }
 0xb9a   : > { %v6622_v6 = vmul.f32 0.7978846, %v6558_v16  ;;  %v6372_v1 = vmul.f32 %v13175_v18, %v13175_v18  ;;  %v6495_v32 = vmul.f32 0.044715, %v6431_v57  ;;  %v13184_v33 = vadd.f32 %v6295_v48, %v13115_v35  ;;  %v6186_v16 = vpop.f32.mrf.mxu1 }
 0xb9b   : > { %v6624_v22 = vmul.f32 0.7978846, %v6560_v63  ;;  %v13187_v0 = vadd.f32 %v6184_v37, %v13108_v45  ;;  %v6555_v60 = vadd.f32 %v6491_v47, %v13128_v11  ;;  %v6497_v63 = vmul.f32 0.044715, %v6433_v19  ;;  %v6299_v19 = vpop.f32.mrf.mxu0 }
 0xb9c   : > { %10657 = vtanh.f32 %v6622_v6  ;;  %v6436_v51 = vmul.f32 %v6372_v1, %v13175_v18  ;;  %v6498_v61 = vmul.f32 0.044715, %v6434_v34  ;;  %v6371_v59 = vmul.f32 %v13181_v5, %v13181_v5  ;;  %v6190_v41 = vpop.f32.mrf.mxu1 }
 0xb9d   : > { %v6373_v57 = vmul.f32 %v13184_v33, %v13184_v33  ;;  %v6374_v48 = vmul.f32 %v13187_v0, %v13187_v0  ;;  %v6557_v37 = vadd.f32 %v6493_v10, %v13131_v62  ;;  %10659 = vtanh.f32 %v6624_v22 }
 0xb9e   : > { %v6500_v20 = vmul.f32 0.044715, %v6436_v51  ;;  %v13199_v47 = vadd.f32 %v6297_v13, %v13110_v31  ;;  %v6559_v6 = vadd.f32 %v6495_v32, %v13150_v2  ;;  %v6435_v34 = vmul.f32 %v6371_v59, %v13181_v5 }
 0xb9f   : > { %v6437_v1 = vmul.f32 %v6373_v57, %v13184_v33  ;;  %v13205_v43 = vadd.f32 %v6186_v16, %v13113_v27  ;;  %v6561_v9 = vadd.f32 %v6497_v63, %v13153_v21  ;;  %v6438_v52 = vmul.f32 %v6374_v48, %v13187_v0  ;;  %v6303_v48 = vpop.f32.mrf.mxu0 }
 0xba0   : > { %v6376_v10 = vmul.f32 %v13199_v47, %v13199_v47  ;;  %v6619_v22 = vmul.f32 0.7978846, %v6555_v60  ;;  %v6562_v13 = vadd.f32 %v6498_v61, %v13166_v53  ;;  %v13213_v51 = vadd.f32 %v6299_v19, %v13115_v35 }
 0xba1   : > { %v6621_v32 = vmul.f32 0.7978846, %v6557_v37  ;;  %v6564_v59 = vadd.f32 %v6500_v20, %v13175_v18  ;;  %v6499_v57 = vmul.f32 0.044715, %v6435_v34  ;;  %v6623_v16 = vmul.f32 0.7978846, %v6559_v6 }
 0xba2   : > { %v6501_v8 = vmul.f32 0.044715, %v6437_v1  ;;  %v6375_v63 = vmul.f32 %v13205_v43, %v13205_v43  ;;  %v6625_v25 = vmul.f32 0.7978846, %v6561_v9  ;;  %v6502_v26 = vmul.f32 0.044715, %v6438_v52 }
 0xba3   : > { %v6440_v60 = vmul.f32 %v6376_v10, %v13199_v47  ;;  %10661 = vtanh.f32 %v6619_v22  ;;  %v6626_v61 = vmul.f32 0.7978846, %v6562_v13  ;;  %v6377_v37 = vmul.f32 %v13213_v51, %v13213_v51  ;;  %v6192_v10 = vpop.f32.mrf.mxu1  ;;  %v6305_v22 = vpop.f32.mrf.mxu0 }
 0xba4   : > { %v13222_v20 = vadd.f32 %v6190_v41, %v13108_v45  ;;  %10663 = vtanh.f32 %v6621_v32  ;;  %v6628_v6 = vmul.f32 0.7978846, %v6564_v59  ;;  %v6563_v34 = vadd.f32 %v6499_v57, %v13181_v5 }
 0xba5   : > { %v10654_v54 = vpop.eup %10653  ;;  %10665 = vtanh.f32 %v6623_v16  ;;  %v6565_v9 = vadd.f32 %v6501_v8, %v13184_v33  ;;  %v6439_v52 = vmul.f32 %v6375_v63, %v13205_v43  ;;  %v6566_v41 = vadd.f32 %v6502_v26, %v13187_v0  ;;  %v6194_v26 = vpop.f32.mrf.mxu1 }
 0xba6   : > { %v10656_v19 = vpop.eup %10655  ;;  %v6378_v1 = vmul.f32 %v13222_v20, %v13222_v20  ;;  %v6746_v13 = vadd.f32 1.0, %v10654_v54  ;;  %10667 = vtanh.f32 %v6625_v25  ;;  %v6504_v17 = vmul.f32 0.044715, %v6440_v60  ;;  %v6307_v25 = vpop.f32.mrf.mxu0 }
 0xba7   : > { %10669 = vtanh.f32 %v6626_v61  ;;  %v6441_v32 = vmul.f32 %v6377_v37, %v13213_v51  ;;  %v6748_v59 = vadd.f32 1.0, %v10656_v19  ;;  %v6627_v57 = vmul.f32 0.7978846, %v6563_v34 }
 0xba8   : > { %10671 = vtanh.f32 %v6628_v6  ;;  %v6442_v8 = vmul.f32 %v6378_v1, %v13222_v20  ;;  %v6629_v63 = vmul.f32 0.7978846, %v6565_v9  ;;  %v6503_v40 = vmul.f32 0.044715, %v6439_v52  ;;  %v6309_v29 = vpop.f32.mrf.mxu0 }
 0xba9   : > { %v10658_v24 = vpop.eup %10657  ;;  %v13233_v44 = vadd.f32 %v6303_v48, %v13110_v31  ;;  %v13236_v54 = vadd.f32 %v6192_v10, %v13113_v27  ;;  %v6810_v60 = vmul.f32 0.5, %v6746_v13  ;;  %v6630_v61 = vmul.f32 0.7978846, %v6566_v41 }
 0xbaa   : > { %v10660_v16 = vpop.eup %10659  ;;  %v6568_v37 = vadd.f32 %v6504_v17, %v13199_v47  ;;  %v13240_v19 = vadd.f32 %v6305_v22, %v13115_v35  ;;  %v6750_v6 = vadd.f32 1.0, %v10658_v24  ;;  %v6505_v34 = vmul.f32 0.044715, %v6441_v32  ;;  %v6196_v32 = vpop.f32.mrf.mxu1 }
 0xbab   : > { %v6380_v9 = vmul.f32 %v13233_v44, %v13233_v44  ;;  %v6379_v48 = vmul.f32 %v13236_v54, %v13236_v54  ;;  %v6752_v52 = vadd.f32 1.0, %v10660_v16  ;;  %v6506_v1 = vmul.f32 0.044715, %v6442_v8 }
 0xbac   : > { %v6381_v10 = vmul.f32 %v13240_v19, %v13240_v19  ;;  %v13249_v13 = vadd.f32 %v6194_v26, %v13108_v45  ;;  %v6812_v17 = vmul.f32 0.5, %v6748_v59  ;;  %v6567_v22 = vadd.f32 %v6503_v40, %v13205_v43 }
 0xbad   : > { %v6444_v24 = vmul.f32 %v6380_v9, %v13233_v44  ;;  %v6443_v41 = vmul.f32 %v6379_v48, %v13236_v54  ;;  %v13255_v50 = vmul.f32 %v6810_v60, %v13118_v23  ;;  %10673 = vtanh.f32 %v6627_v57 }
 0xbae   : > { %v6445_v8 = vmul.f32 %v6381_v10, %v13240_v19  ;;  %v13259_v16 = vadd.f32 %v6307_v25, %v13110_v31  ;;  %v6814_v26 = vmul.f32 0.5, %v6750_v6  ;;  %v6569_v59 = vadd.f32 %v6505_v34, %v13213_v51  ;;  %v6200_v34 = vpop.f32.mrf.mxu1 }
 0xbaf   : > { %v6508_v42 = vmul.f32 0.044715, %v6444_v24  ;;  %v6382_v40 = vmul.f32 %v13249_v13, %v13249_v13  ;;  %v6816_v48 = vmul.f32 0.5, %v6752_v52  ;;  %10675 = vtanh.f32 %v6629_v63  ;;  %v6313_v24 = vpop.f32.mrf.mxu0 }
 0xbb0   : > { %v13264_v9 = vpop.eup %10661  ;;  %v6632_v28 = vmul.f32 0.7978846, %v6568_v37  ;;  %v6570_v23 = vadd.f32 %v6506_v1, %v13222_v20  ;;  %v13270_v60 = vmul.f32 %v6812_v17, %v13121_v46  ;;  %v6631_v25 = vmul.f32 0.7978846, %v6567_v22 }
 0xbb1   : > { %v13267_v57 = vpop.eup %10663  ;;  %v6507_v6 = vmul.f32 0.044715, %v6443_v41  ;;  %v6509_v10 = vmul.f32 0.044715, %v6445_v8  ;;  %v6572_v39 = vadd.f32 %v6508_v42, %v13233_v44  ;;  %v6446_v52 = vmul.f32 %v6382_v40, %v13249_v13 }
 0xbb2   : > { %v13272_v36 = vpop.eup %10665  ;;  %v6384_v63 = vmul.f32 %v13259_v16, %v13259_v16  ;;  %v13279_v37 = vadd.f32 %v6196_v32, %v13113_v27  ;;  %v13284_v46 = vmul.f32 %v6814_v26, %v13138_v4  ;;  %10677 = vtanh.f32 %v6630_v61  ;;  %v6202_v26 = vpop.f32.mrf.mxu1 }
 0xbb3   : > { %v13281_v1 = vpop.eup %10667  ;;  %v6633_v17 = vmul.f32 0.7978846, %v6569_v59  ;;  %v13287_v22 = vadd.f32 %v6309_v29, %v13115_v35  ;;  %v13292_v42 = vmul.f32 %v6816_v48, %v13141_v58  ;;  %10679 = vtanh.f32 %v6632_v28  ;;  %v6315_v59 = vpop.f32.mrf.mxu0 }
 0xbb4   : > { %v13289_v41 = vpop.eup %10669  ;;  %v6634_v8 = vmul.f32 0.7978846, %v6570_v23  ;;  %v6383_v32 = vmul.f32 %v13279_v37, %v13279_v37  ;;  %10681 = vtanh.f32 %v6631_v25  ;;  %v6571_v4 = vadd.f32 %v6507_v6, %v13236_v54 }
 0xbb5   : > { %v13296_v40 = vpop.eup %10671  ;;  %v6573_v61 = vadd.f32 %v6509_v10, %v13240_v19  ;;  %v6385_v29 = vmul.f32 %v13287_v22, %v13287_v22  ;;  %v6636_v56 = vmul.f32 0.7978846, %v6572_v39  ;;  %v6510_v58 = vmul.f32 0.044715, %v6446_v52  ;;  %v6317_v38 = vpop.f32.mrf.mxu0 }
 0xbb6   : > { %v6448_v28 = vmul.f32 %v6384_v63, %v13259_v16  ;;  %v6447_v48 = vmul.f32 %v6383_v32, %v13279_v37  ;;  %10683 = vtanh.f32 %v6633_v17  ;;  %v13310_v49 = vadd.f32 %v6200_v34, %v13108_v45  ;;  %v6204_v32 = vpop.f32.mrf.mxu1 }
 0xbb7   : > { %v6449_v25 = vmul.f32 %v6385_v29, %v13287_v22  ;;  %10685 = vtanh.f32 %v6634_v8  ;;  %v6635_v39 = vmul.f32 0.7978846, %v6571_v4  ;;  %v6637_v52 = vmul.f32 0.7978846, %v6573_v61 }
 0xbb8   : > { %v6511_v10 = vmul.f32 0.044715, %v6447_v48  ;;  %14471 = vst [vmem:[#allocation76_spill] sm:$0xff] %v13310_v49  ;;  %v13313_v63 = vadd.f32 %v6313_v24, %v13110_v31  ;;  %10687 = vtanh.f32 %v6636_v56  ;;  %v6574_v17 = vadd.f32 %v6510_v58, %v13249_v13 }
 0xbb9   : > { %v6513_v55 = vmul.f32 0.044715, %v6449_v25  ;;  %v6512_v29 = vmul.f32 0.044715, %v6448_v28  ;;  %v6386_v6 = vmul.f32 %v13310_v49, %v13310_v49  ;;  %v13324_v61 = vadd.f32 %v6202_v26, %v13113_v27 }
 0xbba   : > { %v13318_v8 = vpop.eup %10673  ;;  %v6575_v34 = vadd.f32 %v6511_v10, %v13279_v37  ;;  %v6388_v4 = vmul.f32 %v13313_v63, %v13313_v63  ;;  %v13327_v24 = vadd.f32 %v6315_v59, %v13115_v35  ;;  %v13332_v28 = vadd.f32 %v6204_v32, %v13108_v45 }
 0xbbb   : > { %v6577_v56 = vadd.f32 %v6513_v55, %v13287_v22  ;;  %v6450_v58 = vmul.f32 %v6386_v6, %v13310_v49  ;;  %v13335_v48 = vadd.f32 %v6317_v38, %v13110_v31  ;;  %10689 = vtanh.f32 %v6635_v39  ;;  %v6206_v38 = vpop.f32.mrf.mxu1 }
 0xbbc   : > { %v13337_v25 = vpop.eup %10675  ;;  %v6452_v10 = vmul.f32 %v6388_v4, %v13313_v63  ;;  %v6387_v26 = vmul.f32 %v13324_v61, %v13324_v61  ;;  %v6389_v59 = vmul.f32 %v13327_v24, %v13327_v24  ;;  %v6638_v55 = vmul.f32 0.7978846, %v6574_v17 }
 0xbbd   : > { %v6576_v6 = vadd.f32 %v6512_v29, %v13259_v16  ;;  %v6514_v23 = vmul.f32 0.044715, %v6450_v58  ;;  %v6390_v32 = vmul.f32 %v13332_v28, %v13332_v28  ;;  %10691 = vtanh.f32 %v6637_v52 }
 0xbbe   : > { %v6639_v15 = vmul.f32 0.7978846, %v6575_v34  ;;  %v6451_v39 = vmul.f32 %v6387_v26, %v13324_v61  ;;  %v6453_v4 = vmul.f32 %v6389_v59, %v13327_v24  ;;  %v6641_v30 = vmul.f32 0.7978846, %v6577_v56 }
 0xbbf   : > { %v10678_v7 = vpop.eup %10677  ;;  %v6578_v3 = vadd.f32 %v6514_v23, %v13310_v49  ;;  %v6454_v14 = vmul.f32 %v6390_v32, %v13332_v28  ;;  %v6392_v17 = vmul.f32 %v13335_v48, %v13335_v48  ;;  %v6516_v58 = vmul.f32 0.044715, %v6452_v10  ;;  %v6319_v49 = vpop.f32.mrf.mxu0 }
 0xbc0   : > { %v10680_v29 = vpop.eup %10679  ;;  %v6515_v12 = vmul.f32 0.044715, %v6451_v39  ;;  %v6517_v31 = vmul.f32 0.044715, %v6453_v4  ;;  %v13354_v52 = vadd.f32 %v6206_v38, %v13113_v27  ;;  %v6754_v26 = vadd.f32 1.0, %v13289_v41 }
 0xbc1   : > { %v10682_v34 = vpop.eup %10681  ;;  %10693 = vtanh.f32 %v6638_v55  ;;  %v6518_v59 = vmul.f32 0.044715, %v6454_v14  ;;  %v6456_v56 = vmul.f32 %v6392_v17, %v13335_v48  ;;  %v6640_v23 = vmul.f32 0.7978846, %v6576_v6 }
 0xbc2   : > { %10695 = vtanh.f32 %v6639_v15  ;;  %v6579_v32 = vadd.f32 %v6515_v12, %v13324_v61  ;;  %v6581_v45 = vadd.f32 %v6517_v31, %v13327_v24  ;;  %v6642_v39 = vmul.f32 0.7978846, %v6578_v3 }
 0xbc3   : > { %v10684_v10 = vpop.eup %10683  ;;  %v6582_v4 = vadd.f32 %v6518_v59, %v13332_v28  ;;  %v6520_v38 = vmul.f32 0.044715, %v6456_v56  ;;  %v6391_v27 = vmul.f32 %v13354_v52, %v13354_v52  ;;  %v6758_v14 = vadd.f32 1.0, %v10678_v7 }
 0xbc4   : > { %v13363_v41 = vpop.eup %10685  ;;  %10697 = vtanh.f32 %v6641_v30  ;;  %v6580_v55 = vadd.f32 %v6516_v58, %v13313_v63  ;;  %v6643_v15 = vmul.f32 0.7978846, %v6579_v32  ;;  %v6645_v6 = vmul.f32 0.7978846, %v6581_v45 }
 0xbc5   : > { %v6584_v12 = vadd.f32 %v6520_v38, %v13335_v48  ;;  %v6455_v31 = vmul.f32 %v6391_v27, %v13354_v52  ;;  %v13369_v3 = vadd.f32 %v6319_v49, %v13115_v35  ;;  %v13371_v17 = vpop.eup %10687  ;;  %v13373_v59 = vmul.f32 0.5, %v6754_v26 }
 0xbc6   : > { %10699 = vtanh.f32 %v6640_v23  ;;  %v6646_v56 = vmul.f32 0.7978846, %v6582_v4  ;;  %v6747_v7 = vadd.f32 1.0, %v13264_v9  ;;  %v6760_v30 = vadd.f32 1.0, %v10680_v29 }
 0xbc7   : > { %10701 = vtanh.f32 %v6642_v39  ;;  %v6648_v58 = vmul.f32 0.7978846, %v6584_v12  ;;  %v6519_v32 = vmul.f32 0.044715, %v6455_v31  ;;  %v6822_v45 = vmul.f32 0.5, %v6758_v14 }
 0xbc8   : > { %10703 = vtanh.f32 %v6643_v15  ;;  %v6393_v27 = vmul.f32 %v13369_v3, %v13369_v3  ;;  %v6751_v49 = vadd.f32 1.0, %v13272_v36  ;;  %v10690_v38 = vpop.eup %10689  ;;  %v6644_v35 = vmul.f32 0.7978846, %v6580_v55 }
 0xbc9   : > { %10705 = vtanh.f32 %v6645_v6  ;;  %v6583_v26 = vadd.f32 %v6519_v32, %v13354_v52  ;;  %v6811_v23 = vmul.f32 0.5, %v6747_v7  ;;  %v6749_v39 = vadd.f32 1.0, %v13267_v57 }
 0xbca   : > { %10707 = vtanh.f32 %v6646_v56  ;;  %v6457_v9 = vmul.f32 %v6393_v27, %v13369_v3  ;;  %v6815_v29 = vmul.f32 0.5, %v6751_v49  ;;  %v10692_v4 = vpop.eup %10691  ;;  %v6753_v12 = vadd.f32 1.0, %v13281_v1 }
 0xbcb   : > { %10709 = vtanh.f32 %v6648_v58  ;;  %v6647_v14 = vmul.f32 0.7978846, %v6583_v26  ;;  %v6875_v15 = vmul.f32 %v6811_v23, %v13128_v11  ;;  %v6813_v6 = vmul.f32 0.5, %v6749_v39 }
 0xbcc   : > { %v6521_v36 = vmul.f32 0.044715, %v6457_v9  ;;  %v6879_v55 = vmul.f32 %v6815_v29, %v13150_v2  ;;  %v6755_v31 = vadd.f32 1.0, %v13318_v8  ;;  %v6817_v56 = vmul.f32 0.5, %v6753_v12 }
 0xbcd   : > { %10711 = vtanh.f32 %v6647_v14  ;;  %v6759_v7 = vadd.f32 1.0, %v10682_v34  ;;  %v6757_v32 = vadd.f32 1.0, %v13337_v25  ;;  %v6877_v49 = vmul.f32 %v6813_v6, %v13131_v62 }
 0xbce   : > { %v10694_v27 = vpop.eup %10693  ;;  %v6585_v57 = vadd.f32 %v6521_v36, %v13369_v3  ;;  %v6939_v58 = vpack.c.bf16 %v6879_v55, %v6875_v15  ;;  %v6819_v11 = vmul.f32 0.5, %v6755_v31  ;;  %v6881_v1 = vmul.f32 %v6817_v56, %v13153_v21 }
 0xbcf   : > { %v10696_v26 = vpop.eup %10695  ;;  %v6823_v23 = vmul.f32 0.5, %v6759_v7  ;;  %v6761_v2 = vadd.f32 1.0, %v10684_v10  ;;  %v6821_v9 = vmul.f32 0.5, %v6757_v32  ;;  %v6756_v8 = vadd.f32 1.0, %v13296_v40 }
 0xbd0   : > { %v6824_v29 = vmul.f32 0.5, %v6760_v30  ;;  %10713 = vtanh.f32 %v6644_v35  ;;  %v6649_v34 = vmul.f32 0.7978846, %v6585_v57  ;;  %7398 = vmatprep.mubr.bf16.mxu1 %v6939_v58  ;;  %v6941_v39 = vpack.c.bf16 %v6881_v1, %v6877_v49 }
 0xbd1   : > { %v10698_v25 = vpop.eup %10697  ;;  %v14472_v14 = vpack.c.bf16 %v13284_v46, %v13255_v50  ;;  %v6883_v62 = vmul.f32 %v6819_v11, %v13181_v5  ;;  %v6887_v15 = vmul.f32 %v6823_v23, %v13205_v43  ;;  %v6825_v21 = vmul.f32 0.5, %v6761_v2 }
 0xbd2   : > { %v6886_v10 = vmul.f32 %v6822_v45, %v13187_v0  ;;  %v6766_v12 = vadd.f32 1.0, %v10694_v27  ;;  %10715 = vtanh.f32 %v6649_v34  ;;  %v6763_v40 = vadd.f32 1.0, %v10690_v38  ;;  %7511 = vmatprep.mubr.bf16.mxu0 %v6941_v39 }
 0xbd3   : > { %7399 = vmatmul.mubr.bf16.vlgmr.msra.gmra.mxu1 %v14472_v14  ;;  %v10700_v30 = vpop.eup %10699  ;;  %v6943_v35 = vpack.c.bf16 %v6887_v15, %v6883_v62  ;;  %v6885_v36 = vmul.f32 %v6821_v9, %v13184_v33  ;;  %v6889_v55 = vmul.f32 %v6825_v21, %v13213_v51  ;;  %v6767_v6 = vadd.f32 1.0, %v10696_v26 }
 0xbd4   : > { %v10702_v50 = vpop.eup %10701  ;;  %v6820_v46 = vmul.f32 0.5, %v6756_v8  ;;  %v14473_v5 = vpack.c.bf16 %v13292_v42, %v13270_v60  ;;  %v6827_v43 = vmul.f32 0.5, %v6763_v40  ;;  %v6765_v31 = vadd.f32 1.0, %v10692_v4 }
 0xbd5   : > { %v6769_v0 = vadd.f32 1.0, %v10698_v25  ;;  %v10704_v45 = vpop.eup %10703  ;;  %v6882_v38 = vmul.f32 %v13373_v59, %v13166_v53  ;;  %v6762_v56 = vadd.f32 1.0, %v13363_v41  ;;  %7408 = vmatprep.mubr.bf16.mxu1 %v6943_v35  ;;  %v6945_v33 = vpack.c.bf16 %v6889_v55, %v6885_v36 }
 0xbd6   : > { %7512 = vmatmul.mubr.bf16.vlgmr.msra.gmra.mxu0 %v14473_v5  ;;  %v6831_v7 = vmul.f32 0.5, %v6767_v6  ;;  %v10706_v51 = vpop.eup %10705  ;;  %v6888_v32 = vmul.f32 %v6824_v29, %v13199_v47  ;;  %v6830_v27 = vmul.f32 0.5, %v6766_v12  ;;  %v6768_v57 = vadd.f32 1.0, %v10700_v30 }
 0xbd7   : > { %v6829_v58 = vmul.f32 0.5, %v6765_v31  ;;  %v10708_v60 = vpop.eup %10707  ;;  %7521 = vmatprep.mubr.bf16.mxu0 %v6945_v33  ;;  %v6942_v42 = vpack.c.bf16 %v6886_v10, %v6882_v38  ;;  %v6891_v4 = vmul.f32 %v6827_v43, %v13236_v54  ;;  %v6833_v11 = vmul.f32 0.5, %v6769_v0  ;;  %v14474_v0 = vld [vmem:[#allocation76_spill] sm:$0xff] }
 0xbd8   : > { %v6895_v49 = vmul.f32 %v6831_v7, %v13279_v37  ;;  %v10710_v53 = vpop.eup %10709  ;;  %v6884_v41 = vmul.f32 %v6820_v46, %v13175_v18  ;;  %v6764_v59 = vadd.f32 1.0, %v13371_v17  ;;  %v6771_v26 = vadd.f32 1.0, %v10704_v45 }
 0xbd9   : > { %v6826_v1 = vmul.f32 0.5, %v6762_v56  ;;  %v6893_v23 = vmul.f32 %v6829_v58, %v13240_v19  ;;  %v6897_v2 = vmul.f32 %v6833_v11, %v13287_v22  ;;  %v6894_v8 = vmul.f32 %v6830_v27, %v13249_v13 }
 0xbda   : > { %v6947_v47 = vpack.c.bf16 %v6895_v49, %v6891_v4  ;;  %v10712_v9 = vpop.eup %10711  ;;  %v6832_v54 = vmul.f32 0.5, %v6768_v57  ;;  %v6944_v29 = vpack.c.bf16 %v6888_v32, %v6884_v41  ;;  %v6774_v37 = vadd.f32 1.0, %v10708_v60  ;;  %v14475_v32 = vld [vmem:[#allocation38_spill] sm:$0xff]  ;;  %v14478_v4 = vld [vmem:[#allocation75_spill] sm:$0xff] }
 0xbdb   : > { %7409 = vmatmul.mubr.bf16.gmra.mxu1 %v6942_v42  ;;  %v6949_v34 = vpack.c.bf16 %v6897_v2, %v6893_v23  ;;  %v6775_v25 = vadd.f32 1.0, %v10712_v9  ;;  %v6835_v18 = vmul.f32 0.5, %v6771_v26  ;;  %v6828_v39 = vmul.f32 0.5, %v6764_v59  ;;  %v14477_v60 = vld [vmem:[#allocation74_spill] sm:$0xff] }
 0xbdc   : > { %7418 = vmatprep.mubr.bf16.mxu1 %v6947_v47  ;;  %v6773_v17 = vadd.f32 1.0, %v10706_v51  ;;  %v6890_v62 = vmul.f32 %v6826_v1, %v13222_v20  ;;  %v6770_v15 = vadd.f32 1.0, %v10702_v50  ;;  %v6896_v22 = vmul.f32 %v6832_v54, %v13259_v16 }
 0xbdd   : > { %v10714_v14 = vpop.eup %10713  ;;  %v6839_v19 = vmul.f32 0.5, %v6775_v25  ;;  %v6776_v21 = vadd.f32 1.0, %v10710_v53  ;;  %v6838_v10 = vmul.f32 0.5, %v6774_v37  ;;  %v6899_v40 = vmul.f32 %v6835_v18, %v13324_v61 }
 0xbde   : > { %7522 = vmatmul.mubr.bf16.gmra.mxu0 %v6944_v29  ;;  %v6946_v12 = vpack.c.bf16 %v6894_v8, %v6890_v62  ;;  %v6892_v35 = vmul.f32 %v6828_v39, %v13233_v44  ;;  %v6772_v36 = vadd.f32 1.0, %v10714_v14  ;;  %v6837_v6 = vmul.f32 0.5, %v6773_v17 }
 0xbdf   : > { %7531 = vmatprep.mubr.bf16.mxu0 %v6949_v34  ;;  %v10716_v13 = vpop.eup %10715  ;;  %v6903_v30 = vmul.f32 %v6839_v19, %v13354_v52  ;;  %v6834_v46 = vmul.f32 0.5, %v6770_v15  ;;  %v6840_v50 = vmul.f32 0.5, %v6776_v21  ;;  %v6902_v16 = vmul.f32 %v6838_v10, %v13332_v28 }
 0xbe0   : > { %v6777_v55 = vadd.f32 1.0, %v10716_v13  ;;  %v6948_v5 = vpack.c.bf16 %v6896_v22, %v6892_v35  ;;  %v6836_v31 = vmul.f32 0.5, %v6772_v36  ;;  %v6901_v61 = vmul.f32 %v6837_v6, %v13327_v24  ;;  %v14476_v24 = vld [vmem:[#allocation73_spill] sm:$0xff] }
 0xbe1   : > { %v6951_v20 = vpack.c.bf16 %v6903_v30, %v6899_v40  ;;  %v6898_v44 = vmul.f32 %v6834_v46, %v14474_v0  ;;  %v6904_v45 = vmul.f32 %v6840_v50, %v13335_v48 }
 0xbe2   : > { %v6841_v43 = vmul.f32 0.5, %v6777_v55  ;;  %v6900_v33 = vmul.f32 %v6836_v31, %v13313_v63 }
 0xbe3   : > { %7419 = vmatmul.mubr.bf16.gmra.mxu1 %v6946_v12  ;;  %v6950_v56 = vpack.c.bf16 %v6902_v16, %v6898_v44 }
 0xbe4   : > { %7428 = vmatprep.mubr.bf16.mxu1 %v6951_v20  ;;  %v6905_v52 = vmul.f32 %v6841_v43, %v13369_v3  ;;  %v6952_v7 = vpack.c.bf16 %v6904_v45, %v6900_v33 }
 0xbe6   : > { %7532 = vmatmul.mubr.bf16.gmra.mxu0 %v6948_v5  ;;  %v6953_v38 = vpack.c.bf16 %v6905_v52, %v6901_v61 }
 0xbe8   : > { %7541 = vmatprep.mubr.bf16.mxu0 %v6953_v38 }
 0xbeb   : > { %7429 = vmatmul.mubr.bf16.gmra.mxu1 %v6950_v56 }
 0xbee   : > { %7542 = vmatmul.mubr.bf16.gmra.mxu0 %v6952_v7 }
 0xc01   : > { %v6210_v28 = vpop.f32.mrf.mxu1  ;;  %v6323_v51 = vpop.f32.mrf.mxu0 }
 0xc02   : > { %v13425_v27 = vadd.f32 %v6210_v28, %v14475_v32  ;;  %v13428_v57 = vadd.f32 %v6323_v51, %v14476_v24 }
 0xc03   : > { %v6212_v3 = vpop.f32.mrf.mxu1  ;;  %v6325_v58 = vpop.f32.mrf.mxu0 }
 0xc04   : > { %v6394_v48 = vmul.f32 %v13425_v27, %v13425_v27  ;;  %v6396_v63 = vmul.f32 %v13428_v57, %v13428_v57  ;;  %v13435_v42 = vadd.f32 %v6212_v3, %v14477_v60  ;;  %v13438_v49 = vadd.f32 %v6325_v58, %v14478_v4 }
 0xc05   : > { %v6214_v11 = vpop.f32.mrf.mxu1  ;;  %v6327_v53 = vpop.f32.mrf.mxu0 }
 0xc06   : > { %v6458_v41 = vmul.f32 %v6394_v48, %v13425_v27  ;;  %v6460_v59 = vmul.f32 %v6396_v63, %v13428_v57  ;;  %v6395_v26 = vmul.f32 %v13435_v42, %v13435_v42  ;;  %v6397_v1 = vmul.f32 %v13438_v49, %v13438_v49 }
 0xc07   : > { %v13447_v47 = vadd.f32 %v6214_v11, %v14475_v32  ;;  %v13450_v23 = vadd.f32 %v6327_v53, %v14476_v24  ;;  %v6216_v2 = vpop.f32.mrf.mxu1  ;;  %v6329_v9 = vpop.f32.mrf.mxu0 }
 0xc08   : > { %v6522_v8 = vmul.f32 0.044715, %v6458_v41  ;;  %v6524_v54 = vmul.f32 0.044715, %v6460_v59  ;;  %v6459_v29 = vmul.f32 %v6395_v26, %v13435_v42  ;;  %v13458_v25 = vadd.f32 %v6216_v2, %v14477_v60 }
 0xc09   : > { %v6398_v37 = vmul.f32 %v13447_v47, %v13447_v47  ;;  %v6400_v34 = vmul.f32 %v13450_v23, %v13450_v23  ;;  %v13461_v18 = vadd.f32 %v6329_v9, %v14478_v4  ;;  %v6220_v39 = vpop.f32.mrf.mxu1  ;;  %v6333_v17 = vpop.f32.mrf.mxu0  ;;  %v6461_v15 = vmul.f32 %v6397_v1, %v13438_v49 }
 0xc0a   : > { %v6586_v14 = vadd.f32 %v6522_v8, %v13425_v27  ;;  %v6588_v62 = vadd.f32 %v6524_v54, %v13428_v57  ;;  %v6399_v21 = vmul.f32 %v13458_v25, %v13458_v25  ;;  %v6523_v10 = vmul.f32 0.044715, %v6459_v29 }
 0xc0b   : > { %v6462_v19 = vmul.f32 %v6398_v37, %v13447_v47  ;;  %v6464_v22 = vmul.f32 %v6400_v34, %v13450_v23  ;;  %v6401_v12 = vmul.f32 %v13461_v18, %v13461_v18  ;;  %v6222_v40 = vpop.f32.mrf.mxu1  ;;  %v6335_v6 = vpop.f32.mrf.mxu0  ;;  %v13474_v46 = vadd.f32 %v6220_v39, %v14475_v32 }
 0xc0c   : > { %v6650_v13 = vmul.f32 0.7978846, %v6586_v14  ;;  %v6652_v30 = vmul.f32 0.7978846, %v6588_v62  ;;  %v6463_v55 = vmul.f32 %v6399_v21, %v13458_v25  ;;  %v6525_v20 = vmul.f32 0.044715, %v6461_v15 }
 0xc0d   : > { %v6526_v35 = vmul.f32 0.044715, %v6462_v19  ;;  %v6528_v36 = vmul.f32 0.044715, %v6464_v22  ;;  %v6587_v43 = vadd.f32 %v6523_v10, %v13435_v42  ;;  %v6402_v16 = vmul.f32 %v13474_v46, %v13474_v46  ;;  %v6224_v61 = vpop.f32.mrf.mxu1  ;;  %v6337_v44 = vpop.f32.mrf.mxu0 }
 0xc0e   : > { %10717 = vtanh.f32 %v6650_v13  ;;  %v13482_v31 = vadd.f32 %v6333_v17, %v14476_v24  ;;  %v6527_v52 = vmul.f32 0.044715, %v6463_v55  ;;  %v6465_v0 = vmul.f32 %v6401_v12, %v13461_v18 }
 0xc0f   : > { %v6590_v50 = vadd.f32 %v6526_v35, %v13447_v47  ;;  %v6592_v5 = vadd.f32 %v6528_v36, %v13450_v23  ;;  %10719 = vtanh.f32 %v6652_v30  ;;  %v6466_v38 = vmul.f32 %v6402_v16, %v13474_v46  ;;  %v6226_v11 = vpop.f32.mrf.mxu1  ;;  %v6339_v1 = vpop.f32.mrf.mxu0 }
 0xc10   : > { %v6404_v56 = vmul.f32 %v13482_v31, %v13482_v31  ;;  %v13489_v33 = vadd.f32 %v6222_v40, %v14477_v60  ;;  %v13492_v28 = vadd.f32 %v6335_v6, %v14478_v4  ;;  %v13495_v51 = vadd.f32 %v6224_v61, %v14475_v32 }
 0xc11   : > { %v6654_v45 = vmul.f32 0.7978846, %v6590_v50  ;;  %v6656_v7 = vmul.f32 0.7978846, %v6592_v5  ;;  %v6651_v3 = vmul.f32 0.7978846, %v6587_v43  ;;  %v6589_v58 = vadd.f32 %v6525_v20, %v13438_v49  ;;  %v6230_v62 = vpop.f32.mrf.mxu1  ;;  %v6343_v35 = vpop.f32.mrf.mxu0 }
 0xc12   : > { %v6530_v48 = vmul.f32 0.044715, %v6466_v38  ;;  %v6468_v63 = vmul.f32 %v6404_v56, %v13482_v31  ;;  %v6529_v53 = vmul.f32 0.044715, %v6465_v0  ;;  %v6403_v41 = vmul.f32 %v13489_v33, %v13489_v33 }
 0xc13   : > { %v6405_v59 = vmul.f32 %v13492_v28, %v13492_v28  ;;  %v6406_v26 = vmul.f32 %v13495_v51, %v13495_v51  ;;  %10721 = vtanh.f32 %v6654_v45  ;;  %v6591_v2 = vadd.f32 %v6527_v52, %v13458_v25  ;;  %v6232_v20 = vpop.f32.mrf.mxu1  ;;  %v6345_v56 = vpop.f32.mrf.mxu0 }
 0xc14   : > { %v6532_v9 = vmul.f32 0.044715, %v6468_v63  ;;  %v13507_v8 = vadd.f32 %v6337_v44, %v14476_v24  ;;  %10723 = vtanh.f32 %v6656_v7  ;;  %v6467_v54 = vmul.f32 %v6403_v41, %v13489_v33 }
 0xc15   : > { %v6470_v29 = vmul.f32 %v6406_v26, %v13495_v51  ;;  %v13512_v37 = vadd.f32 %v6226_v11, %v14477_v60  ;;  %v6594_v34 = vadd.f32 %v6530_v48, %v13474_v46  ;;  %v6469_v39 = vmul.f32 %v6405_v59, %v13492_v28  ;;  %v6234_v48 = vpop.f32.mrf.mxu1 }
 0xc16   : > { %v6408_v17 = vmul.f32 %v13507_v8, %v13507_v8  ;;  %v13519_v14 = vadd.f32 %v6339_v1, %v14478_v4  ;;  %v6596_v15 = vadd.f32 %v6532_v9, %v13482_v31  ;;  %v6653_v21 = vmul.f32 0.7978846, %v6589_v58  ;;  %v6347_v9 = vpop.f32.mrf.mxu0 }
 0xc17   : > { %v6534_v19 = vmul.f32 0.044715, %v6470_v29  ;;  %v6407_v22 = vmul.f32 %v13512_v37, %v13512_v37  ;;  %v6593_v13 = vadd.f32 %v6529_v53, %v13461_v18  ;;  %v6655_v12 = vmul.f32 0.7978846, %v6591_v2 }
 0xc18   : > { %v6472_v10 = vmul.f32 %v6408_v17, %v13507_v8  ;;  %v6531_v40 = vmul.f32 0.044715, %v6467_v54  ;;  %10725 = vtanh.f32 %v6651_v3  ;;  %v6658_v36 = vmul.f32 0.7978846, %v6594_v34 }
 0xc19   : > { %v6598_v30 = vadd.f32 %v6534_v19, %v13495_v51  ;;  %v6533_v55 = vmul.f32 0.044715, %v6469_v39  ;;  %v6409_v6 = vmul.f32 %v13519_v14, %v13519_v14  ;;  %v6660_v5 = vmul.f32 0.7978846, %v6596_v15 }
 0xc1a   : > { %v6536_v43 = vmul.f32 0.044715, %v6472_v10  ;;  %v6471_v16 = vmul.f32 %v6407_v22, %v13512_v37  ;;  %v13531_v61 = vadd.f32 %v6230_v62, %v14475_v32  ;;  %10727 = vtanh.f32 %v6653_v21  ;;  %v6236_v62 = vpop.f32.mrf.mxu1 }
 0xc1b   : > { %v10718_v50 = vpop.eup %10717  ;;  %v6657_v0 = vmul.f32 0.7978846, %v6593_v13  ;;  %10729 = vtanh.f32 %v6655_v12  ;;  %v6595_v44 = vadd.f32 %v6531_v40, %v13489_v33  ;;  %v6662_v45 = vmul.f32 0.7978846, %v6598_v30 }
 0xc1c   : > { %v10720_v52 = vpop.eup %10719  ;;  %v6410_v38 = vmul.f32 %v13531_v61, %v13531_v61  ;;  %v6778_v7 = vadd.f32 1.0, %v10718_v50  ;;  %10731 = vtanh.f32 %v6658_v36  ;;  %v6597_v3 = vadd.f32 %v6533_v55, %v13492_v28 }
 0xc1d   : > { %v6473_v58 = vmul.f32 %v6409_v6, %v13519_v14  ;;  %10733 = vtanh.f32 %v6660_v5  ;;  %v6600_v63 = vadd.f32 %v6536_v43, %v13507_v8  ;;  %v6535_v11 = vmul.f32 0.044715, %v6471_v16  ;;  %v6349_v6 = vpop.f32.mrf.mxu0  ;;  %v6240_v16 = vpop.f32.mrf.mxu1 }
 0xc1e   : > { %v6780_v53 = vadd.f32 1.0, %v10720_v52  ;;  %10735 = vtanh.f32 %v6657_v0  ;;  %v6474_v41 = vmul.f32 %v6410_v38, %v13531_v61  ;;  %v6659_v26 = vmul.f32 0.7978846, %v6595_v44 }
 0xc1f   : > { %10737 = vtanh.f32 %v6662_v45  ;;  %v13541_v1 = vadd.f32 %v6343_v35, %v14476_v24  ;;  %v13544_v2 = vadd.f32 %v6232_v20, %v14477_v60  ;;  %v6842_v29 = vmul.f32 0.5, %v6778_v7 }
 0xc20   : > { %v10722_v59 = vpop.eup %10721  ;;  %v6661_v34 = vmul.f32 0.7978846, %v6597_v3  ;;  %v6537_v39 = vmul.f32 0.044715, %v6473_v58  ;;  %v13547_v17 = vadd.f32 %v6345_v56, %v14478_v4  ;;  %v6664_v15 = vmul.f32 0.7978846, %v6600_v63 }
 0xc21   : > { %14479 = vst [vmem:[#allocation76_spill] sm:$0xff] %v13541_v1  ;;  %v10724_v54 = vpop.eup %10723  ;;  %v6599_v19 = vadd.f32 %v6535_v11, %v13512_v37  ;;  %v6412_v22 = vmul.f32 %v13541_v1, %v13541_v1  ;;  %v6411_v21 = vmul.f32 %v13544_v2, %v13544_v2  ;;  %v6782_v13 = vadd.f32 1.0, %v10722_v59 }
 0xc22   : > { %v6538_v10 = vmul.f32 0.044715, %v6474_v41  ;;  %v6413_v12 = vmul.f32 %v13547_v17, %v13547_v17  ;;  %v13557_v40 = vadd.f32 %v6234_v48, %v14475_v32  ;;  %v13562_v36 = vadd.f32 %v6347_v9, %v14476_v24 }
 0xc23   : > { %v6476_v30 = vmul.f32 %v6412_v22, %v13541_v1  ;;  %v6475_v35 = vmul.f32 %v6411_v21, %v13544_v2  ;;  %v13565_v55 = vadd.f32 %v6236_v62, %v14477_v60  ;;  %v6784_v20 = vadd.f32 1.0, %v10724_v54 }
 0xc24   : > { %14480 = vst [vmem:[#allocation38_spill] sm:$0xff] %v13562_v36  ;;  %v6601_v50 = vadd.f32 %v6537_v39, %v13519_v14  ;;  %v6477_v5 = vmul.f32 %v6413_v12, %v13547_v17  ;;  %v6414_v43 = vmul.f32 %v13557_v40, %v13557_v40  ;;  %v6844_v0 = vmul.f32 0.5, %v6780_v53  ;;  %v6353_v53 = vpop.f32.mrf.mxu0  ;;  %v6242_v39 = vpop.f32.mrf.mxu1 }
 0xc25   : > { %v13571_v52 = vpop.eup %10725  ;;  %v6539_v44 = vmul.f32 0.044715, %v6475_v35  ;;  %v6416_v45 = vmul.f32 %v13562_v36, %v13562_v36  ;;  %v6415_v38 = vmul.f32 %v13565_v55, %v13565_v55  ;;  %10739 = vtanh.f32 %v6659_v26 }
 0xc26   : > { %v6602_v56 = vadd.f32 %v6538_v10, %v13531_v61  ;;  %v6540_v7 = vmul.f32 0.044715, %v6476_v30  ;;  %v6541_v3 = vmul.f32 0.044715, %v6477_v5  ;;  %v6846_v48 = vmul.f32 0.5, %v6782_v13 }
 0xc27   : > { %v13578_v58 = vpop.eup %10727  ;;  %10741 = vtanh.f32 %v6664_v15  ;;  %v6663_v63 = vmul.f32 0.7978846, %v6599_v19  ;;  %v6478_v11 = vmul.f32 %v6414_v43, %v13557_v40  ;;  %v6848_v59 = vmul.f32 0.5, %v6784_v20  ;;  %v6244_v43 = vpop.f32.mrf.mxu1 }
 0xc28   : > { %v13581_v41 = vpop.eup %10729  ;;  %v6665_v9 = vmul.f32 0.7978846, %v6601_v50  ;;  %v6603_v54 = vadd.f32 %v6539_v44, %v13544_v2  ;;  %v6480_v26 = vmul.f32 %v6416_v45, %v13562_v36  ;;  %v13586_v22 = vmul.f32 %v6842_v29, %v13425_v27 }
 0xc29   : > { %v10732_v62 = vpop.eup %10731  ;;  %10743 = vtanh.f32 %v6661_v34  ;;  %v6479_v15 = vmul.f32 %v6415_v38, %v13565_v55  ;;  %v13590_v19 = vadd.f32 %v6349_v6, %v14478_v4  ;;  %v13593_v13 = vmul.f32 %v6844_v0, %v13428_v57  ;;  %v6355_v6 = vpop.f32.mrf.mxu0 }
 0xc2a   : > { %v10734_v21 = vpop.eup %10733  ;;  %v6666_v10 = vmul.f32 0.7978846, %v6602_v56  ;;  %v6604_v12 = vadd.f32 %v6540_v7, %v13541_v1  ;;  %v6605_v30 = vadd.f32 %v6541_v3, %v13547_v17  ;;  %v13600_v27 = vmul.f32 %v6846_v48, %v13447_v47 }
 0xc2b   : > { %v13597_v35 = vpop.eup %10735  ;;  %10745 = vtanh.f32 %v6663_v63  ;;  %v6542_v29 = vmul.f32 0.044715, %v6478_v11  ;;  %v6417_v34 = vmul.f32 %v13590_v19, %v13590_v19  ;;  %v13605_v57 = vmul.f32 %v6848_v59, %v13450_v23  ;;  %v6357_v11 = vpop.f32.mrf.mxu0 }
 0xc2c   : > { %v10738_v20 = vpop.eup %10737  ;;  %10747 = vtanh.f32 %v6665_v9  ;;  %v6667_v50 = vmul.f32 0.7978846, %v6603_v54  ;;  %v6544_v5 = vmul.f32 0.044715, %v6480_v26  ;;  %v13607_v0 = vadd.f32 1.0, %v10732_v62 }
 0xc2d   : > { %v13609_v44 = vadd.f32 1.0, %v10734_v21  ;;  %v6543_v47 = vmul.f32 0.044715, %v6479_v15  ;;  %v6481_v45 = vmul.f32 %v6417_v34, %v13590_v19  ;;  %10749 = vtanh.f32 %v6666_v10 }
 0xc2e   : > { %v13612_v38 = vmul.f32 0.7978846, %v6604_v12  ;;  %v6669_v56 = vmul.f32 0.7978846, %v6605_v30  ;;  %v13615_v7 = vadd.f32 %v6240_v16, %v14475_v32  ;;  %v13617_v23 = vadd.f32 1.0, %v10738_v20  ;;  %v6246_v16 = vpop.f32.mrf.mxu1 }
 0xc2f   : > { %v6606_v3 = vadd.f32 %v6542_v29, %v13557_v40  ;;  %v6545_v48 = vmul.f32 0.044715, %v6481_v45  ;;  %v13621_v63 = vadd.f32 %v6353_v53, %v14476_v24  ;;  %10751 = vtanh.f32 %v6667_v50 }
 0xc30   : > { %14481 = vst [vmem:[#allocation73_spill] sm:$0xff] %v13615_v7  ;;  %v6608_v59 = vadd.f32 %v6544_v5, %v13562_v36  ;;  %v6418_v9 = vmul.f32 %v13615_v7, %v13615_v7  ;;  %v13627_v54 = vadd.f32 %v6242_v39, %v14477_v60  ;;  %v6607_v26 = vadd.f32 %v6543_v47, %v13565_v55 }
 0xc31   : > { %v6609_v62 = vadd.f32 %v6545_v48, %v13590_v19  ;;  %v6420_v15 = vmul.f32 %v13621_v63, %v13621_v63  ;;  %v13634_v53 = vadd.f32 %v6355_v6, %v14478_v4  ;;  %v13640_v12 = vadd.f32 %v6244_v43, %v14475_v32 }
 0xc32   : > { %v6482_v21 = vmul.f32 %v6418_v9, %v13615_v7  ;;  %v6419_v10 = vmul.f32 %v13627_v54, %v13627_v54  ;;  %v13643_v39 = vadd.f32 %v6357_v11, %v14476_v24  ;;  %v13645_v30 = vpop.eup %10739  ;;  %10753 = vtanh.f32 %v6669_v56 }
 0xc33   : > { %v6484_v29 = vmul.f32 %v6420_v15, %v13621_v63  ;;  %v6421_v34 = vmul.f32 %v13634_v53, %v13634_v53  ;;  %v13651_v6 = vadd.f32 %v6246_v16, %v14477_v60  ;;  %v6670_v50 = vmul.f32 0.7978846, %v6606_v3 }
 0xc34   : > { %v10742_v20 = vpop.eup %10741  ;;  %v6546_v5 = vmul.f32 0.044715, %v6482_v21  ;;  %v6483_v32 = vmul.f32 %v6419_v10, %v13627_v54  ;;  %v6422_v24 = vmul.f32 %v13640_v12, %v13640_v12  ;;  %v6672_v43 = vmul.f32 0.7978846, %v6608_v59 }
 0xc35   : > { %v6671_v47 = vmul.f32 0.7978846, %v6607_v26  ;;  %v6485_v45 = vmul.f32 %v6421_v34, %v13634_v53  ;;  %v6424_v56 = vmul.f32 %v13643_v39, %v13643_v39  ;;  %v6673_v11 = vmul.f32 0.7978846, %v6609_v62 }
 0xc36   : > { %v13659_v48 = vpop.eup %10743  ;;  %v6610_v60 = vadd.f32 %v6546_v5, %v13615_v7  ;;  %v6547_v9 = vmul.f32 0.044715, %v6483_v32  ;;  %v6486_v3 = vmul.f32 %v6422_v24, %v13640_v12  ;;  %v6548_v16 = vmul.f32 0.044715, %v6484_v29  ;;  %v6359_v24 = vpop.f32.mrf.mxu0 }
 0xc37   : > { %v6549_v15 = vmul.f32 0.044715, %v6485_v45  ;;  %v6488_v21 = vmul.f32 %v6424_v56, %v13643_v39  ;;  %v6423_v59 = vmul.f32 %v13651_v6, %v13651_v6  ;;  %v6792_v10 = vadd.f32 1.0, %v10742_v20 }
 0xc38   : > { %v10746_v26 = vpop.eup %10745  ;;  %10755 = vtanh.f32 %v6670_v50  ;;  %v6611_v34 = vadd.f32 %v6547_v9, %v13627_v54  ;;  %v6550_v1 = vmul.f32 0.044715, %v6486_v3  ;;  %v6674_v62 = vmul.f32 0.7978846, %v6610_v60 }
 0xc39   : > { %v10748_v36 = vpop.eup %10747  ;;  %10757 = vtanh.f32 %v6672_v43  ;;  %v6613_v5 = vadd.f32 %v6549_v15, %v13634_v53  ;;  %v6552_v32 = vmul.f32 0.044715, %v6488_v21  ;;  %v6487_v56 = vmul.f32 %v6423_v59, %v13651_v6 }
 0xc3a   : > { %10759 = vtanh.f32 %v6671_v47  ;;  %v6675_v29 = vmul.f32 0.7978846, %v6611_v34  ;;  %v6614_v45 = vadd.f32 %v6550_v1, %v13640_v12  ;;  %v10750_v7 = vpop.eup %10749  ;;  %v13671_v20 = vmul.f32 0.5, %v13607_v0 }
 0xc3b   : > { %10761 = vtanh.f32 %v6673_v11  ;;  %v6612_v50 = vadd.f32 %v6548_v16, %v13621_v63  ;;  %v6677_v9 = vmul.f32 0.7978846, %v6613_v5  ;;  %v6616_v43 = vadd.f32 %v6552_v32, %v13643_v39 }
 0xc3c   : > { %10763 = vtanh.f32 %v13612_v38  ;;  %v6551_v60 = vmul.f32 0.044715, %v6487_v56  ;;  %v13677_v47 = vadd.f32 %v6359_v24, %v14478_v4  ;;  %v10752_v3 = vpop.eup %10751  ;;  %v13680_v1 = vmul.f32 0.5, %v13609_v44 }
 0xc3d   : > { %v6854_v15 = vmul.f32 0.5, %v13617_v23  ;;  %10765 = vtanh.f32 %v6674_v62  ;;  %v6678_v0 = vmul.f32 0.7978846, %v6614_v45  ;;  %v6856_v11 = vmul.f32 0.5, %v6792_v10 }
 0xc3e   : > { %10767 = vtanh.f32 %v6675_v29  ;;  %v6615_v16 = vadd.f32 %v6551_v60, %v13651_v6  ;;  %v6425_v38 = vmul.f32 %v13677_v47, %v13677_v47  ;;  %v6676_v21 = vmul.f32 0.7978846, %v6612_v50 }
 0xc3f   : > { %10769 = vtanh.f32 %v6677_v9  ;;  %v6779_v4 = vadd.f32 1.0, %v13571_v52  ;;  %v6783_v59 = vadd.f32 1.0, %v13581_v41  ;;  %v10754_v34 = vpop.eup %10753  ;;  %v6680_v44 = vmul.f32 0.7978846, %v6616_v43 }
 0xc40   : > { %v6679_v5 = vmul.f32 0.7978846, %v6615_v16  ;;  %v6489_v23 = vmul.f32 %v6425_v38, %v13677_v47  ;;  %v6781_v62 = vadd.f32 1.0, %v13578_v58  ;;  %10771 = vtanh.f32 %v6678_v0 }
 0xc41   : > { %v6843_v10 = vmul.f32 0.5, %v6779_v4  ;;  %v6847_v32 = vmul.f32 0.5, %v6783_v59  ;;  %v6785_v24 = vadd.f32 1.0, %v13597_v35  ;;  %v13692_v29 = vmul.f32 %v6854_v15, %v13495_v51 }
 0xc42   : > { %10773 = vtanh.f32 %v6679_v5  ;;  %v6553_v45 = vmul.f32 0.044715, %v6489_v23  ;;  %v6845_v52 = vmul.f32 0.5, %v6781_v62  ;;  %v6787_v43 = vadd.f32 1.0, %v13645_v30 }
 0xc43   : > { %10775 = vtanh.f32 %v6676_v21  ;;  %v6907_v41 = vmul.f32 %v6843_v10, %v13435_v42  ;;  %v6911_v56 = vmul.f32 %v6847_v32, %v13458_v25  ;;  %v6849_v50 = vmul.f32 0.5, %v6785_v24 }
 0xc44   : > { %10777 = vtanh.f32 %v6680_v44  ;;  %v6617_v58 = vadd.f32 %v6553_v45, %v13677_v47  ;;  %v6909_v9 = vmul.f32 %v6845_v52, %v13438_v49  ;;  %v6791_v15 = vadd.f32 1.0, %v10746_v26 }
 0xc45   : > { %v10756_v35 = vpop.eup %10755  ;;  %v6955_v60 = vpack.c.bf16 %v6911_v56, %v6907_v41  ;;  %v6913_v51 = vmul.f32 %v6849_v50, %v13461_v18  ;;  %v6789_v0 = vadd.f32 1.0, %v13659_v48  ;;  %v6954_v42 = vpack.c.bf16 %v13600_v27, %v13586_v22 }
 0xc46   : > { %v10758_v16 = vpop.eup %10757  ;;  %v6681_v38 = vmul.f32 0.7978846, %v6617_v58  ;;  %v6851_v25 = vmul.f32 0.5, %v6787_v43  ;;  %v6793_v21 = vadd.f32 1.0, %v10748_v36  ;;  %v6920_v59 = vmul.f32 %v6856_v11, %v13507_v8 }
 0xc47   : > { %v10760_v4 = vpop.eup %10759  ;;  %7438 = vmatprep.mubr.bf16.mxu1 %v6955_v60  ;;  %v6957_v49 = vpack.c.bf16 %v6913_v51, %v6909_v9  ;;  %v6855_v30 = vmul.f32 0.5, %v6791_v15  ;;  %v6853_v44 = vmul.f32 0.5, %v6789_v0  ;;  %v6794_v23 = vadd.f32 1.0, %v10750_v7 }
 0xc48   : > { %v10762_v5 = vpop.eup %10761  ;;  %10779 = vtanh.f32 %v6681_v38  ;;  %7439 = vmatmul.mubr.bf16.gmra.mxu1 %v6954_v42  ;;  %v6956_v18 = vpack.c.bf16 %v13605_v57, %v13593_v13  ;;  %v6857_v48 = vmul.f32 0.5, %v6793_v21  ;;  %v6798_v62 = vadd.f32 1.0, %v10756_v35 }
 0xc49   : > { %v10764_v26 = vpop.eup %10763  ;;  %7551 = vmatprep.mubr.bf16.mxu0 %v6957_v49  ;;  %v6915_v36 = vmul.f32 %v6851_v25, %v13489_v33  ;;  %v6919_v22 = vmul.f32 %v6855_v30, %v13512_v37  ;;  %v6795_v8 = vadd.f32 1.0, %v10752_v3  ;;  %v6917_v11 = vmul.f32 %v6853_v44, %v13492_v28  ;;  %v14482_v30 = vld [vmem:[#allocation38_spill] sm:$0xff] }
 0xc4a   : > { %v10766_v27 = vpop.eup %10765  ;;  %7552 = vmatmul.mubr.bf16.gmra.mxu0 %v6956_v18  ;;  %v6921_v7 = vmul.f32 %v6857_v48, %v13519_v14  ;;  %v6799_v10 = vadd.f32 1.0, %v10760_v4  ;;  %v6797_v32 = vadd.f32 1.0, %v10754_v34  ;;  %v6800_v45 = vadd.f32 1.0, %v10758_v16  ;;  %v14483_v48 = vld [vmem:[#allocation76_spill] sm:$0xff] }
 0xc4b   : > { %v10768_v24 = vpop.eup %10767  ;;  %v6959_v13 = vpack.c.bf16 %v6919_v22, %v6915_v36  ;;  %v6859_v57 = vmul.f32 0.5, %v6795_v8  ;;  %v6801_v52 = vadd.f32 1.0, %v10762_v5  ;;  %v6914_v33 = vmul.f32 %v13671_v20, %v13474_v46 }
 0xc4c   : > { %v10770_v41 = vpop.eup %10769  ;;  %v6961_v56 = vpack.c.bf16 %v6921_v7, %v6917_v11  ;;  %v6863_v37 = vmul.f32 0.5, %v6799_v10  ;;  %v6916_v3 = vmul.f32 %v13680_v1, %v13482_v31  ;;  %v6796_v50 = vadd.f32 1.0, %v10764_v26 }
 0xc4d   : > { %v6862_v28 = vmul.f32 0.5, %v6798_v62  ;;  %7448 = vmatprep.mubr.bf16.mxu1 %v6959_v13  ;;  %v6861_v14 = vmul.f32 0.5, %v6797_v32  ;;  %v10772_v58 = vpop.eup %10771  ;;  %v6958_v34 = vpack.c.bf16 %v13692_v29, %v6914_v33  ;;  %v6923_v9 = vmul.f32 %v6859_v57, %v13544_v2 }
 0xc4e   : > { %7561 = vmatprep.mubr.bf16.mxu0 %v6961_v56  ;;  %v6927_v43 = vmul.f32 %v6863_v37, %v13565_v55  ;;  %v6865_v35 = vmul.f32 0.5, %v6801_v52  ;;  %v6858_v46 = vmul.f32 0.5, %v6794_v23  ;;  %v6864_v20 = vmul.f32 0.5, %v6800_v45  ;;  %v14484_v45 = vld [vmem:[#allocation73_spill] sm:$0xff]  ;;  %v14486_v37 = vld [vmem:[#allocation39_spill] sm:$0xff] }
 0xc4f   : > { %v10774_v60 = vpop.eup %10773  ;;  %v6960_v51 = vpack.c.bf16 %v6920_v59, %v6916_v3  ;;  %v6803_v15 = vadd.f32 1.0, %v10768_v24  ;;  %v6925_v1 = vmul.f32 %v6861_v14, %v13547_v17  ;;  %v6860_v29 = vmul.f32 0.5, %v6796_v50 }
 0xc50   : > { %v10776_v0 = vpop.eup %10775  ;;  %7449 = vmatmul.mubr.bf16.gmra.mxu1 %v6958_v34  ;;  %v6963_v31 = vpack.c.bf16 %v6927_v43, %v6923_v9  ;;  %v6929_v16 = vmul.f32 %v6865_v35, %v13590_v19  ;;  %v6807_v38 = vadd.f32 1.0, %v10774_v60  ;;  %v6806_v25 = vadd.f32 1.0, %v10772_v58 }
 0xc51   : > { %v10778_v42 = vpop.eup %10777  ;;  %v6867_v2 = vmul.f32 0.5, %v6803_v15  ;;  %v6926_v55 = vmul.f32 %v6862_v28, %v13557_v40  ;;  %v6805_v59 = vadd.f32 1.0, %v10770_v41  ;;  %v6922_v49 = vmul.f32 %v6858_v46, %v13531_v61 }
 0xc52   : > { %7562 = vmatmul.mubr.bf16.gmra.mxu0 %v6960_v51  ;;  %7458 = vmatprep.mubr.bf16.mxu1 %v6963_v31  ;;  %v6965_v21 = vpack.c.bf16 %v6929_v16, %v6925_v1  ;;  %v6871_v4 = vmul.f32 0.5, %v6807_v38  ;;  %v6928_v44 = vmul.f32 %v6864_v20, %v14482_v30  ;;  %v6802_v5 = vadd.f32 1.0, %v10766_v27  ;;  %v14488_v51 = vld [vmem:[#allocation42_spill] sm:$0xff] }
 0xc53   : > { %v6808_v17 = vadd.f32 1.0, %v10778_v42  ;;  %v6931_v19 = vmul.f32 %v6867_v2, %v13627_v54  ;;  %v6924_v26 = vmul.f32 %v6860_v29, %v14483_v48  ;;  %v6804_v40 = vadd.f32 1.0, %v10776_v0  ;;  %v14489_v0 = vld [vmem:[#allocation41_spill] sm:$0xff] }
 0xc54   : > { %7571 = vmatprep.mubr.bf16.mxu0 %v6965_v21  ;;  %v6935_v23 = vmul.f32 %v6871_v4, %v13651_v6  ;;  %v6870_v62 = vmul.f32 0.5, %v6806_v25  ;;  %v6962_v36 = vpack.c.bf16 %v6926_v55, %v6922_v49  ;;  %v6869_v11 = vmul.f32 0.5, %v6805_v59  ;;  %v14490_v4 = vld [vmem:[#allocation44_spill] sm:$0xff]  ;;  %v14491_v49 = vld [vmem:[#allocation43_spill] sm:$0xff] }
 0xc55   : > { %v10780_v18 = vpop.eup %10779  ;;  %v6866_v7 = vmul.f32 0.5, %v6802_v5  ;;  %v6872_v61 = vmul.f32 0.5, %v6808_v17  ;;  %v6964_v10 = vpack.c.bf16 %v6928_v44, %v6924_v26  ;;  %v6868_v32 = vmul.f32 0.5, %v6804_v40 }
 0xc56   : > { %v6967_v22 = vpack.c.bf16 %v6935_v23, %v6931_v19  ;;  %v6809_v8 = vadd.f32 1.0, %v10780_v18  ;;  %v6934_v54 = vmul.f32 %v6870_v62, %v13640_v12  ;;  %v6933_v6 = vmul.f32 %v6869_v11, %v13634_v53  ;;  %v7034_v12 = vld [vmem:[%s14485_s15] sm:$0x3]  ;;  %s11047_s15 = scalar_lea.vmem %s11046_s17, 4096 }
 0xc57   : > { %v6930_v13 = vmul.f32 %v6866_v7, %v14484_v45  ;;  %v6936_v57 = vmul.f32 %v6872_v61, %v13643_v39  ;;  %v6932_v41 = vmul.f32 %v6868_v32, %v13621_v63  ;;  %v13735_v53 = vrot.slane %v7034_v12, %v14486_v37  ;;  %v14492_v62 = vld [vmem:[#allocation49_spill] sm:$0xff]  ;;  %v14494_v45 = vld [vmem:[#allocation47_spill] sm:$0xff]  ;;  %p11049_p2 = scmp.lt.s32.totalorder %s11047_s15, %s11041_s26 }
 0xc58   : > { %7459 = vmatmul.mubr.bf16.gmra.mxu1 %v6962_v36  ;;  %v6873_v27 = vmul.f32 0.5, %v6809_v8 }
 0xc59   : > { %7468 = vmatprep.mubr.bf16.mxu1 %v6967_v22  ;;  %v6966_v33 = vpack.c.bf16 %v6934_v54, %v6930_v13  ;;  %v6968_v56 = vpack.c.bf16 %v6936_v57, %v6932_v41  ;;  %v14493_v22 = vld [vmem:[#allocation45_spill] sm:$0xff]  ;;  %v14495_v57 = vld [vmem:[#allocation46_spill] sm:$0xff]  ;;  %p11050_p9 = por %p11049_p2, %p11048_p8 }
 0xc5a   : > { %7572 = vmatmul.mubr.bf16.gmra.mxu0 %v6964_v10  ;;  %v6937_v24 = vmul.f32 %v6873_v27, %v13677_v47  ;;  %v14487_v47 = vld [vmem:[#allocation40_spill] sm:$0xff] }
 0xc5b   : > { %v13738_v3 = vrot.slane %v7034_v12, %v14487_v47  ;;  %p11051_p10 = pnand %p11050_p9, %p11044_p3 }
 0xc5c   : > { %v6969_v52 = vpack.c.bf16 %v6937_v24, %v6933_v6 }
 0xc5e   : > { %7581 = vmatprep.mubr.bf16.mxu0 %v6969_v52 }
 0xc60   : > { %7469 = vmatmul.mubr.bf16.gmra.mxu1 %v6966_v33 }
 0xc62   : > { %7582 = vmatmul.mubr.bf16.gmra.mxu0 %v6968_v56 }
 0xc93   : > { %v7400_v50 = vpop.f32.mrf.mxu1 }
 0xc94   : > { %v7401_v39 = vadd.f32 %v7400_v50, %v13735_v53 }
 0xc95   : > { %v7402_v28 = vpop.f32.mrf.mxu1 }
 0xc96   : > { %v7513_v63 = vpop.f32.mrf.mxu0  ;;  %v7403_v14 = vadd.f32 %v7402_v28, %v13738_v3 }
 0xc97   : > { %v7514_v58 = vadd.f32 %v7513_v63, %v7401_v39  ;;  %v7404_v34 = vpop.f32.mrf.mxu1 }
 0xc98   : > { %v7515_v9 = vpop.f32.mrf.mxu0  ;;  %v7405_v43 = vadd.f32 %v7404_v34, %v13735_v53 }
 0xc99   : > { %v7516_v35 = vadd.f32 %v7515_v9, %v7403_v14  ;;  %v7406_v60 = vpop.f32.mrf.mxu1  ;;  %v13745_v15 = vadd.f32 %v7514_v58, %v14488_v51  ;;  %v14496_v58 = vld [vmem:[#allocation53_spill] sm:$0xff]  ;;  %v14497_v9 = vld [vmem:[#allocation50_spill] sm:$0xff] }
 0xc9a   : > { %v7517_v46 = vpop.f32.mrf.mxu0  ;;  %v7407_v20 = vadd.f32 %v7406_v60, %v13738_v3 }
 0xc9b   : > { %v13748_v31 = vadd.f32 %v7516_v35, %v14489_v0  ;;  %v7518_v1 = vadd.f32 %v7517_v46, %v7405_v43  ;;  %v7410_v16 = vpop.f32.mrf.mxu1 }
 0xc9c   : > { %v7519_v38 = vpop.f32.mrf.mxu0  ;;  %v7411_v42 = vadd.f32 %v7410_v16, %v13735_v53 }
 0xc9d   : > { %v7520_v29 = vadd.f32 %v7519_v38, %v7407_v20  ;;  %v7412_v25 = vpop.f32.mrf.mxu1  ;;  %v7624_v2 = vadd.f32 %v13748_v31, %v13745_v15  ;;  %v13755_v59 = vadd.f32 %v7518_v1, %v14490_v4 }
 0xc9e   : > { %v7523_v55 = vpop.f32.mrf.mxu0  ;;  %v7413_v21 = vadd.f32 %v7412_v25, %v13738_v3  ;;  %v14499_v25 = vld [vmem:[#allocation48_spill] sm:$0xff] }
 0xc9f   : > { %v13758_v30 = vadd.f32 %v7520_v29, %v14491_v49  ;;  %v7524_v44 = vadd.f32 %v7523_v55, %v7411_v42  ;;  %7625 = vadd.xlane.f32.xlu0 %v7624_v2  ;;  %v7414_v5 = vpop.f32.mrf.mxu1  ;;  %v14498_v42 = vld [vmem:[#allocation51_spill] sm:$0xff] }
 0xca0   : > { %v7525_v17 = vpop.f32.mrf.mxu0  ;;  %v7415_v19 = vadd.f32 %v7414_v5, %v13735_v53 }
 0xca1   : > { %v7526_v23 = vadd.f32 %v7525_v17, %v7413_v21  ;;  %v7416_v18 = vpop.f32.mrf.mxu1  ;;  %v7627_v48 = vadd.f32 %v13758_v30, %v13755_v59  ;;  %v13765_v36 = vadd.f32 %v7524_v44, %v14492_v62 }
 0xca2   : > { %v7527_v26 = vpop.f32.mrf.mxu0  ;;  %v7417_v40 = vadd.f32 %v7416_v18, %v13738_v3  ;;  %v14500_v18 = vld [vmem:[#allocation56_spill] sm:$0xff] }
 0xca3   : > { %v13768_v8 = vadd.f32 %v7526_v23, %v14493_v22  ;;  %v7528_v11 = vadd.f32 %v7527_v26, %v7415_v19  ;;  %7628 = vadd.xlane.f32.xlu1 %v7627_v48  ;;  %v7420_v7 = vpop.f32.mrf.mxu1  ;;  %v14501_v26 = vld [vmem:[#allocation54_spill] sm:$0xff] }
 0xca4   : > { %v7529_v61 = vpop.f32.mrf.mxu0  ;;  %v7421_v10 = vadd.f32 %v7420_v7, %v13735_v53 }
 0xca5   : > { %v7530_v27 = vadd.f32 %v7529_v61, %v7417_v40  ;;  %v7422_v32 = vpop.f32.mrf.mxu1  ;;  %v7630_v54 = vadd.f32 %v13768_v8, %v13765_v36  ;;  %v13775_v13 = vadd.f32 %v7528_v11, %v14494_v45  ;;  %v14502_v61 = vld [vmem:[#allocation55_spill] sm:$0xff] }
 0xca6   : > { %v7533_v6 = vpop.f32.mrf.mxu0  ;;  %v7423_v24 = vadd.f32 %v7422_v32, %v13738_v3 }
 0xca7   : > { %v13778_v52 = vadd.f32 %v7530_v27, %v14495_v57  ;;  %v7534_v41 = vadd.f32 %v7533_v6, %v7421_v10  ;;  %7631 = vadd.xlane.f32.xlu0 %v7630_v54  ;;  %v7424_v33 = vpop.f32.mrf.mxu1  ;;  %v14503_v27 = vld [vmem:[#allocation52_spill] sm:$0xff] }
 0xca8   : > { %v7535_v56 = vpop.f32.mrf.mxu0  ;;  %v7425_v12 = vadd.f32 %v7424_v33, %v13735_v53 }
 0xca9   : > { %v7536_v50 = vadd.f32 %v7535_v56, %v7423_v24  ;;  %v7426_v39 = vpop.f32.mrf.mxu1  ;;  %v7633_v28 = vadd.f32 %v13778_v52, %v13775_v13  ;;  %v13785_v34 = vadd.f32 %v7534_v41, %v14496_v58 }
 0xcaa   : > { %v7537_v63 = vpop.f32.mrf.mxu0  ;;  %v7427_v14 = vadd.f32 %v7426_v39, %v13738_v3 }
 0xcab   : > { %v13788_v43 = vadd.f32 %v7536_v50, %v14497_v9  ;;  %v7538_v35 = vadd.f32 %v7537_v63, %v7425_v12  ;;  %7634 = vadd.xlane.f32.xlu1 %v7633_v28  ;;  %v7430_v60 = vpop.f32.mrf.mxu1  ;;  %v14505_v9 = vld [vmem:[#allocation57_spill] sm:$0xff] }
 0xcac   : > { %v7539_v46 = vpop.f32.mrf.mxu0  ;;  %v7431_v20 = vadd.f32 %v7430_v60, %v13735_v53 }
 0xcad   : > { %v7540_v51 = vadd.f32 %v7539_v46, %v7427_v14  ;;  %v7432_v0 = vpop.f32.mrf.mxu1  ;;  %v7636_v1 = vadd.f32 %v13788_v43, %v13785_v34  ;;  %v13795_v29 = vadd.f32 %v7538_v35, %v14498_v42  ;;  %v14504_v14 = vld [vmem:[#allocation58_spill] sm:$0xff] }
 0xcae   : > { %v7543_v16 = vpop.f32.mrf.mxu0  ;;  %v7433_v38 = vadd.f32 %v7432_v0, %v13738_v3 }
 0xcaf   : > { %v13798_v2 = vadd.f32 %v7540_v51, %v14499_v25  ;;  %v7544_v55 = vadd.f32 %v7543_v16, %v7431_v20  ;;  %7637 = vadd.xlane.f32.xlu0 %v7636_v1  ;;  %v7434_v21 = vpop.f32.mrf.mxu1  ;;  %v14506_v25 = vld [vmem:[#allocation60_spill] sm:$0xff] }
 0xcb0   : > { %v7545_v4 = vpop.f32.mrf.mxu0  ;;  %v7435_v49 = vadd.f32 %v7434_v21, %v13735_v53  ;;  %v14507_v21 = vld [vmem:[#allocation59_spill] sm:$0xff] }
 0xcb1   : > { %v7546_v44 = vadd.f32 %v7545_v4, %v7433_v38  ;;  %v7436_v5 = vpop.f32.mrf.mxu1  ;;  %v7639_v17 = vadd.f32 %v13798_v2, %v13795_v29  ;;  %v13805_v48 = vadd.f32 %v7544_v55, %v14500_v18 }
 0xcb2   : > { %v7547_v19 = vpop.f32.mrf.mxu0  ;;  %v7437_v23 = vadd.f32 %v7436_v5, %v13738_v3 }
 0xcb3   : > { %v13808_v40 = vadd.f32 %v7546_v44, %v14501_v26  ;;  %v7548_v62 = vadd.f32 %v7547_v19, %v7435_v49  ;;  %7640 = vadd.xlane.f32.xlu1 %v7639_v17 }
 0xcb4   : > { %v7549_v22 = vpop.f32.mrf.mxu0 }
 0xcb5   : > { %v7550_v11 = vadd.f32 %v7549_v22, %v7437_v23  ;;  %v7642_v7 = vadd.f32 %v13808_v40, %v13805_v48  ;;  %v13813_v10 = vadd.f32 %v7548_v62, %v14502_v61  ;;  %v14508_v22 = vld [vmem:[#allocation62_spill] sm:$0xff] }
 0xcb7   : > { %v13816_v32 = vadd.f32 %v7550_v11, %v14503_v27  ;;  %7643 = vadd.xlane.f32.xlu0 %v7642_v7  ;;  %v14509_v7 = vld [vmem:[#allocation61_spill] sm:$0xff] }
 0xcb9   : > { %v7645_v54 = vadd.f32 %v13816_v32, %v13813_v10 }
 0xcbb   : > { %7646 = vadd.xlane.f32.xlu1 %v7645_v54 }
 0xd08   : > { %v7440_v6 = vpop.f32.mrf.mxu1 }
 0xd09   : > { %v7441_v24 = vadd.f32 %v7440_v6, %v13735_v53 }
 0xd0a   : > { %v7553_v45 = vpop.f32.mrf.mxu0  ;;  %v7442_v57 = vpop.f32.mrf.mxu1 }
 0xd0b   : > { %v7554_v41 = vadd.f32 %v7553_v45, %v7441_v24  ;;  %v7443_v33 = vadd.f32 %v7442_v57, %v13738_v3 }
 0xd0c   : > { %v7555_v56 = vpop.f32.mrf.mxu0  ;;  %v7444_v12 = vpop.f32.mrf.mxu1 }
 0xd0d   : > { %v7556_v50 = vadd.f32 %v7555_v56, %v7443_v33  ;;  %v7445_v39 = vadd.f32 %v7444_v12, %v13735_v53  ;;  %v13824_v58 = vadd.f32 %v7554_v41, %v14504_v14  ;;  %v14510_v12 = vld [vmem:[#allocation64_spill] sm:$0xff] }
 0xd0e   : > { %v7557_v28 = vpop.f32.mrf.mxu0  ;;  %v7446_v63 = vpop.f32.mrf.mxu1 }
 0xd0f   : > { %v13827_v35 = vadd.f32 %v7556_v50, %v14505_v9  ;;  %v7558_v60 = vadd.f32 %v7557_v28, %v7445_v39  ;;  %v7447_v46 = vadd.f32 %v7446_v63, %v13738_v3  ;;  %v14511_v39 = vld [vmem:[#allocation63_spill] sm:$0xff] }
 0xd10   : > { %v7559_v20 = vpop.f32.mrf.mxu0  ;;  %v7450_v51 = vpop.f32.mrf.mxu1 }
 0xd11   : > { %v7560_v0 = vadd.f32 %v7559_v20, %v7447_v46  ;;  %v7451_v1 = vadd.f32 %v7450_v51, %v13735_v53  ;;  %v7648_v16 = vadd.f32 %v13827_v35, %v13824_v58  ;;  %v13834_v55 = vadd.f32 %v7558_v60, %v14506_v25 }
 0xd12   : > { %v7563_v38 = vpop.f32.mrf.mxu0  ;;  %v7452_v42 = vpop.f32.mrf.mxu1 }
 0xd13   : > { %v13837_v4 = vadd.f32 %v7560_v0, %v14507_v21  ;;  %v7564_v49 = vadd.f32 %v7563_v38, %v7451_v1  ;;  %v7453_v44 = vadd.f32 %v7452_v42, %v13738_v3  ;;  %7649 = vadd.xlane.f32.xlu0 %v7648_v16  ;;  %v14512_v16 = vld [vmem:[#allocation67_spill] sm:$0xff]  ;;  %v14513_v42 = vld [vmem:[#allocation65_spill] sm:$0xff] }
 0xd14   : > { %v7565_v5 = vpop.f32.mrf.mxu0  ;;  %v7454_v17 = vpop.f32.mrf.mxu1 }
 0xd15   : > { %v7566_v19 = vadd.f32 %v7565_v5, %v7453_v44  ;;  %v7455_v23 = vadd.f32 %v7454_v17, %v13735_v53  ;;  %v7651_v18 = vadd.f32 %v13837_v4, %v13834_v55  ;;  %v13844_v11 = vadd.f32 %v7564_v49, %v14508_v22 }
 0xd16   : > { %v7567_v26 = vpop.f32.mrf.mxu0  ;;  %v7456_v62 = vpop.f32.mrf.mxu1 }
 0xd17   : > { %v13847_v61 = vadd.f32 %v7566_v19, %v14509_v7  ;;  %v7568_v27 = vadd.f32 %v7567_v26, %v7455_v23  ;;  %v7457_v54 = vadd.f32 %v7456_v62, %v13738_v3  ;;  %7652 = vadd.xlane.f32.xlu1 %v7651_v18  ;;  %v14514_v62 = vld [vmem:[#allocation68_spill] sm:$0xff]  ;;  %v14515_v7 = vld [vmem:[#allocation66_spill] sm:$0xff] }
 0xd18   : > { %v7569_v6 = vpop.f32.mrf.mxu0  ;;  %v7460_v24 = vpop.f32.mrf.mxu1 }
 0xd19   : > { %v7570_v45 = vadd.f32 %v7569_v6, %v7457_v54  ;;  %v7461_v57 = vadd.f32 %v7460_v24, %v13735_v53  ;;  %v7654_v41 = vadd.f32 %v13847_v61, %v13844_v11  ;;  %v13854_v50 = vadd.f32 %v7568_v27, %v14510_v12 }
 0xd1a   : > { %v7573_v33 = vpop.f32.mrf.mxu0  ;;  %v7462_v56 = vpop.f32.mrf.mxu1 }
 0xd1b   : > { %v13857_v28 = vadd.f32 %v7570_v45, %v14511_v39  ;;  %v7574_v63 = vadd.f32 %v7573_v33, %v7461_v57  ;;  %v7463_v14 = vadd.f32 %v7462_v56, %v13738_v3  ;;  %7655 = vadd.xlane.f32.xlu0 %v7654_v41  ;;  %v14516_v39 = vld [vmem:[#allocation71_spill] sm:$0xff] }
 0xd1c   : > { %v7575_v9 = vpop.f32.mrf.mxu0  ;;  %v7464_v60 = vpop.f32.mrf.mxu1 }
 0xd1d   : > { %v7576_v46 = vadd.f32 %v7575_v9, %v7463_v14  ;;  %v7465_v20 = vadd.f32 %v7464_v60, %v13735_v53  ;;  %v7657_v51 = vadd.f32 %v13857_v28, %v13854_v50  ;;  %v13864_v38 = vadd.f32 %v7574_v63, %v14512_v16  ;;  %v14517_v14 = vld [vmem:[#allocation69_spill] sm:$0xff] }
 0xd1e   : > { %v7577_v0 = vpop.f32.mrf.mxu0  ;;  %v7466_v1 = vpop.f32.mrf.mxu1 }
 0xd1f   : > { %v13867_v25 = vadd.f32 %v7576_v46, %v14513_v42  ;;  %v7578_v21 = vadd.f32 %v7577_v0, %v7465_v20  ;;  %v7467_v49 = vadd.f32 %v7466_v1, %v13738_v3  ;;  %7658 = vadd.xlane.f32.xlu1 %v7657_v51 }
 0xd20   : > { %v7579_v44 = vpop.f32.mrf.mxu0  ;;  %v7470_v5 = vpop.f32.mrf.mxu1 }
 0xd21   : > { %v7580_v17 = vadd.f32 %v7579_v44, %v7467_v49  ;;  %v7471_v19 = vadd.f32 %v7470_v5, %v13735_v53  ;;  %v7660_v23 = vadd.f32 %v13867_v25, %v13864_v38  ;;  %v13874_v22 = vadd.f32 %v7578_v21, %v14514_v62  ;;  %v14518_v21 = vld [vmem:[#allocation72_spill] sm:$0xff]  ;;  %v14519_v44 = vld [vmem:[#allocation70_spill] sm:$0xff] }
 0xd22   : > { %v7583_v18 = vpop.f32.mrf.mxu0  ;;  %v7472_v26 = vpop.f32.mrf.mxu1 }
 0xd23   : > { %v13877_v27 = vadd.f32 %v7580_v17, %v14515_v7  ;;  %v7584_v54 = vadd.f32 %v7583_v18, %v7471_v19  ;;  %v7473_v6 = vadd.f32 %v7472_v26, %v13738_v3  ;;  %7661 = vadd.xlane.f32.xlu0 %v7660_v23 }
 0xd24   : > { %v7585_v24 = vpop.f32.mrf.mxu0  ;;  %v7474_v45 = vpop.f32.mrf.mxu1 }
 0xd25   : > { %v7586_v57 = vadd.f32 %v7585_v24, %v7473_v6  ;;  %v7475_v41 = vadd.f32 %v7474_v45, %v13735_v53  ;;  %v7663_v33 = vadd.f32 %v13877_v27, %v13874_v22  ;;  %v13884_v63 = vadd.f32 %v7584_v54, %v14516_v39 }
 0xd26   : > { %v7587_v56 = vpop.f32.mrf.mxu0  ;;  %v7476_v12 = vpop.f32.mrf.mxu1 }
 0xd27   : > { %v13887_v9 = vadd.f32 %v7586_v57, %v14517_v14  ;;  %v7588_v60 = vadd.f32 %v7587_v56, %v7475_v41  ;;  %v7477_v20 = vadd.f32 %v7476_v12, %v13738_v3  ;;  %7664 = vadd.xlane.f32.xlu1 %v7663_v33 }
 0xd28   : > { %v7626_v46 = vpop.xlane.xlu0 %7625  ;;  %v7589_v51 = vpop.f32.mrf.mxu0 }
 0xd29   : > { %v7672_v0 = vmul.f32 0.00390625, %v7626_v46  ;;  %v7590_v1 = vadd.f32 %v7589_v51, %v7477_v20  ;;  %v7666_v53 = vadd.f32 %v13887_v9, %v13884_v63  ;;  %v13899_v49 = vadd.f32 %v7588_v60, %v14518_v21 }
 0xd2b   : > { %v13893_v16 = vsub.f32 %v13745_v15, %v7672_v0  ;;  %v13896_v42 = vsub.f32 %v13748_v31, %v7672_v0  ;;  %v13902_v5 = vadd.f32 %v7590_v1, %v14519_v44  ;;  %7667 = vadd.xlane.f32.xlu0 %v7666_v53 }
 0xd2c   : > { %v7629_v3 = vpop.xlane.xlu1 %7628 }
 0xd2d   : > { %v7720_v17 = vmul.f32 %v13893_v16, %v13893_v16  ;;  %v7721_v19 = vmul.f32 %v13896_v42, %v13896_v42  ;;  %v7673_v23 = vmul.f32 0.00390625, %v7629_v3  ;;  %v7669_v15 = vadd.f32 %v13902_v5, %v13899_v49 }
 0xd2f   : > { %v13911_v31 = vsub.f32 %v13755_v59, %v7673_v23  ;;  %v13914_v18 = vsub.f32 %v13758_v30, %v7673_v23  ;;  %v7752_v26 = vadd.f32 %v7721_v19, %v7720_v17  ;;  %7670 = vadd.xlane.f32.xlu1 %v7669_v15 }
 0xd30   : > { %v7632_v62 = vpop.xlane.xlu0 %7631 }
 0xd31   : > { %v7722_v7 = vmul.f32 %v13911_v31, %v13911_v31  ;;  %v7723_v54 = vmul.f32 %v13914_v18, %v13914_v18  ;;  %v7674_v6 = vmul.f32 0.00390625, %v7632_v62  ;;  %7753 = vadd.xlane.f32.xlu0 %v7752_v26 }
 0xd33   : > { %v13921_v24 = vsub.f32 %v13765_v36, %v7674_v6  ;;  %v13924_v59 = vsub.f32 %v13768_v8, %v7674_v6  ;;  %v7755_v45 = vadd.f32 %v7723_v54, %v7722_v7 }
 0xd34   : > { %v7635_v30 = vpop.xlane.xlu1 %7634 }
 0xd35   : > { %v7724_v57 = vmul.f32 %v13921_v24, %v13921_v24  ;;  %v7725_v41 = vmul.f32 %v13924_v59, %v13924_v59  ;;  %v7675_v33 = vmul.f32 0.00390625, %v7635_v30  ;;  %7756 = vadd.xlane.f32.xlu1 %v7755_v45 }
 0xd37   : > { %v13931_v56 = vsub.f32 %v13775_v13, %v7675_v33  ;;  %v13934_v12 = vsub.f32 %v13778_v52, %v7675_v33  ;;  %v7758_v36 = vadd.f32 %v7725_v41, %v7724_v57 }
 0xd38   : > { %v7638_v39 = vpop.xlane.xlu0 %7637 }
 0xd39   : > { %v7726_v8 = vmul.f32 %v13931_v56, %v13931_v56  ;;  %v7727_v14 = vmul.f32 %v13934_v12, %v13934_v12  ;;  %v7676_v60 = vmul.f32 0.00390625, %v7638_v39  ;;  %7759 = vadd.xlane.f32.xlu0 %v7758_v36 }
 0xd3b   : > { %v13941_v46 = vsub.f32 %v13785_v34, %v7676_v60  ;;  %v13944_v20 = vsub.f32 %v13788_v43, %v7676_v60  ;;  %v7761_v13 = vadd.f32 %v7727_v14, %v7726_v8 }
 0xd3c   : > { %v7641_v51 = vpop.xlane.xlu1 %7640 }
 0xd3d   : > { %v7728_v52 = vmul.f32 %v13941_v46, %v13941_v46  ;;  %v7729_v0 = vmul.f32 %v13944_v20, %v13944_v20  ;;  %v7677_v1 = vmul.f32 0.00390625, %v7641_v51  ;;  %7762 = vadd.xlane.f32.xlu1 %v7761_v13 }
 0xd3f   : > { %v13951_v53 = vsub.f32 %v13795_v29, %v7677_v1  ;;  %v13954_v21 = vsub.f32 %v13798_v2, %v7677_v1  ;;  %v7764_v34 = vadd.f32 %v7729_v0, %v7728_v52 }
 0xd40   : > { %v7644_v44 = vpop.xlane.xlu0 %7643 }
 0xd41   : > { %v7730_v43 = vmul.f32 %v13951_v53, %v13951_v53  ;;  %v7731_v3 = vmul.f32 %v13954_v21, %v13954_v21  ;;  %v7678_v17 = vmul.f32 0.00390625, %v7644_v44  ;;  %7765 = vadd.xlane.f32.xlu0 %v7764_v34 }
 0xd43   : > { %v13961_v19 = vsub.f32 %v13805_v48, %v7678_v17  ;;  %v13964_v23 = vsub.f32 %v13808_v40, %v7678_v17  ;;  %v7767_v29 = vadd.f32 %v7731_v3, %v7730_v43 }
 0xd44   : > { %v7647_v15 = vpop.xlane.xlu1 %7646 }
 0xd45   : > { %v7732_v2 = vmul.f32 %v13961_v19, %v13961_v19  ;;  %v7733_v26 = vmul.f32 %v13964_v23, %v13964_v23  ;;  %v7679_v62 = vmul.f32 0.00390625, %v7647_v15  ;;  %7768 = vadd.xlane.f32.xlu1 %v7767_v29 }
 0xd47   : > { %v13971_v7 = vsub.f32 %v13813_v10, %v7679_v62  ;;  %v13974_v54 = vsub.f32 %v13816_v32, %v7679_v62  ;;  %v7770_v48 = vadd.f32 %v7733_v26, %v7732_v2 }
 0xd49   : > { %v7734_v40 = vmul.f32 %v13971_v7, %v13971_v7  ;;  %v7735_v6 = vmul.f32 %v13974_v54, %v13974_v54  ;;  %7771 = vadd.xlane.f32.xlu0 %v7770_v48 }
 0xd4b   : > { %v7773_v45 = vadd.f32 %v7735_v6, %v7734_v40 }
 0xd4d   : > { %7774 = vadd.xlane.f32.xlu1 %v7773_v45 }
 0xd9c   : > { %v7650_v30 = vpop.xlane.xlu0 %7649 }
 0xd9d   : > { %v7680_v57 = vmul.f32 0.00390625, %v7650_v30 }
 0xd9f   : > { %v13981_v41 = vsub.f32 %v13824_v58, %v7680_v57  ;;  %v13984_v10 = vsub.f32 %v13827_v35, %v7680_v57 }
 0xda0   : > { %v7653_v32 = vpop.xlane.xlu1 %7652 }
 0xda1   : > { %v7736_v33 = vmul.f32 %v13981_v41, %v13981_v41  ;;  %v7737_v36 = vmul.f32 %v13984_v10, %v13984_v10  ;;  %v7681_v39 = vmul.f32 0.00390625, %v7653_v32 }
 0xda3   : > { %v13991_v8 = vsub.f32 %v13834_v55, %v7681_v39  ;;  %v13994_v14 = vsub.f32 %v13837_v4, %v7681_v39  ;;  %v7776_v60 = vadd.f32 %v7737_v36, %v7736_v33 }
 0xda4   : > { %v7656_v58 = vpop.xlane.xlu0 %7655 }
 0xda5   : > { %v7738_v35 = vmul.f32 %v13991_v8, %v13991_v8  ;;  %v7739_v13 = vmul.f32 %v13994_v14, %v13994_v14  ;;  %v7682_v51 = vmul.f32 0.00390625, %v7656_v58  ;;  %7777 = vadd.xlane.f32.xlu0 %v7776_v60 }
 0xda7   : > { %v14001_v52 = vsub.f32 %v13844_v11, %v7682_v51  ;;  %v14004_v0 = vsub.f32 %v13847_v61, %v7682_v51  ;;  %v7779_v55 = vadd.f32 %v7739_v13, %v7738_v35 }
 0xda8   : > { %v7659_v1 = vpop.xlane.xlu1 %7658 }
 0xda9   : > { %v7740_v4 = vmul.f32 %v14001_v52, %v14001_v52  ;;  %v7741_v34 = vmul.f32 %v14004_v0, %v14004_v0  ;;  %v7683_v44 = vmul.f32 0.00390625, %v7659_v1  ;;  %7780 = vadd.xlane.f32.xlu1 %v7779_v55 }
 0xdab   : > { %v14011_v43 = vsub.f32 %v13854_v50, %v7683_v44  ;;  %v14014_v3 = vsub.f32 %v13857_v28, %v7683_v44  ;;  %v7782_v11 = vadd.f32 %v7741_v34, %v7740_v4 }
 0xdac   : > { %v7662_v17 = vpop.xlane.xlu0 %7661 }
 0xdad   : > { %v7742_v61 = vmul.f32 %v14011_v43, %v14011_v43  ;;  %v7743_v29 = vmul.f32 %v14014_v3, %v14014_v3  ;;  %v7684_v15 = vmul.f32 0.00390625, %v7662_v17  ;;  %7783 = vadd.xlane.f32.xlu0 %v7782_v11 }
 0xdaf   : > { %v14021_v2 = vsub.f32 %v13864_v38, %v7684_v15  ;;  %v14024_v26 = vsub.f32 %v13867_v25, %v7684_v15  ;;  %v7785_v50 = vadd.f32 %v7743_v29, %v7742_v61 }
 0xdb0   : > { %v7665_v62 = vpop.xlane.xlu1 %7664 }
 0xdb1   : > { %v7744_v28 = vmul.f32 %v14021_v2, %v14021_v2  ;;  %v7745_v48 = vmul.f32 %v14024_v26, %v14024_v26  ;;  %v7685_v40 = vmul.f32 0.00390625, %v7665_v62  ;;  %7786 = vadd.xlane.f32.xlu1 %v7785_v50  ;;  %v7880_v50 = vld [vmem:[%s14520_s3] sm:$0x3] }
 0xdb2   : > { %v7924_v62 = vld [vmem:[%s14521_s14] sm:$0x3] }
 0xdb3   : > { %v14031_v6 = vsub.f32 %v13874_v22, %v7685_v40  ;;  %v14034_v45 = vsub.f32 %v13877_v27, %v7685_v40  ;;  %v7788_v38 = vadd.f32 %v7745_v48, %v7744_v28  ;;  %v14067_v40 = vrot.slane %v7880_v50, %v14486_v37 }
 0xdb4   : > { %v7668_v30 = vpop.xlane.xlu0 %7667 }
 0xdb5   : > { %v7746_v25 = vmul.f32 %v14031_v6, %v14031_v6  ;;  %v7747_v57 = vmul.f32 %v14034_v45, %v14034_v45  ;;  %v7686_v32 = vmul.f32 0.00390625, %v7668_v30  ;;  %7789 = vadd.xlane.f32.xlu0 %v7788_v38  ;;  %v14070_v38 = vrot.slane %v7880_v50, %v14487_v47 }
 0xdb7   : > { %v14041_v33 = vsub.f32 %v13884_v63, %v7686_v32  ;;  %v14044_v36 = vsub.f32 %v13887_v9, %v7686_v32  ;;  %v7791_v22 = vadd.f32 %v7747_v57, %v7746_v25  ;;  %v14073_v57 = vrot.slane %v7924_v62, %v14486_v37 }
 0xdb8   : > { %v7671_v39 = vpop.xlane.xlu1 %7670  ;;  %v14076_v32 = vrot.slane %v7924_v62, %v14487_v47 }
 0xdb9   : > { %v7748_v27 = vmul.f32 %v14041_v33, %v14041_v33  ;;  %v7749_v60 = vmul.f32 %v14044_v36, %v14044_v36  ;;  %v7687_v58 = vmul.f32 0.00390625, %v7671_v39  ;;  %7792 = vadd.xlane.f32.xlu1 %v7791_v22 }
 0xdba   : > { %v7754_v35 = vpop.xlane.xlu0 %7753 }
 0xdbb   : > { %v7800_v13 = vmul.f32 0.00390625, %v7754_v35  ;;  %v14051_v51 = vsub.f32 %v13899_v49, %v7687_v58  ;;  %v14054_v63 = vsub.f32 %v13902_v5, %v7687_v58  ;;  %v7794_v9 = vadd.f32 %v7749_v60, %v7748_v27 }
 0xdbd   : > { %v7816_v55 = vadd.f32 1e-12, %v7800_v13  ;;  %v7750_v1 = vmul.f32 %v14051_v51, %v14051_v51  ;;  %v7751_v4 = vmul.f32 %v14054_v63, %v14054_v63  ;;  %7795 = vadd.xlane.f32.xlu0 %v7794_v9 }
 0xdbe   : > { %v7757_v34 = vpop.xlane.xlu1 %7756 }
 0xdbf   : > { %10781 = vrsqrt.f32 %v7816_v55  ;;  %v7801_v44 = vmul.f32 0.00390625, %v7757_v34  ;;  %v7797_v11 = vadd.f32 %v7751_v4, %v7750_v1 }
 0xdc1   : > { %v7817_v17 = vadd.f32 1e-12, %v7801_v44  ;;  %7798 = vadd.xlane.f32.xlu1 %v7797_v11 }
 0xdc2   : > { %v7760_v61 = vpop.xlane.xlu0 %7759 }
 0xdc3   : > { %10783 = vrsqrt.f32 %v7817_v17  ;;  %v7802_v49 = vmul.f32 0.00390625, %v7760_v61 }
 0xdc5   : > { %v7818_v5 = vadd.f32 1e-12, %v7802_v49 }
 0xdc6   : > { %v7763_v29 = vpop.xlane.xlu1 %7762 }
 0xdc7   : > { %10785 = vrsqrt.f32 %v7818_v5  ;;  %v7803_v15 = vmul.f32 0.00390625, %v7763_v29 }
 0xdc9   : > { %v7819_v28 = vadd.f32 1e-12, %v7803_v15 }
 0xdca   : > { %v7766_v48 = vpop.xlane.xlu0 %7765 }
 0xdcb   : > { %10787 = vrsqrt.f32 %v7819_v28  ;;  %v7804_v30 = vmul.f32 0.00390625, %v7766_v48 }
 0xdcc   : > { %v10782_v25 = vpop.eup %10781 }
 0xdcd   : > { %v7848_v22 = vmul.f32 %v10782_v25, %v13893_v16  ;;  %v7849_v39 = vmul.f32 %v10782_v25, %v13896_v42  ;;  %v7820_v27 = vadd.f32 1e-12, %v7804_v30 }
 0xdce   : > { %v7769_v60 = vpop.xlane.xlu1 %7768 }
 0xdcf   : > { %v7892_v58 = vmul.f32 %v14067_v40, %v7848_v22  ;;  %v7893_v35 = vmul.f32 %v14070_v38, %v7849_v39  ;;  %10789 = vrsqrt.f32 %v7820_v27  ;;  %v7805_v13 = vmul.f32 0.00390625, %v7769_v60 }
 0xdd0   : > { %v10784_v9 = vpop.eup %10783 }
 0xdd1   : > { %v7936_v37 = vadd.f32 %v14073_v57, %v7892_v58  ;;  %v7937_v55 = vadd.f32 %v14076_v32, %v7893_v35  ;;  %v7850_v47 = vmul.f32 %v10784_v9, %v13911_v31  ;;  %v7851_v16 = vmul.f32 %v10784_v9, %v13914_v18 }
 0xdd2   : > { %v7821_v1 = vadd.f32 1e-12, %v7805_v13  ;;  %v7772_v42 = vpop.xlane.xlu0 %7771 }
 0xdd3   : > { %v9027_v4 = vpack.c.bf16 %v7937_v55, %v7936_v37  ;;  %v7894_v34 = vmul.f32 %v14067_v40, %v7850_v47  ;;  %v7895_v44 = vmul.f32 %v14070_v38, %v7851_v16  ;;  %v7806_v11 = vmul.f32 0.00390625, %v7772_v42 }
 0xdd4   : > { %v10786_v17 = vpop.eup %10785  ;;  %10791 = vrsqrt.f32 %v7821_v1 }
 0xdd5   : > { %8064 = vst [vmem:[%s11566_s10] sm:$0xff] %v9027_v4  ;;  %v7938_v61 = vadd.f32 %v14073_v57, %v7894_v34  ;;  %v7939_v49 = vadd.f32 %v14076_v32, %v7895_v44  ;;  %v7852_v31 = vmul.f32 %v10786_v17, %v13921_v24  ;;  %v7853_v18 = vmul.f32 %v10786_v17, %v13924_v59 }
 0xdd6   : > { %v7822_v5 = vadd.f32 1e-12, %v7806_v11  ;;  %v7775_v29 = vpop.xlane.xlu1 %7774 }
 0xdd7   : > { %v9028_v15 = vpack.c.bf16 %v7939_v49, %v7938_v61  ;;  %v7896_v50 = vmul.f32 %v14067_v40, %v7852_v31  ;;  %v7897_v62 = vmul.f32 %v14070_v38, %v7853_v18  ;;  %v7807_v28 = vmul.f32 0.00390625, %v7775_v29 }
 0xdd8   : > { %v10788_v48 = vpop.eup %10787  ;;  %10793 = vrsqrt.f32 %v7822_v5 }
 0xdd9   : > { %8065 = vst [vmem:[%s11566_s10 + $0x8] sm:$0xff] %v9028_v15  ;;  %v7940_v30 = vadd.f32 %v14073_v57, %v7896_v50  ;;  %v7941_v25 = vadd.f32 %v14076_v32, %v7897_v62  ;;  %v7854_v24 = vmul.f32 %v10788_v48, %v13931_v56  ;;  %v7855_v59 = vmul.f32 %v10788_v48, %v13934_v12 }
 0xdda   : > { %v7823_v22 = vadd.f32 1e-12, %v7807_v28 }
 0xddb   : > { %v9029_v39 = vpack.c.bf16 %v7941_v25, %v7940_v30  ;;  %v7898_v27 = vmul.f32 %v14067_v40, %v7854_v24  ;;  %v7899_v60 = vmul.f32 %v14070_v38, %v7855_v59 }
 0xddc   : > { %v10790_v58 = vpop.eup %10789  ;;  %10795 = vrsqrt.f32 %v7823_v22 }
 0xddd   : > { %8066 = vst [vmem:[%s11566_s10 + $0x10] sm:$0xff] %v9029_v39  ;;  %v7942_v35 = vadd.f32 %v14073_v57, %v7898_v27  ;;  %v7943_v13 = vadd.f32 %v14076_v32, %v7899_v60  ;;  %v7856_v9 = vmul.f32 %v10790_v58, %v13941_v46  ;;  %v7857_v56 = vmul.f32 %v10790_v58, %v13944_v20 }
 0xddf   : > { %v9030_v12 = vpack.c.bf16 %v7943_v13, %v7942_v35  ;;  %v7900_v37 = vmul.f32 %v14067_v40, %v7856_v9  ;;  %v7901_v55 = vmul.f32 %v14070_v38, %v7857_v56 }
 0xde1   : > { %v10792_v47 = vpop.eup %10791  ;;  %8067 = vst [vmem:[%s11566_s10 + $0x18] sm:$0xff] %v9030_v12  ;;  %v7944_v16 = vadd.f32 %v14073_v57, %v7900_v37  ;;  %v7945_v1 = vadd.f32 %v14076_v32, %v7901_v55 }
 0xde2   : > { %v7858_v42 = vmul.f32 %v10792_v47, %v13951_v53  ;;  %v7859_v4 = vmul.f32 %v10792_v47, %v13954_v21 }
 0xde3   : > { %v9031_v34 = vpack.c.bf16 %v7945_v1, %v7944_v16 }
 0xde4   : > { %v7902_v46 = vmul.f32 %v14067_v40, %v7858_v42  ;;  %v7903_v20 = vmul.f32 %v14070_v38, %v7859_v4 }
 0xde5   : > { %v10794_v44 = vpop.eup %10793  ;;  %8068 = vst [vmem:[%s11566_s10 + $0x20] sm:$0xff] %v9031_v34 }
 0xde6   : > { %v7946_v11 = vadd.f32 %v14073_v57, %v7902_v46  ;;  %v7947_v17 = vadd.f32 %v14076_v32, %v7903_v20  ;;  %v7860_v61 = vmul.f32 %v10794_v44, %v13961_v19  ;;  %v7861_v49 = vmul.f32 %v10794_v44, %v13964_v23 }
 0xde8   : > { %v9032_v31 = vpack.c.bf16 %v7947_v17, %v7946_v11  ;;  %v7904_v53 = vmul.f32 %v14067_v40, %v7860_v61  ;;  %v7905_v21 = vmul.f32 %v14070_v38, %v7861_v49 }
 0xde9   : > { %v10796_v18 = vpop.eup %10795 }
 0xdea   : > { %8069 = vst [vmem:[%s11566_s10 + $0x28] sm:$0xff] %v9032_v31  ;;  %v7948_v5 = vadd.f32 %v14073_v57, %v7904_v53  ;;  %v7949_v29 = vadd.f32 %v14076_v32, %v7905_v21  ;;  %v7862_v15 = vmul.f32 %v10796_v18, %v13971_v7  ;;  %v7863_v50 = vmul.f32 %v10796_v18, %v13974_v54 }
 0xdec   : > { %v9033_v62 = vpack.c.bf16 %v7949_v29, %v7948_v5  ;;  %v7906_v19 = vmul.f32 %v14067_v40, %v7862_v15  ;;  %v7907_v23 = vmul.f32 %v14070_v38, %v7863_v50 }
 0xdee   : > { %8070 = vst [vmem:[%s11566_s10 + $0x30] sm:$0xff] %v9033_v62  ;;  %v7950_v28 = vadd.f32 %v14073_v57, %v7906_v19  ;;  %v7951_v48 = vadd.f32 %v14076_v32, %v7907_v23 }
 0xdf0   : > { %v9034_v30 = vpack.c.bf16 %v7951_v48, %v7950_v28 }
 0xdf2   : > { %8071 = vst [vmem:[%s11566_s10 + $0x38] sm:$0xff] %v9034_v30 }
 0xe2e   : > { %v7778_v25 = vpop.xlane.xlu0 %7777 }
 0xe2f   : > { %v7808_v24 = vmul.f32 0.00390625, %v7778_v25 }
 0xe31   : > { %v7824_v59 = vadd.f32 1e-12, %v7808_v24 }
 0xe32   : > { %v7781_v22 = vpop.xlane.xlu1 %7780 }
 0xe33   : > { %10797 = vrsqrt.f32 %v7824_v59  ;;  %v7809_v7 = vmul.f32 0.00390625, %v7781_v22 }
 0xe35   : > { %v7825_v39 = vadd.f32 1e-12, %v7809_v7 }
 0xe36   : > { %v7784_v54 = vpop.xlane.xlu0 %7783 }
 0xe37   : > { %10799 = vrsqrt.f32 %v7825_v39  ;;  %v7810_v27 = vmul.f32 0.00390625, %v7784_v54 }
 0xe39   : > { %v7826_v60 = vadd.f32 1e-12, %v7810_v27 }
 0xe3a   : > { %v7787_v58 = vpop.xlane.xlu1 %7786 }
 0xe3b   : > { %10801 = vrsqrt.f32 %v7826_v60  ;;  %v7811_v35 = vmul.f32 0.00390625, %v7787_v58 }
 0xe3d   : > { %v7827_v13 = vadd.f32 1e-12, %v7811_v35 }
 0xe3e   : > { %v7790_v9 = vpop.xlane.xlu0 %7789 }
 0xe3f   : > { %10803 = vrsqrt.f32 %v7827_v13  ;;  %v7812_v56 = vmul.f32 0.00390625, %v7790_v9 }
 0xe40   : > { %v10798_v12 = vpop.eup %10797 }
 0xe41   : > { %v7864_v37 = vmul.f32 %v10798_v12, %v13981_v41  ;;  %v7865_v55 = vmul.f32 %v10798_v12, %v13984_v10  ;;  %v7828_v47 = vadd.f32 1e-12, %v7812_v56 }
 0xe42   : > { %v7793_v16 = vpop.xlane.xlu1 %7792 }
 0xe43   : > { %v7908_v1 = vmul.f32 %v14067_v40, %v7864_v37  ;;  %v7909_v42 = vmul.f32 %v14070_v38, %v7865_v55  ;;  %10805 = vrsqrt.f32 %v7828_v47  ;;  %v7813_v4 = vmul.f32 0.00390625, %v7793_v16 }
 0xe44   : > { %v10800_v34 = vpop.eup %10799 }
 0xe45   : > { %v7952_v46 = vadd.f32 %v14073_v57, %v7908_v1  ;;  %v7953_v20 = vadd.f32 %v14076_v32, %v7909_v42  ;;  %v7866_v44 = vmul.f32 %v10800_v34, %v13991_v8  ;;  %v7867_v41 = vmul.f32 %v10800_v34, %v13994_v14 }
 0xe46   : > { %v7829_v11 = vadd.f32 1e-12, %v7813_v4  ;;  %v7796_v10 = vpop.xlane.xlu0 %7795 }
 0xe47   : > { %v9035_v17 = vpack.c.bf16 %v7953_v20, %v7952_v46  ;;  %v7910_v61 = vmul.f32 %v14067_v40, %v7866_v44  ;;  %v7911_v49 = vmul.f32 %v14070_v38, %v7867_v41  ;;  %v7814_v31 = vmul.f32 0.00390625, %v7796_v10 }
 0xe48   : > { %v10802_v53 = vpop.eup %10801  ;;  %10807 = vrsqrt.f32 %v7829_v11 }
 0xe49   : > { %8072 = vst [vmem:[%s11566_s10 + $0x40] sm:$0xff] %v9035_v17  ;;  %v7954_v21 = vadd.f32 %v14073_v57, %v7910_v61  ;;  %v7955_v18 = vadd.f32 %v14076_v32, %v7911_v49  ;;  %v7868_v8 = vmul.f32 %v10802_v53, %v14001_v52  ;;  %v7869_v14 = vmul.f32 %v10802_v53, %v14004_v0 }
 0xe4a   : > { %v7830_v5 = vadd.f32 1e-12, %v7814_v31  ;;  %v7799_v29 = vpop.xlane.xlu1 %7798 }
 0xe4b   : > { %v9036_v15 = vpack.c.bf16 %v7955_v18, %v7954_v21  ;;  %v7912_v50 = vmul.f32 %v14067_v40, %v7868_v8  ;;  %v7913_v62 = vmul.f32 %v14070_v38, %v7869_v14  ;;  %v7815_v19 = vmul.f32 0.00390625, %v7799_v29 }
 0xe4c   : > { %v10804_v23 = vpop.eup %10803  ;;  %10809 = vrsqrt.f32 %v7830_v5 }
 0xe4d   : > { %8073 = vst [vmem:[%s11566_s10 + $0x48] sm:$0xff] %v9036_v15  ;;  %v7956_v28 = vadd.f32 %v14073_v57, %v7912_v50  ;;  %v7957_v48 = vadd.f32 %v14076_v32, %v7913_v62  ;;  %v7870_v52 = vmul.f32 %v10804_v23, %v14011_v43  ;;  %v7871_v0 = vmul.f32 %v10804_v23, %v14014_v3 }
 0xe4e   : > { %v7831_v30 = vadd.f32 1e-12, %v7815_v19 }
 0xe4f   : > { %v9037_v25 = vpack.c.bf16 %v7957_v48, %v7956_v28  ;;  %v7914_v24 = vmul.f32 %v14067_v40, %v7870_v52  ;;  %v7915_v59 = vmul.f32 %v14070_v38, %v7871_v0 }
 0xe50   : > { %v10806_v22 = vpop.eup %10805  ;;  %10811 = vrsqrt.f32 %v7831_v30 }
 0xe51   : > { %8074 = vst [vmem:[%s11566_s10 + $0x50] sm:$0xff] %v9037_v25  ;;  %v7958_v7 = vadd.f32 %v14073_v57, %v7914_v24  ;;  %v7959_v39 = vadd.f32 %v14076_v32, %v7915_v59  ;;  %v7872_v54 = vmul.f32 %v10806_v22, %v14021_v2  ;;  %v7873_v43 = vmul.f32 %v10806_v22, %v14024_v26 }
 0xe53   : > { %v9038_v3 = vpack.c.bf16 %v7959_v39, %v7958_v7  ;;  %v7916_v27 = vmul.f32 %v14067_v40, %v7872_v54  ;;  %v7917_v60 = vmul.f32 %v14070_v38, %v7873_v43 }
 0xe55   : > { %v10808_v58 = vpop.eup %10807  ;;  %8075 = vst [vmem:[%s11566_s10 + $0x58] sm:$0xff] %v9038_v3  ;;  %v7960_v35 = vadd.f32 %v14073_v57, %v7916_v27  ;;  %v7961_v13 = vadd.f32 %v14076_v32, %v7917_v60 }
 0xe56   : > { %v7874_v9 = vmul.f32 %v10808_v58, %v14031_v6  ;;  %v7875_v56 = vmul.f32 %v10808_v58, %v14034_v45 }
 0xe57   : > { %v9039_v2 = vpack.c.bf16 %v7961_v13, %v7960_v35 }
 0xe58   : > { %v7918_v26 = vmul.f32 %v14067_v40, %v7874_v9  ;;  %v7919_v12 = vmul.f32 %v14070_v38, %v7875_v56 }
 0xe59   : > { %v10810_v37 = vpop.eup %10809  ;;  %8076 = vst [vmem:[%s11566_s10 + $0x60] sm:$0xff] %v9039_v2 }
 0xe5a   : > { %v7962_v55 = vadd.f32 %v14073_v57, %v7918_v26  ;;  %v7963_v47 = vadd.f32 %v14076_v32, %v7919_v12  ;;  %v7876_v16 = vmul.f32 %v10810_v37, %v14041_v33  ;;  %v7877_v1 = vmul.f32 %v10810_v37, %v14044_v36 }
 0xe5c   : > { %v9040_v6 = vpack.c.bf16 %v7963_v47, %v7962_v55  ;;  %v7920_v45 = vmul.f32 %v14067_v40, %v7876_v16  ;;  %v7921_v42 = vmul.f32 %v14070_v38, %v7877_v1 }
 0xe5d   : > { %v10812_v4 = vpop.eup %10811 }
 0xe5e   : > { %8077 = vst [vmem:[%s11566_s10 + $0x68] sm:$0xff] %v9040_v6  ;;  %v7964_v34 = vadd.f32 %v14073_v57, %v7920_v45  ;;  %v7965_v46 = vadd.f32 %v14076_v32, %v7921_v42  ;;  %v7878_v33 = vmul.f32 %v10812_v4, %v14051_v51  ;;  %v7879_v36 = vmul.f32 %v10812_v4, %v14054_v63 }
 0xe60   : > { %v9041_v20 = vpack.c.bf16 %v7965_v46, %v7964_v34  ;;  %v7922_v44 = vmul.f32 %v14067_v40, %v7878_v33  ;;  %v7923_v41 = vmul.f32 %v14070_v38, %v7879_v36 }
 0xe62   : > { %8078 = vst [vmem:[%s11566_s10 + $0x70] sm:$0xff] %v9041_v20  ;;  %v7966_v11 = vadd.f32 %v14073_v57, %v7922_v44  ;;  %v7967_v10 = vadd.f32 %v14076_v32, %v7923_v41 }
 0xe64   : > { %v9042_v51 = vpack.c.bf16 %v7967_v10, %v7966_v11 }
 0xe66   : > { %8079 = vst [vmem:[%s11566_s10 + $0x78] sm:$0xff] %v9042_v51 }
 0xe67   : > { %11054 = shalt.err (!%p11051_p10)
}
 0xe68   : > { %s11055_s24 = scalar_lea.hbm %s14197_s29, 2048  ;;  %s11059_s9 = scalar_lea.hbm %s14524_s16, 8192 }
 0xe69   : > { %p11056_p13 = scmp.ne.s32.totalorder %s14197_s29, %s11055_s24  ;;  %p11060_p6 = scmp.lt.s32.totalorder %s14197_s29, %s14524_s16 }
 0xe6a   : > { %p11061_p4 = scmp.lt.s32.totalorder %s11059_s9, %s11055_s24 }
 0xe6b   : > { %p11057_p11 = pnand %p11056_p13, %p11480_p12 }
 0xe6c   : > { %p11062_p1 = por %p11061_p4, %p11060_p6 }
 0xe6d   : > { %p11058_p7 = pneg %p11057_p11 }
 0xe6f   : > { %p11063_p5 = pnand %p11062_p1, %p11058_p7 }
 0xe71   : > { %11066 = shalt.err (!%p11063_p5)
}
 0xe72   : > { %s11197_s8 = smov 128   ;;  %s11198_s14 = smov 8  }
 0xe73   : > { %9754 = dma.vmem_to_hbm [thread:$0]  (%p11480_p12), %s14192_s6, 2048, %s14197_s29, %s14202_s20, %s11197_s8, %s11197_s8, %s11198_s14  }
 0xe74 PF: > { %s14525_s21 = sld [smem:[#allocation28_spill]]  ;;  %p9799_p3 = scmp.ge.s32.totalorder %s11181_s2, 2 }
 0xe76   : > { %p9783_p8 = pnand %p9799_p3, %p11490_p0 }
 0xe78   : > { %p9784_p2 = pneg %p9783_p8 }
 0xe7a   : > { %s8112_s12 = sand.u32 1, %s14525_s21  }
 0xe7b   : > { %s8113_s1 = scalar_lea.sflag [#allocation8], %s8112_s12 }
 0xe7c   : > { %11136 = dma.done.wait (%p9784_p2), %s8113_s1, 2048  }
 0xe7d   : > { %11138 = vsyncadd (%p9784_p2), %s8113_s1, 4294965248  ;;  %s40_s2 = sadd.s32 1, %s11181_s2   ;;  %s14527_s19 = sld [smem:[#allocation29_spill]] }
 0xe7e   : > { %p37_p9 = scmp.ge.s32.totalorder %s40_s2, 6   ;;  %s14528_s29 = sld [smem:[#allocation36_spill]] }
 0xe7f   : > { %s14529_s4 = sld [smem:[#allocation30_spill]]  ;;  %s14534_s27 = smov %s11145_s28 }
 0xe80   : > { %s14530_s6 = sld [smem:[#allocation35_spill]]  ;;  %s14536_s30 = smov %s11157_s0 }
 0xe81   : > { %s14531_s1 = sld [smem:[#allocation32_spill]]  ;;  %s14539_s20 = smov %s11177_s22 }
 0xe82   : > { %s14532_s21 = sld [smem:[#allocation33_spill]] }
 0xe83   : > { %s14533_s25 = sld [smem:[#allocation34_spill]]  ;;  %s14535_s28 = smov %s14527_s19 }
 0xe85   : > { %s14537_s0 = smov %s14529_s4  ;;  %39 = sbr.rel (!%p37_p9) target bundleno = 32 (0x20), region = 186 }
 0xe86   : > { %s14538_s19 = smov %s14530_s6 }
 0xe89   : > { %s14540_s22 = smov %s14533_s25 }
 0xe8a   :  { %8118 = vsyncpa [#allocation7], 1 }
 0xe8b   :  { %8120 = vsyncpa [#allocation7 + $0x1], 1 }
 0xe8c   :  { %8121 = vsyncpa [#allocation10], 1 }
 0xe8d   :  { %8123 = vsyncpa [#allocation10 + $0x1], 1 }
 0xe8e   :  { %8124 = vsyncpa [#allocation13], 1 }
 0xe8f   :  { %8125 = vsyncpa [#allocation16], 1 }
 0xe90   :  { %8126 = vsyncpa [#allocation19], 1 }
 0xe91   :  { %8127 = vsyncpa [#allocation8], 1 }
 0xe92   :  { %8129 = vsyncpa [#allocation8 + $0x1], 1 }

</bundles_post_ra>
